<compile_context>
chip_gen: v6e
topology: v6e:2x2x1
jax: 0.10.0
libtpu: 0.0.40
codegen_flags: <defaults>
</compile_context>

<pallas_src>
import math

import numpy as np

import jax
import jax.numpy as jnp
from jax.experimental import pallas as pl
from jax.experimental.pallas import tpu as pltpu


_CP = 128  # lane padding width (vreg / MXU lane count)


# ----------------------------------------------------------------------------
# Host-side packing (runs once, outside the jitted forward)
# ----------------------------------------------------------------------------
def _padvec(v):
    out = np.zeros((1, _CP), np.float32)
    v = np.asarray(v, np.float32).reshape(-1)
    out[0, : v.shape[0]] = v
    return jnp.asarray(out)


def _pack_conv(cp, H, W, stride):
    """ConvLayer (conv3x3 + folded eval-BN + SiLU) -> compact-im2col operands."""
    w = np.asarray(cp["w"], np.float32)            # (cout, cin, 3, 3)
    cout, cin = w.shape[0], w.shape[1]
    nblk = -(-(9 * cin) // _CP)
    wp = np.zeros((nblk * _CP, _CP), np.float32)   # rows = tap*cin + c
    msk = np.zeros((9, H * W, 1), np.float32)      # zero-pad validity per tap
    for t in range(9):
        di, dj = t // 3, t % 3
        wp[t * cin:(t + 1) * cin, :cout] = w[:, :, di, dj].T
        for hh in range(H):
            if not (0 <= hh + di - 1 < H):
                continue
            for ww in range(W):
                if 0 <= ww + dj - 1 < W:
                    msk[t, hh * W + ww, 0] = 1.0
    inv_std = 1.0 / np.sqrt(np.asarray(cp["v"], np.float32) + 1e-5)
    scale = np.asarray(cp["g"], np.float32) * inv_std
    bias = np.asarray(cp["b"], np.float32) - np.asarray(cp["m"], np.float32) * scale
    ops = [jnp.asarray(wp, jnp.bfloat16), _padvec(scale), _padvec(bias),
           jnp.asarray(msk)]
    if stride == 2:
        Ho, Wo = (H - 1) // 2 + 1, (W - 1) // 2 + 1
        sub = np.zeros((Ho * Wo, H * W), np.float32)       # per-image, O(1) in B
        for oh in range(Ho):
            for ow in range(Wo):
                sub[oh * Wo + ow, (2 * oh) * W + 2 * ow] = 1.0
        ops.append(jnp.asarray(sub, jnp.bfloat16))
    else:
        Ho, Wo = H, W
    return ops, (Ho, Wo)


def _pack_tf(tp, D):
    """TransformerBlock: compact QKV lanes + padded Wo with rows at v's offset."""
    nblk = -(-(3 * D) // _CP)
    wqkv = np.zeros((_CP, nblk * _CP), np.float32)
    wqkv[:D, : 3 * D] = np.asarray(tp["wqkv"], np.float32)   # q|k|v contiguous
    bqkv = np.zeros((1, nblk * _CP), np.float32)
    bqkv[0, : 3 * D] = np.asarray(tp["bqkv"], np.float32)
    voff = (2 * D) % _CP                                     # v's lane offset
    wo = np.zeros((_CP, _CP), np.float32)
    wo[voff:voff + D, :D] = np.asarray(tp["wo"], np.float32)
    hid = np.asarray(tp["w1"], np.float32).shape[1]
    w1 = np.zeros((_CP, _CP), np.float32)
    w1[:D, :hid] = np.asarray(tp["w1"], np.float32)
    w2 = np.zeros((_CP, _CP), np.float32)
    w2[:hid, :D] = np.asarray(tp["w2"], np.float32)
    return [
        _padvec(tp["ln1g"]), _padvec(tp["ln1b"]),
        jnp.asarray(wqkv, jnp.bfloat16), jnp.asarray(bqkv),
        jnp.asarray(wo, jnp.bfloat16), _padvec(tp["bo"]),
        _padvec(tp["ln2g"]), _padvec(tp["ln2b"]),
        jnp.asarray(w1, jnp.bfloat16), _padvec(tp["b1"]),
        jnp.asarray(w2, jnp.bfloat16), _padvec(tp["b2"]),
    ]


def pack_params(params, H0=16, W0=16):
    """Flat operand list, consumed in order by the kernel (batch-independent)."""
    c1, (h1, w1) = _pack_conv(params["conv1"], H0, W0, stride=2)
    c2, (h2, w2) = _pack_conv(params["conv2"], h1, w1, stride=1)
    t1 = _pack_tf(params["tf1"], D=32)
    c3, (h3, w3) = _pack_conv(params["conv3"], h2, w2, stride=2)
    t2 = _pack_tf(params["tf2"], D=64)
    fw = np.asarray(params["fc_w"], np.float32)
    fcw = np.zeros((_CP, _CP), np.float32)
    fcw[: fw.shape[0], : fw.shape[1]] = fw
    return c1 + c2 + t1 + c3 + t2 + [jnp.asarray(fcw, jnp.bfloat16),
                                     _padvec(params["fc_b"])]


# ----------------------------------------------------------------------------
# Kernel building blocks
# ----------------------------------------------------------------------------
def _conv_bn_silu(x, cin, H, W, stride, w_ref, sc_ref, bi_ref, m_ref, sub_ref):
    """3x3 conv (pad 1) + folded BN + SiLU via compact im2col + one tap matmul."""
    Mi = H * W
    nblk = -(-(9 * cin) // _CP)
    blocks = [None] * nblk
    for t in range(9):                               # unrolled; XLU/VPU work only
        di, dj = t // 3, t % 3
        off = (di - 1) * W + (dj - 1)
        sh = x if off == 0 else pltpu.roll(x, (-off) % Mi, axis=0)
        sh = sh * m_ref[t]                           # zero the out-of-image rows
        lane_off = (t * cin) % _CP                   # tap placement along lanes
        if lane_off:
            sh = pltpu.roll(sh, lane_off, axis=1)
        b = (t * cin) // _CP
        blocks[b] = sh if blocks[b] is None else blocks[b] + sh
    col = blocks[0] if nblk == 1 else jnp.concatenate(blocks, axis=1)
    col = col.astype(jnp.bfloat16)                   # (Mi, nblk*128)
    if stride == 2:                                  # one tiny 0/1 subsample matmul
        col = jnp.dot(sub_ref[...], col,
                      preferred_element_type=jnp.float32).astype(jnp.bfloat16)
    y = jnp.dot(col, w_ref[...], preferred_element_type=jnp.float32)
    y = y * sc_ref[...] + bi_ref[...]                # folded BatchNorm (eval)
    return y * jax.nn.sigmoid(y)                     # SiLU in f32


def _transformer(x, n, D, nh, refs):
    """Pre-LN MHA + MLP block on one image's (n, 128) token slab (lanes [0,D) real)."""
    (ln1g, ln1b, wqkv, bqkv, wo, bo, ln2g, ln2b, w1, b1, w2, b2) = refs
    dh = D // nh
    lane = jax.lax.broadcasted_iota(jnp.int32, (n, _CP), 1)
    real = lane < D

    def layer_norm(v, g_ref, b_ref):
        mu = jnp.sum(v, axis=-1, keepdims=True) * (1.0 / D)
        c = jnp.where(real, v - mu, 0.0)             # keep padded lanes out of var
        var = jnp.sum(c * c, axis=-1, keepdims=True) * (1.0 / D)
        return c * jax.lax.rsqrt(var + 1e-5) * g_ref[...] + b_ref[...]

    # ---- multi-head self attention + residual ------------------------------
    xn = layer_norm(x, ln1g, ln1b).astype(jnp.bfloat16)
    qkv = jnp.dot(xn, wqkv[...], preferred_element_type=jnp.float32) + bqkv[...]
    qb = qkv[:, 0:_CP]                               # q at lanes [0, D)
    kb = pltpu.roll(qb, _CP - D, axis=1)             # k aligned to lanes [0, D)
    vblk = (2 * D) // _CP
    voff = (2 * D) % _CP
    vb = qkv[:, vblk * _CP:(vblk + 1) * _CP]         # v at lanes [voff, voff+D)
    sm_scale = 1.0 / math.sqrt(dh)

    o_acc = jnp.zeros((n, _CP), jnp.float32)         # concat-of-heads at v's lanes
    for h in range(nh):
        lo = h * dh
        mqk = (lane >= lo) & (lane < lo + dh)
        q_h = jnp.where(mqk, qb, 0.0).astype(jnp.bfloat16)
        k_h = jnp.where(mqk, kb, 0.0).astype(jnp.bfloat16)
        s = jax.lax.dot_general(q_h, k_h, (((1,), (1,)), ((), ())),
                                preferred_element_type=jnp.float32) * sm_scale
        s = s - jnp.max(s, axis=-1, keepdims=True)
        p = jnp.exp(s)
        p = p * pl.reciprocal(jnp.sum(p, axis=-1, keepdims=True), approx=True)
        mv = (lane >= voff + lo) & (lane < voff + lo + dh)
        v_h = jnp.where(mv, vb, 0.0).astype(jnp.bfloat16)
        o_acc = o_acc + jnp.dot(p.astype(jnp.bfloat16), v_h,
                                preferred_element_type=jnp.float32)
    # single fused output projection for all heads
    x = x + jnp.dot(o_acc.astype(jnp.bfloat16), wo[...],
                    preferred_element_type=jnp.float32) + bo[...]

    # ---- MLP + residual ------------------------------------------------------
    xn2 = layer_norm(x, ln2g, ln2b).astype(jnp.bfloat16)
    hmid = jnp.dot(xn2, w1[...], preferred_element_type=jnp.float32) + b1[...]
    hmid = jnp.maximum(hmid, 0.0).astype(jnp.bfloat16)     # ReLU
    return x + jnp.dot(hmid, w2[...], preferred_element_type=jnp.float32) + b2[...]


def _make_kernel(H0, W0, nh):
    h1, w1 = (H0 - 1) // 2 + 1, (W0 - 1) // 2 + 1    # conv1 output (stride 2)
    h3, w3 = (h1 - 1) // 2 + 1, (w1 - 1) // 2 + 1    # conv3 output (stride 2)
    n1, n2 = h1 * w1, h3 * w3

    def kernel(*refs):
        it = iter(refs[:-1])
        o_ref = refs[-1]

        def take(k):
            return [next(it) for _ in range(k)]

        x = next(it)[0]                              # (H0*W0, 128) f32, one image

        w, sc, bi, m, sub = take(5)
        y = _conv_bn_silu(x, 1, H0, W0, 2, w, sc, bi, m, sub)     # conv1
        w, sc, bi, m = take(4)
        y = _conv_bn_silu(y, 16, h1, w1, 1, w, sc, bi, m, None)   # conv2
        y = _transformer(y, n1, 32, nh, take(12))                 # transformer1
        w, sc, bi, m, sub = take(5)
        y = _conv_bn_silu(y, 32, h1, w1, 2, w, sc, bi, m, sub)    # conv3
        y = _transformer(y, n2, 64, nh, take(12))                 # transformer2

        fcw, fcb = take(2)
        pooled = jnp.sum(y, axis=0, keepdims=True) * (1.0 / n2)   # global avg pool
        pooled = jnp.broadcast_to(pooled, (8, _CP))
        logits = jnp.dot(pooled.astype(jnp.bfloat16), fcw[...],
                         preferred_element_type=jnp.float32) + fcb[...]
        o_ref[0] = logits
        # TODO(synk): nn.Dropout / drop_path layers are identity in eval mode;
        # no RNG mask is applied here.

    return kernel


# ----------------------------------------------------------------------------
# Wrapper: one pallas_call, batch on a parallel grid axis
# ----------------------------------------------------------------------------
def _const_index_map(ndim):
    return lambda b: (0,) * ndim


def mobilevit_forward(x, ops, num_classes=10, nh=4):
    B, cin, H, W = x.shape
    # NCHW -> per-image channels-last token slab, lanes zero-padded to 128.
    x0 = x.transpose(0, 2, 3, 1).reshape(B, H * W, cin)
    x0 = jnp.pad(x0, ((0, 0), (0, 0), (0, _CP - cin))).astype(jnp.float32)

    in_specs = [pl.BlockSpec((1, H * W, _CP), lambda b: (b, 0, 0))]
    for op in ops:                                   # weights: fetched once (const idx)
        in_specs.append(pl.BlockSpec(op.shape, _const_index_map(op.ndim)))

    out = pl.pallas_call(
        _make_kernel(H, W, nh),
        grid=(B,),
        in_specs=in_specs,
        out_specs=pl.BlockSpec((1, 8, _CP), lambda b: (b, 0, 0)),
        out_shape=jax.ShapeDtypeStruct((B, 8, _CP), jnp.float32),
        compiler_params=pltpu.CompilerParams(
            dimension_semantics=("parallel",)),      # splits batch across TCs on v7x
    )(x0, *ops)
    return out[:, 0, :num_classes]


# ----------------------------------------------------------------------------
# Parameter initialization (deterministic, synthetic, PyTorch-shaped)
# ----------------------------------------------------------------------------
def _init_params(key):
    keys = iter(jax.random.split(key, 64))

    def nrm(shape, scale=0.1):
        return scale * jax.random.normal(next(keys), shape, jnp.float32)

    def conv_params(cin, cout):
        return dict(
            w=nrm((cout, cin, 3, 3)),
            g=jnp.ones((cout,), jnp.float32) + nrm((cout,), 0.01),
            b=nrm((cout,), 0.01),
            m=jnp.zeros((cout,), jnp.float32),       # BN running mean (eval)
            v=jnp.ones((cout,), jnp.float32),        # BN running var (eval)
        )

    def tf_params(D, mlp_ratio=2):
        Hd = D * mlp_ratio
        return dict(
            ln1g=jnp.ones((D,), jnp.float32) + nrm((D,), 0.01),
            ln1b=nrm((D,), 0.01),
            wqkv=nrm((D, 3 * D)),
            bqkv=nrm((3 * D,), 0.01),
            wo=nrm((D, D)),
            bo=nrm((D,), 0.01),
            ln2g=jnp.ones((D,), jnp.float32) + nrm((D,), 0.01),
            ln2b=nrm((D,), 0.01),
            w1=nrm((D, Hd)),
            b1=nrm((Hd,), 0.01),
            w2=nrm((Hd, D)),
            b2=nrm((D,), 0.01),
        )

    return dict(
        conv1=conv_params(1, 16),
        conv2=conv_params(16, 32),
        conv3=conv_params(32, 64),
        tf1=tf_params(32),
        tf2=tf_params(64),
        fc_w=nrm((64, 10)),
        fc_b=nrm((10,), 0.01),
    )


if __name__ == "__main__":
    key = jax.random.PRNGKey(0)
    k_in, k_par = jax.random.split(key)

    x = jax.random.normal(k_in, (2, 1, 16, 16), jnp.float32)   # NCHW input
    params = _init_params(k_par)
    ops = pack_params(params, H0=x.shape[2], W0=x.shape[3])

    fwd = jax.jit(mobilevit_forward)
    logits = jax.block_until_ready(fwd(x, ops))

    assert logits.shape == (2, 10), logits.shape
    assert bool(jnp.all(jnp.isfinite(logits)))
    print("KERNEL_OK")
</pallas_src>

<mosaic_0001>
module attributes {stable_mosaic.version = 11 : i64} {
  func.func @kernel(%arg0: i32, %arg1: memref<1x256x128xf32, #tpu.memory_space<vmem>>, %arg2: memref<128x128xbf16, #tpu.memory_space<vmem>>, %arg3: memref<1x128xf32, #tpu.memory_space<vmem>>, %arg4: memref<1x128xf32, #tpu.memory_space<vmem>>, %arg5: memref<9x256x1xf32, #tpu.memory_space<vmem>>, %arg6: memref<64x256xbf16, #tpu.memory_space<vmem>>, %arg7: memref<256x128xbf16, #tpu.memory_space<vmem>>, %arg8: memref<1x128xf32, #tpu.memory_space<vmem>>, %arg9: memref<1x128xf32, #tpu.memory_space<vmem>>, %arg10: memref<9x64x1xf32, #tpu.memory_space<vmem>>, %arg11: memref<1x128xf32, #tpu.memory_space<vmem>>, %arg12: memref<1x128xf32, #tpu.memory_space<vmem>>, %arg13: memref<128x128xbf16, #tpu.memory_space<vmem>>, %arg14: memref<1x128xf32, #tpu.memory_space<vmem>>, %arg15: memref<128x128xbf16, #tpu.memory_space<vmem>>, %arg16: memref<1x128xf32, #tpu.memory_space<vmem>>, %arg17: memref<1x128xf32, #tpu.memory_space<vmem>>, %arg18: memref<1x128xf32, #tpu.memory_space<vmem>>, %arg19: memref<128x128xbf16, #tpu.memory_space<vmem>>, %arg20: memref<1x128xf32, #tpu.memory_space<vmem>>, %arg21: memref<128x128xbf16, #tpu.memory_space<vmem>>, %arg22: memref<1x128xf32, #tpu.memory_space<vmem>>, %arg23: memref<384x128xbf16, #tpu.memory_space<vmem>>, %arg24: memref<1x128xf32, #tpu.memory_space<vmem>>, %arg25: memref<1x128xf32, #tpu.memory_space<vmem>>, %arg26: memref<9x64x1xf32, #tpu.memory_space<vmem>>, %arg27: memref<16x64xbf16, #tpu.memory_space<vmem>>, %arg28: memref<1x128xf32, #tpu.memory_space<vmem>>, %arg29: memref<1x128xf32, #tpu.memory_space<vmem>>, %arg30: memref<128x256xbf16, #tpu.memory_space<vmem>>, %arg31: memref<1x256xf32, #tpu.memory_space<vmem>>, %arg32: memref<128x128xbf16, #tpu.memory_space<vmem>>, %arg33: memref<1x128xf32, #tpu.memory_space<vmem>>, %arg34: memref<1x128xf32, #tpu.memory_space<vmem>>, %arg35: memref<1x128xf32, #tpu.memory_space<vmem>>, %arg36: memref<128x128xbf16, #tpu.memory_space<vmem>>, %arg37: memref<1x128xf32, #tpu.memory_space<vmem>>, %arg38: memref<128x128xbf16, #tpu.memory_space<vmem>>, %arg39: memref<1x128xf32, #tpu.memory_space<vmem>>, %arg40: memref<128x128xbf16, #tpu.memory_space<vmem>>, %arg41: memref<1x128xf32, #tpu.memory_space<vmem>>, %arg42: memref<1x8x128xf32, #tpu.memory_space<vmem>>) attributes {dimension_semantics = [#tpu.dimension_semantics<parallel>], iteration_bounds = array<i64: 2>, scalar_prefetch = 0 : i64, scratch_operands = 0 : i64, tpu.core_type = #tpu.core_type<tc>, window_params = [{transform_indices = @transform_0, window_bounds = array<i64: 1, 256, 128>}, {pipeline_mode = #tpu.pipeline_mode<synchronous>, transform_indices = @transform_1, window_bounds = array<i64: 128, 128>}, {pipeline_mode = #tpu.pipeline_mode<synchronous>, transform_indices = @transform_2, window_bounds = array<i64: 1, 128>}, {pipeline_mode = #tpu.pipeline_mode<synchronous>, transform_indices = @transform_3, window_bounds = array<i64: 1, 128>}, {pipeline_mode = #tpu.pipeline_mode<synchronous>, transform_indices = @transform_4, window_bounds = array<i64: 9, 256, 1>}, {pipeline_mode = #tpu.pipeline_mode<synchronous>, transform_indices = @transform_5, window_bounds = array<i64: 64, 256>}, {pipeline_mode = #tpu.pipeline_mode<synchronous>, transform_indices = @transform_6, window_bounds = array<i64: 256, 128>}, {pipeline_mode = #tpu.pipeline_mode<synchronous>, transform_indices = @transform_7, window_bounds = array<i64: 1, 128>}, {pipeline_mode = #tpu.pipeline_mode<synchronous>, transform_indices = @transform_8, window_bounds = array<i64: 1, 128>}, {pipeline_mode = #tpu.pipeline_mode<synchronous>, transform_indices = @transform_9, window_bounds = array<i64: 9, 64, 1>}, {pipeline_mode = #tpu.pipeline_mode<synchronous>, transform_indices = @transform_10, window_bounds = array<i64: 1, 128>}, {pipeline_mode = #tpu.pipeline_mode<synchronous>, transform_indices = @transform_11, window_bounds = array<i64: 1, 128>}, {pipeline_mode = #tpu.pipeline_mode<synchronous>, transform_indices = @transform_12, window_bounds = array<i64: 128, 128>}, {pipeline_mode = #tpu.pipeline_mode<synchronous>, transform_indices = @transform_13, window_bounds = array<i64: 1, 128>}, {pipeline_mode = #tpu.pipeline_mode<synchronous>, transform_indices = @transform_14, window_bounds = array<i64: 128, 128>}, {pipeline_mode = #tpu.pipeline_mode<synchronous>, transform_indices = @transform_15, window_bounds = array<i64: 1, 128>}, {pipeline_mode = #tpu.pipeline_mode<synchronous>, transform_indices = @transform_16, window_bounds = array<i64: 1, 128>}, {pipeline_mode = #tpu.pipeline_mode<synchronous>, transform_indices = @transform_17, window_bounds = array<i64: 1, 128>}, {pipeline_mode = #tpu.pipeline_mode<synchronous>, transform_indices = @transform_18, window_bounds = array<i64: 128, 128>}, {pipeline_mode = #tpu.pipeline_mode<synchronous>, transform_indices = @transform_19, window_bounds = array<i64: 1, 128>}, {pipeline_mode = #tpu.pipeline_mode<synchronous>, transform_indices = @transform_20, window_bounds = array<i64: 128, 128>}, {pipeline_mode = #tpu.pipeline_mode<synchronous>, transform_indices = @transform_21, window_bounds = array<i64: 1, 128>}, {pipeline_mode = #tpu.pipeline_mode<synchronous>, transform_indices = @transform_22, window_bounds = array<i64: 384, 128>}, {pipeline_mode = #tpu.pipeline_mode<synchronous>, transform_indices = @transform_23, window_bounds = array<i64: 1, 128>}, {pipeline_mode = #tpu.pipeline_mode<synchronous>, transform_indices = @transform_24, window_bounds = array<i64: 1, 128>}, {pipeline_mode = #tpu.pipeline_mode<synchronous>, transform_indices = @transform_25, window_bounds = array<i64: 9, 64, 1>}, {pipeline_mode = #tpu.pipeline_mode<synchronous>, transform_indices = @transform_26, window_bounds = array<i64: 16, 64>}, {pipeline_mode = #tpu.pipeline_mode<synchronous>, transform_indices = @transform_27, window_bounds = array<i64: 1, 128>}, {pipeline_mode = #tpu.pipeline_mode<synchronous>, transform_indices = @transform_28, window_bounds = array<i64: 1, 128>}, {pipeline_mode = #tpu.pipeline_mode<synchronous>, transform_indices = @transform_29, window_bounds = array<i64: 128, 256>}, {pipeline_mode = #tpu.pipeline_mode<synchronous>, transform_indices = @transform_30, window_bounds = array<i64: 1, 256>}, {pipeline_mode = #tpu.pipeline_mode<synchronous>, transform_indices = @transform_31, window_bounds = array<i64: 128, 128>}, {pipeline_mode = #tpu.pipeline_mode<synchronous>, transform_indices = @transform_32, window_bounds = array<i64: 1, 128>}, {pipeline_mode = #tpu.pipeline_mode<synchronous>, transform_indices = @transform_33, window_bounds = array<i64: 1, 128>}, {pipeline_mode = #tpu.pipeline_mode<synchronous>, transform_indices = @transform_34, window_bounds = array<i64: 1, 128>}, {pipeline_mode = #tpu.pipeline_mode<synchronous>, transform_indices = @transform_35, window_bounds = array<i64: 128, 128>}, {pipeline_mode = #tpu.pipeline_mode<synchronous>, transform_indices = @transform_36, window_bounds = array<i64: 1, 128>}, {pipeline_mode = #tpu.pipeline_mode<synchronous>, transform_indices = @transform_37, window_bounds = array<i64: 128, 128>}, {pipeline_mode = #tpu.pipeline_mode<synchronous>, transform_indices = @transform_38, window_bounds = array<i64: 1, 128>}, {pipeline_mode = #tpu.pipeline_mode<synchronous>, transform_indices = @transform_39, window_bounds = array<i64: 128, 128>}, {pipeline_mode = #tpu.pipeline_mode<synchronous>, transform_indices = @transform_40, window_bounds = array<i64: 1, 128>}, {transform_indices = @transform_41, window_bounds = array<i64: 1, 8, 128>}]} {
    %c0 = arith.constant 0 : index
    %c0_0 = arith.constant 0 : index
    %c0_1 = arith.constant 0 : index
    %0 = vector.load %arg1[%c0, %c0_0, %c0_1] : memref<1x256x128xf32, #tpu.memory_space<vmem>>, vector<1x256x128xf32>
    %1 = vector.shape_cast %0 : vector<1x256x128xf32> to vector<256x128xf32>
    %c17_i32 = arith.constant 17 : i32
    %2 = tpu.dynamic_rotate %1 by %c17_i32 dim 0 : vector<256x128xf32>, i32 -> vector<256x128xf32>
    %c0_2 = arith.constant 0 : index
    %c0_3 = arith.constant 0 : index
    %c0_4 = arith.constant 0 : index
    %3 = vector.load %arg5[%c0_2, %c0_3, %c0_4] : memref<9x256x1xf32, #tpu.memory_space<vmem>>, vector<1x256x1xf32>
    %4 = vector.shape_cast %3 : vector<1x256x1xf32> to vector<256x1xf32>
    %5 = vector.broadcast %4 : vector<256x1xf32> to vector<256x128xf32>
    %6 = arith.mulf %2, %5 : vector<256x128xf32>
    %c16_i32 = arith.constant 16 : i32
    %7 = tpu.dynamic_rotate %1 by %c16_i32 dim 0 : vector<256x128xf32>, i32 -> vector<256x128xf32>
    %c1 = arith.constant 1 : index
    %c0_5 = arith.constant 0 : index
    %c0_6 = arith.constant 0 : index
    %8 = vector.load %arg5[%c1, %c0_5, %c0_6] : memref<9x256x1xf32, #tpu.memory_space<vmem>>, vector<1x256x1xf32>
    %9 = vector.shape_cast %8 : vector<1x256x1xf32> to vector<256x1xf32>
    %10 = vector.broadcast %9 : vector<256x1xf32> to vector<256x128xf32>
    %11 = arith.mulf %7, %10 : vector<256x128xf32>
    %c1_i32 = arith.constant 1 : i32
    %12 = tpu.dynamic_rotate %11 by %c1_i32 dim 1 : vector<256x128xf32>, i32 -> vector<256x128xf32>
    %13 = arith.addf %6, %12 : vector<256x128xf32>
    %c15_i32 = arith.constant 15 : i32
    %14 = tpu.dynamic_rotate %1 by %c15_i32 dim 0 : vector<256x128xf32>, i32 -> vector<256x128xf32>
    %c2 = arith.constant 2 : index
    %c0_7 = arith.constant 0 : index
    %c0_8 = arith.constant 0 : index
    %15 = vector.load %arg5[%c2, %c0_7, %c0_8] : memref<9x256x1xf32, #tpu.memory_space<vmem>>, vector<1x256x1xf32>
    %16 = vector.shape_cast %15 : vector<1x256x1xf32> to vector<256x1xf32>
    %17 = vector.broadcast %16 : vector<256x1xf32> to vector<256x128xf32>
    %18 = arith.mulf %14, %17 : vector<256x128xf32>
    %c2_i32 = arith.constant 2 : i32
    %19 = tpu.dynamic_rotate %18 by %c2_i32 dim 1 : vector<256x128xf32>, i32 -> vector<256x128xf32>
    %20 = arith.addf %13, %19 : vector<256x128xf32>
    %c1_i32_9 = arith.constant 1 : i32
    %21 = tpu.dynamic_rotate %1 by %c1_i32_9 dim 0 : vector<256x128xf32>, i32 -> vector<256x128xf32>
    %c3 = arith.constant 3 : index
    %c0_10 = arith.constant 0 : index
    %c0_11 = arith.constant 0 : index
    %22 = vector.load %arg5[%c3, %c0_10, %c0_11] : memref<9x256x1xf32, #tpu.memory_space<vmem>>, vector<1x256x1xf32>
    %23 = vector.shape_cast %22 : vector<1x256x1xf32> to vector<256x1xf32>
    %24 = vector.broadcast %23 : vector<256x1xf32> to vector<256x128xf32>
    %25 = arith.mulf %21, %24 : vector<256x128xf32>
    %c3_i32 = arith.constant 3 : i32
    %26 = tpu.dynamic_rotate %25 by %c3_i32 dim 1 : vector<256x128xf32>, i32 -> vector<256x128xf32>
    %27 = arith.addf %20, %26 : vector<256x128xf32>
    %c4 = arith.constant 4 : index
    %c0_12 = arith.constant 0 : index
    %c0_13 = arith.constant 0 : index
    %28 = vector.load %arg5[%c4, %c0_12, %c0_13] : memref<9x256x1xf32, #tpu.memory_space<vmem>>, vector<1x256x1xf32>
    %29 = vector.shape_cast %28 : vector<1x256x1xf32> to vector<256x1xf32>
    %30 = vector.broadcast %29 : vector<256x1xf32> to vector<256x128xf32>
    %31 = arith.mulf %1, %30 : vector<256x128xf32>
    %c4_i32 = arith.constant 4 : i32
    %32 = tpu.dynamic_rotate %31 by %c4_i32 dim 1 : vector<256x128xf32>, i32 -> vector<256x128xf32>
    %33 = arith.addf %27, %32 : vector<256x128xf32>
    %c255_i32 = arith.constant 255 : i32
    %34 = tpu.dynamic_rotate %1 by %c255_i32 dim 0 : vector<256x128xf32>, i32 -> vector<256x128xf32>
    %c5 = arith.constant 5 : index
    %c0_14 = arith.constant 0 : index
    %c0_15 = arith.constant 0 : index
    %35 = vector.load %arg5[%c5, %c0_14, %c0_15] : memref<9x256x1xf32, #tpu.memory_space<vmem>>, vector<1x256x1xf32>
    %36 = vector.shape_cast %35 : vector<1x256x1xf32> to vector<256x1xf32>
    %37 = vector.broadcast %36 : vector<256x1xf32> to vector<256x128xf32>
    %38 = arith.mulf %34, %37 : vector<256x128xf32>
    %c5_i32 = arith.constant 5 : i32
    %39 = tpu.dynamic_rotate %38 by %c5_i32 dim 1 : vector<256x128xf32>, i32 -> vector<256x128xf32>
    %40 = arith.addf %33, %39 : vector<256x128xf32>
    %c241_i32 = arith.constant 241 : i32
    %41 = tpu.dynamic_rotate %1 by %c241_i32 dim 0 : vector<256x128xf32>, i32 -> vector<256x128xf32>
    %c6 = arith.constant 6 : index
    %c0_16 = arith.constant 0 : index
    %c0_17 = arith.constant 0 : index
    %42 = vector.load %arg5[%c6, %c0_16, %c0_17] : memref<9x256x1xf32, #tpu.memory_space<vmem>>, vector<1x256x1xf32>
    %43 = vector.shape_cast %42 : vector<1x256x1xf32> to vector<256x1xf32>
    %44 = vector.broadcast %43 : vector<256x1xf32> to vector<256x128xf32>
    %45 = arith.mulf %41, %44 : vector<256x128xf32>
    %c6_i32 = arith.constant 6 : i32
    %46 = tpu.dynamic_rotate %45 by %c6_i32 dim 1 : vector<256x128xf32>, i32 -> vector<256x128xf32>
    %47 = arith.addf %40, %46 : vector<256x128xf32>
    %c240_i32 = arith.constant 240 : i32
    %48 = tpu.dynamic_rotate %1 by %c240_i32 dim 0 : vector<256x128xf32>, i32 -> vector<256x128xf32>
    %c7 = arith.constant 7 : index
    %c0_18 = arith.constant 0 : index
    %c0_19 = arith.constant 0 : index
    %49 = vector.load %arg5[%c7, %c0_18, %c0_19] : memref<9x256x1xf32, #tpu.memory_space<vmem>>, vector<1x256x1xf32>
    %50 = vector.shape_cast %49 : vector<1x256x1xf32> to vector<256x1xf32>
    %51 = vector.broadcast %50 : vector<256x1xf32> to vector<256x128xf32>
    %52 = arith.mulf %48, %51 : vector<256x128xf32>
    %c7_i32 = arith.constant 7 : i32
    %53 = tpu.dynamic_rotate %52 by %c7_i32 dim 1 : vector<256x128xf32>, i32 -> vector<256x128xf32>
    %54 = arith.addf %47, %53 : vector<256x128xf32>
    %c239_i32 = arith.constant 239 : i32
    %55 = tpu.dynamic_rotate %1 by %c239_i32 dim 0 : vector<256x128xf32>, i32 -> vector<256x128xf32>
    %c8 = arith.constant 8 : index
    %c0_20 = arith.constant 0 : index
    %c0_21 = arith.constant 0 : index
    %56 = vector.load %arg5[%c8, %c0_20, %c0_21] : memref<9x256x1xf32, #tpu.memory_space<vmem>>, vector<1x256x1xf32>
    %57 = vector.shape_cast %56 : vector<1x256x1xf32> to vector<256x1xf32>
    %58 = vector.broadcast %57 : vector<256x1xf32> to vector<256x128xf32>
    %59 = arith.mulf %55, %58 : vector<256x128xf32>
    %c8_i32 = arith.constant 8 : i32
    %60 = tpu.dynamic_rotate %59 by %c8_i32 dim 1 : vector<256x128xf32>, i32 -> vector<256x128xf32>
    %61 = arith.addf %54, %60 : vector<256x128xf32>
    %62 = arith.truncf %61 : vector<256x128xf32> to vector<256x128xbf16>
    %c0_22 = arith.constant 0 : index
    %c0_23 = arith.constant 0 : index
    %63 = vector.load %arg6[%c0_22, %c0_23] : memref<64x256xbf16, #tpu.memory_space<vmem>>, vector<64x256xbf16>
    %cst = arith.constant dense<0.000000e+00> : vector<64x128xf32>
    %64 = tpu.matmul %63, %62, %cst {dimension_numbers = #tpu.dot_dimension_numbers<[1], [0], [0], [1], [0, 0, 1, 1], [], []>} : vector<64x256xbf16>, vector<256x128xbf16>, vector<64x128xf32> -> vector<64x128xf32>
    %65 = arith.truncf %64 : vector<64x128xf32> to vector<64x128xbf16>
    %c0_24 = arith.constant 0 : index
    %c0_25 = arith.constant 0 : index
    %66 = vector.load %arg2[%c0_24, %c0_25] : memref<128x128xbf16, #tpu.memory_space<vmem>>, vector<128x128xbf16>
    %cst_26 = arith.constant dense<0.000000e+00> : vector<64x128xf32>
    %67 = tpu.matmul %65, %66, %cst_26 {dimension_numbers = #tpu.dot_dimension_numbers<[1], [0], [0], [1], [0, 0, 1, 1], [], []>} : vector<64x128xbf16>, vector<128x128xbf16>, vector<64x128xf32> -> vector<64x128xf32>
    %c0_27 = arith.constant 0 : index
    %c0_28 = arith.constant 0 : index
    %68 = vector.load %arg3[%c0_27, %c0_28] : memref<1x128xf32, #tpu.memory_space<vmem>>, vector<1x128xf32>
    %69 = vector.broadcast %68 : vector<1x128xf32> to vector<64x128xf32>
    %70 = arith.mulf %67, %69 : vector<64x128xf32>
    %c0_29 = arith.constant 0 : index
    %c0_30 = arith.constant 0 : index
    %71 = vector.load %arg4[%c0_29, %c0_30] : memref<1x128xf32, #tpu.memory_space<vmem>>, vector<1x128xf32>
    %72 = vector.broadcast %71 : vector<1x128xf32> to vector<64x128xf32>
    %73 = arith.addf %70, %72 : vector<64x128xf32>
    %74 = arith.negf %73 : vector<64x128xf32>
    %75 = math.exp %74 : vector<64x128xf32>
    %cst_31 = arith.constant 1.000000e+00 : f32
    %76 = vector.broadcast %cst_31 : f32 to vector<64x128xf32>
    %77 = arith.addf %76, %75 : vector<64x128xf32>
    %78 = arith.divf %76, %77 : vector<64x128xf32>
    %79 = arith.mulf %73, %78 : vector<64x128xf32>
    %c9_i32 = arith.constant 9 : i32
    %80 = tpu.dynamic_rotate %79 by %c9_i32 dim 0 : vector<64x128xf32>, i32 -> vector<64x128xf32>
    %c0_32 = arith.constant 0 : index
    %c0_33 = arith.constant 0 : index
    %c0_34 = arith.constant 0 : index
    %81 = vector.load %arg10[%c0_32, %c0_33, %c0_34] : memref<9x64x1xf32, #tpu.memory_space<vmem>>, vector<1x64x1xf32>
    %82 = vector.shape_cast %81 : vector<1x64x1xf32> to vector<64x1xf32>
    %83 = vector.broadcast %82 : vector<64x1xf32> to vector<64x128xf32>
    %84 = arith.mulf %80, %83 : vector<64x128xf32>
    %c8_i32_35 = arith.constant 8 : i32
    %85 = tpu.dynamic_rotate %79 by %c8_i32_35 dim 0 : vector<64x128xf32>, i32 -> vector<64x128xf32>
    %c1_36 = arith.constant 1 : index
    %c0_37 = arith.constant 0 : index
    %c0_38 = arith.constant 0 : index
    %86 = vector.load %arg10[%c1_36, %c0_37, %c0_38] : memref<9x64x1xf32, #tpu.memory_space<vmem>>, vector<1x64x1xf32>
    %87 = vector.shape_cast %86 : vector<1x64x1xf32> to vector<64x1xf32>
    %88 = vector.broadcast %87 : vector<64x1xf32> to vector<64x128xf32>
    %89 = arith.mulf %85, %88 : vector<64x128xf32>
    %c16_i32_39 = arith.constant 16 : i32
    %90 = tpu.dynamic_rotate %89 by %c16_i32_39 dim 1 : vector<64x128xf32>, i32 -> vector<64x128xf32>
    %91 = arith.addf %84, %90 : vector<64x128xf32>
    %c7_i32_40 = arith.constant 7 : i32
    %92 = tpu.dynamic_rotate %79 by %c7_i32_40 dim 0 : vector<64x128xf32>, i32 -> vector<64x128xf32>
    %c2_41 = arith.constant 2 : index
    %c0_42 = arith.constant 0 : index
    %c0_43 = arith.constant 0 : index
    %93 = vector.load %arg10[%c2_41, %c0_42, %c0_43] : memref<9x64x1xf32, #tpu.memory_space<vmem>>, vector<1x64x1xf32>
    %94 = vector.shape_cast %93 : vector<1x64x1xf32> to vector<64x1xf32>
    %95 = vector.broadcast %94 : vector<64x1xf32> to vector<64x128xf32>
    %96 = arith.mulf %92, %95 : vector<64x128xf32>
    %c32_i32 = arith.constant 32 : i32
    %97 = tpu.dynamic_rotate %96 by %c32_i32 dim 1 : vector<64x128xf32>, i32 -> vector<64x128xf32>
    %98 = arith.addf %91, %97 : vector<64x128xf32>
    %c1_i32_44 = arith.constant 1 : i32
    %99 = tpu.dynamic_rotate %79 by %c1_i32_44 dim 0 : vector<64x128xf32>, i32 -> vector<64x128xf32>
    %c3_45 = arith.constant 3 : index
    %c0_46 = arith.constant 0 : index
    %c0_47 = arith.constant 0 : index
    %100 = vector.load %arg10[%c3_45, %c0_46, %c0_47] : memref<9x64x1xf32, #tpu.memory_space<vmem>>, vector<1x64x1xf32>
    %101 = vector.shape_cast %100 : vector<1x64x1xf32> to vector<64x1xf32>
    %102 = vector.broadcast %101 : vector<64x1xf32> to vector<64x128xf32>
    %103 = arith.mulf %99, %102 : vector<64x128xf32>
    %c48_i32 = arith.constant 48 : i32
    %104 = tpu.dynamic_rotate %103 by %c48_i32 dim 1 : vector<64x128xf32>, i32 -> vector<64x128xf32>
    %105 = arith.addf %98, %104 : vector<64x128xf32>
    %c4_48 = arith.constant 4 : index
    %c0_49 = arith.constant 0 : index
    %c0_50 = arith.constant 0 : index
    %106 = vector.load %arg10[%c4_48, %c0_49, %c0_50] : memref<9x64x1xf32, #tpu.memory_space<vmem>>, vector<1x64x1xf32>
    %107 = vector.shape_cast %106 : vector<1x64x1xf32> to vector<64x1xf32>
    %108 = vector.broadcast %107 : vector<64x1xf32> to vector<64x128xf32>
    %109 = arith.mulf %79, %108 : vector<64x128xf32>
    %c64_i32 = arith.constant 64 : i32
    %110 = tpu.dynamic_rotate %109 by %c64_i32 dim 1 : vector<64x128xf32>, i32 -> vector<64x128xf32>
    %111 = arith.addf %105, %110 : vector<64x128xf32>
    %c63_i32 = arith.constant 63 : i32
    %112 = tpu.dynamic_rotate %79 by %c63_i32 dim 0 : vector<64x128xf32>, i32 -> vector<64x128xf32>
    %c5_51 = arith.constant 5 : index
    %c0_52 = arith.constant 0 : index
    %c0_53 = arith.constant 0 : index
    %113 = vector.load %arg10[%c5_51, %c0_52, %c0_53] : memref<9x64x1xf32, #tpu.memory_space<vmem>>, vector<1x64x1xf32>
    %114 = vector.shape_cast %113 : vector<1x64x1xf32> to vector<64x1xf32>
    %115 = vector.broadcast %114 : vector<64x1xf32> to vector<64x128xf32>
    %116 = arith.mulf %112, %115 : vector<64x128xf32>
    %c80_i32 = arith.constant 80 : i32
    %117 = tpu.dynamic_rotate %116 by %c80_i32 dim 1 : vector<64x128xf32>, i32 -> vector<64x128xf32>
    %118 = arith.addf %111, %117 : vector<64x128xf32>
    %c57_i32 = arith.constant 57 : i32
    %119 = tpu.dynamic_rotate %79 by %c57_i32 dim 0 : vector<64x128xf32>, i32 -> vector<64x128xf32>
    %c6_54 = arith.constant 6 : index
    %c0_55 = arith.constant 0 : index
    %c0_56 = arith.constant 0 : index
    %120 = vector.load %arg10[%c6_54, %c0_55, %c0_56] : memref<9x64x1xf32, #tpu.memory_space<vmem>>, vector<1x64x1xf32>
    %121 = vector.shape_cast %120 : vector<1x64x1xf32> to vector<64x1xf32>
    %122 = vector.broadcast %121 : vector<64x1xf32> to vector<64x128xf32>
    %123 = arith.mulf %119, %122 : vector<64x128xf32>
    %c96_i32 = arith.constant 96 : i32
    %124 = tpu.dynamic_rotate %123 by %c96_i32 dim 1 : vector<64x128xf32>, i32 -> vector<64x128xf32>
    %125 = arith.addf %118, %124 : vector<64x128xf32>
    %c56_i32 = arith.constant 56 : i32
    %126 = tpu.dynamic_rotate %79 by %c56_i32 dim 0 : vector<64x128xf32>, i32 -> vector<64x128xf32>
    %c7_57 = arith.constant 7 : index
    %c0_58 = arith.constant 0 : index
    %c0_59 = arith.constant 0 : index
    %127 = vector.load %arg10[%c7_57, %c0_58, %c0_59] : memref<9x64x1xf32, #tpu.memory_space<vmem>>, vector<1x64x1xf32>
    %128 = vector.shape_cast %127 : vector<1x64x1xf32> to vector<64x1xf32>
    %129 = vector.broadcast %128 : vector<64x1xf32> to vector<64x128xf32>
    %130 = arith.mulf %126, %129 : vector<64x128xf32>
    %c112_i32 = arith.constant 112 : i32
    %131 = tpu.dynamic_rotate %130 by %c112_i32 dim 1 : vector<64x128xf32>, i32 -> vector<64x128xf32>
    %132 = arith.addf %125, %131 : vector<64x128xf32>
    %c55_i32 = arith.constant 55 : i32
    %133 = tpu.dynamic_rotate %79 by %c55_i32 dim 0 : vector<64x128xf32>, i32 -> vector<64x128xf32>
    %c8_60 = arith.constant 8 : index
    %c0_61 = arith.constant 0 : index
    %c0_62 = arith.constant 0 : index
    %134 = vector.load %arg10[%c8_60, %c0_61, %c0_62] : memref<9x64x1xf32, #tpu.memory_space<vmem>>, vector<1x64x1xf32>
    %135 = vector.shape_cast %134 : vector<1x64x1xf32> to vector<64x1xf32>
    %136 = vector.broadcast %135 : vector<64x1xf32> to vector<64x128xf32>
    %137 = arith.mulf %133, %136 : vector<64x128xf32>
    %138 = tpu.concatenate %132, %137 in 1 : vector<64x128xf32>, vector<64x128xf32> -> vector<64x256xf32>
    %139 = arith.truncf %138 : vector<64x256xf32> to vector<64x256xbf16>
    %c0_63 = arith.constant 0 : index
    %c0_64 = arith.constant 0 : index
    %140 = vector.load %arg7[%c0_63, %c0_64] : memref<256x128xbf16, #tpu.memory_space<vmem>>, vector<256x128xbf16>
    %cst_65 = arith.constant dense<0.000000e+00> : vector<64x128xf32>
    %141 = tpu.matmul %139, %140, %cst_65 {dimension_numbers = #tpu.dot_dimension_numbers<[1], [0], [0], [1], [0, 0, 1, 1], [], []>} : vector<64x256xbf16>, vector<256x128xbf16>, vector<64x128xf32> -> vector<64x128xf32>
    %c0_66 = arith.constant 0 : index
    %c0_67 = arith.constant 0 : index
    %142 = vector.load %arg8[%c0_66, %c0_67] : memref<1x128xf32, #tpu.memory_space<vmem>>, vector<1x128xf32>
    %143 = vector.broadcast %142 : vector<1x128xf32> to vector<64x128xf32>
    %144 = arith.mulf %141, %143 : vector<64x128xf32>
    %c0_68 = arith.constant 0 : index
    %c0_69 = arith.constant 0 : index
    %145 = vector.load %arg9[%c0_68, %c0_69] : memref<1x128xf32, #tpu.memory_space<vmem>>, vector<1x128xf32>
    %146 = vector.broadcast %145 : vector<1x128xf32> to vector<64x128xf32>
    %147 = arith.addf %144, %146 : vector<64x128xf32>
    %148 = arith.negf %147 : vector<64x128xf32>
    %149 = math.exp %148 : vector<64x128xf32>
    %cst_70 = arith.constant 1.000000e+00 : f32
    %150 = vector.broadcast %cst_70 : f32 to vector<64x128xf32>
    %151 = arith.addf %150, %149 : vector<64x128xf32>
    %152 = arith.divf %150, %151 : vector<64x128xf32>
    %153 = arith.mulf %147, %152 : vector<64x128xf32>
    %154 = tpu.iota {dimensions = array<i32: 1>} : vector<64x128xi32>
    %c32_i32_71 = arith.constant 32 : i32
    %155 = vector.broadcast %c32_i32_71 : i32 to vector<64x128xi32>
    %156 = arith.cmpi slt, %154, %155 : vector<64x128xi32>
    %cst_72 = arith.constant dense<0.000000e+00> : vector<64xf32>
    %157 = vector.multi_reduction <add>, %153, %cst_72 [1] : vector<64x128xf32> to vector<64xf32>
    %158 = vector.shape_cast %157 : vector<64xf32> to vector<64x1xf32>
    %cst_73 = arith.constant 3.125000e-02 : f32
    %159 = vector.broadcast %cst_73 : f32 to vector<64x1xf32>
    %160 = arith.mulf %158, %159 : vector<64x1xf32>
    %161 = vector.broadcast %160 : vector<64x1xf32> to vector<64x128xf32>
    %162 = arith.subf %153, %161 : vector<64x128xf32>
    %cst_74 = arith.constant 0.000000e+00 : f32
    %163 = vector.broadcast %cst_74 : f32 to vector<64x128xf32>
    %164 = arith.select %156, %162, %163 : vector<64x128xi1>, vector<64x128xf32>
    %165 = arith.mulf %164, %164 : vector<64x128xf32>
    %cst_75 = arith.constant dense<0.000000e+00> : vector<64xf32>
    %166 = vector.multi_reduction <add>, %165, %cst_75 [1] : vector<64x128xf32> to vector<64xf32>
    %167 = vector.shape_cast %166 : vector<64xf32> to vector<64x1xf32>
    %cst_76 = arith.constant 3.125000e-02 : f32
    %168 = vector.broadcast %cst_76 : f32 to vector<64x1xf32>
    %169 = arith.mulf %167, %168 : vector<64x1xf32>
    %cst_77 = arith.constant 9.99999974E-6 : f32
    %170 = vector.broadcast %cst_77 : f32 to vector<64x1xf32>
    %171 = arith.addf %169, %170 : vector<64x1xf32>
    %172 = math.rsqrt %171 : vector<64x1xf32>
    %173 = vector.broadcast %172 : vector<64x1xf32> to vector<64x128xf32>
    %174 = arith.mulf %164, %173 : vector<64x128xf32>
    %c0_78 = arith.constant 0 : index
    %c0_79 = arith.constant 0 : index
    %175 = vector.load %arg11[%c0_78, %c0_79] : memref<1x128xf32, #tpu.memory_space<vmem>>, vector<1x128xf32>
    %176 = vector.broadcast %175 : vector<1x128xf32> to vector<64x128xf32>
    %177 = arith.mulf %174, %176 : vector<64x128xf32>
    %c0_80 = arith.constant 0 : index
    %c0_81 = arith.constant 0 : index
    %178 = vector.load %arg12[%c0_80, %c0_81] : memref<1x128xf32, #tpu.memory_space<vmem>>, vector<1x128xf32>
    %179 = vector.broadcast %178 : vector<1x128xf32> to vector<64x128xf32>
    %180 = arith.addf %177, %179 : vector<64x128xf32>
    %181 = arith.truncf %180 : vector<64x128xf32> to vector<64x128xbf16>
    %c0_82 = arith.constant 0 : index
    %c0_83 = arith.constant 0 : index
    %182 = vector.load %arg13[%c0_82, %c0_83] : memref<128x128xbf16, #tpu.memory_space<vmem>>, vector<128x128xbf16>
    %cst_84 = arith.constant dense<0.000000e+00> : vector<64x128xf32>
    %183 = tpu.matmul %181, %182, %cst_84 {dimension_numbers = #tpu.dot_dimension_numbers<[1], [0], [0], [1], [0, 0, 1, 1], [], []>} : vector<64x128xbf16>, vector<128x128xbf16>, vector<64x128xf32> -> vector<64x128xf32>
    %c0_85 = arith.constant 0 : index
    %c0_86 = arith.constant 0 : index
    %184 = vector.load %arg14[%c0_85, %c0_86] : memref<1x128xf32, #tpu.memory_space<vmem>>, vector<1x128xf32>
    %185 = vector.broadcast %184 : vector<1x128xf32> to vector<64x128xf32>
    %186 = arith.addf %183, %185 : vector<64x128xf32>
    %c96_i32_87 = arith.constant 96 : i32
    %187 = tpu.dynamic_rotate %186 by %c96_i32_87 dim 1 : vector<64x128xf32>, i32 -> vector<64x128xf32>
    %cst_88 = arith.constant 0.000000e+00 : f32
    %188 = vector.broadcast %cst_88 : f32 to vector<64x128xf32>
    %c0_i32 = arith.constant 0 : i32
    %189 = vector.broadcast %c0_i32 : i32 to vector<64x128xi32>
    %190 = arith.cmpi sge, %154, %189 : vector<64x128xi32>
    %c8_i32_89 = arith.constant 8 : i32
    %191 = vector.broadcast %c8_i32_89 : i32 to vector<64x128xi32>
    %192 = arith.cmpi slt, %154, %191 : vector<64x128xi32>
    %193 = arith.andi %190, %192 : vector<64x128xi1>
    %cst_90 = arith.constant 0.000000e+00 : f32
    %194 = vector.broadcast %cst_90 : f32 to vector<64x128xf32>
    %195 = arith.select %193, %186, %194 : vector<64x128xi1>, vector<64x128xf32>
    %196 = arith.truncf %195 : vector<64x128xf32> to vector<64x128xbf16>
    %cst_91 = arith.constant 0.000000e+00 : f32
    %197 = vector.broadcast %cst_91 : f32 to vector<64x128xf32>
    %198 = arith.select %193, %187, %197 : vector<64x128xi1>, vector<64x128xf32>
    %199 = arith.truncf %198 : vector<64x128xf32> to vector<64x128xbf16>
    %cst_92 = arith.constant dense<0.000000e+00> : vector<64x64xf32>
    %200 = tpu.matmul %196, %199, %cst_92 {dimension_numbers = #tpu.dot_dimension_numbers<[1], [1], [0], [0], [0, 0, 1, 0], [], []>} : vector<64x128xbf16>, vector<64x128xbf16>, vector<64x64xf32> -> vector<64x64xf32>
    %cst_93 = arith.constant 0.353553385 : f32
    %201 = vector.broadcast %cst_93 : f32 to vector<64x64xf32>
    %202 = arith.mulf %200, %201 : vector<64x64xf32>
    %cst_94 = arith.constant dense<0xFF800000> : vector<64xf32>
    %203 = vector.multi_reduction <maximumf>, %202, %cst_94 [1] : vector<64x64xf32> to vector<64xf32>
    %204 = vector.shape_cast %203 : vector<64xf32> to vector<64x1xf32>
    %205 = vector.broadcast %204 : vector<64x1xf32> to vector<64x64xf32>
    %206 = arith.subf %202, %205 : vector<64x64xf32>
    %207 = math.exp %206 : vector<64x64xf32>
    %cst_95 = arith.constant dense<0.000000e+00> : vector<64xf32>
    %208 = vector.multi_reduction <add>, %207, %cst_95 [1] : vector<64x64xf32> to vector<64xf32>
    %209 = vector.shape_cast %208 : vector<64xf32> to vector<64x1xf32>
    %210 = tpu.reciprocal %209 {approx = true} : vector<64x1xf32> -> vector<64x1xf32>
    %211 = vector.broadcast %210 : vector<64x1xf32> to vector<64x64xf32>
    %212 = arith.mulf %207, %211 : vector<64x64xf32>
    %c64_i32_96 = arith.constant 64 : i32
    %213 = vector.broadcast %c64_i32_96 : i32 to vector<64x128xi32>
    %214 = arith.cmpi sge, %154, %213 : vector<64x128xi32>
    %c72_i32 = arith.constant 72 : i32
    %215 = vector.broadcast %c72_i32 : i32 to vector<64x128xi32>
    %216 = arith.cmpi slt, %154, %215 : vector<64x128xi32>
    %217 = arith.andi %214, %216 : vector<64x128xi1>
    %cst_97 = arith.constant 0.000000e+00 : f32
    %218 = vector.broadcast %cst_97 : f32 to vector<64x128xf32>
    %219 = arith.select %217, %186, %218 : vector<64x128xi1>, vector<64x128xf32>
    %220 = arith.truncf %219 : vector<64x128xf32> to vector<64x128xbf16>
    %221 = arith.truncf %212 : vector<64x64xf32> to vector<64x64xbf16>
    %cst_98 = arith.constant dense<0.000000e+00> : vector<64x128xf32>
    %222 = tpu.matmul %221, %220, %cst_98 {dimension_numbers = #tpu.dot_dimension_numbers<[1], [0], [0], [1], [0, 0, 1, 1], [], []>} : vector<64x64xbf16>, vector<64x128xbf16>, vector<64x128xf32> -> vector<64x128xf32>
    %223 = arith.addf %188, %222 : vector<64x128xf32>
    %c8_i32_99 = arith.constant 8 : i32
    %224 = vector.broadcast %c8_i32_99 : i32 to vector<64x128xi32>
    %225 = arith.cmpi sge, %154, %224 : vector<64x128xi32>
    %c16_i32_100 = arith.constant 16 : i32
    %226 = vector.broadcast %c16_i32_100 : i32 to vector<64x128xi32>
    %227 = arith.cmpi slt, %154, %226 : vector<64x128xi32>
    %228 = arith.andi %225, %227 : vector<64x128xi1>
    %cst_101 = arith.constant 0.000000e+00 : f32
    %229 = vector.broadcast %cst_101 : f32 to vector<64x128xf32>
    %230 = arith.select %228, %186, %229 : vector<64x128xi1>, vector<64x128xf32>
    %231 = arith.truncf %230 : vector<64x128xf32> to vector<64x128xbf16>
    %cst_102 = arith.constant 0.000000e+00 : f32
    %232 = vector.broadcast %cst_102 : f32 to vector<64x128xf32>
    %233 = arith.select %228, %187, %232 : vector<64x128xi1>, vector<64x128xf32>
    %234 = arith.truncf %233 : vector<64x128xf32> to vector<64x128xbf16>
    %cst_103 = arith.constant dense<0.000000e+00> : vector<64x64xf32>
    %235 = tpu.matmul %231, %234, %cst_103 {dimension_numbers = #tpu.dot_dimension_numbers<[1], [1], [0], [0], [0, 0, 1, 0], [], []>} : vector<64x128xbf16>, vector<64x128xbf16>, vector<64x64xf32> -> vector<64x64xf32>
    %cst_104 = arith.constant 0.353553385 : f32
    %236 = vector.broadcast %cst_104 : f32 to vector<64x64xf32>
    %237 = arith.mulf %235, %236 : vector<64x64xf32>
    %cst_105 = arith.constant dense<0xFF800000> : vector<64xf32>
    %238 = vector.multi_reduction <maximumf>, %237, %cst_105 [1] : vector<64x64xf32> to vector<64xf32>
    %239 = vector.shape_cast %238 : vector<64xf32> to vector<64x1xf32>
    %240 = vector.broadcast %239 : vector<64x1xf32> to vector<64x64xf32>
    %241 = arith.subf %237, %240 : vector<64x64xf32>
    %242 = math.exp %241 : vector<64x64xf32>
    %cst_106 = arith.constant dense<0.000000e+00> : vector<64xf32>
    %243 = vector.multi_reduction <add>, %242, %cst_106 [1] : vector<64x64xf32> to vector<64xf32>
    %244 = vector.shape_cast %243 : vector<64xf32> to vector<64x1xf32>
    %245 = tpu.reciprocal %244 {approx = true} : vector<64x1xf32> -> vector<64x1xf32>
    %246 = vector.broadcast %245 : vector<64x1xf32> to vector<64x64xf32>
    %247 = arith.mulf %242, %246 : vector<64x64xf32>
    %c72_i32_107 = arith.constant 72 : i32
    %248 = vector.broadcast %c72_i32_107 : i32 to vector<64x128xi32>
    %249 = arith.cmpi sge, %154, %248 : vector<64x128xi32>
    %c80_i32_108 = arith.constant 80 : i32
    %250 = vector.broadcast %c80_i32_108 : i32 to vector<64x128xi32>
    %251 = arith.cmpi slt, %154, %250 : vector<64x128xi32>
    %252 = arith.andi %249, %251 : vector<64x128xi1>
    %cst_109 = arith.constant 0.000000e+00 : f32
    %253 = vector.broadcast %cst_109 : f32 to vector<64x128xf32>
    %254 = arith.select %252, %186, %253 : vector<64x128xi1>, vector<64x128xf32>
    %255 = arith.truncf %254 : vector<64x128xf32> to vector<64x128xbf16>
    %256 = arith.truncf %247 : vector<64x64xf32> to vector<64x64xbf16>
    %cst_110 = arith.constant dense<0.000000e+00> : vector<64x128xf32>
    %257 = tpu.matmul %256, %255, %cst_110 {dimension_numbers = #tpu.dot_dimension_numbers<[1], [0], [0], [1], [0, 0, 1, 1], [], []>} : vector<64x64xbf16>, vector<64x128xbf16>, vector<64x128xf32> -> vector<64x128xf32>
    %258 = arith.addf %223, %257 : vector<64x128xf32>
    %c16_i32_111 = arith.constant 16 : i32
    %259 = vector.broadcast %c16_i32_111 : i32 to vector<64x128xi32>
    %260 = arith.cmpi sge, %154, %259 : vector<64x128xi32>
    %c24_i32 = arith.constant 24 : i32
    %261 = vector.broadcast %c24_i32 : i32 to vector<64x128xi32>
    %262 = arith.cmpi slt, %154, %261 : vector<64x128xi32>
    %263 = arith.andi %260, %262 : vector<64x128xi1>
    %cst_112 = arith.constant 0.000000e+00 : f32
    %264 = vector.broadcast %cst_112 : f32 to vector<64x128xf32>
    %265 = arith.select %263, %186, %264 : vector<64x128xi1>, vector<64x128xf32>
    %266 = arith.truncf %265 : vector<64x128xf32> to vector<64x128xbf16>
    %cst_113 = arith.constant 0.000000e+00 : f32
    %267 = vector.broadcast %cst_113 : f32 to vector<64x128xf32>
    %268 = arith.select %263, %187, %267 : vector<64x128xi1>, vector<64x128xf32>
    %269 = arith.truncf %268 : vector<64x128xf32> to vector<64x128xbf16>
    %cst_114 = arith.constant dense<0.000000e+00> : vector<64x64xf32>
    %270 = tpu.matmul %266, %269, %cst_114 {dimension_numbers = #tpu.dot_dimension_numbers<[1], [1], [0], [0], [0, 0, 1, 0], [], []>} : vector<64x128xbf16>, vector<64x128xbf16>, vector<64x64xf32> -> vector<64x64xf32>
    %cst_115 = arith.constant 0.353553385 : f32
    %271 = vector.broadcast %cst_115 : f32 to vector<64x64xf32>
    %272 = arith.mulf %270, %271 : vector<64x64xf32>
    %cst_116 = arith.constant dense<0xFF800000> : vector<64xf32>
    %273 = vector.multi_reduction <maximumf>, %272, %cst_116 [1] : vector<64x64xf32> to vector<64xf32>
    %274 = vector.shape_cast %273 : vector<64xf32> to vector<64x1xf32>
    %275 = vector.broadcast %274 : vector<64x1xf32> to vector<64x64xf32>
    %276 = arith.subf %272, %275 : vector<64x64xf32>
    %277 = math.exp %276 : vector<64x64xf32>
    %cst_117 = arith.constant dense<0.000000e+00> : vector<64xf32>
    %278 = vector.multi_reduction <add>, %277, %cst_117 [1] : vector<64x64xf32> to vector<64xf32>
    %279 = vector.shape_cast %278 : vector<64xf32> to vector<64x1xf32>
    %280 = tpu.reciprocal %279 {approx = true} : vector<64x1xf32> -> vector<64x1xf32>
    %281 = vector.broadcast %280 : vector<64x1xf32> to vector<64x64xf32>
    %282 = arith.mulf %277, %281 : vector<64x64xf32>
    %c80_i32_118 = arith.constant 80 : i32
    %283 = vector.broadcast %c80_i32_118 : i32 to vector<64x128xi32>
    %284 = arith.cmpi sge, %154, %283 : vector<64x128xi32>
    %c88_i32 = arith.constant 88 : i32
    %285 = vector.broadcast %c88_i32 : i32 to vector<64x128xi32>
    %286 = arith.cmpi slt, %154, %285 : vector<64x128xi32>
    %287 = arith.andi %284, %286 : vector<64x128xi1>
    %cst_119 = arith.constant 0.000000e+00 : f32
    %288 = vector.broadcast %cst_119 : f32 to vector<64x128xf32>
    %289 = arith.select %287, %186, %288 : vector<64x128xi1>, vector<64x128xf32>
    %290 = arith.truncf %289 : vector<64x128xf32> to vector<64x128xbf16>
    %291 = arith.truncf %282 : vector<64x64xf32> to vector<64x64xbf16>
    %cst_120 = arith.constant dense<0.000000e+00> : vector<64x128xf32>
    %292 = tpu.matmul %291, %290, %cst_120 {dimension_numbers = #tpu.dot_dimension_numbers<[1], [0], [0], [1], [0, 0, 1, 1], [], []>} : vector<64x64xbf16>, vector<64x128xbf16>, vector<64x128xf32> -> vector<64x128xf32>
    %293 = arith.addf %258, %292 : vector<64x128xf32>
    %c24_i32_121 = arith.constant 24 : i32
    %294 = vector.broadcast %c24_i32_121 : i32 to vector<64x128xi32>
    %295 = arith.cmpi sge, %154, %294 : vector<64x128xi32>
    %c32_i32_122 = arith.constant 32 : i32
    %296 = vector.broadcast %c32_i32_122 : i32 to vector<64x128xi32>
    %297 = arith.cmpi slt, %154, %296 : vector<64x128xi32>
    %298 = arith.andi %295, %297 : vector<64x128xi1>
    %cst_123 = arith.constant 0.000000e+00 : f32
    %299 = vector.broadcast %cst_123 : f32 to vector<64x128xf32>
    %300 = arith.select %298, %186, %299 : vector<64x128xi1>, vector<64x128xf32>
    %301 = arith.truncf %300 : vector<64x128xf32> to vector<64x128xbf16>
    %cst_124 = arith.constant 0.000000e+00 : f32
    %302 = vector.broadcast %cst_124 : f32 to vector<64x128xf32>
    %303 = arith.select %298, %187, %302 : vector<64x128xi1>, vector<64x128xf32>
    %304 = arith.truncf %303 : vector<64x128xf32> to vector<64x128xbf16>
    %cst_125 = arith.constant dense<0.000000e+00> : vector<64x64xf32>
    %305 = tpu.matmul %301, %304, %cst_125 {dimension_numbers = #tpu.dot_dimension_numbers<[1], [1], [0], [0], [0, 0, 1, 0], [], []>} : vector<64x128xbf16>, vector<64x128xbf16>, vector<64x64xf32> -> vector<64x64xf32>
    %cst_126 = arith.constant 0.353553385 : f32
    %306 = vector.broadcast %cst_126 : f32 to vector<64x64xf32>
    %307 = arith.mulf %305, %306 : vector<64x64xf32>
    %cst_127 = arith.constant dense<0xFF800000> : vector<64xf32>
    %308 = vector.multi_reduction <maximumf>, %307, %cst_127 [1] : vector<64x64xf32> to vector<64xf32>
    %309 = vector.shape_cast %308 : vector<64xf32> to vector<64x1xf32>
    %310 = vector.broadcast %309 : vector<64x1xf32> to vector<64x64xf32>
    %311 = arith.subf %307, %310 : vector<64x64xf32>
    %312 = math.exp %311 : vector<64x64xf32>
    %cst_128 = arith.constant dense<0.000000e+00> : vector<64xf32>
    %313 = vector.multi_reduction <add>, %312, %cst_128 [1] : vector<64x64xf32> to vector<64xf32>
    %314 = vector.shape_cast %313 : vector<64xf32> to vector<64x1xf32>
    %315 = tpu.reciprocal %314 {approx = true} : vector<64x1xf32> -> vector<64x1xf32>
    %316 = vector.broadcast %315 : vector<64x1xf32> to vector<64x64xf32>
    %317 = arith.mulf %312, %316 : vector<64x64xf32>
    %c88_i32_129 = arith.constant 88 : i32
    %318 = vector.broadcast %c88_i32_129 : i32 to vector<64x128xi32>
    %319 = arith.cmpi sge, %154, %318 : vector<64x128xi32>
    %c96_i32_130 = arith.constant 96 : i32
    %320 = vector.broadcast %c96_i32_130 : i32 to vector<64x128xi32>
    %321 = arith.cmpi slt, %154, %320 : vector<64x128xi32>
    %322 = arith.andi %319, %321 : vector<64x128xi1>
    %cst_131 = arith.constant 0.000000e+00 : f32
    %323 = vector.broadcast %cst_131 : f32 to vector<64x128xf32>
    %324 = arith.select %322, %186, %323 : vector<64x128xi1>, vector<64x128xf32>
    %325 = arith.truncf %324 : vector<64x128xf32> to vector<64x128xbf16>
    %326 = arith.truncf %317 : vector<64x64xf32> to vector<64x64xbf16>
    %cst_132 = arith.constant dense<0.000000e+00> : vector<64x128xf32>
    %327 = tpu.matmul %326, %325, %cst_132 {dimension_numbers = #tpu.dot_dimension_numbers<[1], [0], [0], [1], [0, 0, 1, 1], [], []>} : vector<64x64xbf16>, vector<64x128xbf16>, vector<64x128xf32> -> vector<64x128xf32>
    %328 = arith.addf %293, %327 : vector<64x128xf32>
    %329 = arith.truncf %328 : vector<64x128xf32> to vector<64x128xbf16>
    %c0_133 = arith.constant 0 : index
    %c0_134 = arith.constant 0 : index
    %330 = vector.load %arg15[%c0_133, %c0_134] : memref<128x128xbf16, #tpu.memory_space<vmem>>, vector<128x128xbf16>
    %cst_135 = arith.constant dense<0.000000e+00> : vector<64x128xf32>
    %331 = tpu.matmul %329, %330, %cst_135 {dimension_numbers = #tpu.dot_dimension_numbers<[1], [0], [0], [1], [0, 0, 1, 1], [], []>} : vector<64x128xbf16>, vector<128x128xbf16>, vector<64x128xf32> -> vector<64x128xf32>
    %332 = arith.addf %153, %331 : vector<64x128xf32>
    %c0_136 = arith.constant 0 : index
    %c0_137 = arith.constant 0 : index
    %333 = vector.load %arg16[%c0_136, %c0_137] : memref<1x128xf32, #tpu.memory_space<vmem>>, vector<1x128xf32>
    %334 = vector.broadcast %333 : vector<1x128xf32> to vector<64x128xf32>
    %335 = arith.addf %332, %334 : vector<64x128xf32>
    %cst_138 = arith.constant dense<0.000000e+00> : vector<64xf32>
    %336 = vector.multi_reduction <add>, %335, %cst_138 [1] : vector<64x128xf32> to vector<64xf32>
    %337 = vector.shape_cast %336 : vector<64xf32> to vector<64x1xf32>
    %cst_139 = arith.constant 3.125000e-02 : f32
    %338 = vector.broadcast %cst_139 : f32 to vector<64x1xf32>
    %339 = arith.mulf %337, %338 : vector<64x1xf32>
    %340 = vector.broadcast %339 : vector<64x1xf32> to vector<64x128xf32>
    %341 = arith.subf %335, %340 : vector<64x128xf32>
    %cst_140 = arith.constant 0.000000e+00 : f32
    %342 = vector.broadcast %cst_140 : f32 to vector<64x128xf32>
    %343 = arith.select %156, %341, %342 : vector<64x128xi1>, vector<64x128xf32>
    %344 = arith.mulf %343, %343 : vector<64x128xf32>
    %cst_141 = arith.constant dense<0.000000e+00> : vector<64xf32>
    %345 = vector.multi_reduction <add>, %344, %cst_141 [1] : vector<64x128xf32> to vector<64xf32>
    %346 = vector.shape_cast %345 : vector<64xf32> to vector<64x1xf32>
    %cst_142 = arith.constant 3.125000e-02 : f32
    %347 = vector.broadcast %cst_142 : f32 to vector<64x1xf32>
    %348 = arith.mulf %346, %347 : vector<64x1xf32>
    %cst_143 = arith.constant 9.99999974E-6 : f32
    %349 = vector.broadcast %cst_143 : f32 to vector<64x1xf32>
    %350 = arith.addf %348, %349 : vector<64x1xf32>
    %351 = math.rsqrt %350 : vector<64x1xf32>
    %352 = vector.broadcast %351 : vector<64x1xf32> to vector<64x128xf32>
    %353 = arith.mulf %343, %352 : vector<64x128xf32>
    %c0_144 = arith.constant 0 : index
    %c0_145 = arith.constant 0 : index
    %354 = vector.load %arg17[%c0_144, %c0_145] : memref<1x128xf32, #tpu.memory_space<vmem>>, vector<1x128xf32>
    %355 = vector.broadcast %354 : vector<1x128xf32> to vector<64x128xf32>
    %356 = arith.mulf %353, %355 : vector<64x128xf32>
    %c0_146 = arith.constant 0 : index
    %c0_147 = arith.constant 0 : index
    %357 = vector.load %arg18[%c0_146, %c0_147] : memref<1x128xf32, #tpu.memory_space<vmem>>, vector<1x128xf32>
    %358 = vector.broadcast %357 : vector<1x128xf32> to vector<64x128xf32>
    %359 = arith.addf %356, %358 : vector<64x128xf32>
    %360 = arith.truncf %359 : vector<64x128xf32> to vector<64x128xbf16>
    %c0_148 = arith.constant 0 : index
    %c0_149 = arith.constant 0 : index
    %361 = vector.load %arg19[%c0_148, %c0_149] : memref<128x128xbf16, #tpu.memory_space<vmem>>, vector<128x128xbf16>
    %cst_150 = arith.constant dense<0.000000e+00> : vector<64x128xf32>
    %362 = tpu.matmul %360, %361, %cst_150 {dimension_numbers = #tpu.dot_dimension_numbers<[1], [0], [0], [1], [0, 0, 1, 1], [], []>} : vector<64x128xbf16>, vector<128x128xbf16>, vector<64x128xf32> -> vector<64x128xf32>
    %c0_151 = arith.constant 0 : index
    %c0_152 = arith.constant 0 : index
    %363 = vector.load %arg20[%c0_151, %c0_152] : memref<1x128xf32, #tpu.memory_space<vmem>>, vector<1x128xf32>
    %364 = vector.broadcast %363 : vector<1x128xf32> to vector<64x128xf32>
    %365 = arith.addf %362, %364 : vector<64x128xf32>
    %cst_153 = arith.constant 0.000000e+00 : f32
    %366 = vector.broadcast %cst_153 : f32 to vector<64x128xf32>
    %367 = arith.maximumf %365, %366 : vector<64x128xf32>
    %368 = arith.truncf %367 : vector<64x128xf32> to vector<64x128xbf16>
    %c0_154 = arith.constant 0 : index
    %c0_155 = arith.constant 0 : index
    %369 = vector.load %arg21[%c0_154, %c0_155] : memref<128x128xbf16, #tpu.memory_space<vmem>>, vector<128x128xbf16>
    %cst_156 = arith.constant dense<0.000000e+00> : vector<64x128xf32>
    %370 = tpu.matmul %368, %369, %cst_156 {dimension_numbers = #tpu.dot_dimension_numbers<[1], [0], [0], [1], [0, 0, 1, 1], [], []>} : vector<64x128xbf16>, vector<128x128xbf16>, vector<64x128xf32> -> vector<64x128xf32>
    %371 = arith.addf %335, %370 : vector<64x128xf32>
    %c0_157 = arith.constant 0 : index
    %c0_158 = arith.constant 0 : index
    %372 = vector.load %arg22[%c0_157, %c0_158] : memref<1x128xf32, #tpu.memory_space<vmem>>, vector<1x128xf32>
    %373 = vector.broadcast %372 : vector<1x128xf32> to vector<64x128xf32>
    %374 = arith.addf %371, %373 : vector<64x128xf32>
    %c9_i32_159 = arith.constant 9 : i32
    %375 = tpu.dynamic_rotate %374 by %c9_i32_159 dim 0 : vector<64x128xf32>, i32 -> vector<64x128xf32>
    %c0_160 = arith.constant 0 : index
    %c0_161 = arith.constant 0 : index
    %c0_162 = arith.constant 0 : index
    %376 = vector.load %arg26[%c0_160, %c0_161, %c0_162] : memref<9x64x1xf32, #tpu.memory_space<vmem>>, vector<1x64x1xf32>
    %377 = vector.shape_cast %376 : vector<1x64x1xf32> to vector<64x1xf32>
    %378 = vector.broadcast %377 : vector<64x1xf32> to vector<64x128xf32>
    %379 = arith.mulf %375, %378 : vector<64x128xf32>
    %c8_i32_163 = arith.constant 8 : i32
    %380 = tpu.dynamic_rotate %374 by %c8_i32_163 dim 0 : vector<64x128xf32>, i32 -> vector<64x128xf32>
    %c1_164 = arith.constant 1 : index
    %c0_165 = arith.constant 0 : index
    %c0_166 = arith.constant 0 : index
    %381 = vector.load %arg26[%c1_164, %c0_165, %c0_166] : memref<9x64x1xf32, #tpu.memory_space<vmem>>, vector<1x64x1xf32>
    %382 = vector.shape_cast %381 : vector<1x64x1xf32> to vector<64x1xf32>
    %383 = vector.broadcast %382 : vector<64x1xf32> to vector<64x128xf32>
    %384 = arith.mulf %380, %383 : vector<64x128xf32>
    %c32_i32_167 = arith.constant 32 : i32
    %385 = tpu.dynamic_rotate %384 by %c32_i32_167 dim 1 : vector<64x128xf32>, i32 -> vector<64x128xf32>
    %386 = arith.addf %379, %385 : vector<64x128xf32>
    %c7_i32_168 = arith.constant 7 : i32
    %387 = tpu.dynamic_rotate %374 by %c7_i32_168 dim 0 : vector<64x128xf32>, i32 -> vector<64x128xf32>
    %c2_169 = arith.constant 2 : index
    %c0_170 = arith.constant 0 : index
    %c0_171 = arith.constant 0 : index
    %388 = vector.load %arg26[%c2_169, %c0_170, %c0_171] : memref<9x64x1xf32, #tpu.memory_space<vmem>>, vector<1x64x1xf32>
    %389 = vector.shape_cast %388 : vector<1x64x1xf32> to vector<64x1xf32>
    %390 = vector.broadcast %389 : vector<64x1xf32> to vector<64x128xf32>
    %391 = arith.mulf %387, %390 : vector<64x128xf32>
    %c64_i32_172 = arith.constant 64 : i32
    %392 = tpu.dynamic_rotate %391 by %c64_i32_172 dim 1 : vector<64x128xf32>, i32 -> vector<64x128xf32>
    %393 = arith.addf %386, %392 : vector<64x128xf32>
    %c1_i32_173 = arith.constant 1 : i32
    %394 = tpu.dynamic_rotate %374 by %c1_i32_173 dim 0 : vector<64x128xf32>, i32 -> vector<64x128xf32>
    %c3_174 = arith.constant 3 : index
    %c0_175 = arith.constant 0 : index
    %c0_176 = arith.constant 0 : index
    %395 = vector.load %arg26[%c3_174, %c0_175, %c0_176] : memref<9x64x1xf32, #tpu.memory_space<vmem>>, vector<1x64x1xf32>
    %396 = vector.shape_cast %395 : vector<1x64x1xf32> to vector<64x1xf32>
    %397 = vector.broadcast %396 : vector<64x1xf32> to vector<64x128xf32>
    %398 = arith.mulf %394, %397 : vector<64x128xf32>
    %c96_i32_177 = arith.constant 96 : i32
    %399 = tpu.dynamic_rotate %398 by %c96_i32_177 dim 1 : vector<64x128xf32>, i32 -> vector<64x128xf32>
    %400 = arith.addf %393, %399 : vector<64x128xf32>
    %c4_178 = arith.constant 4 : index
    %c0_179 = arith.constant 0 : index
    %c0_180 = arith.constant 0 : index
    %401 = vector.load %arg26[%c4_178, %c0_179, %c0_180] : memref<9x64x1xf32, #tpu.memory_space<vmem>>, vector<1x64x1xf32>
    %402 = vector.shape_cast %401 : vector<1x64x1xf32> to vector<64x1xf32>
    %403 = vector.broadcast %402 : vector<64x1xf32> to vector<64x128xf32>
    %404 = arith.mulf %374, %403 : vector<64x128xf32>
    %c63_i32_181 = arith.constant 63 : i32
    %405 = tpu.dynamic_rotate %374 by %c63_i32_181 dim 0 : vector<64x128xf32>, i32 -> vector<64x128xf32>
    %c5_182 = arith.constant 5 : index
    %c0_183 = arith.constant 0 : index
    %c0_184 = arith.constant 0 : index
    %406 = vector.load %arg26[%c5_182, %c0_183, %c0_184] : memref<9x64x1xf32, #tpu.memory_space<vmem>>, vector<1x64x1xf32>
    %407 = vector.shape_cast %406 : vector<1x64x1xf32> to vector<64x1xf32>
    %408 = vector.broadcast %407 : vector<64x1xf32> to vector<64x128xf32>
    %409 = arith.mulf %405, %408 : vector<64x128xf32>
    %c32_i32_185 = arith.constant 32 : i32
    %410 = tpu.dynamic_rotate %409 by %c32_i32_185 dim 1 : vector<64x128xf32>, i32 -> vector<64x128xf32>
    %411 = arith.addf %404, %410 : vector<64x128xf32>
    %c57_i32_186 = arith.constant 57 : i32
    %412 = tpu.dynamic_rotate %374 by %c57_i32_186 dim 0 : vector<64x128xf32>, i32 -> vector<64x128xf32>
    %c6_187 = arith.constant 6 : index
    %c0_188 = arith.constant 0 : index
    %c0_189 = arith.constant 0 : index
    %413 = vector.load %arg26[%c6_187, %c0_188, %c0_189] : memref<9x64x1xf32, #tpu.memory_space<vmem>>, vector<1x64x1xf32>
    %414 = vector.shape_cast %413 : vector<1x64x1xf32> to vector<64x1xf32>
    %415 = vector.broadcast %414 : vector<64x1xf32> to vector<64x128xf32>
    %416 = arith.mulf %412, %415 : vector<64x128xf32>
    %c64_i32_190 = arith.constant 64 : i32
    %417 = tpu.dynamic_rotate %416 by %c64_i32_190 dim 1 : vector<64x128xf32>, i32 -> vector<64x128xf32>
    %418 = arith.addf %411, %417 : vector<64x128xf32>
    %c56_i32_191 = arith.constant 56 : i32
    %419 = tpu.dynamic_rotate %374 by %c56_i32_191 dim 0 : vector<64x128xf32>, i32 -> vector<64x128xf32>
    %c7_192 = arith.constant 7 : index
    %c0_193 = arith.constant 0 : index
    %c0_194 = arith.constant 0 : index
    %420 = vector.load %arg26[%c7_192, %c0_193, %c0_194] : memref<9x64x1xf32, #tpu.memory_space<vmem>>, vector<1x64x1xf32>
    %421 = vector.shape_cast %420 : vector<1x64x1xf32> to vector<64x1xf32>
    %422 = vector.broadcast %421 : vector<64x1xf32> to vector<64x128xf32>
    %423 = arith.mulf %419, %422 : vector<64x128xf32>
    %c96_i32_195 = arith.constant 96 : i32
    %424 = tpu.dynamic_rotate %423 by %c96_i32_195 dim 1 : vector<64x128xf32>, i32 -> vector<64x128xf32>
    %425 = arith.addf %418, %424 : vector<64x128xf32>
    %c55_i32_196 = arith.constant 55 : i32
    %426 = tpu.dynamic_rotate %374 by %c55_i32_196 dim 0 : vector<64x128xf32>, i32 -> vector<64x128xf32>
    %c8_197 = arith.constant 8 : index
    %c0_198 = arith.constant 0 : index
    %c0_199 = arith.constant 0 : index
    %427 = vector.load %arg26[%c8_197, %c0_198, %c0_199] : memref<9x64x1xf32, #tpu.memory_space<vmem>>, vector<1x64x1xf32>
    %428 = vector.shape_cast %427 : vector<1x64x1xf32> to vector<64x1xf32>
    %429 = vector.broadcast %428 : vector<64x1xf32> to vector<64x128xf32>
    %430 = arith.mulf %426, %429 : vector<64x128xf32>
    %431 = tpu.concatenate %400, %425, %430 in 1 : vector<64x128xf32>, vector<64x128xf32>, vector<64x128xf32> -> vector<64x384xf32>
    %432 = arith.truncf %431 : vector<64x384xf32> to vector<64x384xbf16>
    %c0_200 = arith.constant 0 : index
    %c0_201 = arith.constant 0 : index
    %433 = vector.load %arg27[%c0_200, %c0_201] : memref<16x64xbf16, #tpu.memory_space<vmem>>, vector<16x64xbf16>
    %cst_202 = arith.constant dense<0.000000e+00> : vector<16x384xf32>
    %434 = tpu.matmul %433, %432, %cst_202 {dimension_numbers = #tpu.dot_dimension_numbers<[1], [0], [0], [1], [0, 0, 1, 1], [], []>} : vector<16x64xbf16>, vector<64x384xbf16>, vector<16x384xf32> -> vector<16x384xf32>
    %435 = arith.truncf %434 : vector<16x384xf32> to vector<16x384xbf16>
    %c0_203 = arith.constant 0 : index
    %c0_204 = arith.constant 0 : index
    %436 = vector.load %arg23[%c0_203, %c0_204] : memref<384x128xbf16, #tpu.memory_space<vmem>>, vector<384x128xbf16>
    %cst_205 = arith.constant dense<0.000000e+00> : vector<16x128xf32>
    %437 = tpu.matmul %435, %436, %cst_205 {dimension_numbers = #tpu.dot_dimension_numbers<[1], [0], [0], [1], [0, 0, 1, 1], [], []>} : vector<16x384xbf16>, vector<384x128xbf16>, vector<16x128xf32> -> vector<16x128xf32>
    %c0_206 = arith.constant 0 : index
    %c0_207 = arith.constant 0 : index
    %438 = vector.load %arg24[%c0_206, %c0_207] : memref<1x128xf32, #tpu.memory_space<vmem>>, vector<1x128xf32>
    %439 = vector.broadcast %438 : vector<1x128xf32> to vector<16x128xf32>
    %440 = arith.mulf %437, %439 : vector<16x128xf32>
    %c0_208 = arith.constant 0 : index
    %c0_209 = arith.constant 0 : index
    %441 = vector.load %arg25[%c0_208, %c0_209] : memref<1x128xf32, #tpu.memory_space<vmem>>, vector<1x128xf32>
    %442 = vector.broadcast %441 : vector<1x128xf32> to vector<16x128xf32>
    %443 = arith.addf %440, %442 : vector<16x128xf32>
    %444 = arith.negf %443 : vector<16x128xf32>
    %445 = math.exp %444 : vector<16x128xf32>
    %cst_210 = arith.constant 1.000000e+00 : f32
    %446 = vector.broadcast %cst_210 : f32 to vector<16x128xf32>
    %447 = arith.addf %446, %445 : vector<16x128xf32>
    %448 = arith.divf %446, %447 : vector<16x128xf32>
    %449 = arith.mulf %443, %448 : vector<16x128xf32>
    %450 = tpu.iota {dimensions = array<i32: 1>} : vector<16x128xi32>
    %c64_i32_211 = arith.constant 64 : i32
    %451 = vector.broadcast %c64_i32_211 : i32 to vector<16x128xi32>
    %452 = arith.cmpi slt, %450, %451 : vector<16x128xi32>
    %cst_212 = arith.constant dense<0.000000e+00> : vector<16xf32>
    %453 = vector.multi_reduction <add>, %449, %cst_212 [1] : vector<16x128xf32> to vector<16xf32>
    %454 = vector.shape_cast %453 : vector<16xf32> to vector<16x1xf32>
    %cst_213 = arith.constant 1.562500e-02 : f32
    %455 = vector.broadcast %cst_213 : f32 to vector<16x1xf32>
    %456 = arith.mulf %454, %455 : vector<16x1xf32>
    %457 = vector.broadcast %456 : vector<16x1xf32> to vector<16x128xf32>
    %458 = arith.subf %449, %457 : vector<16x128xf32>
    %cst_214 = arith.constant 0.000000e+00 : f32
    %459 = vector.broadcast %cst_214 : f32 to vector<16x128xf32>
    %460 = arith.select %452, %458, %459 : vector<16x128xi1>, vector<16x128xf32>
    %461 = arith.mulf %460, %460 : vector<16x128xf32>
    %cst_215 = arith.constant dense<0.000000e+00> : vector<16xf32>
    %462 = vector.multi_reduction <add>, %461, %cst_215 [1] : vector<16x128xf32> to vector<16xf32>
    %463 = vector.shape_cast %462 : vector<16xf32> to vector<16x1xf32>
    %cst_216 = arith.constant 1.562500e-02 : f32
    %464 = vector.broadcast %cst_216 : f32 to vector<16x1xf32>
    %465 = arith.mulf %463, %464 : vector<16x1xf32>
    %cst_217 = arith.constant 9.99999974E-6 : f32
    %466 = vector.broadcast %cst_217 : f32 to vector<16x1xf32>
    %467 = arith.addf %465, %466 : vector<16x1xf32>
    %468 = math.rsqrt %467 : vector<16x1xf32>
    %469 = vector.broadcast %468 : vector<16x1xf32> to vector<16x128xf32>
    %470 = arith.mulf %460, %469 : vector<16x128xf32>
    %c0_218 = arith.constant 0 : index
    %c0_219 = arith.constant 0 : index
    %471 = vector.load %arg28[%c0_218, %c0_219] : memref<1x128xf32, #tpu.memory_space<vmem>>, vector<1x128xf32>
    %472 = vector.broadcast %471 : vector<1x128xf32> to vector<16x128xf32>
    %473 = arith.mulf %470, %472 : vector<16x128xf32>
    %c0_220 = arith.constant 0 : index
    %c0_221 = arith.constant 0 : index
    %474 = vector.load %arg29[%c0_220, %c0_221] : memref<1x128xf32, #tpu.memory_space<vmem>>, vector<1x128xf32>
    %475 = vector.broadcast %474 : vector<1x128xf32> to vector<16x128xf32>
    %476 = arith.addf %473, %475 : vector<16x128xf32>
    %477 = arith.truncf %476 : vector<16x128xf32> to vector<16x128xbf16>
    %c0_222 = arith.constant 0 : index
    %c0_223 = arith.constant 0 : index
    %478 = vector.load %arg30[%c0_222, %c0_223] : memref<128x256xbf16, #tpu.memory_space<vmem>>, vector<128x256xbf16>
    %cst_224 = arith.constant dense<0.000000e+00> : vector<16x256xf32>
    %479 = tpu.matmul %477, %478, %cst_224 {dimension_numbers = #tpu.dot_dimension_numbers<[1], [0], [0], [1], [0, 0, 1, 1], [], []>} : vector<16x128xbf16>, vector<128x256xbf16>, vector<16x256xf32> -> vector<16x256xf32>
    %c0_225 = arith.constant 0 : index
    %c0_226 = arith.constant 0 : index
    %480 = vector.load %arg31[%c0_225, %c0_226] : memref<1x256xf32, #tpu.memory_space<vmem>>, vector<1x256xf32>
    %481 = vector.broadcast %480 : vector<1x256xf32> to vector<16x256xf32>
    %482 = arith.addf %479, %481 : vector<16x256xf32>
    %483 = vector.extract_strided_slice %482 {offsets = [0, 0], sizes = [16, 128], strides = [1, 1]} : vector<16x256xf32> to vector<16x128xf32>
    %c64_i32_227 = arith.constant 64 : i32
    %484 = tpu.dynamic_rotate %483 by %c64_i32_227 dim 1 : vector<16x128xf32>, i32 -> vector<16x128xf32>
    %485 = vector.extract_strided_slice %482 {offsets = [0, 128], sizes = [16, 128], strides = [1, 1]} : vector<16x256xf32> to vector<16x128xf32>
    %cst_228 = arith.constant 0.000000e+00 : f32
    %486 = vector.broadcast %cst_228 : f32 to vector<16x128xf32>
    %c0_i32_229 = arith.constant 0 : i32
    %487 = vector.broadcast %c0_i32_229 : i32 to vector<16x128xi32>
    %488 = arith.cmpi sge, %450, %487 : vector<16x128xi32>
    %c16_i32_230 = arith.constant 16 : i32
    %489 = vector.broadcast %c16_i32_230 : i32 to vector<16x128xi32>
    %490 = arith.cmpi slt, %450, %489 : vector<16x128xi32>
    %491 = arith.andi %488, %490 : vector<16x128xi1>
    %cst_231 = arith.constant 0.000000e+00 : f32
    %492 = vector.broadcast %cst_231 : f32 to vector<16x128xf32>
    %493 = arith.select %491, %483, %492 : vector<16x128xi1>, vector<16x128xf32>
    %494 = arith.truncf %493 : vector<16x128xf32> to vector<16x128xbf16>
    %cst_232 = arith.constant 0.000000e+00 : f32
    %495 = vector.broadcast %cst_232 : f32 to vector<16x128xf32>
    %496 = arith.select %491, %484, %495 : vector<16x128xi1>, vector<16x128xf32>
    %497 = arith.truncf %496 : vector<16x128xf32> to vector<16x128xbf16>
    %cst_233 = arith.constant dense<0.000000e+00> : vector<16x16xf32>
    %498 = tpu.matmul %494, %497, %cst_233 {dimension_numbers = #tpu.dot_dimension_numbers<[1], [1], [0], [0], [0, 0, 1, 0], [], []>} : vector<16x128xbf16>, vector<16x128xbf16>, vector<16x16xf32> -> vector<16x16xf32>
    %cst_234 = arith.constant 2.500000e-01 : f32
    %499 = vector.broadcast %cst_234 : f32 to vector<16x16xf32>
    %500 = arith.mulf %498, %499 : vector<16x16xf32>
    %cst_235 = arith.constant dense<0xFF800000> : vector<16xf32>
    %501 = vector.multi_reduction <maximumf>, %500, %cst_235 [1] : vector<16x16xf32> to vector<16xf32>
    %502 = vector.shape_cast %501 : vector<16xf32> to vector<16x1xf32>
    %503 = vector.broadcast %502 : vector<16x1xf32> to vector<16x16xf32>
    %504 = arith.subf %500, %503 : vector<16x16xf32>
    %505 = math.exp %504 : vector<16x16xf32>
    %cst_236 = arith.constant dense<0.000000e+00> : vector<16xf32>
    %506 = vector.multi_reduction <add>, %505, %cst_236 [1] : vector<16x16xf32> to vector<16xf32>
    %507 = vector.shape_cast %506 : vector<16xf32> to vector<16x1xf32>
    %508 = tpu.reciprocal %507 {approx = true} : vector<16x1xf32> -> vector<16x1xf32>
    %509 = vector.broadcast %508 : vector<16x1xf32> to vector<16x16xf32>
    %510 = arith.mulf %505, %509 : vector<16x16xf32>
    %c0_i32_237 = arith.constant 0 : i32
    %511 = vector.broadcast %c0_i32_237 : i32 to vector<16x128xi32>
    %512 = arith.cmpi sge, %450, %511 : vector<16x128xi32>
    %c16_i32_238 = arith.constant 16 : i32
    %513 = vector.broadcast %c16_i32_238 : i32 to vector<16x128xi32>
    %514 = arith.cmpi slt, %450, %513 : vector<16x128xi32>
    %515 = arith.andi %512, %514 : vector<16x128xi1>
    %cst_239 = arith.constant 0.000000e+00 : f32
    %516 = vector.broadcast %cst_239 : f32 to vector<16x128xf32>
    %517 = arith.select %515, %485, %516 : vector<16x128xi1>, vector<16x128xf32>
    %518 = arith.truncf %517 : vector<16x128xf32> to vector<16x128xbf16>
    %519 = arith.truncf %510 : vector<16x16xf32> to vector<16x16xbf16>
    %cst_240 = arith.constant dense<0.000000e+00> : vector<16x128xf32>
    %520 = tpu.matmul %519, %518, %cst_240 {dimension_numbers = #tpu.dot_dimension_numbers<[1], [0], [0], [1], [0, 0, 1, 1], [], []>} : vector<16x16xbf16>, vector<16x128xbf16>, vector<16x128xf32> -> vector<16x128xf32>
    %521 = arith.addf %486, %520 : vector<16x128xf32>
    %c16_i32_241 = arith.constant 16 : i32
    %522 = vector.broadcast %c16_i32_241 : i32 to vector<16x128xi32>
    %523 = arith.cmpi sge, %450, %522 : vector<16x128xi32>
    %c32_i32_242 = arith.constant 32 : i32
    %524 = vector.broadcast %c32_i32_242 : i32 to vector<16x128xi32>
    %525 = arith.cmpi slt, %450, %524 : vector<16x128xi32>
    %526 = arith.andi %523, %525 : vector<16x128xi1>
    %cst_243 = arith.constant 0.000000e+00 : f32
    %527 = vector.broadcast %cst_243 : f32 to vector<16x128xf32>
    %528 = arith.select %526, %483, %527 : vector<16x128xi1>, vector<16x128xf32>
    %529 = arith.truncf %528 : vector<16x128xf32> to vector<16x128xbf16>
    %cst_244 = arith.constant 0.000000e+00 : f32
    %530 = vector.broadcast %cst_244 : f32 to vector<16x128xf32>
    %531 = arith.select %526, %484, %530 : vector<16x128xi1>, vector<16x128xf32>
    %532 = arith.truncf %531 : vector<16x128xf32> to vector<16x128xbf16>
    %cst_245 = arith.constant dense<0.000000e+00> : vector<16x16xf32>
    %533 = tpu.matmul %529, %532, %cst_245 {dimension_numbers = #tpu.dot_dimension_numbers<[1], [1], [0], [0], [0, 0, 1, 0], [], []>} : vector<16x128xbf16>, vector<16x128xbf16>, vector<16x16xf32> -> vector<16x16xf32>
    %cst_246 = arith.constant 2.500000e-01 : f32
    %534 = vector.broadcast %cst_246 : f32 to vector<16x16xf32>
    %535 = arith.mulf %533, %534 : vector<16x16xf32>
    %cst_247 = arith.constant dense<0xFF800000> : vector<16xf32>
    %536 = vector.multi_reduction <maximumf>, %535, %cst_247 [1] : vector<16x16xf32> to vector<16xf32>
    %537 = vector.shape_cast %536 : vector<16xf32> to vector<16x1xf32>
    %538 = vector.broadcast %537 : vector<16x1xf32> to vector<16x16xf32>
    %539 = arith.subf %535, %538 : vector<16x16xf32>
    %540 = math.exp %539 : vector<16x16xf32>
    %cst_248 = arith.constant dense<0.000000e+00> : vector<16xf32>
    %541 = vector.multi_reduction <add>, %540, %cst_248 [1] : vector<16x16xf32> to vector<16xf32>
    %542 = vector.shape_cast %541 : vector<16xf32> to vector<16x1xf32>
    %543 = tpu.reciprocal %542 {approx = true} : vector<16x1xf32> -> vector<16x1xf32>
    %544 = vector.broadcast %543 : vector<16x1xf32> to vector<16x16xf32>
    %545 = arith.mulf %540, %544 : vector<16x16xf32>
    %c16_i32_249 = arith.constant 16 : i32
    %546 = vector.broadcast %c16_i32_249 : i32 to vector<16x128xi32>
    %547 = arith.cmpi sge, %450, %546 : vector<16x128xi32>
    %c32_i32_250 = arith.constant 32 : i32
    %548 = vector.broadcast %c32_i32_250 : i32 to vector<16x128xi32>
    %549 = arith.cmpi slt, %450, %548 : vector<16x128xi32>
    %550 = arith.andi %547, %549 : vector<16x128xi1>
    %cst_251 = arith.constant 0.000000e+00 : f32
    %551 = vector.broadcast %cst_251 : f32 to vector<16x128xf32>
    %552 = arith.select %550, %485, %551 : vector<16x128xi1>, vector<16x128xf32>
    %553 = arith.truncf %552 : vector<16x128xf32> to vector<16x128xbf16>
    %554 = arith.truncf %545 : vector<16x16xf32> to vector<16x16xbf16>
    %cst_252 = arith.constant dense<0.000000e+00> : vector<16x128xf32>
    %555 = tpu.matmul %554, %553, %cst_252 {dimension_numbers = #tpu.dot_dimension_numbers<[1], [0], [0], [1], [0, 0, 1, 1], [], []>} : vector<16x16xbf16>, vector<16x128xbf16>, vector<16x128xf32> -> vector<16x128xf32>
    %556 = arith.addf %521, %555 : vector<16x128xf32>
    %c32_i32_253 = arith.constant 32 : i32
    %557 = vector.broadcast %c32_i32_253 : i32 to vector<16x128xi32>
    %558 = arith.cmpi sge, %450, %557 : vector<16x128xi32>
    %c48_i32_254 = arith.constant 48 : i32
    %559 = vector.broadcast %c48_i32_254 : i32 to vector<16x128xi32>
    %560 = arith.cmpi slt, %450, %559 : vector<16x128xi32>
    %561 = arith.andi %558, %560 : vector<16x128xi1>
    %cst_255 = arith.constant 0.000000e+00 : f32
    %562 = vector.broadcast %cst_255 : f32 to vector<16x128xf32>
    %563 = arith.select %561, %483, %562 : vector<16x128xi1>, vector<16x128xf32>
    %564 = arith.truncf %563 : vector<16x128xf32> to vector<16x128xbf16>
    %cst_256 = arith.constant 0.000000e+00 : f32
    %565 = vector.broadcast %cst_256 : f32 to vector<16x128xf32>
    %566 = arith.select %561, %484, %565 : vector<16x128xi1>, vector<16x128xf32>
    %567 = arith.truncf %566 : vector<16x128xf32> to vector<16x128xbf16>
    %cst_257 = arith.constant dense<0.000000e+00> : vector<16x16xf32>
    %568 = tpu.matmul %564, %567, %cst_257 {dimension_numbers = #tpu.dot_dimension_numbers<[1], [1], [0], [0], [0, 0, 1, 0], [], []>} : vector<16x128xbf16>, vector<16x128xbf16>, vector<16x16xf32> -> vector<16x16xf32>
    %cst_258 = arith.constant 2.500000e-01 : f32
    %569 = vector.broadcast %cst_258 : f32 to vector<16x16xf32>
    %570 = arith.mulf %568, %569 : vector<16x16xf32>
    %cst_259 = arith.constant dense<0xFF800000> : vector<16xf32>
    %571 = vector.multi_reduction <maximumf>, %570, %cst_259 [1] : vector<16x16xf32> to vector<16xf32>
    %572 = vector.shape_cast %571 : vector<16xf32> to vector<16x1xf32>
    %573 = vector.broadcast %572 : vector<16x1xf32> to vector<16x16xf32>
    %574 = arith.subf %570, %573 : vector<16x16xf32>
    %575 = math.exp %574 : vector<16x16xf32>
    %cst_260 = arith.constant dense<0.000000e+00> : vector<16xf32>
    %576 = vector.multi_reduction <add>, %575, %cst_260 [1] : vector<16x16xf32> to vector<16xf32>
    %577 = vector.shape_cast %576 : vector<16xf32> to vector<16x1xf32>
    %578 = tpu.reciprocal %577 {approx = true} : vector<16x1xf32> -> vector<16x1xf32>
    %579 = vector.broadcast %578 : vector<16x1xf32> to vector<16x16xf32>
    %580 = arith.mulf %575, %579 : vector<16x16xf32>
    %c32_i32_261 = arith.constant 32 : i32
    %581 = vector.broadcast %c32_i32_261 : i32 to vector<16x128xi32>
    %582 = arith.cmpi sge, %450, %581 : vector<16x128xi32>
    %c48_i32_262 = arith.constant 48 : i32
    %583 = vector.broadcast %c48_i32_262 : i32 to vector<16x128xi32>
    %584 = arith.cmpi slt, %450, %583 : vector<16x128xi32>
    %585 = arith.andi %582, %584 : vector<16x128xi1>
    %cst_263 = arith.constant 0.000000e+00 : f32
    %586 = vector.broadcast %cst_263 : f32 to vector<16x128xf32>
    %587 = arith.select %585, %485, %586 : vector<16x128xi1>, vector<16x128xf32>
    %588 = arith.truncf %587 : vector<16x128xf32> to vector<16x128xbf16>
    %589 = arith.truncf %580 : vector<16x16xf32> to vector<16x16xbf16>
    %cst_264 = arith.constant dense<0.000000e+00> : vector<16x128xf32>
    %590 = tpu.matmul %589, %588, %cst_264 {dimension_numbers = #tpu.dot_dimension_numbers<[1], [0], [0], [1], [0, 0, 1, 1], [], []>} : vector<16x16xbf16>, vector<16x128xbf16>, vector<16x128xf32> -> vector<16x128xf32>
    %591 = arith.addf %556, %590 : vector<16x128xf32>
    %c48_i32_265 = arith.constant 48 : i32
    %592 = vector.broadcast %c48_i32_265 : i32 to vector<16x128xi32>
    %593 = arith.cmpi sge, %450, %592 : vector<16x128xi32>
    %c64_i32_266 = arith.constant 64 : i32
    %594 = vector.broadcast %c64_i32_266 : i32 to vector<16x128xi32>
    %595 = arith.cmpi slt, %450, %594 : vector<16x128xi32>
    %596 = arith.andi %593, %595 : vector<16x128xi1>
    %cst_267 = arith.constant 0.000000e+00 : f32
    %597 = vector.broadcast %cst_267 : f32 to vector<16x128xf32>
    %598 = arith.select %596, %483, %597 : vector<16x128xi1>, vector<16x128xf32>
    %599 = arith.truncf %598 : vector<16x128xf32> to vector<16x128xbf16>
    %cst_268 = arith.constant 0.000000e+00 : f32
    %600 = vector.broadcast %cst_268 : f32 to vector<16x128xf32>
    %601 = arith.select %596, %484, %600 : vector<16x128xi1>, vector<16x128xf32>
    %602 = arith.truncf %601 : vector<16x128xf32> to vector<16x128xbf16>
    %cst_269 = arith.constant dense<0.000000e+00> : vector<16x16xf32>
    %603 = tpu.matmul %599, %602, %cst_269 {dimension_numbers = #tpu.dot_dimension_numbers<[1], [1], [0], [0], [0, 0, 1, 0], [], []>} : vector<16x128xbf16>, vector<16x128xbf16>, vector<16x16xf32> -> vector<16x16xf32>
    %cst_270 = arith.constant 2.500000e-01 : f32
    %604 = vector.broadcast %cst_270 : f32 to vector<16x16xf32>
    %605 = arith.mulf %603, %604 : vector<16x16xf32>
    %cst_271 = arith.constant dense<0xFF800000> : vector<16xf32>
    %606 = vector.multi_reduction <maximumf>, %605, %cst_271 [1] : vector<16x16xf32> to vector<16xf32>
    %607 = vector.shape_cast %606 : vector<16xf32> to vector<16x1xf32>
    %608 = vector.broadcast %607 : vector<16x1xf32> to vector<16x16xf32>
    %609 = arith.subf %605, %608 : vector<16x16xf32>
    %610 = math.exp %609 : vector<16x16xf32>
    %cst_272 = arith.constant dense<0.000000e+00> : vector<16xf32>
    %611 = vector.multi_reduction <add>, %610, %cst_272 [1] : vector<16x16xf32> to vector<16xf32>
    %612 = vector.shape_cast %611 : vector<16xf32> to vector<16x1xf32>
    %613 = tpu.reciprocal %612 {approx = true} : vector<16x1xf32> -> vector<16x1xf32>
    %614 = vector.broadcast %613 : vector<16x1xf32> to vector<16x16xf32>
    %615 = arith.mulf %610, %614 : vector<16x16xf32>
    %c48_i32_273 = arith.constant 48 : i32
    %616 = vector.broadcast %c48_i32_273 : i32 to vector<16x128xi32>
    %617 = arith.cmpi sge, %450, %616 : vector<16x128xi32>
    %c64_i32_274 = arith.constant 64 : i32
    %618 = vector.broadcast %c64_i32_274 : i32 to vector<16x128xi32>
    %619 = arith.cmpi slt, %450, %618 : vector<16x128xi32>
    %620 = arith.andi %617, %619 : vector<16x128xi1>
    %cst_275 = arith.constant 0.000000e+00 : f32
    %621 = vector.broadcast %cst_275 : f32 to vector<16x128xf32>
    %622 = arith.select %620, %485, %621 : vector<16x128xi1>, vector<16x128xf32>
    %623 = arith.truncf %622 : vector<16x128xf32> to vector<16x128xbf16>
    %624 = arith.truncf %615 : vector<16x16xf32> to vector<16x16xbf16>
    %cst_276 = arith.constant dense<0.000000e+00> : vector<16x128xf32>
    %625 = tpu.matmul %624, %623, %cst_276 {dimension_numbers = #tpu.dot_dimension_numbers<[1], [0], [0], [1], [0, 0, 1, 1], [], []>} : vector<16x16xbf16>, vector<16x128xbf16>, vector<16x128xf32> -> vector<16x128xf32>
    %626 = arith.addf %591, %625 : vector<16x128xf32>
    %627 = arith.truncf %626 : vector<16x128xf32> to vector<16x128xbf16>
    %c0_277 = arith.constant 0 : index
    %c0_278 = arith.constant 0 : index
    %628 = vector.load %arg32[%c0_277, %c0_278] : memref<128x128xbf16, #tpu.memory_space<vmem>>, vector<128x128xbf16>
    %cst_279 = arith.constant dense<0.000000e+00> : vector<16x128xf32>
    %629 = tpu.matmul %627, %628, %cst_279 {dimension_numbers = #tpu.dot_dimension_numbers<[1], [0], [0], [1], [0, 0, 1, 1], [], []>} : vector<16x128xbf16>, vector<128x128xbf16>, vector<16x128xf32> -> vector<16x128xf32>
    %630 = arith.addf %449, %629 : vector<16x128xf32>
    %c0_280 = arith.constant 0 : index
    %c0_281 = arith.constant 0 : index
    %631 = vector.load %arg33[%c0_280, %c0_281] : memref<1x128xf32, #tpu.memory_space<vmem>>, vector<1x128xf32>
    %632 = vector.broadcast %631 : vector<1x128xf32> to vector<16x128xf32>
    %633 = arith.addf %630, %632 : vector<16x128xf32>
    %cst_282 = arith.constant dense<0.000000e+00> : vector<16xf32>
    %634 = vector.multi_reduction <add>, %633, %cst_282 [1] : vector<16x128xf32> to vector<16xf32>
    %635 = vector.shape_cast %634 : vector<16xf32> to vector<16x1xf32>
    %cst_283 = arith.constant 1.562500e-02 : f32
    %636 = vector.broadcast %cst_283 : f32 to vector<16x1xf32>
    %637 = arith.mulf %635, %636 : vector<16x1xf32>
    %638 = vector.broadcast %637 : vector<16x1xf32> to vector<16x128xf32>
    %639 = arith.subf %633, %638 : vector<16x128xf32>
    %cst_284 = arith.constant 0.000000e+00 : f32
    %640 = vector.broadcast %cst_284 : f32 to vector<16x128xf32>
    %641 = arith.select %452, %639, %640 : vector<16x128xi1>, vector<16x128xf32>
    %642 = arith.mulf %641, %641 : vector<16x128xf32>
    %cst_285 = arith.constant dense<0.000000e+00> : vector<16xf32>
    %643 = vector.multi_reduction <add>, %642, %cst_285 [1] : vector<16x128xf32> to vector<16xf32>
    %644 = vector.shape_cast %643 : vector<16xf32> to vector<16x1xf32>
    %cst_286 = arith.constant 1.562500e-02 : f32
    %645 = vector.broadcast %cst_286 : f32 to vector<16x1xf32>
    %646 = arith.mulf %644, %645 : vector<16x1xf32>
    %cst_287 = arith.constant 9.99999974E-6 : f32
    %647 = vector.broadcast %cst_287 : f32 to vector<16x1xf32>
    %648 = arith.addf %646, %647 : vector<16x1xf32>
    %649 = math.rsqrt %648 : vector<16x1xf32>
    %650 = vector.broadcast %649 : vector<16x1xf32> to vector<16x128xf32>
    %651 = arith.mulf %641, %650 : vector<16x128xf32>
    %c0_288 = arith.constant 0 : index
    %c0_289 = arith.constant 0 : index
    %652 = vector.load %arg34[%c0_288, %c0_289] : memref<1x128xf32, #tpu.memory_space<vmem>>, vector<1x128xf32>
    %653 = vector.broadcast %652 : vector<1x128xf32> to vector<16x128xf32>
    %654 = arith.mulf %651, %653 : vector<16x128xf32>
    %c0_290 = arith.constant 0 : index
    %c0_291 = arith.constant 0 : index
    %655 = vector.load %arg35[%c0_290, %c0_291] : memref<1x128xf32, #tpu.memory_space<vmem>>, vector<1x128xf32>
    %656 = vector.broadcast %655 : vector<1x128xf32> to vector<16x128xf32>
    %657 = arith.addf %654, %656 : vector<16x128xf32>
    %658 = arith.truncf %657 : vector<16x128xf32> to vector<16x128xbf16>
    %c0_292 = arith.constant 0 : index
    %c0_293 = arith.constant 0 : index
    %659 = vector.load %arg36[%c0_292, %c0_293] : memref<128x128xbf16, #tpu.memory_space<vmem>>, vector<128x128xbf16>
    %cst_294 = arith.constant dense<0.000000e+00> : vector<16x128xf32>
    %660 = tpu.matmul %658, %659, %cst_294 {dimension_numbers = #tpu.dot_dimension_numbers<[1], [0], [0], [1], [0, 0, 1, 1], [], []>} : vector<16x128xbf16>, vector<128x128xbf16>, vector<16x128xf32> -> vector<16x128xf32>
    %c0_295 = arith.constant 0 : index
    %c0_296 = arith.constant 0 : index
    %661 = vector.load %arg37[%c0_295, %c0_296] : memref<1x128xf32, #tpu.memory_space<vmem>>, vector<1x128xf32>
    %662 = vector.broadcast %661 : vector<1x128xf32> to vector<16x128xf32>
    %663 = arith.addf %660, %662 : vector<16x128xf32>
    %cst_297 = arith.constant 0.000000e+00 : f32
    %664 = vector.broadcast %cst_297 : f32 to vector<16x128xf32>
    %665 = arith.maximumf %663, %664 : vector<16x128xf32>
    %666 = arith.truncf %665 : vector<16x128xf32> to vector<16x128xbf16>
    %c0_298 = arith.constant 0 : index
    %c0_299 = arith.constant 0 : index
    %667 = vector.load %arg38[%c0_298, %c0_299] : memref<128x128xbf16, #tpu.memory_space<vmem>>, vector<128x128xbf16>
    %cst_300 = arith.constant dense<0.000000e+00> : vector<16x128xf32>
    %668 = tpu.matmul %666, %667, %cst_300 {dimension_numbers = #tpu.dot_dimension_numbers<[1], [0], [0], [1], [0, 0, 1, 1], [], []>} : vector<16x128xbf16>, vector<128x128xbf16>, vector<16x128xf32> -> vector<16x128xf32>
    %669 = arith.addf %633, %668 : vector<16x128xf32>
    %c0_301 = arith.constant 0 : index
    %c0_302 = arith.constant 0 : index
    %670 = vector.load %arg39[%c0_301, %c0_302] : memref<1x128xf32, #tpu.memory_space<vmem>>, vector<1x128xf32>
    %671 = vector.broadcast %670 : vector<1x128xf32> to vector<16x128xf32>
    %672 = arith.addf %669, %671 : vector<16x128xf32>
    %cst_303 = arith.constant dense<0.000000e+00> : vector<128xf32>
    %673 = vector.multi_reduction <add>, %672, %cst_303 [0] : vector<16x128xf32> to vector<128xf32>
    %674 = vector.shape_cast %673 : vector<128xf32> to vector<1x128xf32>
    %cst_304 = arith.constant 6.250000e-02 : f32
    %675 = vector.broadcast %cst_304 : f32 to vector<1x128xf32>
    %676 = arith.mulf %674, %675 : vector<1x128xf32>
    %677 = vector.shape_cast %676 : vector<1x128xf32> to vector<1x128xf32>
    %678 = vector.broadcast %677 : vector<1x128xf32> to vector<8x128xf32>
    %679 = arith.truncf %678 : vector<8x128xf32> to vector<8x128xbf16>
    %c0_305 = arith.constant 0 : index
    %c0_306 = arith.constant 0 : index
    %680 = vector.load %arg40[%c0_305, %c0_306] : memref<128x128xbf16, #tpu.memory_space<vmem>>, vector<128x128xbf16>
    %cst_307 = arith.constant dense<0.000000e+00> : vector<8x128xf32>
    %681 = tpu.matmul %679, %680, %cst_307 {dimension_numbers = #tpu.dot_dimension_numbers<[1], [0], [0], [1], [0, 0, 1, 1], [], []>} : vector<8x128xbf16>, vector<128x128xbf16>, vector<8x128xf32> -> vector<8x128xf32>
    %c0_308 = arith.constant 0 : index
    %c0_309 = arith.constant 0 : index
    %682 = vector.load %arg41[%c0_308, %c0_309] : memref<1x128xf32, #tpu.memory_space<vmem>>, vector<1x128xf32>
    %683 = vector.broadcast %682 : vector<1x128xf32> to vector<8x128xf32>
    %684 = arith.addf %681, %683 : vector<8x128xf32>
    %c0_310 = arith.constant 0 : index
    %c0_311 = arith.constant 0 : index
    %c0_312 = arith.constant 0 : index
    %685 = vector.load %arg42[%c0_310, %c0_311, %c0_312] : memref<1x8x128xf32, #tpu.memory_space<vmem>>, vector<1x8x128xf32>
    %686 = vector.shape_cast %685 : vector<1x8x128xf32> to vector<8x128xf32>
    %687 = vector.shape_cast %684 : vector<8x128xf32> to vector<1x8x128xf32>
    tpu.vector_store %arg42[%c0_310, %c0_311, %c0_312], %687 {strides = array<i32>} : memref<1x8x128xf32, #tpu.memory_space<vmem>>, vector<1x8x128xf32>,
    return
  }
  func.func @transform_0(%arg0: i32) -> (i32, i32, i32) {
    %c0_i32 = arith.constant 0 : i32
    %c0_i32_0 = arith.constant 0 : i32
    %c0_i32_1 = arith.constant 0 : i32
    return %arg0, %c0_i32, %c0_i32_0 : i32, i32, i32
  }
  func.func @transform_1(%arg0: i32) -> (i32, i32) {
    %c0_i32 = arith.constant 0 : i32
    %c0_i32_0 = arith.constant 0 : i32
    %c0_i32_1 = arith.constant 0 : i32
    return %c0_i32, %c0_i32_0 : i32, i32
  }
  func.func @transform_2(%arg0: i32) -> (i32, i32) {
    %c0_i32 = arith.constant 0 : i32
    %c0_i32_0 = arith.constant 0 : i32
    %c0_i32_1 = arith.constant 0 : i32
    return %c0_i32, %c0_i32_0 : i32, i32
  }
  func.func @transform_3(%arg0: i32) -> (i32, i32) {
    %c0_i32 = arith.constant 0 : i32
    %c0_i32_0 = arith.constant 0 : i32
    %c0_i32_1 = arith.constant 0 : i32
    return %c0_i32, %c0_i32_0 : i32, i32
  }
  func.func @transform_4(%arg0: i32) -> (i32, i32, i32) {
    %c0_i32 = arith.constant 0 : i32
    %c0_i32_0 = arith.constant 0 : i32
    %c0_i32_1 = arith.constant 0 : i32
    %c0_i32_2 = arith.constant 0 : i32
    return %c0_i32, %c0_i32_0, %c0_i32_1 : i32, i32, i32
  }
  func.func @transform_5(%arg0: i32) -> (i32, i32) {
    %c0_i32 = arith.constant 0 : i32
    %c0_i32_0 = arith.constant 0 : i32
    %c0_i32_1 = arith.constant 0 : i32
    return %c0_i32, %c0_i32_0 : i32, i32
  }
  func.func @transform_6(%arg0: i32) -> (i32, i32) {
    %c0_i32 = arith.constant 0 : i32
    %c0_i32_0 = arith.constant 0 : i32
    %c0_i32_1 = arith.constant 0 : i32
    return %c0_i32, %c0_i32_0 : i32, i32
  }
  func.func @transform_7(%arg0: i32) -> (i32, i32) {
    %c0_i32 = arith.constant 0 : i32
    %c0_i32_0 = arith.constant 0 : i32
    %c0_i32_1 = arith.constant 0 : i32
    return %c0_i32, %c0_i32_0 : i32, i32
  }
  func.func @transform_8(%arg0: i32) -> (i32, i32) {
    %c0_i32 = arith.constant 0 : i32
    %c0_i32_0 = arith.constant 0 : i32
    %c0_i32_1 = arith.constant 0 : i32
    return %c0_i32, %c0_i32_0 : i32, i32
  }
  func.func @transform_9(%arg0: i32) -> (i32, i32, i32) {
    %c0_i32 = arith.constant 0 : i32
    %c0_i32_0 = arith.constant 0 : i32
    %c0_i32_1 = arith.constant 0 : i32
    %c0_i32_2 = arith.constant 0 : i32
    return %c0_i32, %c0_i32_0, %c0_i32_1 : i32, i32, i32
  }
  func.func @transform_10(%arg0: i32) -> (i32, i32) {
    %c0_i32 = arith.constant 0 : i32
    %c0_i32_0 = arith.constant 0 : i32
    %c0_i32_1 = arith.constant 0 : i32
    return %c0_i32, %c0_i32_0 : i32, i32
  }
  func.func @transform_11(%arg0: i32) -> (i32, i32) {
    %c0_i32 = arith.constant 0 : i32
    %c0_i32_0 = arith.constant 0 : i32
    %c0_i32_1 = arith.constant 0 : i32
    return %c0_i32, %c0_i32_0 : i32, i32
  }
  func.func @transform_12(%arg0: i32) -> (i32, i32) {
    %c0_i32 = arith.constant 0 : i32
    %c0_i32_0 = arith.constant 0 : i32
    %c0_i32_1 = arith.constant 0 : i32
    return %c0_i32, %c0_i32_0 : i32, i32
  }
  func.func @transform_13(%arg0: i32) -> (i32, i32) {
    %c0_i32 = arith.constant 0 : i32
    %c0_i32_0 = arith.constant 0 : i32
    %c0_i32_1 = arith.constant 0 : i32
    return %c0_i32, %c0_i32_0 : i32, i32
  }
  func.func @transform_14(%arg0: i32) -> (i32, i32) {
    %c0_i32 = arith.constant 0 : i32
    %c0_i32_0 = arith.constant 0 : i32
    %c0_i32_1 = arith.constant 0 : i32
    return %c0_i32, %c0_i32_0 : i32, i32
  }
  func.func @transform_15(%arg0: i32) -> (i32, i32) {
    %c0_i32 = arith.constant 0 : i32
    %c0_i32_0 = arith.constant 0 : i32
    %c0_i32_1 = arith.constant 0 : i32
    return %c0_i32, %c0_i32_0 : i32, i32
  }
  func.func @transform_16(%arg0: i32) -> (i32, i32) {
    %c0_i32 = arith.constant 0 : i32
    %c0_i32_0 = arith.constant 0 : i32
    %c0_i32_1 = arith.constant 0 : i32
    return %c0_i32, %c0_i32_0 : i32, i32
  }
  func.func @transform_17(%arg0: i32) -> (i32, i32) {
    %c0_i32 = arith.constant 0 : i32
    %c0_i32_0 = arith.constant 0 : i32
    %c0_i32_1 = arith.constant 0 : i32
    return %c0_i32, %c0_i32_0 : i32, i32
  }
  func.func @transform_18(%arg0: i32) -> (i32, i32) {
    %c0_i32 = arith.constant 0 : i32
    %c0_i32_0 = arith.constant 0 : i32
    %c0_i32_1 = arith.constant 0 : i32
    return %c0_i32, %c0_i32_0 : i32, i32
  }
  func.func @transform_19(%arg0: i32) -> (i32, i32) {
    %c0_i32 = arith.constant 0 : i32
    %c0_i32_0 = arith.constant 0 : i32
    %c0_i32_1 = arith.constant 0 : i32
    return %c0_i32, %c0_i32_0 : i32, i32
  }
  func.func @transform_20(%arg0: i32) -> (i32, i32) {
    %c0_i32 = arith.constant 0 : i32
    %c0_i32_0 = arith.constant 0 : i32
    %c0_i32_1 = arith.constant 0 : i32
    return %c0_i32, %c0_i32_0 : i32, i32
  }
  func.func @transform_21(%arg0: i32) -> (i32, i32) {
    %c0_i32 = arith.constant 0 : i32
    %c0_i32_0 = arith.constant 0 : i32
    %c0_i32_1 = arith.constant 0 : i32
    return %c0_i32, %c0_i32_0 : i32, i32
  }
  func.func @transform_22(%arg0: i32) -> (i32, i32) {
    %c0_i32 = arith.constant 0 : i32
    %c0_i32_0 = arith.constant 0 : i32
    %c0_i32_1 = arith.constant 0 : i32
    return %c0_i32, %c0_i32_0 : i32, i32
  }
  func.func @transform_23(%arg0: i32) -> (i32, i32) {
    %c0_i32 = arith.constant 0 : i32
    %c0_i32_0 = arith.constant 0 : i32
    %c0_i32_1 = arith.constant 0 : i32
    return %c0_i32, %c0_i32_0 : i32, i32
  }
  func.func @transform_24(%arg0: i32) -> (i32, i32) {
    %c0_i32 = arith.constant 0 : i32
    %c0_i32_0 = arith.constant 0 : i32
    %c0_i32_1 = arith.constant 0 : i32
    return %c0_i32, %c0_i32_0 : i32, i32
  }
  func.func @transform_25(%arg0: i32) -> (i32, i32, i32) {
    %c0_i32 = arith.constant 0 : i32
    %c0_i32_0 = arith.constant 0 : i32
    %c0_i32_1 = arith.constant 0 : i32
    %c0_i32_2 = arith.constant 0 : i32
    return %c0_i32, %c0_i32_0, %c0_i32_1 : i32, i32, i32
  }
  func.func @transform_26(%arg0: i32) -> (i32, i32) {
    %c0_i32 = arith.constant 0 : i32
    %c0_i32_0 = arith.constant 0 : i32
    %c0_i32_1 = arith.constant 0 : i32
    return %c0_i32, %c0_i32_0 : i32, i32
  }
  func.func @transform_27(%arg0: i32) -> (i32, i32) {
    %c0_i32 = arith.constant 0 : i32
    %c0_i32_0 = arith.constant 0 : i32
    %c0_i32_1 = arith.constant 0 : i32
    return %c0_i32, %c0_i32_0 : i32, i32
  }
  func.func @transform_28(%arg0: i32) -> (i32, i32) {
    %c0_i32 = arith.constant 0 : i32
    %c0_i32_0 = arith.constant 0 : i32
    %c0_i32_1 = arith.constant 0 : i32
    return %c0_i32, %c0_i32_0 : i32, i32
  }
  func.func @transform_29(%arg0: i32) -> (i32, i32) {
    %c0_i32 = arith.constant 0 : i32
    %c0_i32_0 = arith.constant 0 : i32
    %c0_i32_1 = arith.constant 0 : i32
    return %c0_i32, %c0_i32_0 : i32, i32
  }
  func.func @transform_30(%arg0: i32) -> (i32, i32) {
    %c0_i32 = arith.constant 0 : i32
    %c0_i32_0 = arith.constant 0 : i32
    %c0_i32_1 = arith.constant 0 : i32
    return %c0_i32, %c0_i32_0 : i32, i32
  }
  func.func @transform_31(%arg0: i32) -> (i32, i32) {
    %c0_i32 = arith.constant 0 : i32
    %c0_i32_0 = arith.constant 0 : i32
    %c0_i32_1 = arith.constant 0 : i32
    return %c0_i32, %c0_i32_0 : i32, i32
  }
  func.func @transform_32(%arg0: i32) -> (i32, i32) {
    %c0_i32 = arith.constant 0 : i32
    %c0_i32_0 = arith.constant 0 : i32
    %c0_i32_1 = arith.constant 0 : i32
    return %c0_i32, %c0_i32_0 : i32, i32
  }
  func.func @transform_33(%arg0: i32) -> (i32, i32) {
    %c0_i32 = arith.constant 0 : i32
    %c0_i32_0 = arith.constant 0 : i32
    %c0_i32_1 = arith.constant 0 : i32
    return %c0_i32, %c0_i32_0 : i32, i32
  }
  func.func @transform_34(%arg0: i32) -> (i32, i32) {
    %c0_i32 = arith.constant 0 : i32
    %c0_i32_0 = arith.constant 0 : i32
    %c0_i32_1 = arith.constant 0 : i32
    return %c0_i32, %c0_i32_0 : i32, i32
  }
  func.func @transform_35(%arg0: i32) -> (i32, i32) {
    %c0_i32 = arith.constant 0 : i32
    %c0_i32_0 = arith.constant 0 : i32
    %c0_i32_1 = arith.constant 0 : i32
    return %c0_i32, %c0_i32_0 : i32, i32
  }
  func.func @transform_36(%arg0: i32) -> (i32, i32) {
    %c0_i32 = arith.constant 0 : i32
    %c0_i32_0 = arith.constant 0 : i32
    %c0_i32_1 = arith.constant 0 : i32
    return %c0_i32, %c0_i32_0 : i32, i32
  }
  func.func @transform_37(%arg0: i32) -> (i32, i32) {
    %c0_i32 = arith.constant 0 : i32
    %c0_i32_0 = arith.constant 0 : i32
    %c0_i32_1 = arith.constant 0 : i32
    return %c0_i32, %c0_i32_0 : i32, i32
  }
  func.func @transform_38(%arg0: i32) -> (i32, i32) {
    %c0_i32 = arith.constant 0 : i32
    %c0_i32_0 = arith.constant 0 : i32
    %c0_i32_1 = arith.constant 0 : i32
    return %c0_i32, %c0_i32_0 : i32, i32
  }
  func.func @transform_39(%arg0: i32) -> (i32, i32) {
    %c0_i32 = arith.constant 0 : i32
    %c0_i32_0 = arith.constant 0 : i32
    %c0_i32_1 = arith.constant 0 : i32
    return %c0_i32, %c0_i32_0 : i32, i32
  }
  func.func @transform_40(%arg0: i32) -> (i32, i32) {
    %c0_i32 = arith.constant 0 : i32
    %c0_i32_0 = arith.constant 0 : i32
    %c0_i32_1 = arith.constant 0 : i32
    return %c0_i32, %c0_i32_0 : i32, i32
  }
  func.func @transform_41(%arg0: i32) -> (i32, i32, i32) {
    %c0_i32 = arith.constant 0 : i32
    %c0_i32_0 = arith.constant 0 : i32
    %c0_i32_1 = arith.constant 0 : i32
    return %arg0, %c0_i32, %c0_i32_0 : i32, i32, i32
  }
}

</mosaic_0001>

<bundles_post_ra>
// kernel: mobilevit_forward.1
= control target key start
LH: loop header
LB: loop body
LE: loop exit
PB: predicated region body
PF: predicated region fallthrough
CT: control target
= control target key end

     0   :  { %s11989_s6 = smov 1   ;;  %s11990_s10 = smov 2   ;;  %s17286_s0 = inlined_call_operand.smem [shape: u32[42], index: -1, kind: input, shape index: {}] }
   0x1   :  { %s12056_s5 = sld [smem:[%s17286_s0]]   ;;  %s11991_s14 = smov 3  }
   0x2   :  { %s12061_s9 = sld [smem:[%s17286_s0 + %s11989_s6]]   ;;  %s11992_s18 = smov 4  }
   0x3   :  { %s12066_s13 = sld [smem:[%s17286_s0 + %s11990_s10]]   ;;  %s11993_s22 = smov 5  }
   0x4   :  { %s12071_s17 = sld [smem:[%s17286_s0 + %s11991_s14]]   ;;  %s11994_s26 = smov 6  }
   0x5   :  { %s12076_s21 = sld [smem:[%s17286_s0 + %s11992_s18]]   ;;  %s11995_s30 = smov 7  }
   0x6   :  { %s12081_s25 = sld [smem:[%s17286_s0 + %s11993_s22]]   ;;  %s11996_s4 = smov 8  }
   0x7   :  { %s12086_s29 = sld [smem:[%s17286_s0 + %s11994_s26]]   ;;  %s11997_s10 = smov 9  }
   0x8   :  { %s12091_s3 = sld [smem:[%s17286_s0 + %s11995_s30]]   ;;  %s11998_s15 = smov 10  }
   0x9   :  { %s12096_s8 = sld [smem:[%s17286_s0 + %s11996_s4]]   ;;  %s11999_s20 = smov 11  }
   0xa   :  { %s12101_s14 = sld [smem:[%s17286_s0 + %s11997_s10]]   ;;  %s12000_s26 = smov 12  }
   0xb   :  { %s12106_s19 = sld [smem:[%s17286_s0 + %s11998_s15]]   ;;  %s12001_s1 = smov 13  }
   0xc   :  { %s12111_s24 = sld [smem:[%s17286_s0 + %s11999_s20]]   ;;  %s12002_s7 = smov 14  }
   0xd   :  { %s12116_s30 = sld [smem:[%s17286_s0 + %s12000_s26]]   ;;  %s12003_s15 = smov 15  }
   0xe   :  { %s12121_s6 = sld [smem:[%s17286_s0 + %s12001_s1]]   ;;  %s12004_s22 = smov 16  }
   0xf   :  { %s12126_s12 = sld [smem:[%s17286_s0 + %s12002_s7]]   ;;  %s12005_s28 = smov 17  }
  0x10   :  { %s12131_s20 = sld [smem:[%s17286_s0 + %s12003_s15]]   ;;  %s12006_s7 = smov 18  }
  0x11   :  { %s12136_s27 = sld [smem:[%s17286_s0 + %s12004_s22]]   ;;  %s12007_s15 = smov 19  }
  0x12   :  { %s12141_s4 = sld [smem:[%s17286_s0 + %s12005_s28]]   ;;  %s12008_s22 = smov 20  }
  0x13   :  { %s12009_s28 = smov 21  }
  0x15   :  { %17420 = sst [smem:[#allocation2_spill]] %s12126_s12 }
  0x16   :  { %17421 = sst [smem:[#allocation3_spill]] %s12131_s20 }
  0x17   :  { %17422 = sst [smem:[#allocation4_spill]] %s12136_s27 }
  0x18   :  { %17423 = sst [smem:[#allocation5_spill]] %s12141_s4 }
  0x19   :  { %s12146_s12 = sld [smem:[%s17286_s0 + %s12006_s7]]   ;;  %s12010_s7 = smov 22  }
  0x1a   :  { %s12151_s20 = sld [smem:[%s17286_s0 + %s12007_s15]]   ;;  %s12011_s15 = smov 23  }
  0x1b   :  { %s12156_s27 = sld [smem:[%s17286_s0 + %s12008_s22]]   ;;  %s12012_s22 = smov 24  }
  0x1c   :  { %s12161_s4 = sld [smem:[%s17286_s0 + %s12009_s28]]   ;;  %s12013_s28 = smov 25  }
  0x1f   :  { %17424 = sst [smem:[#allocation6_spill]] %s12146_s12 }
  0x20   :  { %17425 = sst [smem:[#allocation7_spill]] %s12151_s20 }
  0x21   :  { %17426 = sst [smem:[#allocation8_spill]] %s12156_s27 }
  0x22   :  { %17427 = sst [smem:[#allocation9_spill]] %s12161_s4 }
  0x23   :  { %s12166_s12 = sld [smem:[%s17286_s0 + %s12010_s7]]   ;;  %s12014_s7 = smov 26  }
  0x24   :  { %s12171_s20 = sld [smem:[%s17286_s0 + %s12011_s15]]   ;;  %s12015_s15 = smov 27  }
  0x25   :  { %s12176_s27 = sld [smem:[%s17286_s0 + %s12012_s22]]   ;;  %s12016_s22 = smov 28  }
  0x26   :  { %s12181_s4 = sld [smem:[%s17286_s0 + %s12013_s28]]   ;;  %s12017_s28 = smov 29  }
  0x29   :  { %17428 = sst [smem:[#allocation10_spill]] %s12166_s12 }
  0x2a   :  { %17429 = sst [smem:[#allocation11_spill]] %s12171_s20 }
  0x2b   :  { %17430 = sst [smem:[#allocation12_spill]] %s12176_s27 }
  0x2c   :  { %17431 = sst [smem:[#allocation13_spill]] %s12181_s4 }
  0x2d   :  { %s12186_s12 = sld [smem:[%s17286_s0 + %s12014_s7]]   ;;  %s12018_s7 = smov 30  }
  0x2e   :  { %s12191_s20 = sld [smem:[%s17286_s0 + %s12015_s15]]   ;;  %s12019_s15 = smov 31  }
  0x2f   :  { %s12196_s27 = sld [smem:[%s17286_s0 + %s12016_s22]]   ;;  %s12020_s22 = smov 32  }
  0x30   :  { %s12201_s4 = sld [smem:[%s17286_s0 + %s12017_s28]]   ;;  %s12021_s28 = smov 33  }
  0x33   :  { %17432 = sst [smem:[#allocation14_spill]] %s12186_s12 }
  0x34   :  { %17433 = sst [smem:[#allocation15_spill]] %s12191_s20 }
  0x35   :  { %17434 = sst [smem:[#allocation16_spill]] %s12196_s27 }
  0x36   :  { %17435 = sst [smem:[#allocation17_spill]] %s12201_s4 }
  0x37   :  { %s12206_s12 = sld [smem:[%s17286_s0 + %s12018_s7]]   ;;  %s12022_s7 = smov 34  }
  0x38   :  { %s12211_s20 = sld [smem:[%s17286_s0 + %s12019_s15]]   ;;  %s12023_s15 = smov 35  }
  0x39   :  { %s12216_s27 = sld [smem:[%s17286_s0 + %s12020_s22]]   ;;  %s12024_s22 = smov 36  }
  0x3a   :  { %s12221_s4 = sld [smem:[%s17286_s0 + %s12021_s28]]   ;;  %s12025_s28 = smov 37  }
  0x3d   :  { %17436 = sst [smem:[#allocation18_spill]] %s12206_s12 }
  0x3e   :  { %17437 = sst [smem:[#allocation19_spill]] %s12211_s20 }
  0x3f   :  { %17438 = sst [smem:[#allocation20_spill]] %s12216_s27 }
  0x40   :  { %17439 = sst [smem:[#allocation21_spill]] %s12221_s4 }
  0x41   :  { %s12226_s12 = sld [smem:[%s17286_s0 + %s12022_s7]]   ;;  %s12026_s7 = smov 38  }
  0x42   :  { %s12231_s20 = sld [smem:[%s17286_s0 + %s12023_s15]]   ;;  %s12027_s15 = smov 39  }
  0x43   :  { %s12236_s27 = sld [smem:[%s17286_s0 + %s12024_s22]]   ;;  %s12028_s22 = smov 40  }
  0x44   :  { %s12241_s4 = sld [smem:[%s17286_s0 + %s12025_s28]]   ;;  %s12029_s28 = smov 41  }
  0x47   :  { %17440 = sst [smem:[#allocation22_spill]] %s12226_s12 }
  0x48   :  { %17441 = sst [smem:[#allocation23_spill]] %s12231_s20 }
  0x49   :  { %17442 = sst [smem:[#allocation24_spill]] %s12236_s27 }
  0x4a   :  { %17443 = sst [smem:[#allocation25_spill]] %s12241_s4 }
  0x4b   :  { %s12246_s12 = sld [smem:[%s17286_s0 + %s12026_s7]]   ;;  %s12263_s7 = smov 0  }
  0x4c   :  { %s12251_s20 = sld [smem:[%s17286_s0 + %s12027_s15]]  }
  0x4d   :  { %s12256_s27 = sld [smem:[%s17286_s0 + %s12028_s22]]  }
  0x4e   :  { %s12261_s4 = sld [smem:[%s17286_s0 + %s12029_s28]]  }
  0x4f LB: > { %s9960_s10 = sadd.s32 4294967295, %s11987_s7   ;;  %p9964_p0 = scmp.ge.s32.totalorder %s11987_s7, 1  ;;  %s11987_s7 = sphi %s12263_s7, %s93_s7  }
  0x50   : > { %p1129_p1 = scmp.lt.s32.totalorder %s11987_s7, 3 }
  0x52   : > { %p1130_p2 = pnand %p9964_p0, %p1129_p1 }
  0x54   : > { %1133 = sbr.rel (%p1130_p2) target bundleno = 8880 (0x22b0), region = 184 }
  0x59   : > { %v9982_v0 = vld [vmem:[%s12076_s21 + $0x170] sm:$0xff]  ;;  %v17296_v2 = vmov 0   ;;  %v9983_v3 = vld [vmem:[%s12076_s21 + $0x178] sm:$0xff]  ;;  %v9997_v9 = vld [vmem:[%s12076_s21 + $0x1e8] sm:$0xff]  ;;  %p1228_p3 = scmp.lt.s32.totalorder %s9960_s10, 1  ;;  %s12031_s15 = smov 1  }
  0x5a   : > { %v9998_v1 = vld [vmem:[%s12076_s21 + $0x1f0] sm:$0xff]  ;;  %11502 = vset.pattern.permute.xlu1 %v17296_v2  ;;  %11501 = vset.pattern.permute.xlu0 %v17296_v2  ;;  %v9999_v4 = vld [vmem:[%s12076_s21 + $0x1f8] sm:$0xff]  ;;  %v9996_v10 = vld [vmem:[%s12076_s21 + $0x1e0] sm:$0xff]  ;;  %s12032_s16 = smov 2   ;;  %s12033_s18 = smov 3  }
  0x5b   : > { %1666 = vperm.xlu1 %11502, %v9982_v0   ;;  %1746 = vperm.xlu0 %11501, %v9998_v1   ;;  %v10031_v5 = vld [vmem:[%s12076_s21 + $0x2f8] sm:$0xff]  ;;  %v10030_v6 = vld [vmem:[%s12076_s21 + $0x2f0] sm:$0xff]  ;;  %v9981_v13 = vld [vmem:[%s12076_s21 + $0x168] sm:$0xff]  ;;  %s18268_s10 = smov (!%p1228_p3, %s9960_s10), 1  ;;  %s12034_s22 = smov 4  }
  0x5c   : > { %v10015_v7 = vld [vmem:[%s12076_s21 + $0x278] sm:$0xff]  ;;  %v10014_v8 = vld [vmem:[%s12076_s21 + $0x270] sm:$0xff]  ;;  %v9980_v14 = vld [vmem:[%s12076_s21 + $0x160] sm:$0xff]  ;;  %s10733_s0 = sshll.u32 %s18268_s10, 8  ;;  %s12035_s23 = smov 5  }
  0x5d   : > { %v10063_v11 = vld [vmem:[%s12076_s21 + $0x3f8] sm:$0xff]  ;;  %v10062_v12 = vld [vmem:[%s12076_s21 + $0x3f0] sm:$0xff]  ;;  %v10029_v17 = vld [vmem:[%s12076_s21 + $0x2e8] sm:$0xff]  ;;  %s12943_s11 = scalar_lea.vmem %s12056_s5, %s10733_s0  ;;  %s12036_s26 = smov 6  }
  0x5e   : > { %v10047_v15 = vld [vmem:[%s12076_s21 + $0x378] sm:$0xff]  ;;  %v10046_v16 = vld [vmem:[%s12076_s21 + $0x370] sm:$0xff]  ;;  %v10028_v18 = vld [vmem:[%s12076_s21 + $0x2e0] sm:$0xff]  ;;  %s12037_s28 = smov 7   ;;  %s12038_s1 = smov 8  }
  0x5f   : > { %1671 = vperm.xlu1 %11502, %v9983_v3   ;;  %1751 = vperm.xlu0 %11501, %v9999_v4   ;;  %v10095_v19 = vld [vmem:[%s12076_s21 + $0x4f8] sm:$0xff]  ;;  %v10094_v20 = vld [vmem:[%s12076_s21 + $0x4f0] sm:$0xff]  ;;  %v10013_v21 = vld [vmem:[%s12076_s21 + $0x268] sm:$0xff]  ;;  %s12039_s2 = smov 16   ;;  %s12040_s0 = smov 32  }
  0x60   : > { %v10012_v22 = vld [vmem:[%s12076_s21 + $0x260] sm:$0xff]  ;;  %v10079_v23 = vld [vmem:[%s12076_s21 + $0x478] sm:$0xff]  ;;  %v10078_v24 = vld [vmem:[%s12076_s21 + $0x470] sm:$0xff] }
  0x61   : > { %v9995_v25 = vld [vmem:[%s12076_s21 + $0x1d8] sm:$0xff]  ;;  %v9994_v26 = vld [vmem:[%s12076_s21 + $0x1d0] sm:$0xff]  ;;  %v10061_v27 = vld [vmem:[%s12076_s21 + $0x3e8] sm:$0xff] }
  0x62   : > { %v10060_v28 = vld [vmem:[%s12076_s21 + $0x3e0] sm:$0xff]  ;;  %v10127_v29 = vld [vmem:[%s12076_s21 + $0x5f8] sm:$0xff]  ;;  %v10126_v30 = vld [vmem:[%s12076_s21 + $0x5f0] sm:$0xff] }
  0x63   : > { %2137 = vperm.xlu1 %11502, %v10031_v5   ;;  %2132 = vperm.xlu0 %11501, %v10030_v6   ;;  %v9979_v31 = vld [vmem:[%s12076_s21 + $0x158] sm:$0xff]  ;;  %v9978_v32 = vld [vmem:[%s12076_s21 + $0x150] sm:$0xff]  ;;  %v10045_v33 = vld [vmem:[%s12076_s21 + $0x368] sm:$0xff] }
  0x64   : > { %v10044_v34 = vld [vmem:[%s12076_s21 + $0x360] sm:$0xff]  ;;  %v10111_v35 = vld [vmem:[%s12076_s21 + $0x578] sm:$0xff]  ;;  %v10110_v36 = vld [vmem:[%s12076_s21 + $0x570] sm:$0xff] }
  0x65   : > { %v10027_v37 = vld [vmem:[%s12076_s21 + $0x2d8] sm:$0xff]  ;;  %v10026_v38 = vld [vmem:[%s12076_s21 + $0x2d0] sm:$0xff]  ;;  %v10093_v39 = vld [vmem:[%s12076_s21 + $0x4e8] sm:$0xff] }
  0x66   : > { %v10092_v40 = vld [vmem:[%s12076_s21 + $0x4e0] sm:$0xff]  ;;  %v10159_v41 = vld [vmem:[%s12076_s21 + $0x6f8] sm:$0xff]  ;;  %v10158_v42 = vld [vmem:[%s12076_s21 + $0x6f0] sm:$0xff] }
  0x67   : > { %2057 = vperm.xlu1 %11502, %v10015_v7   ;;  %2052 = vperm.xlu0 %11501, %v10014_v8   ;;  %v10011_v43 = vld [vmem:[%s12076_s21 + $0x258] sm:$0xff]  ;;  %v10010_v44 = vld [vmem:[%s12076_s21 + $0x250] sm:$0xff]  ;;  %v10077_v45 = vld [vmem:[%s12076_s21 + $0x468] sm:$0xff] }
  0x68   : > { %v10076_v46 = vld [vmem:[%s12076_s21 + $0x460] sm:$0xff]  ;;  %v10143_v47 = vld [vmem:[%s12076_s21 + $0x678] sm:$0xff]  ;;  %v10142_v48 = vld [vmem:[%s12076_s21 + $0x670] sm:$0xff] }
  0x69   : > { %v9993_v49 = vld [vmem:[%s12076_s21 + $0x1c8] sm:$0xff]  ;;  %v9992_v50 = vld [vmem:[%s12076_s21 + $0x1c0] sm:$0xff]  ;;  %v10059_v51 = vld [vmem:[%s12076_s21 + $0x3d8] sm:$0xff] }
  0x6a   : > { %v10058_v52 = vld [vmem:[%s12076_s21 + $0x3d0] sm:$0xff]  ;;  %v10125_v53 = vld [vmem:[%s12076_s21 + $0x5e8] sm:$0xff]  ;;  %v10124_v54 = vld [vmem:[%s12076_s21 + $0x5e0] sm:$0xff] }
  0x6b   : > { %1741 = vperm.xlu1 %11502, %v9997_v9   ;;  %1736 = vperm.xlu0 %11501, %v9996_v10   ;;  %v10191_v55 = vld [vmem:[%s12076_s21 + $0x7f8] sm:$0xff]  ;;  %v10190_v56 = vld [vmem:[%s12076_s21 + $0x7f0] sm:$0xff]  ;;  %v9977_v57 = vld [vmem:[%s12076_s21 + $0x148] sm:$0xff] }
  0x6c   : > { %v9976_v58 = vld [vmem:[%s12076_s21 + $0x140] sm:$0xff]  ;;  %v10043_v59 = vld [vmem:[%s12076_s21 + $0x358] sm:$0xff]  ;;  %v10042_v60 = vld [vmem:[%s12076_s21 + $0x350] sm:$0xff] }
  0x6d   : > { %v10109_v61 = vld [vmem:[%s12076_s21 + $0x568] sm:$0xff]  ;;  %v10108_v62 = vld [vmem:[%s12076_s21 + $0x560] sm:$0xff]  ;;  %v10175_v63 = vld [vmem:[%s12076_s21 + $0x778] sm:$0xff] }
  0x6e   : > { %v10174_v0 = vld [vmem:[%s12076_s21 + $0x770] sm:$0xff]  ;;  %v10025_v4 = vld [vmem:[%s12076_s21 + $0x2c8] sm:$0xff]  ;;  %v10024_v5 = vld [vmem:[%s12076_s21 + $0x2c0] sm:$0xff] }
  0x6f   : > { %2458 = vperm.xlu1 %11502, %v10063_v11   ;;  %2453 = vperm.xlu0 %11501, %v10062_v12   ;;  %v10091_v8 = vld [vmem:[%s12076_s21 + $0x4d8] sm:$0xff]  ;;  %v10090_v9 = vld [vmem:[%s12076_s21 + $0x4d0] sm:$0xff]  ;;  %v10157_v12 = vld [vmem:[%s12076_s21 + $0x6e8] sm:$0xff] }
  0x73   : > { %1661 = vperm.xlu1 %11502, %v9981_v13   ;;  %1656 = vperm.xlu0 %11501, %v9980_v14   ;;  %v10156_v13 = vld [vmem:[%s12076_s21 + $0x6e0] sm:$0xff] }
  0x77   : > { %2378 = vperm.xlu1 %11502, %v10047_v15   ;;  %2373 = vperm.xlu0 %11501, %v10046_v16   ;;  %v10223_v16 = vld [vmem:[%s12076_s21 + $0x8f8] sm:$0xff] }
  0x7b   : > { %2127 = vperm.xlu1 %11502, %v10029_v17   ;;  %2122 = vperm.xlu0 %11501, %v10028_v18   ;;  %v10222_v17 = vld [vmem:[%s12076_s21 + $0x8f0] sm:$0xff] }
  0x7f   : > { %2779 = vperm.xlu1 %11502, %v10095_v19   ;;  %2774 = vperm.xlu0 %11501, %v10094_v20   ;;  %v10009_v20 = vld [vmem:[%s12076_s21 + $0x248] sm:$0xff] }
  0x83   : > { %2047 = vperm.xlu1 %11502, %v10013_v21   ;;  %2042 = vperm.xlu0 %11501, %v10012_v22   ;;  %v10008_v21 = vld [vmem:[%s12076_s21 + $0x240] sm:$0xff] }
  0x87   : > { %2699 = vperm.xlu1 %11502, %v10079_v23   ;;  %2694 = vperm.xlu0 %11501, %v10078_v24   ;;  %v10075_v24 = vld [vmem:[%s12076_s21 + $0x458] sm:$0xff] }
  0x8b   : > { %1731 = vperm.xlu1 %11502, %v9995_v25   ;;  %1726 = vperm.xlu0 %11501, %v9994_v26   ;;  %v10074_v25 = vld [vmem:[%s12076_s21 + $0x450] sm:$0xff] }
  0x8f   : > { %2448 = vperm.xlu1 %11502, %v10061_v27   ;;  %2443 = vperm.xlu0 %11501, %v10060_v28   ;;  %v10141_v28 = vld [vmem:[%s12076_s21 + $0x668] sm:$0xff] }
  0x93   : > { %3100 = vperm.xlu1 %11502, %v10127_v29   ;;  %3095 = vperm.xlu0 %11501, %v10126_v30   ;;  %v10140_v29 = vld [vmem:[%s12076_s21 + $0x660] sm:$0xff] }
  0x97   : > { %1651 = vperm.xlu1 %11502, %v9979_v31   ;;  %1646 = vperm.xlu0 %11501, %v9978_v32   ;;  %v10207_v32 = vld [vmem:[%s12076_s21 + $0x878] sm:$0xff] }
  0x9b   : > { %2368 = vperm.xlu1 %11502, %v10045_v33   ;;  %2363 = vperm.xlu0 %11501, %v10044_v34   ;;  %v10206_v33 = vld [vmem:[%s12076_s21 + $0x870] sm:$0xff] }
  0x9f   : > { %3020 = vperm.xlu1 %11502, %v10111_v35   ;;  %3015 = vperm.xlu0 %11501, %v10110_v36   ;;  %v9991_v36 = vld [vmem:[%s12076_s21 + $0x1b8] sm:$0xff] }
  0xa3   : > { %2117 = vperm.xlu1 %11502, %v10027_v37   ;;  %2112 = vperm.xlu0 %11501, %v10026_v38   ;;  %v9990_v37 = vld [vmem:[%s12076_s21 + $0x1b0] sm:$0xff] }
  0xa7   : > { %2769 = vperm.xlu1 %11502, %v10093_v39   ;;  %2764 = vperm.xlu0 %11501, %v10092_v40   ;;  %v10057_v40 = vld [vmem:[%s12076_s21 + $0x3c8] sm:$0xff] }
  0xab   : > { %3421 = vperm.xlu1 %11502, %v10159_v41   ;;  %3416 = vperm.xlu0 %11501, %v10158_v42   ;;  %v10056_v41 = vld [vmem:[%s12076_s21 + $0x3c0] sm:$0xff] }
  0xaf   : > { %2037 = vperm.xlu1 %11502, %v10011_v43   ;;  %2032 = vperm.xlu0 %11501, %v10010_v44   ;;  %v10123_v44 = vld [vmem:[%s12076_s21 + $0x5d8] sm:$0xff] }
  0xb3   : > { %2689 = vperm.xlu1 %11502, %v10077_v45   ;;  %2684 = vperm.xlu0 %11501, %v10076_v46   ;;  %v10122_v45 = vld [vmem:[%s12076_s21 + $0x5d0] sm:$0xff] }
  0xb7   : > { %3341 = vperm.xlu1 %11502, %v10143_v47   ;;  %3336 = vperm.xlu0 %11501, %v10142_v48   ;;  %v10189_v48 = vld [vmem:[%s12076_s21 + $0x7e8] sm:$0xff] }
  0xbb   : > { %1721 = vperm.xlu1 %11502, %v9993_v49   ;;  %1716 = vperm.xlu0 %11501, %v9992_v50   ;;  %v10188_v49 = vld [vmem:[%s12076_s21 + $0x7e0] sm:$0xff] }
  0xbf   : > { %2438 = vperm.xlu1 %11502, %v10059_v51   ;;  %2433 = vperm.xlu0 %11501, %v10058_v52   ;;  %v9975_v52 = vld [vmem:[%s12076_s21 + $0x138] sm:$0xff] }
  0xc3   : > { %3090 = vperm.xlu1 %11502, %v10125_v53   ;;  %3085 = vperm.xlu0 %11501, %v10124_v54   ;;  %v9974_v53 = vld [vmem:[%s12076_s21 + $0x130] sm:$0xff] }
  0xc7   : > { %3742 = vperm.xlu1 %11502, %v10191_v55   ;;  %3737 = vperm.xlu0 %11501, %v10190_v56   ;;  %v10041_v56 = vld [vmem:[%s12076_s21 + $0x348] sm:$0xff] }
  0xcb   : > { %1641 = vperm.xlu1 %11502, %v9977_v57   ;;  %1636 = vperm.xlu0 %11501, %v9976_v58   ;;  %v10040_v57 = vld [vmem:[%s12076_s21 + $0x340] sm:$0xff] }
  0xcf   : > { %2358 = vperm.xlu1 %11502, %v10043_v59   ;;  %2353 = vperm.xlu0 %11501, %v10042_v60   ;;  %v10107_v60 = vld [vmem:[%s12076_s21 + $0x558] sm:$0xff] }
  0xd3   : > { %3010 = vperm.xlu1 %11502, %v10109_v61   ;;  %3005 = vperm.xlu0 %11501, %v10108_v62   ;;  %v10106_v61 = vld [vmem:[%s12076_s21 + $0x550] sm:$0xff] }
  0xd6   : > { %v12337_v1 = vpop.permute.xlu1 %1666  ;;  %v12339_v3 = vpop.permute.xlu0 %1746 }
  0xd7   : > { %3662 = vperm.xlu1 %11502, %v10175_v63   ;;  %3657 = vperm.xlu0 %11501, %v10174_v0   ;;  %v10173_v0 = vld [vmem:[%s12076_s21 + $0x768] sm:$0xff] }
  0xda   : > { %v12343_v6 = vpop.permute.xlu1 %1671  ;;  %v12345_v7 = vpop.permute.xlu0 %1751 }
  0xdb   : > { %2107 = vperm.xlu1 %11502, %v10025_v4   ;;  %2102 = vperm.xlu0 %11501, %v10024_v5   ;;  %v10172_v4 = vld [vmem:[%s12076_s21 + $0x760] sm:$0xff] }
  0xde   : > { %v12349_v10 = vpop.permute.xlu1 %2137  ;;  %v12351_v11 = vpop.permute.xlu0 %2132 }
  0xdf   : > { %2759 = vperm.xlu1 %11502, %v10091_v8   ;;  %2754 = vperm.xlu0 %11501, %v10090_v9   ;;  %v10023_v9 = vld [vmem:[%s12076_s21 + $0x2b8] sm:$0xff] }
  0xe2   : > { %v12355_v14 = vpop.permute.xlu1 %2057  ;;  %v12357_v15 = vpop.permute.xlu0 %2052 }
  0xe3   : > { %3411 = vperm.xlu1 %11502, %v10157_v12   ;;  %3406 = vperm.xlu0 %11501, %v10156_v13   ;;  %v10022_v12 = vld [vmem:[%s12076_s21 + $0x2b0] sm:$0xff] }
  0xe6   : > { %v12361_v18 = vpop.permute.xlu1 %1741  ;;  %v12363_v19 = vpop.permute.xlu0 %1736 }
  0xe7   : > { %4063 = vperm.xlu1 %11502, %v10223_v16   ;;  %4058 = vperm.xlu0 %11501, %v10222_v17   ;;  %v10089_v17 = vld [vmem:[%s12076_s21 + $0x4c8] sm:$0xff] }
  0xea   : > { %v12367_v22 = vpop.permute.xlu1 %2458  ;;  %v12369_v23 = vpop.permute.xlu0 %2453 }
  0xeb   : > { %2027 = vperm.xlu1 %11502, %v10009_v20   ;;  %2022 = vperm.xlu0 %11501, %v10008_v21   ;;  %v10088_v20 = vld [vmem:[%s12076_s21 + $0x4c0] sm:$0xff] }
  0xee   : > { %v12373_v26 = vpop.permute.xlu1 %1661  ;;  %v12375_v27 = vpop.permute.xlu0 %1656 }
  0xef   : > { %2679 = vperm.xlu1 %11502, %v10075_v24   ;;  %2674 = vperm.xlu0 %11501, %v10074_v25   ;;  %v10155_v25 = vld [vmem:[%s12076_s21 + $0x6d8] sm:$0xff] }
  0xf2   : > { %v12379_v30 = vpop.permute.xlu1 %2378  ;;  %v12381_v31 = vpop.permute.xlu0 %2373 }
  0xf3   : > { %3331 = vperm.xlu1 %11502, %v10141_v28   ;;  %3326 = vperm.xlu0 %11501, %v10140_v29   ;;  %v10154_v28 = vld [vmem:[%s12076_s21 + $0x6d0] sm:$0xff] }
  0xf6   : > { %v12385_v34 = vpop.permute.xlu1 %2127  ;;  %v12387_v35 = vpop.permute.xlu0 %2122 }
  0xf7   : > { %3983 = vperm.xlu1 %11502, %v10207_v32   ;;  %3978 = vperm.xlu0 %11501, %v10206_v33   ;;  %v10221_v33 = vld [vmem:[%s12076_s21 + $0x8e8] sm:$0xff] }
  0xfa   : > { %v12391_v38 = vpop.permute.xlu1 %2779  ;;  %v12393_v39 = vpop.permute.xlu0 %2774 }
  0xfb   : > { %1711 = vperm.xlu1 %11502, %v9991_v36   ;;  %1706 = vperm.xlu0 %11501, %v9990_v37   ;;  %v10220_v36 = vld [vmem:[%s12076_s21 + $0x8e0] sm:$0xff] }
  0xfe   : > { %v12397_v42 = vpop.permute.xlu1 %2047  ;;  %v12399_v43 = vpop.permute.xlu0 %2042 }
  0xff   : > { %2428 = vperm.xlu1 %11502, %v10057_v40   ;;  %2423 = vperm.xlu0 %11501, %v10056_v41   ;;  %v10007_v41 = vld [vmem:[%s12076_s21 + $0x238] sm:$0xff] }
 0x102   : > { %v12403_v46 = vpop.permute.xlu1 %2699  ;;  %v12405_v47 = vpop.permute.xlu0 %2694 }
 0x103   : > { %3080 = vperm.xlu1 %11502, %v10123_v44   ;;  %3075 = vperm.xlu0 %11501, %v10122_v45   ;;  %v10006_v44 = vld [vmem:[%s12076_s21 + $0x230] sm:$0xff] }
 0x106   : > { %v12409_v50 = vpop.permute.xlu1 %1731  ;;  %v12411_v51 = vpop.permute.xlu0 %1726 }
 0x107   : > { %3732 = vperm.xlu1 %11502, %v10189_v48   ;;  %3727 = vperm.xlu0 %11501, %v10188_v49   ;;  %v10073_v49 = vld [vmem:[%s12076_s21 + $0x448] sm:$0xff] }
 0x10a   : > { %v12415_v54 = vpop.permute.xlu1 %2448  ;;  %v12417_v55 = vpop.permute.xlu0 %2443 }
 0x10b   : > { %1631 = vperm.xlu1 %11502, %v9975_v52   ;;  %1626 = vperm.xlu0 %11501, %v9974_v53   ;;  %v10072_v52 = vld [vmem:[%s12076_s21 + $0x440] sm:$0xff] }
 0x10e   : > { %v12421_v58 = vpop.permute.xlu1 %3100  ;;  %v12423_v59 = vpop.permute.xlu0 %3095 }
 0x10f   : > { %2348 = vperm.xlu1 %11502, %v10041_v56   ;;  %2343 = vperm.xlu0 %11501, %v10040_v57   ;;  %v10139_v57 = vld [vmem:[%s12076_s21 + $0x658] sm:$0xff] }
 0x112   : > { %v12427_v62 = vpop.permute.xlu1 %1651  ;;  %v12429_v63 = vpop.permute.xlu0 %1646 }
 0x113   : > { %3000 = vperm.xlu1 %11502, %v10107_v60   ;;  %2995 = vperm.xlu0 %11501, %v10106_v61   ;;  %v10138_v60 = vld [vmem:[%s12076_s21 + $0x650] sm:$0xff] }
 0x116   : > { %v12433_v5 = vpop.permute.xlu1 %2368  ;;  %v12435_v8 = vpop.permute.xlu0 %2363 }
 0x117   : > { %3652 = vperm.xlu1 %11502, %v10173_v0   ;;  %3647 = vperm.xlu0 %11501, %v10172_v4   ;;  %v10205_v4 = vld [vmem:[%s12076_s21 + $0x868] sm:$0xff] }
 0x11a   : > { %v12439_v13 = vpop.permute.xlu1 %3020  ;;  %v12441_v16 = vpop.permute.xlu0 %3015 }
 0x11b   : > { %2097 = vperm.xlu1 %11502, %v10023_v9   ;;  %2092 = vperm.xlu0 %11501, %v10022_v12   ;;  %v10204_v9 = vld [vmem:[%s12076_s21 + $0x860] sm:$0xff] }
 0x11e   : > { %v12445_v21 = vpop.permute.xlu1 %2117  ;;  %v12447_v24 = vpop.permute.xlu0 %2112 }
 0x11f   : > { %2749 = vperm.xlu1 %11502, %v10089_v17   ;;  %2744 = vperm.xlu0 %11501, %v10088_v20   ;;  %v9989_v20 = vld [vmem:[%s12076_s21 + $0x1a8] sm:$0xff] }
 0x122   : > { %v12451_v29 = vpop.permute.xlu1 %2769  ;;  %v12453_v32 = vpop.permute.xlu0 %2764 }
 0x123   : > { %3401 = vperm.xlu1 %11502, %v10155_v25   ;;  %3396 = vperm.xlu0 %11501, %v10154_v28   ;;  %v9988_v25 = vld [vmem:[%s12076_s21 + $0x1a0] sm:$0xff] }
 0x126   : > { %v12457_v37 = vpop.permute.xlu1 %3421  ;;  %v12459_v40 = vpop.permute.xlu0 %3416 }
 0x127   : > { %4053 = vperm.xlu1 %11502, %v10221_v33   ;;  %4048 = vperm.xlu0 %11501, %v10220_v36   ;;  %v10055_v36 = vld [vmem:[%s12076_s21 + $0x3b8] sm:$0xff] }
 0x12a   : > { %v12463_v45 = vpop.permute.xlu1 %2037  ;;  %v12465_v48 = vpop.permute.xlu0 %2032 }
 0x12b   : > { %2017 = vperm.xlu1 %11502, %v10007_v41   ;;  %2012 = vperm.xlu0 %11501, %v10006_v44   ;;  %v10054_v41 = vld [vmem:[%s12076_s21 + $0x3b0] sm:$0xff] }
 0x12e   : > { %v12469_v53 = vpop.permute.xlu1 %2689  ;;  %v12471_v56 = vpop.permute.xlu0 %2684 }
 0x12f   : > { %2669 = vperm.xlu1 %11502, %v10073_v49   ;;  %2664 = vperm.xlu0 %11501, %v10072_v52   ;;  %v10121_v52 = vld [vmem:[%s12076_s21 + $0x5c8] sm:$0xff] }
 0x132   : > { %v12475_v61 = vpop.permute.xlu1 %3341  ;;  %v12477_v0 = vpop.permute.xlu0 %3336 }
 0x133   : > { %3321 = vperm.xlu1 %11502, %v10139_v57   ;;  %3316 = vperm.xlu0 %11501, %v10138_v60   ;;  %v10120_v57 = vld [vmem:[%s12076_s21 + $0x5c0] sm:$0xff] }
 0x136   : > { %v12481_v12 = vpop.permute.xlu1 %1721  ;;  %v12483_v17 = vpop.permute.xlu0 %1716 }
 0x137   : > { %17444 = vst [vmem:[#allocation26_spill] sm:$0xff] %v12483_v17  ;;  %3973 = vperm.xlu1 %11502, %v10205_v4   ;;  %3968 = vperm.xlu0 %11501, %v10204_v9   ;;  %v10187_v9 = vld [vmem:[%s12076_s21 + $0x7d8] sm:$0xff] }
 0x13a   : > { %v12487_v28 = vpop.permute.xlu1 %2438  ;;  %v12489_v33 = vpop.permute.xlu0 %2433 }
 0x13b   : > { %17445 = vst [vmem:[#allocation27_spill] sm:$0xff] %v12487_v28  ;;  %17446 = vst [vmem:[#allocation28_spill] sm:$0xff] %v12489_v33  ;;  %1701 = vperm.xlu1 %11502, %v9989_v20   ;;  %1696 = vperm.xlu0 %11501, %v9988_v25   ;;  %v10186_v20 = vld [vmem:[%s12076_s21 + $0x7d0] sm:$0xff] }
 0x13e   : > { %v12493_v44 = vpop.permute.xlu1 %3090  ;;  %v12495_v49 = vpop.permute.xlu0 %3085 }
 0x13f   : > { %17447 = vst [vmem:[#allocation29_spill] sm:$0xff] %v12493_v44  ;;  %17448 = vst [vmem:[#allocation30_spill] sm:$0xff] %v12495_v49  ;;  %2418 = vperm.xlu1 %11502, %v10055_v36   ;;  %2413 = vperm.xlu0 %11501, %v10054_v41   ;;  %v9973_v36 = vld [vmem:[%s12076_s21 + $0x128] sm:$0xff]  ;;  %v9972_v41 = vld [vmem:[%s12076_s21 + $0x120] sm:$0xff] }
 0x142   : > { %v12499_v60 = vpop.permute.xlu1 %3742  ;;  %v12501_v4 = vpop.permute.xlu0 %3737 }
 0x143   : > { %17449 = vst [vmem:[#allocation31_spill] sm:$0xff] %v12499_v60  ;;  %17450 = vst [vmem:[#allocation32_spill] sm:$0xff] %v12501_v4  ;;  %3070 = vperm.xlu1 %11502, %v10121_v52   ;;  %3065 = vperm.xlu0 %11501, %v10120_v57   ;;  %v10039_v52 = vld [vmem:[%s12076_s21 + $0x338] sm:$0xff]  ;;  %v10038_v57 = vld [vmem:[%s12076_s21 + $0x330] sm:$0xff] }
 0x146   : > { %v12505_v25 = vpop.permute.xlu1 %1641  ;;  %v12507_v2 = vpop.permute.xlu0 %1636 }
 0x147   : > { %17451 = vst [vmem:[#allocation33_spill] sm:$0xff] %v12505_v25  ;;  %17452 = vst [vmem:[#allocation34_spill] sm:$0xff] %v12507_v2  ;;  %3722 = vperm.xlu1 %11502, %v10187_v9   ;;  %3717 = vperm.xlu0 %11501, %v10186_v20   ;;  %v10105_v9 = vld [vmem:[%s12076_s21 + $0x548] sm:$0xff]  ;;  %v10104_v20 = vld [vmem:[%s12076_s21 + $0x540] sm:$0xff] }
 0x14a   : > { %v12511_v49 = vpop.permute.xlu1 %2358  ;;  %v12513_v60 = vpop.permute.xlu0 %2353 }
 0x14b   : > { %17453 = vst [vmem:[#allocation35_spill] sm:$0xff] %v12511_v49  ;;  %17454 = vst [vmem:[#allocation36_spill] sm:$0xff] %v12513_v60  ;;  %1621 = vperm.xlu1 %11502, %v9973_v36   ;;  %1616 = vperm.xlu0 %11501, %v9972_v41   ;;  %v10171_v36 = vld [vmem:[%s12076_s21 + $0x758] sm:$0xff]  ;;  %v10170_v41 = vld [vmem:[%s12076_s21 + $0x750] sm:$0xff] }
 0x14e   : > { %v12517_v4 = vpop.permute.xlu1 %3010  ;;  %v12519_v25 = vpop.permute.xlu0 %3005 }
 0x14f   : > { %17455 = vst [vmem:[#allocation37_spill] sm:$0xff] %v12517_v4  ;;  %17456 = vst [vmem:[#allocation38_spill] sm:$0xff] %v12519_v25  ;;  %2338 = vperm.xlu1 %11502, %v10039_v52   ;;  %2333 = vperm.xlu0 %11501, %v10038_v57   ;;  %v10021_v52 = vld [vmem:[%s12076_s21 + $0x2a8] sm:$0xff]  ;;  %v10020_v57 = vld [vmem:[%s12076_s21 + $0x2a0] sm:$0xff] }
 0x152   : > { %v12523_v2 = vpop.permute.xlu1 %3662  ;;  %v12525_v49 = vpop.permute.xlu0 %3657 }
 0x153   : > { %17457 = vst [vmem:[#allocation39_spill] sm:$0xff] %v12523_v2  ;;  %17458 = vst [vmem:[#allocation40_spill] sm:$0xff] %v12525_v49  ;;  %2990 = vperm.xlu1 %11502, %v10105_v9   ;;  %2985 = vperm.xlu0 %11501, %v10104_v20   ;;  %v10087_v9 = vld [vmem:[%s12076_s21 + $0x4b8] sm:$0xff]  ;;  %v10086_v20 = vld [vmem:[%s12076_s21 + $0x4b0] sm:$0xff] }
 0x156   : > { %v12529_v60 = vpop.permute.xlu1 %2107  ;;  %v12531_v4 = vpop.permute.xlu0 %2102 }
 0x157   : > { %17459 = vst [vmem:[#allocation41_spill] sm:$0xff] %v12529_v60  ;;  %17460 = vst [vmem:[#allocation42_spill] sm:$0xff] %v12531_v4  ;;  %3642 = vperm.xlu1 %11502, %v10171_v36   ;;  %3637 = vperm.xlu0 %11501, %v10170_v41   ;;  %v10153_v36 = vld [vmem:[%s12076_s21 + $0x6c8] sm:$0xff]  ;;  %v10152_v41 = vld [vmem:[%s12076_s21 + $0x6c0] sm:$0xff] }
 0x15a   : > { %v12535_v25 = vpop.permute.xlu1 %2759  ;;  %v12537_v2 = vpop.permute.xlu0 %2754 }
 0x15b   : > { %17461 = vst [vmem:[#allocation43_spill] sm:$0xff] %v12535_v25  ;;  %17462 = vst [vmem:[#allocation44_spill] sm:$0xff] %v12537_v2  ;;  %2087 = vperm.xlu1 %11502, %v10021_v52   ;;  %2082 = vperm.xlu0 %11501, %v10020_v57   ;;  %v10219_v52 = vld [vmem:[%s12076_s21 + $0x8d8] sm:$0xff]  ;;  %v10218_v57 = vld [vmem:[%s12076_s21 + $0x8d0] sm:$0xff] }
 0x15e   : > { %v12541_v49 = vpop.permute.xlu1 %3411  ;;  %v12543_v60 = vpop.permute.xlu0 %3406 }
 0x15f   : > { %17463 = vst [vmem:[#allocation45_spill] sm:$0xff] %v12541_v49  ;;  %17464 = vst [vmem:[#allocation46_spill] sm:$0xff] %v12543_v60  ;;  %2739 = vperm.xlu1 %11502, %v10087_v9   ;;  %2734 = vperm.xlu0 %11501, %v10086_v20   ;;  %v10005_v9 = vld [vmem:[%s12076_s21 + $0x228] sm:$0xff]  ;;  %v10004_v20 = vld [vmem:[%s12076_s21 + $0x220] sm:$0xff] }
 0x162   : > { %v12547_v4 = vpop.permute.xlu1 %4063  ;;  %v12549_v25 = vpop.permute.xlu0 %4058 }
 0x163   : > { %17465 = vst [vmem:[#allocation47_spill] sm:$0xff] %v12547_v4  ;;  %17466 = vst [vmem:[#allocation48_spill] sm:$0xff] %v12549_v25  ;;  %3391 = vperm.xlu1 %11502, %v10153_v36   ;;  %3386 = vperm.xlu0 %11501, %v10152_v41   ;;  %v10071_v36 = vld [vmem:[%s12076_s21 + $0x438] sm:$0xff]  ;;  %v10070_v41 = vld [vmem:[%s12076_s21 + $0x430] sm:$0xff] }
 0x166   : > { %v12553_v2 = vpop.permute.xlu1 %2027  ;;  %v12555_v49 = vpop.permute.xlu0 %2022 }
 0x167   : > { %17467 = vst [vmem:[#allocation49_spill] sm:$0xff] %v12553_v2  ;;  %17468 = vst [vmem:[#allocation50_spill] sm:$0xff] %v12555_v49  ;;  %4043 = vperm.xlu1 %11502, %v10219_v52   ;;  %4038 = vperm.xlu0 %11501, %v10218_v57   ;;  %v10137_v52 = vld [vmem:[%s12076_s21 + $0x648] sm:$0xff]  ;;  %v10136_v57 = vld [vmem:[%s12076_s21 + $0x640] sm:$0xff] }
 0x16a   : > { %v12559_v60 = vpop.permute.xlu1 %2679  ;;  %v12561_v4 = vpop.permute.xlu0 %2674 }
 0x16b   : > { %17469 = vst [vmem:[#allocation51_spill] sm:$0xff] %v12559_v60  ;;  %17470 = vst [vmem:[#allocation52_spill] sm:$0xff] %v12561_v4  ;;  %2007 = vperm.xlu1 %11502, %v10005_v9   ;;  %2002 = vperm.xlu0 %11501, %v10004_v20   ;;  %v10203_v9 = vld [vmem:[%s12076_s21 + $0x858] sm:$0xff]  ;;  %v10202_v20 = vld [vmem:[%s12076_s21 + $0x850] sm:$0xff] }
 0x16e   : > { %v12565_v25 = vpop.permute.xlu1 %3331  ;;  %v12567_v2 = vpop.permute.xlu0 %3326 }
 0x16f   : > { %17471 = vst [vmem:[#allocation53_spill] sm:$0xff] %v12565_v25  ;;  %17472 = vst [vmem:[#allocation54_spill] sm:$0xff] %v12567_v2  ;;  %2659 = vperm.xlu1 %11502, %v10071_v36   ;;  %2654 = vperm.xlu0 %11501, %v10070_v41   ;;  %v9987_v36 = vld [vmem:[%s12076_s21 + $0x198] sm:$0xff]  ;;  %v9986_v41 = vld [vmem:[%s12076_s21 + $0x190] sm:$0xff] }
 0x172   : > { %v12571_v49 = vpop.permute.xlu1 %3983  ;;  %v12573_v60 = vpop.permute.xlu0 %3978 }
 0x173   : > { %17473 = vst [vmem:[#allocation55_spill] sm:$0xff] %v12571_v49  ;;  %17474 = vst [vmem:[#allocation56_spill] sm:$0xff] %v12573_v60  ;;  %3311 = vperm.xlu1 %11502, %v10137_v52   ;;  %3306 = vperm.xlu0 %11501, %v10136_v57   ;;  %v10053_v52 = vld [vmem:[%s12076_s21 + $0x3a8] sm:$0xff]  ;;  %v10052_v57 = vld [vmem:[%s12076_s21 + $0x3a0] sm:$0xff] }
 0x176   : > { %v12577_v4 = vpop.permute.xlu1 %1711  ;;  %v12579_v25 = vpop.permute.xlu0 %1706 }
 0x177   : > { %17475 = vst [vmem:[#allocation57_spill] sm:$0xff] %v12577_v4  ;;  %17476 = vst [vmem:[#allocation58_spill] sm:$0xff] %v12579_v25  ;;  %3963 = vperm.xlu1 %11502, %v10203_v9   ;;  %3958 = vperm.xlu0 %11501, %v10202_v20   ;;  %v10119_v9 = vld [vmem:[%s12076_s21 + $0x5b8] sm:$0xff]  ;;  %v10118_v20 = vld [vmem:[%s12076_s21 + $0x5b0] sm:$0xff] }
 0x17a   : > { %v12583_v2 = vpop.permute.xlu1 %2428  ;;  %v12585_v49 = vpop.permute.xlu0 %2423 }
 0x17b   : > { %17477 = vst [vmem:[#allocation59_spill] sm:$0xff] %v12583_v2  ;;  %17478 = vst [vmem:[#allocation60_spill] sm:$0xff] %v12585_v49  ;;  %1691 = vperm.xlu1 %11502, %v9987_v36   ;;  %1686 = vperm.xlu0 %11501, %v9986_v41   ;;  %v10185_v36 = vld [vmem:[%s12076_s21 + $0x7c8] sm:$0xff]  ;;  %v10184_v41 = vld [vmem:[%s12076_s21 + $0x7c0] sm:$0xff] }
 0x17e   : > { %v12589_v60 = vpop.permute.xlu1 %3080  ;;  %v12591_v4 = vpop.permute.xlu0 %3075 }
 0x17f   : > { %17479 = vst [vmem:[#allocation61_spill] sm:$0xff] %v12589_v60  ;;  %17480 = vst [vmem:[#allocation62_spill] sm:$0xff] %v12591_v4  ;;  %2408 = vperm.xlu1 %11502, %v10053_v52   ;;  %2403 = vperm.xlu0 %11501, %v10052_v57   ;;  %v9971_v52 = vld [vmem:[%s12076_s21 + $0x118] sm:$0xff]  ;;  %v9970_v57 = vld [vmem:[%s12076_s21 + $0x110] sm:$0xff] }
 0x182   : > { %v12595_v25 = vpop.permute.xlu1 %3732  ;;  %v12597_v2 = vpop.permute.xlu0 %3727 }
 0x183   : > { %17481 = vst [vmem:[#allocation63_spill] sm:$0xff] %v12595_v25  ;;  %17482 = vst [vmem:[#allocation64_spill] sm:$0xff] %v12597_v2  ;;  %3060 = vperm.xlu1 %11502, %v10119_v9   ;;  %3055 = vperm.xlu0 %11501, %v10118_v20   ;;  %v10037_v9 = vld [vmem:[%s12076_s21 + $0x328] sm:$0xff]  ;;  %v10036_v20 = vld [vmem:[%s12076_s21 + $0x320] sm:$0xff] }
 0x186   : > { %v12601_v49 = vpop.permute.xlu1 %1631  ;;  %v12603_v60 = vpop.permute.xlu0 %1626 }
 0x187   : > { %17483 = vst [vmem:[#allocation65_spill] sm:$0xff] %v12601_v49  ;;  %17484 = vst [vmem:[#allocation66_spill] sm:$0xff] %v12603_v60  ;;  %3712 = vperm.xlu1 %11502, %v10185_v36   ;;  %3707 = vperm.xlu0 %11501, %v10184_v41   ;;  %v10103_v36 = vld [vmem:[%s12076_s21 + $0x538] sm:$0xff]  ;;  %v10102_v41 = vld [vmem:[%s12076_s21 + $0x530] sm:$0xff] }
 0x18a   : > { %v12607_v4 = vpop.permute.xlu1 %2348  ;;  %v12609_v25 = vpop.permute.xlu0 %2343 }
 0x18b   : > { %17485 = vst [vmem:[#allocation67_spill] sm:$0xff] %v12607_v4  ;;  %17486 = vst [vmem:[#allocation68_spill] sm:$0xff] %v12609_v25  ;;  %1611 = vperm.xlu1 %11502, %v9971_v52   ;;  %1606 = vperm.xlu0 %11501, %v9970_v57   ;;  %v10169_v52 = vld [vmem:[%s12076_s21 + $0x748] sm:$0xff]  ;;  %v10168_v57 = vld [vmem:[%s12076_s21 + $0x740] sm:$0xff] }
 0x18e   : > { %v12613_v2 = vpop.permute.xlu1 %3000  ;;  %v12615_v49 = vpop.permute.xlu0 %2995 }
 0x18f   : > { %17487 = vst [vmem:[#allocation69_spill] sm:$0xff] %v12613_v2  ;;  %17488 = vst [vmem:[#allocation70_spill] sm:$0xff] %v12615_v49  ;;  %2328 = vperm.xlu1 %11502, %v10037_v9   ;;  %2323 = vperm.xlu0 %11501, %v10036_v20   ;;  %v10019_v9 = vld [vmem:[%s12076_s21 + $0x298] sm:$0xff]  ;;  %v10018_v20 = vld [vmem:[%s12076_s21 + $0x290] sm:$0xff] }
 0x192   : > { %v12619_v60 = vpop.permute.xlu1 %3652  ;;  %v12621_v4 = vpop.permute.xlu0 %3647 }
 0x193   : > { %17489 = vst [vmem:[#allocation71_spill] sm:$0xff] %v12619_v60  ;;  %17490 = vst [vmem:[#allocation72_spill] sm:$0xff] %v12621_v4  ;;  %2980 = vperm.xlu1 %11502, %v10103_v36   ;;  %2975 = vperm.xlu0 %11501, %v10102_v41   ;;  %v10085_v36 = vld [vmem:[%s12076_s21 + $0x4a8] sm:$0xff]  ;;  %v10084_v41 = vld [vmem:[%s12076_s21 + $0x4a0] sm:$0xff] }
 0x196   : > { %v12625_v25 = vpop.permute.xlu1 %2097  ;;  %v12627_v2 = vpop.permute.xlu0 %2092 }
 0x197   : > { %17491 = vst [vmem:[#allocation73_spill] sm:$0xff] %v12625_v25  ;;  %17492 = vst [vmem:[#allocation74_spill] sm:$0xff] %v12627_v2  ;;  %3632 = vperm.xlu1 %11502, %v10169_v52   ;;  %3627 = vperm.xlu0 %11501, %v10168_v57   ;;  %v10151_v52 = vld [vmem:[%s12076_s21 + $0x6b8] sm:$0xff]  ;;  %v10150_v57 = vld [vmem:[%s12076_s21 + $0x6b0] sm:$0xff] }
 0x19a   : > { %v12631_v49 = vpop.permute.xlu1 %2749  ;;  %v12633_v60 = vpop.permute.xlu0 %2744 }
 0x19b   : > { %17493 = vst [vmem:[#allocation75_spill] sm:$0xff] %v12631_v49  ;;  %17494 = vst [vmem:[#allocation76_spill] sm:$0xff] %v12633_v60  ;;  %2077 = vperm.xlu1 %11502, %v10019_v9   ;;  %2072 = vperm.xlu0 %11501, %v10018_v20   ;;  %v10217_v9 = vld [vmem:[%s12076_s21 + $0x8c8] sm:$0xff]  ;;  %v10216_v20 = vld [vmem:[%s12076_s21 + $0x8c0] sm:$0xff] }
 0x19e   : > { %v12637_v4 = vpop.permute.xlu1 %3401  ;;  %v12639_v25 = vpop.permute.xlu0 %3396 }
 0x19f   : > { %17495 = vst [vmem:[#allocation77_spill] sm:$0xff] %v12637_v4  ;;  %17496 = vst [vmem:[#allocation78_spill] sm:$0xff] %v12639_v25  ;;  %2729 = vperm.xlu1 %11502, %v10085_v36   ;;  %2724 = vperm.xlu0 %11501, %v10084_v41   ;;  %v10003_v36 = vld [vmem:[%s12076_s21 + $0x218] sm:$0xff]  ;;  %v10002_v41 = vld [vmem:[%s12076_s21 + $0x210] sm:$0xff] }
 0x1a2   : > { %v12643_v2 = vpop.permute.xlu1 %4053  ;;  %v12645_v49 = vpop.permute.xlu0 %4048 }
 0x1a3   : > { %17497 = vst [vmem:[#allocation79_spill] sm:$0xff] %v12643_v2  ;;  %17498 = vst [vmem:[#allocation80_spill] sm:$0xff] %v12645_v49  ;;  %3381 = vperm.xlu1 %11502, %v10151_v52   ;;  %3376 = vperm.xlu0 %11501, %v10150_v57   ;;  %v10069_v52 = vld [vmem:[%s12076_s21 + $0x428] sm:$0xff]  ;;  %v10068_v57 = vld [vmem:[%s12076_s21 + $0x420] sm:$0xff] }
 0x1a6   : > { %v12649_v60 = vpop.permute.xlu1 %2017  ;;  %v12651_v4 = vpop.permute.xlu0 %2012 }
 0x1a7   : > { %17499 = vst [vmem:[#allocation81_spill] sm:$0xff] %v12649_v60  ;;  %17500 = vst [vmem:[#allocation82_spill] sm:$0xff] %v12651_v4  ;;  %4033 = vperm.xlu1 %11502, %v10217_v9   ;;  %4028 = vperm.xlu0 %11501, %v10216_v20   ;;  %v10135_v9 = vld [vmem:[%s12076_s21 + $0x638] sm:$0xff]  ;;  %v10134_v20 = vld [vmem:[%s12076_s21 + $0x630] sm:$0xff] }
 0x1aa   : > { %v12655_v25 = vpop.permute.xlu1 %2669  ;;  %v12657_v2 = vpop.permute.xlu0 %2664 }
 0x1ab   : > { %17501 = vst [vmem:[#allocation83_spill] sm:$0xff] %v12655_v25  ;;  %17502 = vst [vmem:[#allocation84_spill] sm:$0xff] %v12657_v2  ;;  %1997 = vperm.xlu1 %11502, %v10003_v36   ;;  %1992 = vperm.xlu0 %11501, %v10002_v41   ;;  %v10201_v36 = vld [vmem:[%s12076_s21 + $0x848] sm:$0xff]  ;;  %v10200_v41 = vld [vmem:[%s12076_s21 + $0x840] sm:$0xff] }
 0x1ae   : > { %v12661_v49 = vpop.permute.xlu1 %3321  ;;  %v12663_v60 = vpop.permute.xlu0 %3316 }
 0x1af   : > { %17503 = vst [vmem:[#allocation85_spill] sm:$0xff] %v12661_v49  ;;  %17504 = vst [vmem:[#allocation86_spill] sm:$0xff] %v12663_v60  ;;  %2649 = vperm.xlu1 %11502, %v10069_v52   ;;  %2644 = vperm.xlu0 %11501, %v10068_v57   ;;  %v9985_v52 = vld [vmem:[%s12076_s21 + $0x188] sm:$0xff]  ;;  %v9984_v57 = vld [vmem:[%s12076_s21 + $0x180] sm:$0xff] }
 0x1b2   : > { %v12667_v4 = vpop.permute.xlu1 %3973  ;;  %v12669_v25 = vpop.permute.xlu0 %3968 }
 0x1b3   : > { %17505 = vst [vmem:[#allocation87_spill] sm:$0xff] %v12667_v4  ;;  %17506 = vst [vmem:[#allocation88_spill] sm:$0xff] %v12669_v25  ;;  %3301 = vperm.xlu1 %11502, %v10135_v9   ;;  %3296 = vperm.xlu0 %11501, %v10134_v20   ;;  %v10051_v9 = vld [vmem:[%s12076_s21 + $0x398] sm:$0xff]  ;;  %v10050_v20 = vld [vmem:[%s12076_s21 + $0x390] sm:$0xff] }
 0x1b6   : > { %v12673_v2 = vpop.permute.xlu1 %1701  ;;  %v12675_v49 = vpop.permute.xlu0 %1696 }
 0x1b7   : > { %17507 = vst [vmem:[#allocation89_spill] sm:$0xff] %v12673_v2  ;;  %17508 = vst [vmem:[#allocation90_spill] sm:$0xff] %v12675_v49  ;;  %3953 = vperm.xlu1 %11502, %v10201_v36   ;;  %3948 = vperm.xlu0 %11501, %v10200_v41   ;;  %v10117_v36 = vld [vmem:[%s12076_s21 + $0x5a8] sm:$0xff]  ;;  %v10116_v41 = vld [vmem:[%s12076_s21 + $0x5a0] sm:$0xff] }
 0x1ba   : > { %v12679_v60 = vpop.permute.xlu1 %2418  ;;  %v12681_v4 = vpop.permute.xlu0 %2413 }
 0x1bb   : > { %17509 = vst [vmem:[#allocation91_spill] sm:$0xff] %v12679_v60  ;;  %17510 = vst [vmem:[#allocation92_spill] sm:$0xff] %v12681_v4  ;;  %1681 = vperm.xlu1 %11502, %v9985_v52   ;;  %1676 = vperm.xlu0 %11501, %v9984_v57   ;;  %v10183_v52 = vld [vmem:[%s12076_s21 + $0x7b8] sm:$0xff]  ;;  %v10182_v57 = vld [vmem:[%s12076_s21 + $0x7b0] sm:$0xff] }
 0x1be   : > { %v12685_v25 = vpop.permute.xlu1 %3070  ;;  %v12687_v2 = vpop.permute.xlu0 %3065 }
 0x1bf   : > { %17511 = vst [vmem:[#allocation93_spill] sm:$0xff] %v12685_v25  ;;  %17512 = vst [vmem:[#allocation94_spill] sm:$0xff] %v12687_v2  ;;  %2398 = vperm.xlu1 %11502, %v10051_v9   ;;  %2393 = vperm.xlu0 %11501, %v10050_v20   ;;  %v9969_v9 = vld [vmem:[%s12076_s21 + $0x108] sm:$0xff]  ;;  %v9968_v20 = vld [vmem:[%s12076_s21 + $0x100] sm:$0xff] }
 0x1c2   : > { %v12691_v49 = vpop.permute.xlu1 %3722  ;;  %v12693_v60 = vpop.permute.xlu0 %3717 }
 0x1c3   : > { %17513 = vst [vmem:[#allocation95_spill] sm:$0xff] %v12691_v49  ;;  %17514 = vst [vmem:[#allocation96_spill] sm:$0xff] %v12693_v60  ;;  %3050 = vperm.xlu1 %11502, %v10117_v36   ;;  %3045 = vperm.xlu0 %11501, %v10116_v41   ;;  %v10035_v36 = vld [vmem:[%s12076_s21 + $0x318] sm:$0xff]  ;;  %v10034_v41 = vld [vmem:[%s12076_s21 + $0x310] sm:$0xff] }
 0x1c6   : > { %v12697_v4 = vpop.permute.xlu1 %1621  ;;  %v12699_v25 = vpop.permute.xlu0 %1616 }
 0x1c7   : > { %17515 = vst [vmem:[#allocation97_spill] sm:$0xff] %v12697_v4  ;;  %17516 = vst [vmem:[#allocation98_spill] sm:$0xff] %v12699_v25  ;;  %3702 = vperm.xlu1 %11502, %v10183_v52   ;;  %3697 = vperm.xlu0 %11501, %v10182_v57   ;;  %v10101_v52 = vld [vmem:[%s12076_s21 + $0x528] sm:$0xff]  ;;  %v10100_v57 = vld [vmem:[%s12076_s21 + $0x520] sm:$0xff] }
 0x1ca   : > { %v12703_v2 = vpop.permute.xlu1 %2338  ;;  %v12705_v49 = vpop.permute.xlu0 %2333 }
 0x1cb   : > { %17517 = vst [vmem:[#allocation99_spill] sm:$0xff] %v12703_v2  ;;  %17518 = vst [vmem:[#allocation100_spill] sm:$0xff] %v12705_v49  ;;  %1601 = vperm.xlu1 %11502, %v9969_v9   ;;  %1596 = vperm.xlu0 %11501, %v9968_v20   ;;  %v10167_v9 = vld [vmem:[%s12076_s21 + $0x738] sm:$0xff]  ;;  %v10166_v20 = vld [vmem:[%s12076_s21 + $0x730] sm:$0xff] }
 0x1ce   : > { %v12709_v60 = vpop.permute.xlu1 %2990  ;;  %v12711_v4 = vpop.permute.xlu0 %2985 }
 0x1cf   : > { %17519 = vst [vmem:[#allocation101_spill] sm:$0xff] %v12709_v60  ;;  %17520 = vst [vmem:[#allocation102_spill] sm:$0xff] %v12711_v4  ;;  %2318 = vperm.xlu1 %11502, %v10035_v36   ;;  %2313 = vperm.xlu0 %11501, %v10034_v41   ;;  %v10017_v36 = vld [vmem:[%s12076_s21 + $0x288] sm:$0xff]  ;;  %v10016_v41 = vld [vmem:[%s12076_s21 + $0x280] sm:$0xff] }
 0x1d2   : > { %v12715_v25 = vpop.permute.xlu1 %3642  ;;  %v12717_v2 = vpop.permute.xlu0 %3637 }
 0x1d3   : > { %17521 = vst [vmem:[#allocation103_spill] sm:$0xff] %v12715_v25  ;;  %17522 = vst [vmem:[#allocation104_spill] sm:$0xff] %v12717_v2  ;;  %2970 = vperm.xlu1 %11502, %v10101_v52   ;;  %2965 = vperm.xlu0 %11501, %v10100_v57   ;;  %v10083_v52 = vld [vmem:[%s12076_s21 + $0x498] sm:$0xff]  ;;  %v10082_v57 = vld [vmem:[%s12076_s21 + $0x490] sm:$0xff] }
 0x1d6   : > { %v12721_v49 = vpop.permute.xlu1 %2087  ;;  %v12723_v60 = vpop.permute.xlu0 %2082 }
 0x1d7   : > { %17523 = vst [vmem:[#allocation105_spill] sm:$0xff] %v12721_v49  ;;  %17524 = vst [vmem:[#allocation106_spill] sm:$0xff] %v12723_v60  ;;  %3622 = vperm.xlu1 %11502, %v10167_v9   ;;  %3617 = vperm.xlu0 %11501, %v10166_v20   ;;  %v10149_v9 = vld [vmem:[%s12076_s21 + $0x6a8] sm:$0xff]  ;;  %v10148_v20 = vld [vmem:[%s12076_s21 + $0x6a0] sm:$0xff] }
 0x1da   : > { %v12727_v4 = vpop.permute.xlu1 %2739  ;;  %v12729_v25 = vpop.permute.xlu0 %2734 }
 0x1db   : > { %17525 = vst [vmem:[#allocation107_spill] sm:$0xff] %v12727_v4  ;;  %17526 = vst [vmem:[#allocation108_spill] sm:$0xff] %v12729_v25  ;;  %2067 = vperm.xlu1 %11502, %v10017_v36   ;;  %2062 = vperm.xlu0 %11501, %v10016_v41   ;;  %v10215_v36 = vld [vmem:[%s12076_s21 + $0x8b8] sm:$0xff]  ;;  %v10214_v41 = vld [vmem:[%s12076_s21 + $0x8b0] sm:$0xff] }
 0x1de   : > { %v12733_v2 = vpop.permute.xlu1 %3391  ;;  %v12735_v49 = vpop.permute.xlu0 %3386 }
 0x1df   : > { %17527 = vst [vmem:[#allocation109_spill] sm:$0xff] %v12733_v2  ;;  %17528 = vst [vmem:[#allocation110_spill] sm:$0xff] %v12735_v49  ;;  %2719 = vperm.xlu1 %11502, %v10083_v52   ;;  %2714 = vperm.xlu0 %11501, %v10082_v57   ;;  %v10001_v52 = vld [vmem:[%s12076_s21 + $0x208] sm:$0xff]  ;;  %v10000_v57 = vld [vmem:[%s12076_s21 + $0x200] sm:$0xff] }
 0x1e2   : > { %v12739_v60 = vpop.permute.xlu1 %4043  ;;  %v12741_v4 = vpop.permute.xlu0 %4038 }
 0x1e3   : > { %17529 = vst [vmem:[#allocation111_spill] sm:$0xff] %v12739_v60  ;;  %17530 = vst [vmem:[#allocation112_spill] sm:$0xff] %v12741_v4  ;;  %3371 = vperm.xlu1 %11502, %v10149_v9   ;;  %3366 = vperm.xlu0 %11501, %v10148_v20   ;;  %v10067_v9 = vld [vmem:[%s12076_s21 + $0x418] sm:$0xff]  ;;  %v10066_v20 = vld [vmem:[%s12076_s21 + $0x410] sm:$0xff] }
 0x1e6   : > { %v12745_v25 = vpop.permute.xlu1 %2007  ;;  %v12747_v2 = vpop.permute.xlu0 %2002 }
 0x1e7   : > { %17531 = vst [vmem:[#allocation113_spill] sm:$0xff] %v12745_v25  ;;  %17532 = vst [vmem:[#allocation114_spill] sm:$0xff] %v12747_v2  ;;  %4023 = vperm.xlu1 %11502, %v10215_v36   ;;  %4018 = vperm.xlu0 %11501, %v10214_v41   ;;  %v10133_v36 = vld [vmem:[%s12076_s21 + $0x628] sm:$0xff]  ;;  %v10132_v41 = vld [vmem:[%s12076_s21 + $0x620] sm:$0xff] }
 0x1ea   : > { %v12751_v49 = vpop.permute.xlu1 %2659  ;;  %v12753_v60 = vpop.permute.xlu0 %2654 }
 0x1eb   : > { %17533 = vst [vmem:[#allocation115_spill] sm:$0xff] %v12751_v49  ;;  %17534 = vst [vmem:[#allocation116_spill] sm:$0xff] %v12753_v60  ;;  %1987 = vperm.xlu1 %11502, %v10001_v52   ;;  %1982 = vperm.xlu0 %11501, %v10000_v57   ;;  %v10199_v52 = vld [vmem:[%s12076_s21 + $0x838] sm:$0xff]  ;;  %v10198_v57 = vld [vmem:[%s12076_s21 + $0x830] sm:$0xff] }
 0x1ee   : > { %v12757_v4 = vpop.permute.xlu1 %3311  ;;  %v12759_v25 = vpop.permute.xlu0 %3306 }
 0x1ef   : > { %17535 = vst [vmem:[#allocation117_spill] sm:$0xff] %v12757_v4  ;;  %17536 = vst [vmem:[#allocation118_spill] sm:$0xff] %v12759_v25  ;;  %2639 = vperm.xlu1 %11502, %v10067_v9   ;;  %2634 = vperm.xlu0 %11501, %v10066_v20   ;;  %v10049_v9 = vld [vmem:[%s12076_s21 + $0x388] sm:$0xff]  ;;  %v10048_v20 = vld [vmem:[%s12076_s21 + $0x380] sm:$0xff] }
 0x1f2   : > { %v12763_v2 = vpop.permute.xlu1 %3963  ;;  %v12765_v49 = vpop.permute.xlu0 %3958 }
 0x1f3   : > { %17537 = vst [vmem:[#allocation119_spill] sm:$0xff] %v12763_v2  ;;  %17538 = vst [vmem:[#allocation120_spill] sm:$0xff] %v12765_v49  ;;  %3291 = vperm.xlu1 %11502, %v10133_v36   ;;  %3286 = vperm.xlu0 %11501, %v10132_v41   ;;  %v10115_v36 = vld [vmem:[%s12076_s21 + $0x598] sm:$0xff]  ;;  %v10114_v41 = vld [vmem:[%s12076_s21 + $0x590] sm:$0xff] }
 0x1f6   : > { %v12769_v60 = vpop.permute.xlu1 %1691  ;;  %v12771_v4 = vpop.permute.xlu0 %1686 }
 0x1f7   : > { %17539 = vst [vmem:[#allocation121_spill] sm:$0xff] %v12769_v60  ;;  %17540 = vst [vmem:[#allocation122_spill] sm:$0xff] %v12771_v4  ;;  %3943 = vperm.xlu1 %11502, %v10199_v52   ;;  %3938 = vperm.xlu0 %11501, %v10198_v57   ;;  %v10181_v52 = vld [vmem:[%s12076_s21 + $0x7a8] sm:$0xff]  ;;  %v10180_v57 = vld [vmem:[%s12076_s21 + $0x7a0] sm:$0xff] }
 0x1fa   : > { %v12775_v25 = vpop.permute.xlu1 %2408  ;;  %v12777_v2 = vpop.permute.xlu0 %2403 }
 0x1fb   : > { %17541 = vst [vmem:[#allocation123_spill] sm:$0xff] %v12775_v25  ;;  %17542 = vst [vmem:[#allocation124_spill] sm:$0xff] %v12777_v2  ;;  %2388 = vperm.xlu1 %11502, %v10049_v9   ;;  %2383 = vperm.xlu0 %11501, %v10048_v20   ;;  %v10033_v9 = vld [vmem:[%s12076_s21 + $0x308] sm:$0xff]  ;;  %v10032_v20 = vld [vmem:[%s12076_s21 + $0x300] sm:$0xff] }
 0x1fe   : > { %v12781_v49 = vpop.permute.xlu1 %3060  ;;  %v12783_v60 = vpop.permute.xlu0 %3055 }
 0x1ff   : > { %17543 = vst [vmem:[#allocation125_spill] sm:$0xff] %v12781_v49  ;;  %17544 = vst [vmem:[#allocation126_spill] sm:$0xff] %v12783_v60  ;;  %3040 = vperm.xlu1 %11502, %v10115_v36   ;;  %3035 = vperm.xlu0 %11501, %v10114_v41   ;;  %v10099_v36 = vld [vmem:[%s12076_s21 + $0x518] sm:$0xff]  ;;  %v10098_v41 = vld [vmem:[%s12076_s21 + $0x510] sm:$0xff] }
 0x202   : > { %v12787_v4 = vpop.permute.xlu1 %3712  ;;  %v12789_v25 = vpop.permute.xlu0 %3707 }
 0x203   : > { %17545 = vst [vmem:[#allocation127_spill] sm:$0xff] %v12787_v4  ;;  %17546 = vst [vmem:[#allocation128_spill] sm:$0xff] %v12789_v25  ;;  %3692 = vperm.xlu1 %11502, %v10181_v52   ;;  %3687 = vperm.xlu0 %11501, %v10180_v57   ;;  %v10165_v52 = vld [vmem:[%s12076_s21 + $0x728] sm:$0xff]  ;;  %v10164_v57 = vld [vmem:[%s12076_s21 + $0x720] sm:$0xff] }
 0x206   : > { %v12793_v2 = vpop.permute.xlu1 %1611  ;;  %v12795_v49 = vpop.permute.xlu0 %1606 }
 0x207   : > { %17547 = vst [vmem:[#allocation129_spill] sm:$0xff] %v12793_v2  ;;  %17548 = vst [vmem:[#allocation130_spill] sm:$0xff] %v12795_v49  ;;  %2308 = vperm.xlu1 %11502, %v10033_v9   ;;  %2303 = vperm.xlu0 %11501, %v10032_v20   ;;  %v10081_v9 = vld [vmem:[%s12076_s21 + $0x488] sm:$0xff]  ;;  %v10080_v20 = vld [vmem:[%s12076_s21 + $0x480] sm:$0xff] }
 0x20a   : > { %v12799_v60 = vpop.permute.xlu1 %2328  ;;  %v12801_v4 = vpop.permute.xlu0 %2323 }
 0x20b   : > { %17549 = vst [vmem:[#allocation131_spill] sm:$0xff] %v12799_v60  ;;  %17550 = vst [vmem:[#allocation132_spill] sm:$0xff] %v12801_v4  ;;  %2960 = vperm.xlu1 %11502, %v10099_v36   ;;  %2955 = vperm.xlu0 %11501, %v10098_v41   ;;  %v10147_v36 = vld [vmem:[%s12076_s21 + $0x698] sm:$0xff]  ;;  %v10146_v41 = vld [vmem:[%s12076_s21 + $0x690] sm:$0xff] }
 0x20e   : > { %v12805_v25 = vpop.permute.xlu1 %2980  ;;  %v12807_v2 = vpop.permute.xlu0 %2975 }
 0x20f   : > { %17551 = vst [vmem:[#allocation133_spill] sm:$0xff] %v12805_v25  ;;  %17552 = vst [vmem:[#allocation134_spill] sm:$0xff] %v12807_v2  ;;  %3612 = vperm.xlu1 %11502, %v10165_v52   ;;  %3607 = vperm.xlu0 %11501, %v10164_v57   ;;  %v10213_v52 = vld [vmem:[%s12076_s21 + $0x8a8] sm:$0xff]  ;;  %v10212_v57 = vld [vmem:[%s12076_s21 + $0x8a0] sm:$0xff] }
 0x212   : > { %v12811_v49 = vpop.permute.xlu1 %3632  ;;  %v12813_v60 = vpop.permute.xlu0 %3627 }
 0x213   : > { %17553 = vst [vmem:[#allocation135_spill] sm:$0xff] %v12811_v49  ;;  %17554 = vst [vmem:[#allocation136_spill] sm:$0xff] %v12813_v60  ;;  %2709 = vperm.xlu1 %11502, %v10081_v9   ;;  %2704 = vperm.xlu0 %11501, %v10080_v20   ;;  %v10065_v9 = vld [vmem:[%s12076_s21 + $0x408] sm:$0xff]  ;;  %v10064_v20 = vld [vmem:[%s12076_s21 + $0x400] sm:$0xff] }
 0x216   : > { %v12817_v4 = vpop.permute.xlu1 %2077  ;;  %v12819_v25 = vpop.permute.xlu0 %2072 }
 0x217   : > { %17555 = vst [vmem:[#allocation137_spill] sm:$0xff] %v12817_v4  ;;  %17556 = vst [vmem:[#allocation138_spill] sm:$0xff] %v12819_v25  ;;  %3361 = vperm.xlu1 %11502, %v10147_v36   ;;  %3356 = vperm.xlu0 %11501, %v10146_v41   ;;  %v10131_v36 = vld [vmem:[%s12076_s21 + $0x618] sm:$0xff]  ;;  %v10130_v41 = vld [vmem:[%s12076_s21 + $0x610] sm:$0xff] }
 0x21a   : > { %v12823_v2 = vpop.permute.xlu1 %2729  ;;  %v12825_v49 = vpop.permute.xlu0 %2724 }
 0x21b   : > { %17557 = vst [vmem:[#allocation139_spill] sm:$0xff] %v12823_v2  ;;  %17558 = vst [vmem:[#allocation140_spill] sm:$0xff] %v12825_v49  ;;  %4013 = vperm.xlu1 %11502, %v10213_v52   ;;  %4008 = vperm.xlu0 %11501, %v10212_v57   ;;  %v10197_v52 = vld [vmem:[%s12076_s21 + $0x828] sm:$0xff]  ;;  %v10196_v57 = vld [vmem:[%s12076_s21 + $0x820] sm:$0xff] }
 0x21e   : > { %v12829_v60 = vpop.permute.xlu1 %3381  ;;  %v12831_v4 = vpop.permute.xlu0 %3376 }
 0x21f   : > { %17559 = vst [vmem:[#allocation141_spill] sm:$0xff] %v12829_v60  ;;  %17560 = vst [vmem:[#allocation142_spill] sm:$0xff] %v12831_v4  ;;  %2629 = vperm.xlu1 %11502, %v10065_v9   ;;  %2624 = vperm.xlu0 %11501, %v10064_v20   ;;  %v10113_v9 = vld [vmem:[%s12076_s21 + $0x588] sm:$0xff]  ;;  %v10112_v20 = vld [vmem:[%s12076_s21 + $0x580] sm:$0xff] }
 0x222   : > { %v12835_v25 = vpop.permute.xlu1 %4033  ;;  %v12837_v2 = vpop.permute.xlu0 %4028 }
 0x223   : > { %17561 = vst [vmem:[#allocation143_spill] sm:$0xff] %v12835_v25  ;;  %17562 = vst [vmem:[#allocation144_spill] sm:$0xff] %v12837_v2  ;;  %3281 = vperm.xlu1 %11502, %v10131_v36   ;;  %3276 = vperm.xlu0 %11501, %v10130_v41   ;;  %v10179_v36 = vld [vmem:[%s12076_s21 + $0x798] sm:$0xff]  ;;  %v10178_v41 = vld [vmem:[%s12076_s21 + $0x790] sm:$0xff] }
 0x226   : > { %v12841_v49 = vpop.permute.xlu1 %1997  ;;  %v12843_v60 = vpop.permute.xlu0 %1992 }
 0x227   : > { %17563 = vst [vmem:[#allocation145_spill] sm:$0xff] %v12841_v49  ;;  %17564 = vst [vmem:[#allocation146_spill] sm:$0xff] %v12843_v60  ;;  %3933 = vperm.xlu1 %11502, %v10197_v52   ;;  %3928 = vperm.xlu0 %11501, %v10196_v57   ;;  %v10097_v52 = vld [vmem:[%s12076_s21 + $0x508] sm:$0xff]  ;;  %v10096_v57 = vld [vmem:[%s12076_s21 + $0x500] sm:$0xff] }
 0x22a   : > { %v12847_v4 = vpop.permute.xlu1 %2649  ;;  %v12849_v25 = vpop.permute.xlu0 %2644 }
 0x22b   : > { %17565 = vst [vmem:[#allocation147_spill] sm:$0xff] %v12847_v4  ;;  %17566 = vst [vmem:[#allocation148_spill] sm:$0xff] %v12849_v25  ;;  %3030 = vperm.xlu1 %11502, %v10113_v9   ;;  %3025 = vperm.xlu0 %11501, %v10112_v20   ;;  %v10163_v9 = vld [vmem:[%s12076_s21 + $0x718] sm:$0xff]  ;;  %v10162_v20 = vld [vmem:[%s12076_s21 + $0x710] sm:$0xff] }
 0x22e   : > { %v12853_v2 = vpop.permute.xlu1 %3301  ;;  %v12855_v49 = vpop.permute.xlu0 %3296 }
 0x22f   : > { %17567 = vst [vmem:[#allocation149_spill] sm:$0xff] %v12853_v2  ;;  %17568 = vst [vmem:[#allocation150_spill] sm:$0xff] %v12855_v49  ;;  %3682 = vperm.xlu1 %11502, %v10179_v36   ;;  %3677 = vperm.xlu0 %11501, %v10178_v41   ;;  %v10145_v36 = vld [vmem:[%s12076_s21 + $0x688] sm:$0xff]  ;;  %v10144_v41 = vld [vmem:[%s12076_s21 + $0x680] sm:$0xff] }
 0x232   : > { %v12859_v60 = vpop.permute.xlu1 %3953  ;;  %v12861_v4 = vpop.permute.xlu0 %3948 }
 0x233   : > { %17569 = vst [vmem:[#allocation151_spill] sm:$0xff] %v12859_v60  ;;  %17570 = vst [vmem:[#allocation152_spill] sm:$0xff] %v12861_v4  ;;  %2950 = vperm.xlu1 %11502, %v10097_v52   ;;  %2945 = vperm.xlu0 %11501, %v10096_v57   ;;  %v10211_v52 = vld [vmem:[%s12076_s21 + $0x898] sm:$0xff]  ;;  %v10210_v57 = vld [vmem:[%s12076_s21 + $0x890] sm:$0xff] }
 0x236   : > { %v12865_v25 = vpop.permute.xlu1 %1681  ;;  %v12867_v2 = vpop.permute.xlu0 %1676 }
 0x237   : > { %17571 = vst [vmem:[#allocation153_spill] sm:$0xff] %v12865_v25  ;;  %17572 = vst [vmem:[#allocation154_spill] sm:$0xff] %v12867_v2  ;;  %3602 = vperm.xlu1 %11502, %v10163_v9   ;;  %3597 = vperm.xlu0 %11501, %v10162_v20   ;;  %v10129_v9 = vld [vmem:[%s12076_s21 + $0x608] sm:$0xff]  ;;  %v10128_v20 = vld [vmem:[%s12076_s21 + $0x600] sm:$0xff] }
 0x23a   : > { %v12871_v49 = vpop.permute.xlu1 %2398  ;;  %v12873_v60 = vpop.permute.xlu0 %2393 }
 0x23b   : > { %17573 = vst [vmem:[#allocation155_spill] sm:$0xff] %v12871_v49  ;;  %17574 = vst [vmem:[#allocation156_spill] sm:$0xff] %v12873_v60  ;;  %3351 = vperm.xlu1 %11502, %v10145_v36   ;;  %3346 = vperm.xlu0 %11501, %v10144_v41   ;;  %v10195_v36 = vld [vmem:[%s12076_s21 + $0x818] sm:$0xff]  ;;  %v10194_v41 = vld [vmem:[%s12076_s21 + $0x810] sm:$0xff] }
 0x23e   : > { %v12877_v4 = vpop.permute.xlu1 %3050  ;;  %v12879_v25 = vpop.permute.xlu0 %3045 }
 0x23f   : > { %17575 = vst [vmem:[#allocation157_spill] sm:$0xff] %v12877_v4  ;;  %17576 = vst [vmem:[#allocation158_spill] sm:$0xff] %v12879_v25  ;;  %4003 = vperm.xlu1 %11502, %v10211_v52   ;;  %3998 = vperm.xlu0 %11501, %v10210_v57   ;;  %v10177_v52 = vld [vmem:[%s12076_s21 + $0x788] sm:$0xff]  ;;  %v10176_v57 = vld [vmem:[%s12076_s21 + $0x780] sm:$0xff] }
 0x242   : > { %v12883_v2 = vpop.permute.xlu1 %3702  ;;  %v12885_v49 = vpop.permute.xlu0 %3697 }
 0x243   : > { %17577 = vst [vmem:[#allocation159_spill] sm:$0xff] %v12883_v2  ;;  %17578 = vst [vmem:[#allocation160_spill] sm:$0xff] %v12885_v49  ;;  %3271 = vperm.xlu1 %11502, %v10129_v9   ;;  %3266 = vperm.xlu0 %11501, %v10128_v20   ;;  %v10161_v9 = vld [vmem:[%s12076_s21 + $0x708] sm:$0xff]  ;;  %v10160_v20 = vld [vmem:[%s12076_s21 + $0x700] sm:$0xff] }
 0x246   : > { %v12889_v60 = vpop.permute.xlu1 %1601  ;;  %v12891_v4 = vpop.permute.xlu0 %1596 }
 0x247   : > { %17579 = vst [vmem:[#allocation161_spill] sm:$0xff] %v12889_v60  ;;  %17580 = vst [vmem:[#allocation162_spill] sm:$0xff] %v12891_v4  ;;  %3923 = vperm.xlu1 %11502, %v10195_v36   ;;  %3918 = vperm.xlu0 %11501, %v10194_v41   ;;  %v10209_v36 = vld [vmem:[%s12076_s21 + $0x888] sm:$0xff]  ;;  %v10208_v41 = vld [vmem:[%s12076_s21 + $0x880] sm:$0xff] }
 0x24a   : > { %v12895_v25 = vpop.permute.xlu1 %2318  ;;  %v12897_v2 = vpop.permute.xlu0 %2313 }
 0x24b   : > { %17581 = vst [vmem:[#allocation163_spill] sm:$0xff] %v12895_v25  ;;  %17582 = vst [vmem:[#allocation164_spill] sm:$0xff] %v12897_v2  ;;  %3672 = vperm.xlu1 %11502, %v10177_v52   ;;  %3667 = vperm.xlu0 %11501, %v10176_v57   ;;  %v10193_v52 = vld [vmem:[%s12076_s21 + $0x808] sm:$0xff]  ;;  %v10192_v57 = vld [vmem:[%s12076_s21 + $0x800] sm:$0xff]  ;;  %v17298_v2 = vlaneseq }
 0x24e   : > { %v12901_v49 = vpop.permute.xlu1 %2970  ;;  %v12903_v60 = vpop.permute.xlu0 %2965 }
 0x24f   : > { %17583 = vst [vmem:[#allocation165_spill] sm:$0xff] %v12901_v49  ;;  %17584 = vst [vmem:[#allocation166_spill] sm:$0xff] %v12903_v60  ;;  %3592 = vperm.xlu1 %11502, %v10161_v9   ;;  %3587 = vperm.xlu0 %11501, %v10160_v20   ;;  %v1368_v9 = vld [vmem:[%s12076_s21 + $0xf8] sm:$0xff]  ;;  %v1367_v20 = vld [vmem:[%s12076_s21 + $0xf0] sm:$0xff] }
 0x252   : > { %v12907_v25 = vpop.permute.xlu1 %3622  ;;  %v12909_v4 = vpop.permute.xlu0 %3617 }
 0x253   : > { %17585 = vst [vmem:[#allocation167_spill] sm:$0xff] %v12907_v25  ;;  %17586 = vst [vmem:[#allocation168_spill] sm:$0xff] %v12909_v4  ;;  %3993 = vperm.xlu1 %11502, %v10209_v36   ;;  %3988 = vperm.xlu0 %11501, %v10208_v41   ;;  %v1352_v41 = vld [vmem:[%s12076_s21 + $0x78] sm:$0xff] }
 0x256   : > { %v12913_v49 = vpop.permute.xlu1 %2067  ;;  %v12915_v60 = vpop.permute.xlu0 %2062 }
 0x257   : > { %17587 = vst [vmem:[#allocation169_spill] sm:$0xff] %v12913_v49  ;;  %17588 = vst [vmem:[#allocation170_spill] sm:$0xff] %v12915_v60  ;;  %3913 = vperm.xlu1 %11502, %v10193_v52   ;;  %3908 = vperm.xlu0 %11501, %v10192_v57   ;;  %v1351_v52 = vld [vmem:[%s12076_s21 + $0x70] sm:$0xff]  ;;  %v1365_v49 = vld [vmem:[%s12076_s21 + $0xe0] sm:$0xff] }
 0x25a   : > { %v12921_v4 = vpop.permute.xlu1 %2719  ;;  %v12923_v36 = vpop.permute.xlu0 %2714 }
 0x25b   : > { %17589 = vst [vmem:[#allocation171_spill] sm:$0xff] %v12921_v4  ;;  %17590 = vst [vmem:[#allocation172_spill] sm:$0xff] %v12923_v36  ;;  %1526 = vperm.xlu1 %11502, %v1368_v9   ;;  %1521 = vperm.xlu0 %11501, %v1367_v20   ;;  %v1366_v4 = vld [vmem:[%s12076_s21 + $0xe8] sm:$0xff] }
 0x25c   : > { %v1350_v20 = vld [vmem:[%s12076_s21 + $0x68] sm:$0xff] }
 0x25e   : > { %v12931_v57 = vpop.permute.xlu1 %3371  ;;  %v12933_v60 = vpop.permute.xlu0 %3366 }
 0x25f   : > { %17591 = vst [vmem:[#allocation173_spill] sm:$0xff] %v12931_v57  ;;  %17592 = vst [vmem:[#allocation174_spill] sm:$0xff] %v12933_v60  ;;  %1446 = vperm.xlu1 %11502, %v1352_v41   ;;  %1441 = vperm.xlu0 %11501, %v1351_v52   ;;  %v1349_v57 = vld [vmem:[%s12076_s21 + $0x60] sm:$0xff]  ;;  %v12951_v41 = vld [vmem:[%s12943_s11 + $0xe8] sm:$0xff] }
 0x260   : > { %v12948_v60 = vld [vmem:[%s12943_s11 + $0xe0] sm:$0xff]  ;;  %v1911_v44 = vrot.slane %v12951_v41, 1 }
 0x262   : > { %v12938_v36 = vpop.permute.xlu1 %4023  ;;  %v12940_v9 = vpop.permute.xlu0 %4018 }
 0x263   : > { %17593 = vst [vmem:[#allocation175_spill] sm:$0xff] %v12938_v36  ;;  %17594 = vst [vmem:[#allocation176_spill] sm:$0xff] %v12940_v9  ;;  %1516 = vperm.xlu1 %11502, %v1366_v4   ;;  %1511 = vperm.xlu0 %11501, %v1365_v49   ;;  %v1784_v49 = vmul.f32 %v12339_v3, %v12948_v60  ;;  %v1785_v4 = vmul.f32 %v12345_v7, %v12951_v41 }
 0x266   : > { %v12953_v52 = vpop.permute.xlu1 %1987  ;;  %v12955_v36 = vpop.permute.xlu0 %1982 }
 0x267   : > { %17595 = vst [vmem:[#allocation177_spill] sm:$0xff] %v12953_v52  ;;  %17596 = vst [vmem:[#allocation178_spill] sm:$0xff] %v12955_v36  ;;  %1436 = vperm.xlu1 %11502, %v1350_v20   ;;  %1431 = vperm.xlu0 %11501, %v1349_v57   ;;  %v1364_v36 = vld [vmem:[%s12076_s21 + $0xd8] sm:$0xff]  ;;  %v1363_v20 = vld [vmem:[%s12076_s21 + $0xd0] sm:$0xff] }
 0x268   : > { %v12970_v52 = vld [vmem:[%s12943_s11 + $0x60] sm:$0xff]  ;;  %v12973_v57 = vld [vmem:[%s12943_s11 + $0x68] sm:$0xff] }
 0x26a   : > { %v12961_v9 = vpop.permute.xlu1 %2639  ;;  %v12963_v25 = vpop.permute.xlu0 %2634 }
 0x26b   : > { %17597 = vst [vmem:[#allocation179_spill] sm:$0xff] %v12961_v9  ;;  %17598 = vst [vmem:[#allocation180_spill] sm:$0xff] %v12963_v25  ;;  %1848 = vrot.lane.b32.xlu1 %v1785_v4, %s12031_s15  ;;  %1846 = vrot.lane.b32.xlu0 %v1784_v49, %s12031_s15  ;;  %v12980_v9 = vld [vmem:[%s12943_s11 + $0xf0] sm:$0xff]  ;;  %v12983_v25 = vshrl.u32 %v17298_v2, 7  ;;  %v1768_v49 = vmul.f32 %v12337_v1, %v12970_v52  ;;  %v1769_v4 = vmul.f32 %v12343_v6, %v12973_v57  ;;  %v1348_v1 = vld [vmem:[%s12076_s21 + $0x58] sm:$0xff] }
 0x26c   : > { %v1347_v6 = vld [vmem:[%s12076_s21 + $0x50] sm:$0xff] }
 0x26d   : > { %17601 = vst [vmem:[#allocation183_spill] sm:$0xff] %v12983_v25  ;;  %vm1914_vm0 = vcmp.lt.s32.totalorder %v12983_v25, 7  ;;  %vm1304_vm1 = vcmp.lt.s32.totalorder %v12983_v25, 1 }
 0x26e   : > { %v12975_v3 = vpop.permute.xlu1 %3291  ;;  %v12977_v7 = vpop.permute.xlu0 %3286 }
 0x26f   : > { %17599 = vst [vmem:[#allocation181_spill] sm:$0xff] %v12975_v3  ;;  %17600 = vst [vmem:[#allocation182_spill] sm:$0xff] %v12977_v7  ;;  %1506 = vperm.xlu1 %11502, %v1364_v36   ;;  %1501 = vperm.xlu0 %11501, %v1363_v20   ;;  %v17299_v3 = vrot.slane %v12980_v9, 1  ;;  %v17300_v7 = vrot.slane %v12948_v60, 1  ;;  %v12998_v36 = vld [vmem:[%s12943_s11 + $0x70] sm:$0xff] }
 0x271   : > { %v13009_v2 = vsel %vm1914_vm0, %v1911_v44, %v17299_v3 }
 0x272   : > { %v12992_v33 = vpop.permute.xlu1 %3943  ;;  %v12994_v28 = vpop.permute.xlu0 %3938  ;;  %17604 = vst [vmem:[#allocation186_spill] sm:$0xff] %v13009_v2  ;;  %v2171_v3 = vmul.f32 %v12349_v10, %v13009_v2  ;;  %v13044_v10 = vld [vmem:[%s12943_s11 + $0xf8] sm:$0xff] }
 0x273   : > { %17602 = vst [vmem:[#allocation184_spill] sm:$0xff] %v12992_v33  ;;  %17603 = vst [vmem:[#allocation185_spill] sm:$0xff] %v12994_v28  ;;  %1816 = vrot.lane.b32.xlu1 %v1769_v4, %s12031_s15  ;;  %1814 = vrot.lane.b32.xlu0 %v1768_v49, %s12031_s15  ;;  %v13015_v28 = vsel %vm1914_vm0, %v17300_v7, %v1911_v44  ;;  %v1895_v4 = vrot.slane %v12973_v57, 1  ;;  %v17301_v49 = vrot.slane %v12998_v36, 1  ;;  %v17609_v7 = vrot.slane %v12970_v52, 1 }
 0x274   : > { %17605 = vst [vmem:[#allocation187_spill] sm:$0xff] %v13015_v28  ;;  %v2170_v17 = vmul.f32 %v12351_v11, %v13015_v28 }
 0x275   : > { %v13031_v44 = vsel %vm1914_vm0, %v1895_v4, %v17301_v49 }
 0x276   : > { %v13019_v33 = vpop.permute.xlu1 %2388  ;;  %v13021_v20 = vpop.permute.xlu0 %2383  ;;  %17608 = vst [vmem:[#allocation190_spill] sm:$0xff] %v13031_v44  ;;  %v2155_v11 = vmul.f32 %v12355_v14, %v13031_v44 }
 0x277   : > { %17606 = vst [vmem:[#allocation188_spill] sm:$0xff] %v13019_v33  ;;  %17607 = vst [vmem:[#allocation189_spill] sm:$0xff] %v13021_v20  ;;  %1426 = vperm.xlu1 %11502, %v1348_v1   ;;  %1421 = vperm.xlu0 %11501, %v1347_v6   ;;  %v13037_v20 = vsel %vm1914_vm0, %v17609_v7, %v1895_v4  ;;  %v13053_v33 = vld [vmem:[%s12943_s11 + $0xd8] sm:$0xff]  ;;  %v13056_v7 = vld [vmem:[%s12943_s11 + $0xd0] sm:$0xff]  ;;  %v1300_v4 = vrot.slane %v12980_v9, 7 }
 0x278   : > { %17610 = vst [vmem:[#allocation191_spill] sm:$0xff] %v13037_v20  ;;  %v2154_v49 = vmul.f32 %v12357_v15, %v13037_v20  ;;  %v1783_v14 = vmul.f32 %v12361_v18, %v13053_v33  ;;  %v1782_v15 = vmul.f32 %v12363_v19, %v13056_v7 }
 0x27a   : > { %v13039_v1 = vpop.permute.xlu1 %3040  ;;  %v13041_v6 = vpop.permute.xlu0 %3035 }
 0x27b   : > { %17611 = vst [vmem:[#allocation192_spill] sm:$0xff] %v13039_v1  ;;  %17612 = vst [vmem:[#allocation193_spill] sm:$0xff] %v13041_v6  ;;  %2234 = vrot.lane.b32.xlu1 %v2171_v3, %s12032_s16  ;;  %2232 = vrot.lane.b32.xlu0 %v2170_v17, %s12032_s16  ;;  %v17304_v6 = vrot.slane %v13044_v10, 7  ;;  %v17305_v1 = vrot.slane %v12951_v41, 7 }
 0x27d   : > { %v13076_v17 = vsel %vm1304_vm1, %v1300_v4, %v17304_v6 }
 0x27e   : > { %v13061_v28 = vpop.permute.xlu1 %3692  ;;  %v13063_v3 = vpop.permute.xlu0 %3687  ;;  %17615 = vst [vmem:[#allocation196_spill] sm:$0xff] %v13076_v17  ;;  %v2492_v19 = vmul.f32 %v12367_v22, %v13076_v17  ;;  %v1284_v22 = vrot.slane %v12998_v36, 7 }
 0x27f   : > { %17613 = vst [vmem:[#allocation194_spill] sm:$0xff] %v13061_v28  ;;  %17614 = vst [vmem:[#allocation195_spill] sm:$0xff] %v13063_v3  ;;  %2202 = vrot.lane.b32.xlu1 %v2155_v11, %s12032_s16  ;;  %2200 = vrot.lane.b32.xlu0 %v2154_v49, %s12032_s16  ;;  %v13082_v49 = vsel %vm1304_vm1, %v17305_v1, %v1300_v4  ;;  %v13099_v4 = vld [vmem:[%s12943_s11 + $0x78] sm:$0xff]  ;;  %v1361_v1 = vld [vmem:[%s12076_s21 + $0xc0] sm:$0xff] }
 0x280   : > { %17616 = vst [vmem:[#allocation197_spill] sm:$0xff] %v13082_v49  ;;  %v2491_v6 = vmul.f32 %v12369_v23, %v13082_v49  ;;  %v17308_v23 = vrot.slane %v13099_v4, 7 }
 0x282   : > { %v13084_v18 = vpop.permute.xlu1 %2308  ;;  %v13086_v11 = vpop.permute.xlu0 %2303  ;;  %v13126_v49 = vsel %vm1304_vm1, %v1284_v22, %v17308_v23 }
 0x283   : > { %17617 = vst [vmem:[#allocation198_spill] sm:$0xff] %v13084_v18  ;;  %17618 = vst [vmem:[#allocation199_spill] sm:$0xff] %v13086_v11  ;;  %1844 = vrot.lane.b32.xlu1 %v1783_v14, %s12031_s15  ;;  %1842 = vrot.lane.b32.xlu0 %v1782_v15, %s12031_s15  ;;  %v1362_v14 = vld [vmem:[%s12076_s21 + $0xc8] sm:$0xff]  ;;  %v13106_v15 = vld [vmem:[%s12943_s11 + $0x58] sm:$0xff] }
 0x284   : > { %v13109_v11 = vld [vmem:[%s12943_s11 + $0x50] sm:$0xff]  ;;  %17623 = vst [vmem:[#allocation204_spill] sm:$0xff] %v13126_v49 }
 0x286   : > { %v13094_v3 = vpop.permute.xlu1 %2960  ;;  %v13096_v28 = vpop.permute.xlu0 %2955 }
 0x287   : > { %17619 = vst [vmem:[#allocation200_spill] sm:$0xff] %v13094_v3  ;;  %17620 = vst [vmem:[#allocation201_spill] sm:$0xff] %v13096_v28  ;;  %2555 = vrot.lane.b32.xlu1 %v2492_v19, %s12033_s18  ;;  %2553 = vrot.lane.b32.xlu0 %v2491_v6, %s12033_s18  ;;  %v17309_v3 = vrot.slane %v12973_v57, 7  ;;  %v1767_v6 = vmul.f32 %v12373_v26, %v13106_v15  ;;  %v1766_v19 = vmul.f32 %v12375_v27, %v13109_v11 }
 0x288   : > { %v2476_v27 = vmul.f32 %v12379_v30, %v13126_v49 }
 0x28a   : > { %v13114_v28 = vpop.permute.xlu1 %3612  ;;  %v13116_v18 = vpop.permute.xlu0 %3607 }
 0x28b   : > { %17621 = vst [vmem:[#allocation202_spill] sm:$0xff] %v13114_v28  ;;  %17622 = vst [vmem:[#allocation203_spill] sm:$0xff] %v13116_v18  ;;  %1496 = vperm.xlu1 %11502, %v1362_v14   ;;  %1491 = vperm.xlu0 %11501, %v1361_v1   ;;  %v13132_v14 = vsel %vm1304_vm1, %v17309_v3, %v1284_v22  ;;  %v1909_v18 = vrot.slane %v13053_v33, 1  ;;  %v17312_v28 = vrot.slane %v13056_v7, 1 }
 0x28c   : > { %17624 = vst [vmem:[#allocation205_spill] sm:$0xff] %v13132_v14  ;;  %v2475_v23 = vmul.f32 %v12381_v31, %v13132_v14 }
 0x28d   : > { %v13164_v31 = vsel %vm1914_vm0, %v17312_v28, %v1909_v18 }
 0x28e   : > { %v13134_v1 = vpop.permute.xlu1 %2709  ;;  %v13136_v26 = vpop.permute.xlu0 %2704  ;;  %17631 = vst [vmem:[#allocation211_spill] sm:$0xff] %v13164_v31 }
 0x28f   : > { %17625 = vst [vmem:[#allocation206_spill] sm:$0xff] %v13134_v1  ;;  %17626 = vst [vmem:[#allocation207_spill] sm:$0xff] %v13136_v26  ;;  %1812 = vrot.lane.b32.xlu1 %v1767_v6, %s12031_s15  ;;  %1810 = vrot.lane.b32.xlu0 %v1766_v19, %s12031_s15  ;;  %v1346_v6 = vld [vmem:[%s12076_s21 + $0x48] sm:$0xff]  ;;  %v1345_v19 = vld [vmem:[%s12076_s21 + $0x40] sm:$0xff]  ;;  %v17629_v26 = vrot.slane %v12948_v60, 1  ;;  %v17313_v1 = vrot.slane %v13109_v11, 1 }
 0x291   : > { %v13158_v30 = vsel %vm1914_vm0, %v1909_v18, %v17629_v26  ;;  %v1893_v26 = vrot.slane %v13106_v15, 1 }
 0x292   : > { %v13146_v22 = vpop.permute.xlu1 %3361  ;;  %v13148_v3 = vpop.permute.xlu0 %3356  ;;  %17630 = vst [vmem:[#allocation210_spill] sm:$0xff] %v13158_v30 }
 0x293   : > { %17627 = vst [vmem:[#allocation208_spill] sm:$0xff] %v13146_v22  ;;  %17628 = vst [vmem:[#allocation209_spill] sm:$0xff] %v13148_v3  ;;  %2523 = vrot.lane.b32.xlu1 %v2476_v27, %s12033_s18  ;;  %2521 = vrot.lane.b32.xlu0 %v2475_v23, %s12033_s18  ;;  %v2169_v23 = vmul.f32 %v12385_v34, %v13158_v30  ;;  %v2168_v27 = vmul.f32 %v12387_v35, %v13164_v31  ;;  %v17636_v35 = vrot.slane %v12970_v52, 1 }
 0x294   : > { %v2812_v34 = vmul.f32 %v12393_v39, %v12980_v9 }
 0x296   : > { %v13166_v22 = vpop.permute.xlu1 %4013  ;;  %v13168_v3 = vpop.permute.xlu0 %4008 }
 0x297   : > { %17632 = vst [vmem:[#allocation212_spill] sm:$0xff] %v13166_v22  ;;  %17633 = vst [vmem:[#allocation213_spill] sm:$0xff] %v13168_v3  ;;  %1416 = vperm.xlu1 %11502, %v1346_v6   ;;  %1411 = vperm.xlu0 %11501, %v1345_v19   ;;  %v2813_v6 = vmul.f32 %v12391_v38, %v13044_v10  ;;  %v13190_v19 = vsel %vm1914_vm0, %v1893_v26, %v17636_v35 }
 0x298   : > { %17637 = vst [vmem:[#allocation216_spill] sm:$0xff] %v13190_v19  ;;  %v2153_v39 = vmul.f32 %v12397_v42, %v13190_v19  ;;  %v13222_v42 = vld [vmem:[%s12943_s11 + $0xc0] sm:$0xff] }
 0x29a   : > { %v13176_v14 = vpop.permute.xlu1 %2629  ;;  %v13178_v18 = vpop.permute.xlu0 %2624 }
 0x29b   : > { %17634 = vst [vmem:[#allocation214_spill] sm:$0xff] %v13176_v14  ;;  %17635 = vst [vmem:[#allocation215_spill] sm:$0xff] %v13178_v18  ;;  %2230 = vrot.lane.b32.xlu1 %v2169_v23, %s12032_s16  ;;  %2228 = vrot.lane.b32.xlu0 %v2168_v27, %s12032_s16  ;;  %v13196_v23 = vsel %vm1914_vm0, %v17313_v1, %v1893_v26  ;;  %v13219_v1 = vld [vmem:[%s12943_s11 + $0xc8] sm:$0xff] }
 0x29c   : > { %17638 = vst [vmem:[#allocation217_spill] sm:$0xff] %v13196_v23  ;;  %v2152_v35 = vmul.f32 %v12399_v43, %v13196_v23  ;;  %v1298_v43 = vrot.slane %v12948_v60, 7 }
 0x29e   : > { %v13198_v27 = vpop.permute.xlu1 %3281  ;;  %v13200_v38 = vpop.permute.xlu0 %3276 }
 0x29f   : > { %17639 = vst [vmem:[#allocation218_spill] sm:$0xff] %v13198_v27  ;;  %17640 = vst [vmem:[#allocation219_spill] sm:$0xff] %v13200_v38  ;;  %2876 = vrot.lane.b32.xlu1 %v2813_v6, %s12034_s22  ;;  %2874 = vrot.lane.b32.xlu0 %v2812_v34, %s12034_s22  ;;  %v2797_v6 = vmul.f32 %v12403_v46, %v13099_v4  ;;  %v2796_v34 = vmul.f32 %v12405_v47, %v12998_v36 }
 0x2a0   : > { %v1781_v46 = vmul.f32 %v12409_v50, %v13219_v1  ;;  %v1780_v47 = vmul.f32 %v12411_v51, %v13222_v42 }
 0x2a2   : > { %v13208_v28 = vpop.permute.xlu1 %3933  ;;  %v13210_v26 = vpop.permute.xlu0 %3928 }
 0x2a3   : > { %17641 = vst [vmem:[#allocation220_spill] sm:$0xff] %v13208_v28  ;;  %17642 = vst [vmem:[#allocation221_spill] sm:$0xff] %v13210_v26  ;;  %2198 = vrot.lane.b32.xlu1 %v2153_v39, %s12032_s16  ;;  %2196 = vrot.lane.b32.xlu0 %v2152_v35, %s12032_s16  ;;  %v13231_v39 = vld [vmem:[%s12943_s11] sm:$0xff]  ;;  %v17645_v35 = vrot.slane %v12951_v41, 7 }
 0x2a5   : > { %v13243_v28 = vsel %vm1304_vm1, %v1298_v43, %v17645_v35  ;;  %v17650_v35 = vrot.slane %v12980_v9, 1 }
 0x2a6   : > { %v13226_v38 = vpop.permute.xlu1 %3030  ;;  %v13228_v26 = vpop.permute.xlu0 %3025  ;;  %v2490_v51 = vmul.f32 %v12415_v54, %v13243_v28 }
 0x2a7   : > { %17643 = vst [vmem:[#allocation222_spill] sm:$0xff] %v13226_v38  ;;  %17644 = vst [vmem:[#allocation223_spill] sm:$0xff] %v13228_v26  ;;  %2844 = vrot.lane.b32.xlu1 %v2797_v6, %s12034_s22  ;;  %2842 = vrot.lane.b32.xlu0 %v2796_v34, %s12034_s22  ;;  %v17646_v38 = vrot.slane %v13053_v33, 7  ;;  %v17314_v6 = vrot.slane %v13231_v39, 1  ;;  %v1913_v34 = vrot.slane %v13044_v10, 1 }
 0x2a9   : > { %v13249_v26 = vsel %vm1304_vm1, %v17646_v38, %v1298_v43  ;;  %v13267_v43 = vsel %vm1914_vm0, %v1913_v34, %v17314_v6 }
 0x2aa   : > { %v13253_v50 = vpop.permute.xlu1 %3682  ;;  %v13255_v27 = vpop.permute.xlu0 %3677  ;;  %v2489_v38 = vmul.f32 %v12417_v55, %v13249_v26  ;;  %17649 = vst [vmem:[#allocation226_spill] sm:$0xff] %v13267_v43  ;;  %v3134_v55 = vmul.f32 %v12421_v58, %v13267_v43  ;;  %v1282_v58 = vrot.slane %v12970_v52, 7 }
 0x2ab   : > { %17647 = vst [vmem:[#allocation224_spill] sm:$0xff] %v13253_v50  ;;  %17648 = vst [vmem:[#allocation225_spill] sm:$0xff] %v13255_v27  ;;  %1840 = vrot.lane.b32.xlu1 %v1781_v46, %s12031_s15  ;;  %1838 = vrot.lane.b32.xlu0 %v1780_v47, %s12031_s15  ;;  %v13273_v46 = vsel %vm1914_vm0, %v17650_v35, %v1913_v34  ;;  %v1359_v34 = vld [vmem:[%s12076_s21 + $0xb0] sm:$0xff]  ;;  %v13294_v35 = vld [vmem:[%s12943_s11 + $0x48] sm:$0xff] }
 0x2ac   : > { %17651 = vst [vmem:[#allocation227_spill] sm:$0xff] %v13273_v46  ;;  %v3133_v6 = vmul.f32 %v12423_v59, %v13273_v46 }
 0x2ae   : > { %v13275_v47 = vpop.permute.xlu1 %2950  ;;  %v13277_v54 = vpop.permute.xlu0 %2945 }
 0x2af   : > { %17652 = vst [vmem:[#allocation228_spill] sm:$0xff] %v13275_v47  ;;  %17653 = vst [vmem:[#allocation229_spill] sm:$0xff] %v13277_v54  ;;  %2551 = vrot.lane.b32.xlu1 %v2490_v51, %s12033_s18  ;;  %2549 = vrot.lane.b32.xlu0 %v2489_v38, %s12033_s18  ;;  %v1360_v51 = vld [vmem:[%s12076_s21 + $0xb8] sm:$0xff]  ;;  %v13297_v38 = vld [vmem:[%s12943_s11 + $0x40] sm:$0xff]  ;;  %v17315_v47 = vrot.slane %v13106_v15, 7  ;;  %v17658_v54 = vrot.slane %v12973_v57, 7 }
 0x2b1   : > { %v13316_v18 = vsel %vm1304_vm1, %v1282_v58, %v17658_v54 }
 0x2b2   : > { %v13285_v50 = vpop.permute.xlu1 %3602  ;;  %v13287_v27 = vpop.permute.xlu0 %3597 }
 0x2b3   : > { %17654 = vst [vmem:[#allocation230_spill] sm:$0xff] %v13285_v50  ;;  %17655 = vst [vmem:[#allocation231_spill] sm:$0xff] %v13287_v27  ;;  %3195 = vrot.lane.b32.xlu0 %v3133_v6, %s12035_s23  ;;  %3197 = vrot.lane.b32.xlu1 %v3134_v55, %s12035_s23  ;;  %v13306_v27 = vld [vmem:[%s12943_s11 + $0x80] sm:$0xff]  ;;  %v1765_v6 = vmul.f32 %v12427_v62, %v13294_v35  ;;  %v1764_v55 = vmul.f32 %v12429_v63, %v13297_v38 }
 0x2b4   : > { %v2474_v63 = vmul.f32 %v12433_v5, %v13316_v18 }
 0x2b6   : > { %v13301_v59 = vpop.permute.xlu1 %3351  ;;  %v13303_v50 = vpop.permute.xlu0 %3346 }
 0x2b7   : > { %17656 = vst [vmem:[#allocation232_spill] sm:$0xff] %v13301_v59  ;;  %17657 = vst [vmem:[#allocation233_spill] sm:$0xff] %v13303_v50  ;;  %1481 = vperm.xlu0 %11501, %v1359_v34   ;;  %1486 = vperm.xlu1 %11502, %v1360_v51   ;;  %v13322_v59 = vsel %vm1304_vm1, %v17315_v47, %v1282_v58  ;;  %v1897_v34 = vrot.slane %v13099_v4, 1  ;;  %v17316_v51 = vrot.slane %v13306_v27, 1  ;;  %v17662_v47 = vrot.slane %v12998_v36, 1 }
 0x2b8   : > { %v2473_v54 = vmul.f32 %v12435_v8, %v13322_v59 }
 0x2b9   : > { %v13340_v58 = vsel %vm1914_vm0, %v1897_v34, %v17316_v51 }
 0x2ba   : > { %v13326_v62 = vpop.permute.xlu1 %4003  ;;  %v13328_v50 = vpop.permute.xlu0 %3998  ;;  %17661 = vst [vmem:[#allocation236_spill] sm:$0xff] %v13340_v58  ;;  %v3118_v8 = vmul.f32 %v12439_v13, %v13340_v58 }
 0x2bb   : > { %17659 = vst [vmem:[#allocation234_spill] sm:$0xff] %v13326_v62  ;;  %17660 = vst [vmem:[#allocation235_spill] sm:$0xff] %v13328_v50  ;;  %1806 = vrot.lane.b32.xlu0 %v1764_v55, %s12031_s15  ;;  %1808 = vrot.lane.b32.xlu1 %v1765_v6, %s12031_s15  ;;  %v13346_v55 = vsel %vm1914_vm0, %v17662_v47, %v1897_v34  ;;  %v1907_v62 = vrot.slane %v13219_v1, 1  ;;  %v17317_v47 = vrot.slane %v13222_v42, 1  ;;  %v1270_v50 = vrot.slane %v13231_v39, 7 }
 0x2bc   : > { %17663 = vst [vmem:[#allocation237_spill] sm:$0xff] %v13346_v55  ;;  %v3117_v51 = vmul.f32 %v12441_v16, %v13346_v55 }
 0x2bd   : > { %v13378_v16 = vsel %vm1914_vm0, %v17317_v47, %v1907_v62 }
 0x2be   : > { %v13348_v6 = vpop.permute.xlu1 %3271  ;;  %v13350_v5 = vpop.permute.xlu0 %3266  ;;  %17670 = vst [vmem:[#allocation243_spill] sm:$0xff] %v13378_v16 }
 0x2bf   : > { %17664 = vst [vmem:[#allocation238_spill] sm:$0xff] %v13348_v6  ;;  %17665 = vst [vmem:[#allocation239_spill] sm:$0xff] %v13350_v5  ;;  %2517 = vrot.lane.b32.xlu0 %v2473_v54, %s12033_s18  ;;  %2519 = vrot.lane.b32.xlu1 %v2474_v63, %s12033_s18  ;;  %v1343_v54 = vld [vmem:[%s12076_s21 + $0x30] sm:$0xff]  ;;  %v1344_v63 = vld [vmem:[%s12076_s21 + $0x38] sm:$0xff]  ;;  %v17668_v5 = vrot.slane %v13056_v7, 1 }
 0x2c1   : > { %v13372_v13 = vsel %vm1914_vm0, %v1907_v62, %v17668_v5  ;;  %v2166_v5 = vmul.f32 %v12447_v24, %v13378_v16 }
 0x2c2   : > { %v13360_v34 = vpop.permute.xlu1 %3923  ;;  %v13362_v6 = vpop.permute.xlu0 %3918  ;;  %17669 = vst [vmem:[#allocation242_spill] sm:$0xff] %v13372_v13 }
 0x2c3   : > { %17666 = vst [vmem:[#allocation240_spill] sm:$0xff] %v13360_v34  ;;  %17667 = vst [vmem:[#allocation241_spill] sm:$0xff] %v13362_v6  ;;  %3163 = vrot.lane.b32.xlu0 %v3117_v51, %s12035_s23  ;;  %3165 = vrot.lane.b32.xlu1 %v3118_v8, %s12035_s23  ;;  %v13385_v51 = vld [vmem:[%s12943_s11 + $0x8] sm:$0xff]  ;;  %v2167_v8 = vmul.f32 %v12445_v21, %v13372_v13  ;;  %v2810_v21 = vmul.f32 %v12453_v32, %v12948_v60 }
 0x2c4   : > { %17673 = vst [vmem:[#allocation246_spill] sm:$0xff] %v13385_v51  ;;  %v17318_v14 = vrot.slane %v13385_v51, 7 }
 0x2c6   : > { %v13380_v34 = vpop.permute.xlu1 %3672  ;;  %v13382_v6 = vpop.permute.xlu0 %3667  ;;  %v13407_v24 = vsel %vm1304_vm1, %v1270_v50, %v17318_v14 }
 0x2c7   : > { %17671 = vst [vmem:[#allocation244_spill] sm:$0xff] %v13380_v34  ;;  %17672 = vst [vmem:[#allocation245_spill] sm:$0xff] %v13382_v6  ;;  %1401 = vperm.xlu0 %11501, %v1343_v54   ;;  %1406 = vperm.xlu1 %11502, %v1344_v63   ;;  %v2811_v54 = vmul.f32 %v12451_v29, %v12951_v41  ;;  %v17677_v63 = vrot.slane %v13044_v10, 7  ;;  %v17319_v29 = vrot.slane %v13297_v38, 1 }
 0x2c8   : > { %17676 = vst [vmem:[#allocation249_spill] sm:$0xff] %v13407_v24  ;;  %v3455_v32 = vmul.f32 %v12457_v37, %v13407_v24  ;;  %v13444_v37 = vld [vmem:[%s12943_s11 + $0x88] sm:$0xff] }
 0x2ca   : > { %v13393_v62 = vpop.permute.xlu1 %3592  ;;  %v13395_v47 = vpop.permute.xlu0 %3587 }
 0x2cb   : > { %17674 = vst [vmem:[#allocation247_spill] sm:$0xff] %v13393_v62  ;;  %17675 = vst [vmem:[#allocation248_spill] sm:$0xff] %v13395_v47  ;;  %2224 = vrot.lane.b32.xlu0 %v2166_v5, %s12032_s16  ;;  %2226 = vrot.lane.b32.xlu1 %v2167_v8, %s12032_s16  ;;  %v13413_v5 = vsel %vm1304_vm1, %v17677_v63, %v1270_v50  ;;  %v1891_v8 = vrot.slane %v13294_v35, 1  ;;  %v17681_v50 = vrot.slane %v13109_v11, 1 }
 0x2cc   : > { %17678 = vst [vmem:[#allocation250_spill] sm:$0xff] %v13413_v5  ;;  %v3454_v60 = vmul.f32 %v12459_v40, %v13413_v5 }
 0x2cd   : > { %v13431_v63 = vsel %vm1914_vm0, %v1891_v8, %v17681_v50  ;;  %v13437_v14 = vsel %vm1914_vm0, %v17319_v29, %v1891_v8  ;;  %v1286_v8 = vrot.slane %v13306_v27, 7  ;;  %v17320_v29 = vrot.slane %v13444_v37, 7 }
 0x2ce   : > { %v13417_v41 = vpop.permute.xlu1 %3993  ;;  %v13419_v62 = vpop.permute.xlu0 %3988  ;;  %v2151_v40 = vmul.f32 %v12463_v45, %v13431_v63  ;;  %v2150_v50 = vmul.f32 %v12465_v48, %v13437_v14  ;;  %v2795_v45 = vmul.f32 %v12469_v53, %v12973_v57  ;;  %v2794_v48 = vmul.f32 %v12471_v56, %v12970_v52  ;;  %v13487_v52 = vld [vmem:[%s12943_s11 + $0xb8] sm:$0xff]  ;;  %v13490_v57 = vld [vmem:[%s12943_s11 + $0xb0] sm:$0xff] }
 0x2cf   : > { %17679 = vst [vmem:[#allocation251_spill] sm:$0xff] %v13417_v41  ;;  %17680 = vst [vmem:[#allocation252_spill] sm:$0xff] %v13419_v62  ;;  %2870 = vrot.lane.b32.xlu0 %v2810_v21, %s12034_s22  ;;  %2872 = vrot.lane.b32.xlu1 %v2811_v54, %s12034_s22 }
 0x2d2   : > { %v13439_v21 = vpop.permute.xlu1 %3913  ;;  %v13441_v54 = vpop.permute.xlu0 %3908 }
 0x2d3   : > { %17682 = vst [vmem:[#allocation253_spill] sm:$0xff] %v13439_v21  ;;  %17683 = vst [vmem:[#allocation254_spill] sm:$0xff] %v13441_v54  ;;  %3516 = vrot.lane.b32.xlu0 %v3454_v60, %s12036_s26  ;;  %3518 = vrot.lane.b32.xlu1 %v3455_v32, %s12036_s26  ;;  %v13468_v32 = vsel %vm1304_vm1, %v1286_v8, %v17320_v29  ;;  %v17685_v60 = vrot.slane %v13099_v4, 7 }
 0x2d4   : > { %17684 = vst [vmem:[#allocation255_spill] sm:$0xff] %v13468_v32  ;;  %v3439_v53 = vmul.f32 %v12475_v61, %v13468_v32  ;;  %v1779_v61 = vmul.f32 %v12481_v12, %v13487_v52  ;;  %v17695_v12 = vld [vmem:[#allocation27_spill] sm:$0xff] }
 0x2d5   : > { %v13474_v41 = vsel %vm1304_vm1, %v17685_v60, %v1286_v8  ;;  %v1296_v8 = vrot.slane %v13056_v7, 7  ;;  %v17321_v60 = vrot.slane %v13219_v1, 7 }
 0x2d6   : > { %v13454_v21 = vpop.permute.xlu1 %1526  ;;  %v13456_v54 = vpop.permute.xlu0 %1521  ;;  %17686 = vst [vmem:[#allocation256_spill] sm:$0xff] %v13474_v41  ;;  %v3438_v56 = vmul.f32 %v12477_v0, %v13474_v41  ;;  %v17689_v0 = vld [vmem:[#allocation26_spill] sm:$0xff] }
 0x2d7   : > { %2192 = vrot.lane.b32.xlu0 %v2150_v50, %s12032_s16  ;;  %2194 = vrot.lane.b32.xlu1 %v2151_v40, %s12032_s16  ;;  %v13514_v34 = vsel %vm1304_vm1, %v17321_v60, %v1296_v8  ;;  %v17699_v60 = vld [vmem:[#allocation30_spill] sm:$0xff] }
 0x2d8   : > { %17692 = vst [vmem:[#allocation259_spill] sm:$0xff] %v13514_v34 }
 0x2da   : > { %v13476_v50 = vpop.permute.xlu1 %1446  ;;  %v13478_v40 = vpop.permute.xlu0 %1441 }
 0x2db   : > { %2838 = vrot.lane.b32.xlu0 %v2794_v48, %s12034_s22  ;;  %2840 = vrot.lane.b32.xlu1 %v2795_v45, %s12034_s22  ;;  %v1778_v45 = vmul.f32 %v17689_v0, %v13490_v57  ;;  %v17690_v48 = vrot.slane %v13053_v33, 7 }
 0x2dd   : > { %v13508_v47 = vsel %vm1304_vm1, %v1296_v8, %v17690_v48  ;;  %v17696_v48 = vld [vmem:[#allocation28_spill] sm:$0xff]  ;;  %v17697_v8 = vld [vmem:[#allocation29_spill] sm:$0xff] }
 0x2de   : > { %v13494_v29 = vpop.permute.xlu1 %1516  ;;  %v13496_v62 = vpop.permute.xlu0 %1511  ;;  %17691 = vst [vmem:[#allocation26_spill] sm:$0xff] %v13508_v47  ;;  %v2488_v0 = vmul.f32 %v17695_v12, %v13508_v47  ;;  %v2487_v6 = vmul.f32 %v17696_v48, %v13514_v34  ;;  %v1905_v47 = vrot.slane %v13487_v52, 1 }
 0x2df   : > { %17687 = vst [vmem:[#allocation257_spill] sm:$0xff] %v13494_v29  ;;  %17688 = vst [vmem:[#allocation258_spill] sm:$0xff] %v13496_v62  ;;  %3484 = vrot.lane.b32.xlu0 %v3438_v56, %s12036_s26  ;;  %3486 = vrot.lane.b32.xlu1 %v3439_v53, %s12036_s26  ;;  %v17710_v29 = vrot.slane %v13106_v15, 7 }
 0x2e2   : > { %v13516_v56 = vpop.permute.xlu1 %1436  ;;  %v13518_v53 = vpop.permute.xlu0 %1431 }
 0x2e3   : > { %17693 = vst [vmem:[#allocation260_spill] sm:$0xff] %v13516_v56  ;;  %17694 = vst [vmem:[#allocation261_spill] sm:$0xff] %v13518_v53  ;;  %1834 = vrot.lane.b32.xlu0 %v1778_v45, %s12031_s15  ;;  %1836 = vrot.lane.b32.xlu1 %v1779_v61, %s12031_s15  ;;  %v3132_v61 = vmul.f32 %v17697_v8, %v13009_v2  ;;  %v17698_v45 = vld [vmem:[#allocation187_spill] sm:$0xff] }
 0x2e4   : > { %v3131_v12 = vmul.f32 %v17699_v60, %v17698_v45  ;;  %v1357_v60 = vld [vmem:[%s12076_s21 + $0xa0] sm:$0xff] }
 0x2e6   : > { %v13526_v3 = vpop.permute.xlu1 %1848  ;;  %v13528_v22 = vpop.permute.xlu0 %1846 }
 0x2e7   : > { %2545 = vrot.lane.b32.xlu0 %v2487_v6, %s12033_s18  ;;  %2547 = vrot.lane.b32.xlu1 %v2488_v0, %s12033_s18  ;;  %v17702_v6 = vld [vmem:[#allocation31_spill] sm:$0xff]  ;;  %v17703_v0 = vld [vmem:[#allocation32_spill] sm:$0xff] }
 0x2e8   : > { %v3776_v24 = vmul.f32 %v17702_v6, %v13385_v51  ;;  %v3775_v41 = vmul.f32 %v17703_v0, %v13231_v39  ;;  %v1280_v6 = vrot.slane %v13109_v11, 7 }
 0x2ea   : > { %v13536_v5 = vpop.permute.xlu1 %1506  ;;  %v13538_v48 = vpop.permute.xlu0 %1501  ;;  %v13574_v45 = vsel %vm1304_vm1, %v1280_v6, %v17710_v29  ;;  %v17714_v29 = vld [vmem:[#allocation36_spill] sm:$0xff] }
 0x2eb   : > { %17700 = vst [vmem:[#allocation27_spill] sm:$0xff] %v13536_v5  ;;  %17701 = vst [vmem:[#allocation28_spill] sm:$0xff] %v13538_v48  ;;  %3191 = vrot.lane.b32.xlu0 %v3131_v12, %s12035_s23  ;;  %3193 = vrot.lane.b32.xlu1 %v3132_v61, %s12035_s23  ;;  %v1358_v48 = vld [vmem:[%s12076_s21 + $0xa8] sm:$0xff]  ;;  %v13555_v12 = vld [vmem:[%s12943_s11 + $0x38] sm:$0xff]  ;;  %v17333_v5 = vrot.slane %v13294_v35, 7 }
 0x2ec   : > { %v13558_v61 = vld [vmem:[%s12943_s11 + $0x30] sm:$0xff] }
 0x2ee   : > { %v13546_v32 = vpop.permute.xlu1 %1816  ;;  %v13548_v8 = vpop.permute.xlu0 %1814 }
 0x2ef   : > { %17704 = vst [vmem:[#allocation29_spill] sm:$0xff] %v13546_v32  ;;  %17705 = vst [vmem:[#allocation30_spill] sm:$0xff] %v13548_v8  ;;  %3837 = vrot.lane.b32.xlu0 %v3775_v41, %s12037_s28  ;;  %3839 = vrot.lane.b32.xlu1 %v3776_v24, %s12037_s28  ;;  %v17708_v41 = vld [vmem:[#allocation33_spill] sm:$0xff]  ;;  %v17709_v24 = vld [vmem:[#allocation34_spill] sm:$0xff] }
 0x2f0   : > { %v1763_v56 = vmul.f32 %v17708_v41, %v13555_v12  ;;  %v1762_v62 = vmul.f32 %v17709_v24, %v13558_v61  ;;  %17711 = vst [vmem:[#allocation33_spill] sm:$0xff] %v13574_v45  ;;  %v17713_v41 = vld [vmem:[#allocation35_spill] sm:$0xff]  ;;  %v13647_v32 = vld [vmem:[%s12943_s11 + $0x10] sm:$0xff] }
 0x2f1   : > { %v2472_v24 = vmul.f32 %v17713_v41, %v13574_v45 }
 0x2f2   : > { %v13562_v0 = vpop.permute.xlu1 %1426  ;;  %v13564_v53 = vpop.permute.xlu0 %1421 }
 0x2f3   : > { %17706 = vst [vmem:[#allocation31_spill] sm:$0xff] %v13562_v0  ;;  %17707 = vst [vmem:[#allocation32_spill] sm:$0xff] %v13564_v53  ;;  %1471 = vperm.xlu0 %11501, %v1357_v60   ;;  %1476 = vperm.xlu1 %11502, %v1358_v48   ;;  %v13580_v0 = vsel %vm1304_vm1, %v17333_v5, %v1280_v6  ;;  %v17717_v6 = vld [vmem:[#allocation37_spill] sm:$0xff] }
 0x2f4   : > { %17712 = vst [vmem:[#allocation34_spill] sm:$0xff] %v13580_v0  ;;  %v2471_v53 = vmul.f32 %v17714_v29, %v13580_v0 }
 0x2f6   : > { %v13582_v60 = vpop.permute.xlu1 %2234  ;;  %v13584_v48 = vpop.permute.xlu0 %2232 }
 0x2f7   : > { %1802 = vrot.lane.b32.xlu0 %v1762_v62, %s12031_s15  ;;  %1804 = vrot.lane.b32.xlu1 %v1763_v56, %s12031_s15  ;;  %v3116_v62 = vmul.f32 %v17717_v6, %v13031_v44  ;;  %v17718_v56 = vld [vmem:[#allocation38_spill] sm:$0xff]  ;;  %v17342_v6 = vrot.slane %v13490_v57, 1 }
 0x2f8   : > { %v3115_v5 = vmul.f32 %v17718_v56, %v13037_v20 }
 0x2fa   : > { %v13592_v2 = vpop.permute.xlu1 %2202  ;;  %v13594_v34 = vpop.permute.xlu0 %2200 }
 0x2fb   : > { %17715 = vst [vmem:[#allocation35_spill] sm:$0xff] %v13592_v2  ;;  %17716 = vst [vmem:[#allocation36_spill] sm:$0xff] %v13594_v34  ;;  %2513 = vrot.lane.b32.xlu0 %v2471_v53, %s12033_s18  ;;  %2515 = vrot.lane.b32.xlu1 %v2472_v24, %s12033_s18  ;;  %v17721_v53 = vld [vmem:[#allocation39_spill] sm:$0xff]  ;;  %v17722_v24 = vld [vmem:[#allocation40_spill] sm:$0xff] }
 0x2fc   : > { %v3760_v29 = vmul.f32 %v17721_v53, %v13444_v37  ;;  %v3759_v0 = vmul.f32 %v17722_v24, %v13306_v27  ;;  %v17723_v53 = vrot.slane %v13222_v42, 1  ;;  %v17729_v34 = vld [vmem:[#allocation42_spill] sm:$0xff] }
 0x2fe   : > { %v13602_v41 = vpop.permute.xlu1 %1844  ;;  %v13604_v45 = vpop.permute.xlu0 %1842  ;;  %v13626_v24 = vsel %vm1914_vm0, %v1905_v47, %v17723_v53 }
 0x2ff   : > { %17719 = vst [vmem:[#allocation37_spill] sm:$0xff] %v13602_v41  ;;  %17720 = vst [vmem:[#allocation38_spill] sm:$0xff] %v13604_v45  ;;  %3159 = vrot.lane.b32.xlu0 %v3115_v5, %s12035_s23  ;;  %3161 = vrot.lane.b32.xlu1 %v3116_v62, %s12035_s23  ;;  %v1341_v5 = vld [vmem:[%s12076_s21 + $0x20] sm:$0xff]  ;;  %v1342_v62 = vld [vmem:[%s12076_s21 + $0x28] sm:$0xff]  ;;  %v13632_v45 = vsel %vm1914_vm0, %v17342_v6, %v1905_v47 }
 0x300   : > { %17724 = vst [vmem:[#allocation39_spill] sm:$0xff] %v13626_v24  ;;  %17725 = vst [vmem:[#allocation40_spill] sm:$0xff] %v13632_v45  ;;  %v2164_v2 = vmul.f32 %v17729_v34, %v13632_v45  ;;  %v17732_v47 = vld [vmem:[#allocation43_spill] sm:$0xff]  ;;  %v17345_v34 = vrot.slane %v13647_v32, 1 }
 0x302   : > { %v13614_v44 = vpop.permute.xlu1 %2555  ;;  %v13616_v56 = vpop.permute.xlu0 %2553 }
 0x303   : > { %3805 = vrot.lane.b32.xlu0 %v3759_v0, %s12037_s28  ;;  %3807 = vrot.lane.b32.xlu1 %v3760_v29, %s12037_s28  ;;  %v17728_v0 = vld [vmem:[#allocation41_spill] sm:$0xff] }
 0x304   : > { %v2165_v29 = vmul.f32 %v17728_v0, %v13626_v24  ;;  %v1883_v0 = vrot.slane %v13385_v51, 1 }
 0x306   : > { %v13634_v41 = vpop.permute.xlu1 %1496  ;;  %v13636_v20 = vpop.permute.xlu0 %1491 }
 0x307   : > { %17726 = vst [vmem:[#allocation262_spill] sm:$0xff] %v13634_v41  ;;  %17727 = vst [vmem:[#allocation263_spill] sm:$0xff] %v13636_v20  ;;  %1391 = vperm.xlu0 %11501, %v1341_v5   ;;  %1396 = vperm.xlu1 %11502, %v1342_v62   ;;  %v2809_v5 = vmul.f32 %v17732_v47, %v13053_v33  ;;  %v17733_v62 = vld [vmem:[#allocation44_spill] sm:$0xff]  ;;  %v17736_v33 = vld [vmem:[#allocation46_spill] sm:$0xff] }
 0x308   : > { %v2808_v6 = vmul.f32 %v17733_v62, %v13056_v7  ;;  %v13671_v7 = vsel %vm1914_vm0, %v1883_v0, %v17345_v34  ;;  %v17738_v62 = vrot.slane %v13231_v39, 1  ;;  %v17743_v34 = vld [vmem:[#allocation48_spill] sm:$0xff] }
 0x309   : > { %17737 = vst [vmem:[#allocation43_spill] sm:$0xff] %v13671_v7 }
 0x30a   : > { %v13642_v53 = vpop.permute.xlu1 %1812  ;;  %v13644_v8 = vpop.permute.xlu0 %1810  ;;  %v13677_v51 = vsel %vm1914_vm0, %v17738_v62, %v1883_v0  ;;  %v17744_v62 = vrot.slane %v13297_v38, 1 }
 0x30b   : > { %17730 = vst [vmem:[#allocation41_spill] sm:$0xff] %v13642_v53  ;;  %17731 = vst [vmem:[#allocation42_spill] sm:$0xff] %v13644_v8  ;;  %2220 = vrot.lane.b32.xlu0 %v2164_v2, %s12032_s16  ;;  %2222 = vrot.lane.b32.xlu1 %v2165_v29, %s12032_s16  ;;  %v17734_v2 = vld [vmem:[#allocation45_spill] sm:$0xff]  ;;  %v4096_v0 = vmul.f32 %v17743_v34, %v13677_v51 }
 0x30c   : > { %v3453_v29 = vmul.f32 %v17734_v2, %v13076_v17  ;;  %v17735_v8 = vld [vmem:[#allocation197_spill] sm:$0xff]  ;;  %17739 = vst [vmem:[#allocation44_spill] sm:$0xff] %v13677_v51 }
 0x30d   : > { %v3452_v47 = vmul.f32 %v17736_v33, %v17735_v8  ;;  %v17742_v33 = vld [vmem:[#allocation47_spill] sm:$0xff]  ;;  %v17746_v8 = vrot.slane %v13558_v61, 1  ;;  %v17750_v34 = vld [vmem:[#allocation49_spill] sm:$0xff] }
 0x30e   : > { %v13657_v20 = vpop.permute.xlu1 %2523  ;;  %v13659_v41 = vpop.permute.xlu0 %2521  ;;  %v4097_v39 = vmul.f32 %v17742_v33, %v13671_v7 }
 0x30f   : > { %2866 = vrot.lane.b32.xlu0 %v2808_v6, %s12034_s22  ;;  %2868 = vrot.lane.b32.xlu1 %v2809_v5, %s12034_s22  ;;  %v1889_v6 = vrot.slane %v13555_v12, 1 }
 0x311   : > { %v13695_v5 = vsel %vm1914_vm0, %v1889_v6, %v17744_v62  ;;  %v17751_v62 = vld [vmem:[#allocation50_spill] sm:$0xff] }
 0x312   : > { %v13681_v2 = vpop.permute.xlu1 %1416  ;;  %v13683_v17 = vpop.permute.xlu0 %1411  ;;  %17745 = vst [vmem:[#allocation47_spill] sm:$0xff] %v13695_v5  ;;  %v2149_v33 = vmul.f32 %v17750_v34, %v13695_v5  ;;  %v1899_v34 = vrot.slane %v13444_v37, 1 }
 0x313   : > { %17740 = vst [vmem:[#allocation45_spill] sm:$0xff] %v13681_v2  ;;  %17741 = vst [vmem:[#allocation46_spill] sm:$0xff] %v13683_v17  ;;  %3512 = vrot.lane.b32.xlu0 %v3452_v47, %s12036_s26  ;;  %3514 = vrot.lane.b32.xlu1 %v3453_v29, %s12036_s26  ;;  %v13701_v17 = vsel %vm1914_vm0, %v17746_v8, %v1889_v6  ;;  %v13718_v8 = vld [vmem:[%s12943_s11 + $0x90] sm:$0xff]  ;;  %v17752_v6 = vld [vmem:[#allocation51_spill] sm:$0xff] }
 0x314   : > { %17747 = vst [vmem:[#allocation48_spill] sm:$0xff] %v13701_v17  ;;  %v2148_v2 = vmul.f32 %v17751_v62, %v13701_v17  ;;  %v17354_v62 = vrot.slane %v13718_v8, 1 }
 0x316   : > { %v13703_v47 = vpop.permute.xlu1 %2230  ;;  %v13705_v29 = vpop.permute.xlu0 %2228 }
 0x317   : > { %17748 = vst [vmem:[#allocation264_spill] sm:$0xff] %v13703_v47  ;;  %17749 = vst [vmem:[#allocation265_spill] sm:$0xff] %v13705_v29  ;;  %4158 = vrot.lane.b32.xlu0 %v4096_v0, %s12038_s1  ;;  %4160 = vrot.lane.b32.xlu1 %v4097_v39, %s12038_s1  ;;  %v2793_v0 = vmul.f32 %v17752_v6, %v13106_v15  ;;  %v17753_v39 = vld [vmem:[#allocation52_spill] sm:$0xff]  ;;  %v17758_v6 = vld [vmem:[#allocation54_spill] sm:$0xff] }
 0x318   : > { %v2792_v53 = vmul.f32 %v17753_v39, %v13109_v11  ;;  %v13742_v39 = vsel %vm1914_vm0, %v1899_v34, %v17354_v62  ;;  %v17763_v62 = vld [vmem:[#allocation56_spill] sm:$0xff] }
 0x319   : > { %17759 = vst [vmem:[#allocation51_spill] sm:$0xff] %v13742_v39 }
 0x31a   : > { %v13713_v51 = vpop.permute.xlu1 %2876  ;;  %v13715_v7 = vpop.permute.xlu0 %2874 }
 0x31b   : > { %2188 = vrot.lane.b32.xlu0 %v2148_v2, %s12032_s16  ;;  %2190 = vrot.lane.b32.xlu1 %v2149_v33, %s12032_s16  ;;  %v17756_v2 = vld [vmem:[#allocation53_spill] sm:$0xff] }
 0x31c   : > { %v3437_v15 = vmul.f32 %v17756_v2, %v13126_v49  ;;  %v17757_v33 = vld [vmem:[#allocation205_spill] sm:$0xff]  ;;  %v17762_v2 = vld [vmem:[#allocation55_spill] sm:$0xff] }
 0x31d   : > { %v3436_v11 = vmul.f32 %v17758_v6, %v17757_v33  ;;  %v4081_v6 = vmul.f32 %v17762_v2, %v13742_v39  ;;  %v13761_v33 = vld [vmem:[%s12943_s11 + $0xa8] sm:$0xff] }
 0x31e   : > { %v13728_v17 = vpop.permute.xlu1 %2198  ;;  %v13730_v5 = vpop.permute.xlu0 %2196 }
 0x31f   : > { %17754 = vst [vmem:[#allocation49_spill] sm:$0xff] %v13728_v17  ;;  %17755 = vst [vmem:[#allocation50_spill] sm:$0xff] %v13730_v5  ;;  %2834 = vrot.lane.b32.xlu0 %v2792_v53, %s12034_s22  ;;  %2836 = vrot.lane.b32.xlu1 %v2793_v0, %s12034_s22  ;;  %v17760_v17 = vrot.slane %v13306_v27, 1  ;;  %v13764_v27 = vld [vmem:[%s12943_s11 + $0xa0] sm:$0xff] }
 0x321   : > { %v13748_v5 = vsel %vm1914_vm0, %v17760_v17, %v1899_v34  ;;  %v1294_v17 = vrot.slane %v13222_v42, 7  ;;  %v17364_v34 = vrot.slane %v13487_v52, 7 }
 0x322   : > { %17761 = vst [vmem:[#allocation52_spill] sm:$0xff] %v13748_v5  ;;  %v13750_v53 = vpop.permute.xlu1 %2844  ;;  %v13752_v0 = vpop.permute.xlu0 %2842  ;;  %v4080_v49 = vmul.f32 %v17763_v62, %v13748_v5  ;;  %v17767_v62 = vld [vmem:[#allocation58_spill] sm:$0xff]  ;;  %v17768_v5 = vrot.slane %v13219_v1, 7 }
 0x323   : > { %3480 = vrot.lane.b32.xlu0 %v3436_v11, %s12036_s26  ;;  %3482 = vrot.lane.b32.xlu1 %v3437_v15, %s12036_s26  ;;  %v17766_v15 = vld [vmem:[#allocation57_spill] sm:$0xff]  ;;  %v1776_v2 = vmul.f32 %v17767_v62, %v13764_v27 }
 0x324   : > { %v1777_v11 = vmul.f32 %v17766_v15, %v13761_v33  ;;  %v13782_v39 = vsel %vm1304_vm1, %v1294_v17, %v17768_v5  ;;  %v17773_v15 = vld [vmem:[#allocation59_spill] sm:$0xff]  ;;  %v17774_v5 = vld [vmem:[#allocation60_spill] sm:$0xff] }
 0x325   : > { %17769 = vst [vmem:[#allocation55_spill] sm:$0xff] %v13782_v39  ;;  %v2486_v62 = vmul.f32 %v17773_v15, %v13782_v39 }
 0x326   : > { %v13768_v29 = vpop.permute.xlu1 %1840  ;;  %v13770_v47 = vpop.permute.xlu0 %1838 }
 0x327   : > { %17764 = vst [vmem:[#allocation53_spill] sm:$0xff] %v13768_v29  ;;  %17765 = vst [vmem:[#allocation54_spill] sm:$0xff] %v13770_v47  ;;  %4126 = vrot.lane.b32.xlu0 %v4080_v49, %s12038_s1  ;;  %4128 = vrot.lane.b32.xlu1 %v4081_v6, %s12038_s1  ;;  %v13788_v47 = vsel %vm1304_vm1, %v17364_v34, %v1294_v17  ;;  %v17775_v17 = vld [vmem:[#allocation61_spill] sm:$0xff] }
 0x328   : > { %17770 = vst [vmem:[#allocation56_spill] sm:$0xff] %v13788_v47  ;;  %v2485_v29 = vmul.f32 %v17774_v5, %v13788_v47 }
 0x32a   : > { %v13790_v49 = vpop.permute.xlu1 %2551  ;;  %v13792_v6 = vpop.permute.xlu0 %2549 }
 0x32b   : > { %17771 = vst [vmem:[#allocation57_spill] sm:$0xff] %v13790_v49  ;;  %17772 = vst [vmem:[#allocation58_spill] sm:$0xff] %v13792_v6  ;;  %1830 = vrot.lane.b32.xlu0 %v1776_v2, %s12031_s15  ;;  %1832 = vrot.lane.b32.xlu1 %v1777_v11, %s12031_s15  ;;  %v3130_v11 = vmul.f32 %v17775_v17, %v13158_v30  ;;  %v17776_v2 = vld [vmem:[#allocation62_spill] sm:$0xff] }
 0x32c   : > { %v3129_v15 = vmul.f32 %v17776_v2, %v13164_v31  ;;  %v1355_v2 = vld [vmem:[%s12076_s21 + $0x90] sm:$0xff] }
 0x32e   : > { %v13800_v45 = vpop.permute.xlu0 %3195  ;;  %v13802_v24 = vpop.permute.xlu1 %3197 }
 0x32f   : > { %2541 = vrot.lane.b32.xlu0 %v2485_v29, %s12033_s18  ;;  %2543 = vrot.lane.b32.xlu1 %v2486_v62, %s12033_s18  ;;  %v17779_v29 = vld [vmem:[#allocation63_spill] sm:$0xff]  ;;  %v17780_v62 = vld [vmem:[#allocation64_spill] sm:$0xff] }
 0x330   : > { %v3774_v47 = vmul.f32 %v17779_v29, %v13044_v10  ;;  %v3773_v39 = vmul.f32 %v17780_v62, %v12980_v9  ;;  %v17371_v10 = vrot.slane %v13555_v12, 7 }
 0x332   : > { %v13810_v34 = vpop.permute.xlu0 %1481  ;;  %v13812_v5 = vpop.permute.xlu1 %1486 }
 0x333   : > { %17777 = vst [vmem:[#allocation59_spill] sm:$0xff] %v13810_v34  ;;  %17778 = vst [vmem:[#allocation60_spill] sm:$0xff] %v13812_v5  ;;  %3187 = vrot.lane.b32.xlu0 %v3129_v15, %s12035_s23  ;;  %3189 = vrot.lane.b32.xlu1 %v3130_v11, %s12035_s23  ;;  %v1356_v5 = vld [vmem:[%s12076_s21 + $0x98] sm:$0xff]  ;;  %v13829_v34 = vld [vmem:[%s12943_s11 + $0x28] sm:$0xff]  ;;  %v1278_v11 = vrot.slane %v13297_v38, 7 }
 0x334   : > { %v13832_v15 = vld [vmem:[%s12943_s11 + $0x20] sm:$0xff] }
 0x335   : > { %v13854_v30 = vsel %vm1304_vm1, %v17371_v10, %v1278_v11 }
 0x336   : > { %v13820_v6 = vpop.permute.xlu0 %1806  ;;  %v13822_v17 = vpop.permute.xlu1 %1808 }
 0x337   : > { %17781 = vst [vmem:[#allocation61_spill] sm:$0xff] %v13820_v6  ;;  %17782 = vst [vmem:[#allocation62_spill] sm:$0xff] %v13822_v17  ;;  %3833 = vrot.lane.b32.xlu0 %v3773_v39, %s12037_s28  ;;  %3835 = vrot.lane.b32.xlu1 %v3774_v47, %s12037_s28  ;;  %v17785_v39 = vld [vmem:[#allocation65_spill] sm:$0xff]  ;;  %v17786_v47 = vld [vmem:[#allocation66_spill] sm:$0xff]  ;;  %v17787_v6 = vrot.slane %v13294_v35, 7 }
 0x338   : > { %v1761_v62 = vmul.f32 %v17785_v39, %v13829_v34  ;;  %v1760_v17 = vmul.f32 %v17786_v47, %v13832_v15  ;;  %17789 = vst [vmem:[#allocation66_spill] sm:$0xff] %v13854_v30  ;;  %v17790_v39 = vld [vmem:[#allocation67_spill] sm:$0xff] }
 0x339   : > { %v13848_v31 = vsel %vm1304_vm1, %v1278_v11, %v17787_v6  ;;  %v17791_v6 = vld [vmem:[#allocation68_spill] sm:$0xff]  ;;  %v17794_v11 = vld [vmem:[#allocation69_spill] sm:$0xff] }
 0x33a   : > { %v13836_v29 = vpop.permute.xlu0 %2517  ;;  %v13838_v9 = vpop.permute.xlu1 %2519  ;;  %17788 = vst [vmem:[#allocation65_spill] sm:$0xff] %v13848_v31  ;;  %v2470_v47 = vmul.f32 %v17790_v39, %v13848_v31 }
 0x33b   : > { %17783 = vst [vmem:[#allocation63_spill] sm:$0xff] %v13836_v29  ;;  %17784 = vst [vmem:[#allocation64_spill] sm:$0xff] %v13838_v9  ;;  %1461 = vperm.xlu0 %11501, %v1355_v2   ;;  %1466 = vperm.xlu1 %11502, %v1356_v5   ;;  %v2469_v9 = vmul.f32 %v17791_v6, %v13854_v30 }
 0x33e   : > { %v13856_v2 = vpop.permute.xlu0 %3163  ;;  %v13858_v5 = vpop.permute.xlu1 %3165 }
 0x33f   : > { %1798 = vrot.lane.b32.xlu0 %v1760_v17, %s12031_s15  ;;  %1800 = vrot.lane.b32.xlu1 %v1761_v62, %s12031_s15  ;;  %v3114_v17 = vmul.f32 %v17794_v11, %v13190_v19  ;;  %v17795_v62 = vld [vmem:[#allocation70_spill] sm:$0xff]  ;;  %v17378_v11 = vrot.slane %v13764_v27, 1 }
 0x340   : > { %v3113_v10 = vmul.f32 %v17795_v62, %v13196_v23 }
 0x342   : > { %v13866_v29 = vpop.permute.xlu0 %1401  ;;  %v13868_v49 = vpop.permute.xlu1 %1406 }
 0x343   : > { %17792 = vst [vmem:[#allocation67_spill] sm:$0xff] %v13866_v29  ;;  %17793 = vst [vmem:[#allocation68_spill] sm:$0xff] %v13868_v49  ;;  %2509 = vrot.lane.b32.xlu0 %v2469_v9, %s12033_s18  ;;  %2511 = vrot.lane.b32.xlu1 %v2470_v47, %s12033_s18  ;;  %v17798_v9 = vld [vmem:[#allocation71_spill] sm:$0xff]  ;;  %v17799_v47 = vld [vmem:[#allocation72_spill] sm:$0xff]  ;;  %v1903_v29 = vrot.slane %v13761_v33, 1 }
 0x344   : > { %v3758_v6 = vmul.f32 %v17798_v9, %v13099_v4  ;;  %v3757_v49 = vmul.f32 %v17799_v47, %v12998_v36 }
 0x345   : > { %v13906_v36 = vsel %vm1914_vm0, %v17378_v11, %v1903_v29 }
 0x346   : > { %v13876_v39 = vpop.permute.xlu0 %2224  ;;  %v13878_v31 = vpop.permute.xlu1 %2226  ;;  %17803 = vst [vmem:[#allocation266_spill] sm:$0xff] %v13906_v36 }
 0x347   : > { %17796 = vst [vmem:[#allocation69_spill] sm:$0xff] %v13876_v39  ;;  %17797 = vst [vmem:[#allocation70_spill] sm:$0xff] %v13878_v31  ;;  %3155 = vrot.lane.b32.xlu0 %v3113_v10, %s12035_s23  ;;  %3157 = vrot.lane.b32.xlu1 %v3114_v17, %s12035_s23  ;;  %v1339_v10 = vld [vmem:[%s12076_s21 + $0x10] sm:$0xff]  ;;  %v1340_v17 = vld [vmem:[%s12076_s21 + $0x18] sm:$0xff]  ;;  %v17801_v31 = vrot.slane %v13490_v57, 1 }
 0x348   : > { %v17805_v39 = vld [vmem:[#allocation74_spill] sm:$0xff] }
 0x349   : > { %v13900_v4 = vsel %vm1914_vm0, %v1903_v29, %v17801_v31  ;;  %v2162_v23 = vmul.f32 %v17805_v39, %v13906_v36  ;;  %v17808_v29 = vld [vmem:[#allocation75_spill] sm:$0xff]  ;;  %v17811_v39 = vld [vmem:[#allocation77_spill] sm:$0xff] }
 0x34a   : > { %v13888_v19 = vpop.permute.xlu0 %2870  ;;  %v13890_v62 = vpop.permute.xlu1 %2872  ;;  %17802 = vst [vmem:[#allocation72_spill] sm:$0xff] %v13900_v4  ;;  %v2807_v11 = vmul.f32 %v17808_v29, %v13219_v1  ;;  %v17385_v1 = vrot.slane %v13832_v15, 1 }
 0x34b   : > { %17800 = vst [vmem:[#allocation71_spill] sm:$0xff] %v13890_v62  ;;  %3801 = vrot.lane.b32.xlu0 %v3757_v49, %s12037_s28  ;;  %3803 = vrot.lane.b32.xlu1 %v3758_v6, %s12037_s28  ;;  %v17804_v49 = vld [vmem:[#allocation73_spill] sm:$0xff] }
 0x34c   : > { %v2163_v6 = vmul.f32 %v17804_v49, %v13900_v4 }
 0x34e   : > { %v13908_v9 = vpop.permute.xlu0 %3516  ;;  %v13910_v47 = vpop.permute.xlu1 %3518 }
 0x34f   : > { %1381 = vperm.xlu0 %11501, %v1339_v10   ;;  %1386 = vperm.xlu1 %11502, %v1340_v17   ;;  %v17809_v10 = vld [vmem:[#allocation76_spill] sm:$0xff] }
 0x350   : > { %v2806_v17 = vmul.f32 %v17809_v10, %v13222_v42 }
 0x352   : > { %v13916_v31 = vpop.permute.xlu0 %2192  ;;  %v13918_v30 = vpop.permute.xlu1 %2194 }
 0x353   : > { %17806 = vst [vmem:[#allocation73_spill] sm:$0xff] %v13916_v31  ;;  %17807 = vst [vmem:[#allocation74_spill] sm:$0xff] %v13918_v30  ;;  %2216 = vrot.lane.b32.xlu0 %v2162_v23, %s12032_s16  ;;  %2218 = vrot.lane.b32.xlu1 %v2163_v6, %s12032_s16  ;;  %v3451_v30 = vmul.f32 %v17811_v39, %v13243_v28  ;;  %v17812_v23 = vld [vmem:[#allocation78_spill] sm:$0xff]  ;;  %v1887_v31 = vrot.slane %v13829_v34, 1 }
 0x354   : > { %v3450_v6 = vmul.f32 %v17812_v23, %v13249_v26  ;;  %v17815_v23 = vrot.slane %v13558_v61, 1 }
 0x355   : > { %v13958_v4 = vsel %vm1914_vm0, %v17385_v1, %v1887_v31 }
 0x356   : > { %v13926_v62 = vpop.permute.xlu0 %2838  ;;  %v13928_v49 = vpop.permute.xlu1 %2840  ;;  %v13952_v36 = vsel %vm1914_vm0, %v1887_v31, %v17815_v23  ;;  %17817 = vst [vmem:[#allocation77_spill] sm:$0xff] %v13958_v4  ;;  %v17821_v23 = vld [vmem:[#allocation82_spill] sm:$0xff]  ;;  %v17824_v31 = vld [vmem:[#allocation83_spill] sm:$0xff] }
 0x357   : > { %17810 = vst [vmem:[#allocation75_spill] sm:$0xff] %v13928_v49  ;;  %2862 = vrot.lane.b32.xlu0 %v2806_v17, %s12034_s22  ;;  %2864 = vrot.lane.b32.xlu1 %v2807_v11, %s12034_s22  ;;  %v17813_v11 = vld [vmem:[#allocation79_spill] sm:$0xff]  ;;  %v17814_v17 = vld [vmem:[#allocation80_spill] sm:$0xff]  ;;  %17816 = vst [vmem:[#allocation76_spill] sm:$0xff] %v13952_v36 }
 0x358   : > { %v4095_v10 = vmul.f32 %v17813_v11, %v13267_v43  ;;  %v4094_v39 = vmul.f32 %v17814_v17, %v13273_v46  ;;  %v17820_v11 = vld [vmem:[#allocation81_spill] sm:$0xff]  ;;  %v2146_v46 = vmul.f32 %v17821_v23, %v13958_v4 }
 0x359   : > { %v2147_v17 = vmul.f32 %v17820_v11, %v13952_v36  ;;  %v17826_v23 = vld [vmem:[#allocation85_spill] sm:$0xff] }
 0x35a   : > { %v13938_v29 = vpop.permute.xlu0 %3484  ;;  %v13940_v42 = vpop.permute.xlu1 %3486 }
 0x35b   : > { %3508 = vrot.lane.b32.xlu0 %v3450_v6, %s12036_s26  ;;  %3510 = vrot.lane.b32.xlu1 %v3451_v30, %s12036_s26 }
 0x35d   : > { %v18022_v25 = vld [vmem:[#allocation77_spill] sm:$0xff] }
 0x35e   : > { %v13960_v6 = vpop.permute.xlu0 %1834  ;;  %v13962_v30 = vpop.permute.xlu1 %1836 }
 0x35f   : > { %17818 = vst [vmem:[#allocation78_spill] sm:$0xff] %v13960_v6  ;;  %17819 = vst [vmem:[#allocation79_spill] sm:$0xff] %v13962_v30  ;;  %4154 = vrot.lane.b32.xlu0 %v4094_v39, %s12038_s1  ;;  %4156 = vrot.lane.b32.xlu1 %v4095_v10, %s12038_s1  ;;  %v2791_v39 = vmul.f32 %v17824_v31, %v13294_v35  ;;  %v17825_v10 = vld [vmem:[#allocation84_spill] sm:$0xff]  ;;  %v17827_v6 = vld [vmem:[#allocation86_spill] sm:$0xff] }
 0x360   : > { %v2790_v1 = vmul.f32 %v17825_v10, %v13297_v38  ;;  %v17828_v38 = vld [vmem:[#allocation87_spill] sm:$0xff]  ;;  %v14001_v10 = vld [vmem:[%s12943_s11 + $0x98] sm:$0xff] }
 0x361   : > { %v4079_v31 = vmul.f32 %v17828_v38, %v13340_v58  ;;  %v17833_v38 = vld [vmem:[#allocation90_spill] sm:$0xff] }
 0x362   : > { %v13970_v43 = vpop.permute.xlu0 %2545  ;;  %v13972_v49 = vpop.permute.xlu1 %2547 }
 0x363   : > { %17822 = vst [vmem:[#allocation80_spill] sm:$0xff] %v13970_v43  ;;  %17823 = vst [vmem:[#allocation81_spill] sm:$0xff] %v13972_v49  ;;  %2184 = vrot.lane.b32.xlu0 %v2146_v46, %s12032_s16  ;;  %2186 = vrot.lane.b32.xlu1 %v2147_v17, %s12032_s16  ;;  %v3435_v46 = vmul.f32 %v17826_v23, %v13316_v18  ;;  %v3434_v17 = vmul.f32 %v17827_v6, %v13322_v59  ;;  %v1292_v23 = vrot.slane %v13490_v57, 7 }
 0x364   : > { %v17392_v6 = vrot.slane %v13761_v33, 7 }
 0x366   : > { %v13980_v30 = vpop.permute.xlu0 %3191  ;;  %v13982_v11 = vpop.permute.xlu1 %3193 }
 0x367   : > { %2830 = vrot.lane.b32.xlu0 %v2790_v1, %s12034_s22  ;;  %2832 = vrot.lane.b32.xlu1 %v2791_v39, %s12034_s22  ;;  %v17829_v1 = vld [vmem:[#allocation88_spill] sm:$0xff] }
 0x368   : > { %v4078_v39 = vmul.f32 %v17829_v1, %v13346_v55  ;;  %v1774_v1 = vmul.f32 %v17833_v38, %v13718_v8  ;;  %v17834_v55 = vrot.slane %v13487_v52, 7  ;;  %v17840_v38 = vld [vmem:[#allocation92_spill] sm:$0xff] }
 0x36a   : > { %v13990_v49 = vpop.permute.xlu0 %3837  ;;  %v13992_v35 = vpop.permute.xlu1 %3839  ;;  %v14019_v58 = vsel %vm1304_vm1, %v1292_v23, %v17834_v55 }
 0x36b   : > { %3476 = vrot.lane.b32.xlu0 %v3434_v17, %s12036_s26  ;;  %3478 = vrot.lane.b32.xlu1 %v3435_v46, %s12036_s26  ;;  %v17832_v46 = vld [vmem:[#allocation89_spill] sm:$0xff]  ;;  %17835 = vst [vmem:[#allocation84_spill] sm:$0xff] %v14019_v58 }
 0x36c   : > { %v1775_v17 = vmul.f32 %v17832_v46, %v14001_v10  ;;  %v17839_v46 = vld [vmem:[#allocation91_spill] sm:$0xff] }
 0x36d   : > { %v2484_v55 = vmul.f32 %v17839_v46, %v14019_v58 }
 0x36e   : > { %v14005_v43 = vpop.permute.xlu0 %1471  ;;  %v14007_v4 = vpop.permute.xlu1 %1476 }
 0x36f   : > { %17830 = vst [vmem:[#allocation82_spill] sm:$0xff] %v14005_v43  ;;  %17831 = vst [vmem:[#allocation83_spill] sm:$0xff] %v14007_v4  ;;  %4122 = vrot.lane.b32.xlu0 %v4078_v39, %s12038_s1  ;;  %4124 = vrot.lane.b32.xlu1 %v4079_v31, %s12038_s1  ;;  %v14025_v4 = vsel %vm1304_vm1, %v17392_v6, %v1292_v23 }
 0x370   : > { %17836 = vst [vmem:[#allocation85_spill] sm:$0xff] %v14025_v4  ;;  %v2483_v43 = vmul.f32 %v17840_v38, %v14025_v4 }
 0x372   : > { %v14027_v39 = vpop.permute.xlu0 %1802  ;;  %v14029_v31 = vpop.permute.xlu1 %1804 }
 0x373   : > { %17837 = vst [vmem:[#allocation86_spill] sm:$0xff] %v14027_v39  ;;  %17838 = vst [vmem:[#allocation87_spill] sm:$0xff] %v14029_v31  ;;  %1826 = vrot.lane.b32.xlu0 %v1774_v1, %s12031_s15  ;;  %1828 = vrot.lane.b32.xlu1 %v1775_v17, %s12031_s15  ;;  %v17843_v1 = vld [vmem:[#allocation93_spill] sm:$0xff]  ;;  %v17844_v17 = vld [vmem:[#allocation94_spill] sm:$0xff] }
 0x374   : > { %v3128_v6 = vmul.f32 %v17843_v1, %v13372_v13  ;;  %v3127_v46 = vmul.f32 %v17844_v17, %v13378_v16  ;;  %v17847_v39 = vld [vmem:[#allocation95_spill] sm:$0xff]  ;;  %v1353_v17 = vld [vmem:[%s12076_s21 + $0x80] sm:$0xff]  ;;  %v14066_v13 = vld [vmem:[%s12943_s11 + $0x18] sm:$0xff] }
 0x375   : > { %v1354_v16 = vld [vmem:[%s12076_s21 + $0x88] sm:$0xff] }
 0x376   : > { %v14037_v36 = vpop.permute.xlu0 %2513  ;;  %v14039_v23 = vpop.permute.xlu1 %2515 }
 0x377   : > { %17841 = vst [vmem:[#allocation88_spill] sm:$0xff] %v14037_v36  ;;  %17842 = vst [vmem:[#allocation89_spill] sm:$0xff] %v14039_v23  ;;  %2537 = vrot.lane.b32.xlu0 %v2483_v43, %s12033_s18  ;;  %2539 = vrot.lane.b32.xlu1 %v2484_v55, %s12033_s18  ;;  %v11949_v43 = vld [vmem:[%s12943_s11 + $0xe8] sm:$0xff]  ;;  %v11950_v55 = vld [vmem:[%s12943_s11 + $0xe0] sm:$0xff] }
 0x378   : > { %v3772_v23 = vmul.f32 %v11949_v43, %v17847_v39  ;;  %v17848_v36 = vld [vmem:[#allocation96_spill] sm:$0xff] }
 0x379   : > { %v3771_v4 = vmul.f32 %v11950_v55, %v17848_v36  ;;  %v1560_v36 = vmul.f32 %v13454_v21, %v13243_v28 }
 0x37a   : > { %v14047_v31 = vpop.permute.xlu0 %3159  ;;  %v14049_v38 = vpop.permute.xlu1 %3161 }
 0x37b   : > { %17845 = vst [vmem:[#allocation90_spill] sm:$0xff] %v14047_v31  ;;  %17846 = vst [vmem:[#allocation91_spill] sm:$0xff] %v14049_v38  ;;  %3183 = vrot.lane.b32.xlu0 %v3127_v46, %s12035_s23  ;;  %3185 = vrot.lane.b32.xlu1 %v3128_v6, %s12035_s23  ;;  %v1276_v6 = vrot.slane %v13558_v61, 7  ;;  %v17852_v38 = vld [vmem:[#allocation98_spill] sm:$0xff]  ;;  %v1881_v46 = vadd.f32 %v13526_v3, %v1560_v36 }
 0x37c   : > { %v1758_v31 = vmul.f32 %v17852_v38, %v13647_v32  ;;  %v17855_v38 = vld [vmem:[#allocation99_spill] sm:$0xff] }
 0x37d   : > { %v2267_v3 = vadd.f32 %v13582_v60, %v1881_v46  ;;  %v17857_v46 = vld [vmem:[#allocation101_spill] sm:$0xff] }
 0x37e   : > { %v14057_v58 = vpop.permute.xlu0 %3805  ;;  %v14059_v1 = vpop.permute.xlu1 %3807 }
 0x37f   : > { %3829 = vrot.lane.b32.xlu0 %v3771_v4, %s12037_s28  ;;  %3831 = vrot.lane.b32.xlu1 %v3772_v23, %s12037_s28  ;;  %v1559_v4 = vmul.f32 %v13456_v54, %v13249_v26  ;;  %v17851_v23 = vld [vmem:[#allocation97_spill] sm:$0xff]  ;;  %v17854_v26 = vrot.slane %v13829_v34, 7 }
 0x380   : > { %v1759_v55 = vmul.f32 %v17851_v23, %v14066_v13 }
 0x382   : > { %v14070_v39 = vpop.permute.xlu0 %1391  ;;  %v14072_v43 = vpop.permute.xlu1 %1396 }
 0x383   : > { %17849 = vst [vmem:[#allocation92_spill] sm:$0xff] %v14070_v39  ;;  %17850 = vst [vmem:[#allocation93_spill] sm:$0xff] %v14072_v43  ;;  %1451 = vperm.xlu0 %11501, %v1353_v17   ;;  %1456 = vperm.xlu1 %11502, %v1354_v16   ;;  %v1880_v39 = vadd.f32 %v13528_v22, %v1559_v4  ;;  %v17853_v43 = vrot.slane %v13555_v12, 7  ;;  %v14094_v16 = vsel %vm1304_vm1, %v17854_v26, %v1276_v6 }
 0x385   : > { %v14088_v28 = vsel %vm1304_vm1, %v1276_v6, %v17853_v43  ;;  %v2266_v22 = vadd.f32 %v13584_v48, %v1880_v39  ;;  %v17856_v43 = vld [vmem:[#allocation100_spill] sm:$0xff]  ;;  %v2588_v6 = vadd.f32 %v13614_v44, %v2267_v3  ;;  %v3112_v39 = vmul.f32 %v17857_v46, %v13431_v63  ;;  %v17858_v44 = vld [vmem:[#allocation102_spill] sm:$0xff] }
 0x386   : > { %v14096_v21 = vpop.permute.xlu0 %2220  ;;  %v14098_v54 = vpop.permute.xlu1 %2222  ;;  %v2468_v17 = vmul.f32 %v17855_v38, %v14088_v28  ;;  %v2467_v36 = vmul.f32 %v17856_v43, %v14094_v16  ;;  %v11951_v38 = vld [vmem:[%s12943_s11 + $0x68] sm:$0xff]  ;;  %v1543_v46 = vmul.f32 %v13478_v40, %v13322_v59  ;;  %v17864_v59 = vrot.slane %v13718_v8, 1 }
 0x387   : > { %1794 = vrot.lane.b32.xlu0 %v1758_v31, %s12031_s15  ;;  %1796 = vrot.lane.b32.xlu1 %v1759_v55, %s12031_s15  ;;  %v2587_v4 = vadd.f32 %v13616_v56, %v2266_v22  ;;  %v2909_v48 = vadd.f32 %v13713_v51, %v2588_v6  ;;  %v3111_v56 = vmul.f32 %v17858_v44, %v13437_v14 }
 0x389   : > { %v2908_v31 = vadd.f32 %v13715_v7, %v2587_v4  ;;  %v3230_v26 = vadd.f32 %v13802_v24, %v2909_v48 }
 0x38a   : > { %v14110_v23 = vpop.permute.xlu0 %2866  ;;  %v14112_v60 = vpop.permute.xlu1 %2868 }
 0x38b   : > { %2505 = vrot.lane.b32.xlu0 %v2467_v36, %s12033_s18  ;;  %2507 = vrot.lane.b32.xlu1 %v2468_v17, %s12033_s18  ;;  %v3229_v55 = vadd.f32 %v13800_v45, %v2908_v31  ;;  %v3551_v22 = vadd.f32 %v13910_v47, %v3230_v26  ;;  %v17859_v17 = vld [vmem:[#allocation103_spill] sm:$0xff]  ;;  %v11952_v45 = vld [vmem:[%s12943_s11 + $0x60] sm:$0xff]  ;;  %v17860_v36 = vld [vmem:[#allocation104_spill] sm:$0xff]  ;;  %v1544_v47 = vmul.f32 %v13476_v50, %v13316_v18  ;;  %v17863_v18 = vrot.slane %v13764_v27, 1 }
 0x38c   : > { %v3756_v43 = vmul.f32 %v11951_v38, %v17859_v17  ;;  %v3755_v24 = vmul.f32 %v11952_v45, %v17860_v36  ;;  %v17862_v26 = vld [vmem:[#allocation30_spill] sm:$0xff]  ;;  %v17868_v36 = vld [vmem:[#allocation36_spill] sm:$0xff] }
 0x38d   : > { %v3550_v7 = vadd.f32 %v13908_v9, %v3229_v55  ;;  %v3872_v4 = vadd.f32 %v13992_v35, %v3551_v22  ;;  %v1901_v9 = vrot.slane %v14001_v10, 1  ;;  %v17861_v55 = vld [vmem:[#allocation29_spill] sm:$0xff] }
 0x38e   : > { %v14124_v3 = vpop.permute.xlu0 %3512  ;;  %v14126_v51 = vpop.permute.xlu1 %3514  ;;  %v1865_v35 = vadd.f32 %v17861_v55, %v1544_v47  ;;  %v17870_v47 = vld [vmem:[#allocation106_spill] sm:$0xff] }
 0x38f   : > { %3151 = vrot.lane.b32.xlu0 %v3111_v56, %s12035_s23  ;;  %3153 = vrot.lane.b32.xlu1 %v3112_v39, %s12035_s23  ;;  %v3871_v6 = vadd.f32 %v13990_v49, %v3550_v7  ;;  %v1337_v56 = vld [vmem:[%s12076_s21] sm:$0xff]  ;;  %v1338_v49 = vld [vmem:[%s12076_s21 + $0x8] sm:$0xff]  ;;  %v1864_v7 = vadd.f32 %v17862_v26, %v1543_v46  ;;  %v14153_v50 = vsel %vm1914_vm0, %v1901_v9, %v17863_v18  ;;  %v17874_v18 = vld [vmem:[#allocation109_spill] sm:$0xff] }
 0x390   : > { %v14159_v40 = vsel %vm1914_vm0, %v17864_v59, %v1901_v9 }
 0x392   : > { %v4159_v48 = vpop.permute.xlu0 %4158  ;;  %v4161_v31 = vpop.permute.xlu1 %4160 }
 0x393   : > { %v4192_v39 = vadd.f32 %v4159_v48, %v3871_v6  ;;  %v4193_v44 = vadd.f32 %v4161_v31, %v3872_v4  ;;  %3797 = vrot.lane.b32.xlu0 %v3755_v24, %s12037_s28  ;;  %3799 = vrot.lane.b32.xlu1 %v3756_v43, %s12037_s28  ;;  %v17867_v43 = vld [vmem:[#allocation35_spill] sm:$0xff]  ;;  %v2250_v24 = vadd.f32 %v17868_v36, %v1864_v7  ;;  %v17869_v6 = vld [vmem:[#allocation105_spill] sm:$0xff]  ;;  %v1885_v36 = vrot.slane %v14066_v13, 1 }
 0x394   : > { %v2251_v45 = vadd.f32 %v17867_v43, %v1865_v35  ;;  %v2161_v4 = vmul.f32 %v17869_v6, %v14153_v50  ;;  %v2160_v48 = vmul.f32 %v17870_v47, %v14159_v40  ;;  %v17872_v35 = vld [vmem:[#allocation108_spill] sm:$0xff]  ;;  %v17876_v43 = vld [vmem:[#allocation110_spill] sm:$0xff]  ;;  %v17878_v47 = vld [vmem:[#allocation111_spill] sm:$0xff] }
 0x395   : > { %v4209_v22 = vpack.c.bf16 %v4193_v44, %v4192_v39  ;;  %v2571_v31 = vadd.f32 %v13659_v41, %v2250_v24 }
 0x396   : > { %v14161_v38 = vpop.permute.xlu0 %2188  ;;  %v14163_v17 = vpop.permute.xlu1 %2190  ;;  %v2572_v9 = vadd.f32 %v13657_v20, %v2251_v45  ;;  %v2804_v20 = vmul.f32 %v17872_v35, %v13490_v57  ;;  %v17875_v57 = vld [vmem:[#allocation259_spill] sm:$0xff] }
 0x397   : > { %17865 = vst [vmem:[#allocation94_spill] sm:$0xff] %v14161_v38  ;;  %17866 = vst [vmem:[#allocation95_spill] sm:$0xff] %v14163_v17  ;;  %1371 = vperm.xlu0 %11501, %v1337_v56   ;;  %1376 = vperm.xlu1 %11502, %v1338_v49   ;;  %v2892_v56 = vadd.f32 %v13752_v0, %v2571_v31  ;;  %v17871_v49 = vld [vmem:[#allocation107_spill] sm:$0xff]  ;;  %v17880_v31 = vld [vmem:[#allocation112_spill] sm:$0xff] }
 0x398   : > { %10734 = vmatprep.subr.bf16.mxu0 %v4209_v22  ;;  %v2893_v44 = vadd.f32 %v13750_v53, %v2572_v9  ;;  %v2805_v55 = vmul.f32 %v17871_v49, %v13487_v52  ;;  %v17873_v52 = vld [vmem:[#allocation26_spill] sm:$0xff]  ;;  %v17879_v9 = vld [vmem:[#allocation187_spill] sm:$0xff]  ;;  %v17882_v49 = vrot.slane %v13647_v32, 1  ;;  %v17926_v17 = vld [vmem:[#allocation257_spill] sm:$0xff] }
 0x399   : > { %v3213_v41 = vadd.f32 %v13856_v2, %v2892_v56  ;;  %v3449_v59 = vmul.f32 %v17874_v18, %v17873_v52  ;;  %v3448_v2 = vmul.f32 %v17876_v43, %v17875_v57  ;;  %v1558_v38 = vmul.f32 %v17926_v17, %v17873_v52  ;;  %v17934_v52 = vld [vmem:[#allocation264_spill] sm:$0xff] }
 0x39a   : > { %v14173_v46 = vpop.permute.xlu0 %2834  ;;  %v14175_v39 = vpop.permute.xlu1 %2836  ;;  %v3214_v26 = vadd.f32 %v13858_v5, %v2893_v44  ;;  %v4092_v44 = vmul.f32 %v17880_v31, %v17879_v9  ;;  %v17896_v9 = vld [vmem:[#allocation119_spill] sm:$0xff] }
 0x39b   : > { %2212 = vrot.lane.b32.xlu0 %v2160_v48, %s12032_s16  ;;  %2214 = vrot.lane.b32.xlu1 %v2161_v4, %s12032_s16  ;;  %v3534_v53 = vadd.f32 %v13938_v29, %v3213_v41  ;;  %v17877_v4 = vld [vmem:[#allocation186_spill] sm:$0xff]  ;;  %v17885_v41 = vld [vmem:[#allocation113_spill] sm:$0xff] }
 0x39c   : > { %v3535_v0 = vadd.f32 %v13940_v42, %v3214_v26  ;;  %v4093_v48 = vmul.f32 %v17878_v47, %v17877_v4  ;;  %v17894_v4 = vld [vmem:[#allocation118_spill] sm:$0xff] }
 0x39d   : > { %v3855_v5 = vadd.f32 %v14057_v58, %v3534_v53  ;;  %v17881_v58 = vrot.slane %v13832_v15, 1  ;;  %v17886_v53 = vld [vmem:[#allocation114_spill] sm:$0xff] }
 0x39e   : > { %v14187_v7 = vpop.permute.xlu0 %3480  ;;  %v14189_v22 = vpop.permute.xlu1 %3482  ;;  %v3856_v45 = vadd.f32 %v14059_v1, %v3535_v0 }
 0x39f   : > { %2858 = vrot.lane.b32.xlu0 %v2804_v20, %s12034_s22  ;;  %2860 = vrot.lane.b32.xlu1 %v2805_v55, %s12034_s22  ;;  %v14212_v1 = vsel %vm1914_vm0, %v1885_v36, %v17881_v58  ;;  %v14218_v55 = vsel %vm1914_vm0, %v17882_v49, %v1885_v36  ;;  %v1290_v49 = vrot.slane %v13764_v27, 7 }
 0x3a0   : > { %v2145_v26 = vmul.f32 %v17885_v41, %v14212_v1  ;;  %v2144_v0 = vmul.f32 %v17886_v53, %v14218_v55  ;;  %v17399_v41 = vrot.slane %v14001_v10, 7 }
 0x3a2   : > { %v4127_v24 = vpop.permute.xlu0 %4126  ;;  %v4129_v29 = vpop.permute.xlu1 %4128 }
 0x3a3   : > { %v4176_v6 = vadd.f32 %v4127_v24, %v3855_v5  ;;  %v4177_v42 = vadd.f32 %v4129_v29, %v3856_v45  ;;  %3504 = vrot.lane.b32.xlu0 %v3448_v2, %s12036_s26  ;;  %3506 = vrot.lane.b32.xlu1 %v3449_v59, %s12036_s26  ;;  %v17889_v59 = vld [vmem:[#allocation115_spill] sm:$0xff]  ;;  %v17890_v2 = vld [vmem:[#allocation116_spill] sm:$0xff]  ;;  %v17891_v24 = vld [vmem:[#allocation33_spill] sm:$0xff] }
 0x3a4   : > { %v2789_v43 = vmul.f32 %v17889_v59, %v13555_v12  ;;  %v2788_v5 = vmul.f32 %v17890_v2, %v13558_v61  ;;  %v17892_v29 = vld [vmem:[#allocation117_spill] sm:$0xff]  ;;  %v17895_v61 = vld [vmem:[#allocation190_spill] sm:$0xff] }
 0x3a5   : > { %v4201_v56 = vpack.c.bf16 %v4177_v42, %v4176_v6  ;;  %v3433_v6 = vmul.f32 %v17892_v29, %v17891_v24  ;;  %v17893_v42 = vld [vmem:[#allocation34_spill] sm:$0xff]  ;;  %v4077_v31 = vmul.f32 %v17896_v9, %v17895_v61  ;;  %v17903_v29 = vrot.slane %v13761_v33, 7  ;;  %v17906_v9 = vld [vmem:[#allocation123_spill] sm:$0xff] }
 0x3a6   : > { %v14220_v35 = vpop.permute.xlu0 %1830  ;;  %v14222_v20 = vpop.permute.xlu1 %1832  ;;  %v3432_v47 = vmul.f32 %v17894_v4, %v17893_v42  ;;  %v17902_v2 = vld [vmem:[#allocation122_spill] sm:$0xff]  ;;  %v14285_v4 = vsel %vm1304_vm1, %v17399_v41, %v1290_v49 }
 0x3a7   : > { %17883 = vst [vmem:[#allocation96_spill] sm:$0xff] %v14220_v35  ;;  %17884 = vst [vmem:[#allocation97_spill] sm:$0xff] %v14222_v20  ;;  %4150 = vrot.lane.b32.xlu0 %v4092_v44, %s12038_s1  ;;  %4152 = vrot.lane.b32.xlu1 %v4093_v48, %s12038_s1  ;;  %v17897_v44 = vld [vmem:[#allocation191_spill] sm:$0xff]  ;;  %v17913_v41 = vld [vmem:[#allocation126_spill] sm:$0xff]  ;;  %v17920_v20 = vrot.slane %v13829_v34, 7 }
 0x3a8   : > { %10735 = vmatpush3.bf16.msra.mxu0 %v4201_v56  ;;  %v17898_v56 = vld [vmem:[#allocation120_spill] sm:$0xff] }
 0x3a9   : > { %v4076_v58 = vmul.f32 %v17898_v56, %v17897_v44  ;;  %v17907_v44 = vld [vmem:[#allocation124_spill] sm:$0xff] }
 0x3aa   : > { %v14230_v32 = vpop.permute.xlu0 %2541  ;;  %v14232_v18 = vpop.permute.xlu1 %2543  ;;  %v2481_v56 = vmul.f32 %v17907_v44, %v14285_v4  ;;  %v11954_v44 = vld [vmem:[%s12943_s11 + $0xd8] sm:$0xff] }
 0x3ab   : > { %17887 = vst [vmem:[#allocation98_spill] sm:$0xff] %v14230_v32  ;;  %17888 = vst [vmem:[#allocation99_spill] sm:$0xff] %v14232_v18  ;;  %2180 = vrot.lane.b32.xlu0 %v2144_v0, %s12032_s16  ;;  %2182 = vrot.lane.b32.xlu1 %v2145_v26, %s12032_s16  ;;  %v17901_v0 = vld [vmem:[#allocation121_spill] sm:$0xff]  ;;  %v17931_v32 = vld [vmem:[#allocation38_spill] sm:$0xff] }
 0x3ac   : > { %v1773_v59 = vmul.f32 %v17901_v0, %v13444_v37  ;;  %v17910_v0 = vld [vmem:[#allocation39_spill] sm:$0xff]  ;;  %v17930_v18 = vld [vmem:[#allocation37_spill] sm:$0xff] }
 0x3ae   : > { %v14240_v45 = vpop.permute.xlu0 %3187  ;;  %v14242_v36 = vpop.permute.xlu1 %3189 }
 0x3af   : > { %2826 = vrot.lane.b32.xlu0 %v2788_v5, %s12034_s22  ;;  %2828 = vrot.lane.b32.xlu1 %v2789_v43, %s12034_s22  ;;  %v14271_v43 = vld [vmem:[%s12943_s11 + $0x80] sm:$0xff] }
 0x3b0   : > { %v1772_v5 = vmul.f32 %v14271_v43, %v17902_v2  ;;  %v17911_v2 = vld [vmem:[#allocation125_spill] sm:$0xff] }
 0x3b2   : > { %v14250_v48 = vpop.permute.xlu0 %3833  ;;  %v14252_v12 = vpop.permute.xlu1 %3835 }
 0x3b3   : > { %3472 = vrot.lane.b32.xlu0 %v3432_v47, %s12036_s26  ;;  %3474 = vrot.lane.b32.xlu1 %v3433_v6, %s12036_s26  ;;  %v14279_v6 = vsel %vm1304_vm1, %v1290_v49, %v17903_v29  ;;  %v17912_v29 = vld [vmem:[#allocation40_spill] sm:$0xff] }
 0x3b6   : > { %v14262_v26 = vpop.permute.xlu0 %1461  ;;  %v14264_v53 = vpop.permute.xlu1 %1466 }
 0x3b7   : > { %17899 = vst [vmem:[#allocation100_spill] sm:$0xff] %v14262_v26  ;;  %17900 = vst [vmem:[#allocation101_spill] sm:$0xff] %v14264_v53  ;;  %4118 = vrot.lane.b32.xlu0 %v4076_v58, %s12038_s1  ;;  %4120 = vrot.lane.b32.xlu1 %v4077_v31, %s12038_s1  ;;  %v2482_v31 = vmul.f32 %v17906_v9, %v14279_v6 }
 0x3ba   : > { %v14287_v47 = vpop.permute.xlu0 %1798  ;;  %v14289_v61 = vpop.permute.xlu1 %1800 }
 0x3bb   : > { %17904 = vst [vmem:[#allocation102_spill] sm:$0xff] %v14287_v47  ;;  %17905 = vst [vmem:[#allocation103_spill] sm:$0xff] %v14289_v61  ;;  %1822 = vrot.lane.b32.xlu0 %v1772_v5, %s12031_s15  ;;  %1824 = vrot.lane.b32.xlu1 %v1773_v59, %s12031_s15  ;;  %v3126_v5 = vmul.f32 %v17911_v2, %v17910_v0  ;;  %v3125_v59 = vmul.f32 %v17913_v41, %v17912_v29  ;;  %v17915_v61 = vld [vmem:[#allocation128_spill] sm:$0xff]  ;;  %v1274_v2 = vrot.slane %v13832_v15, 7 }
 0x3be   : > { %v14297_v58 = vpop.permute.xlu0 %2509  ;;  %v14299_v49 = vpop.permute.xlu1 %2511 }
 0x3bf   : > { %17908 = vst [vmem:[#allocation104_spill] sm:$0xff] %v14297_v58  ;;  %17909 = vst [vmem:[#allocation29_spill] sm:$0xff] %v14299_v49  ;;  %2533 = vrot.lane.b32.xlu0 %v2481_v56, %s12033_s18  ;;  %2535 = vrot.lane.b32.xlu1 %v2482_v31, %s12033_s18  ;;  %v17914_v56 = vld [vmem:[#allocation127_spill] sm:$0xff]  ;;  %v11955_v31 = vld [vmem:[%s12943_s11 + $0xd0] sm:$0xff]  ;;  %v14339_v49 = vsel %vm1304_vm1, %v1274_v2, %v17920_v20 }
 0x3c0   : > { %v3770_v26 = vmul.f32 %v11954_v44, %v17914_v56  ;;  %v3769_v47 = vmul.f32 %v11955_v31, %v17915_v61  ;;  %v14331_v56 = vld [vmem:[%s12943_s11] sm:$0xff]  ;;  %17921 = vst [vmem:[#allocation36_spill] sm:$0xff] %v14339_v49  ;;  %v17928_v20 = vld [vmem:[#allocation131_spill] sm:$0xff] }
 0x3c1   : > { %17918 = vst [vmem:[#allocation35_spill] sm:$0xff] %v14331_v56  ;;  %v17919_v61 = vld [vmem:[#allocation130_spill] sm:$0xff] }
 0x3c2   : > { %v14307_v53 = vpop.permute.xlu0 %3155  ;;  %v14309_v9 = vpop.permute.xlu1 %3157  ;;  %v1756_v31 = vmul.f32 %v14331_v56, %v17919_v61  ;;  %v17927_v61 = vld [vmem:[#allocation258_spill] sm:$0xff] }
 0x3c3   : > { %3179 = vrot.lane.b32.xlu0 %v3125_v59, %s12035_s23  ;;  %3181 = vrot.lane.b32.xlu1 %v3126_v5, %s12035_s23  ;;  %v14326_v59 = vld [vmem:[%s12943_s11 + $0x8] sm:$0xff]  ;;  %v17917_v5 = vld [vmem:[#allocation129_spill] sm:$0xff]  ;;  %v1557_v56 = vmul.f32 %v17927_v61, %v17875_v57 }
 0x3c4   : > { %17916 = vst [vmem:[#allocation30_spill] sm:$0xff] %v14326_v59  ;;  %v1757_v44 = vmul.f32 %v14326_v59, %v17917_v5  ;;  %v2466_v59 = vmul.f32 %v17928_v20, %v14339_v49  ;;  %v17936_v61 = vld [vmem:[#allocation47_spill] sm:$0xff]  ;;  %v17937_v20 = vld [vmem:[#allocation133_spill] sm:$0xff] }
 0x3c6   : > { %v14319_v41 = vpop.permute.xlu0 %3801  ;;  %v14321_v35 = vpop.permute.xlu1 %3803 }
 0x3c7   : > { %3825 = vrot.lane.b32.xlu0 %v3769_v47, %s12037_s28  ;;  %3827 = vrot.lane.b32.xlu1 %v3770_v26, %s12037_s28  ;;  %v17922_v47 = vrot.slane %v14066_v13, 7 }
 0x3c9   : > { %v14345_v26 = vsel %vm1304_vm1, %v17922_v47, %v1274_v2  ;;  %v17929_v2 = vld [vmem:[#allocation132_spill] sm:$0xff] }
 0x3ca   : > { %17923 = vst [vmem:[#allocation105_spill] sm:$0xff] %v14345_v26  ;;  %v14347_v58 = vpop.permute.xlu0 %1381  ;;  %v14349_v5 = vpop.permute.xlu1 %1386  ;;  %v2465_v47 = vmul.f32 %v17929_v2, %v14345_v26  ;;  %v3110_v2 = vmul.f32 %v17937_v20, %v17936_v61  ;;  %v17941_v26 = vld [vmem:[#allocation58_spill] sm:$0xff]  ;;  %v17944_v61 = vld [vmem:[#allocation136_spill] sm:$0xff] }
 0x3cb   : > { %17924 = vst [vmem:[#allocation106_spill] sm:$0xff] %v14347_v58  ;;  %17925 = vst [vmem:[#allocation107_spill] sm:$0xff] %v14349_v5  ;;  %1790 = vrot.lane.b32.xlu0 %v1756_v31, %s12031_s15  ;;  %1792 = vrot.lane.b32.xlu1 %v1757_v44, %s12031_s15  ;;  %v1879_v58 = vadd.f32 %v17930_v18, %v1558_v38  ;;  %v1878_v5 = vadd.f32 %v17931_v32, %v1557_v56  ;;  %v17935_v31 = vld [vmem:[#allocation265_spill] sm:$0xff]  ;;  %v17938_v38 = vld [vmem:[#allocation48_spill] sm:$0xff] }
 0x3cc   : > { %v17939_v18 = vld [vmem:[#allocation134_spill] sm:$0xff]  ;;  %v17940_v56 = vld [vmem:[#allocation57_spill] sm:$0xff] }
 0x3cd   : > { %v2265_v57 = vadd.f32 %v17934_v52, %v1879_v58  ;;  %v2264_v44 = vadd.f32 %v17935_v31, %v1878_v5  ;;  %v3109_v32 = vmul.f32 %v17939_v18, %v17938_v38  ;;  %v17942_v52 = vld [vmem:[#allocation71_spill] sm:$0xff]  ;;  %v11959_v18 = vld [vmem:[%s12943_s11 + $0x50] sm:$0xff] }
 0x3ce   : > { %v14363_v29 = vpop.permute.xlu0 %2216  ;;  %v14365_v17 = vpop.permute.xlu1 %2218  ;;  %v17943_v31 = vld [vmem:[#allocation135_spill] sm:$0xff] }
 0x3cf   : > { %17932 = vst [vmem:[#allocation108_spill] sm:$0xff] %v14363_v29  ;;  %17933 = vst [vmem:[#allocation26_spill] sm:$0xff] %v14365_v17  ;;  %2501 = vrot.lane.b32.xlu0 %v2465_v47, %s12033_s18  ;;  %2503 = vrot.lane.b32.xlu1 %v2466_v59, %s12033_s18  ;;  %v2586_v29 = vadd.f32 %v17940_v56, %v2265_v57  ;;  %v2585_v49 = vadd.f32 %v17941_v26, %v2264_v44  ;;  %v11958_v59 = vld [vmem:[%s12943_s11 + $0x58] sm:$0xff] }
 0x3d0   : > { %v3754_v20 = vmul.f32 %v11958_v59, %v17943_v31  ;;  %v3753_v57 = vmul.f32 %v11959_v18, %v17944_v61  ;;  %v17947_v61 = vld [vmem:[#allocation52_spill] sm:$0xff] }
 0x3d1   : > { %v2906_v5 = vadd.f32 %v13888_v19, %v2585_v49  ;;  %v2907_v47 = vadd.f32 %v17942_v52, %v2586_v29  ;;  %v17945_v29 = vld [vmem:[#allocation51_spill] sm:$0xff]  ;;  %v17948_v52 = vld [vmem:[#allocation138_spill] sm:$0xff] }
 0x3d2   : > { %v14377_v17 = vpop.permute.xlu0 %2862  ;;  %v14379_v58 = vpop.permute.xlu1 %2864 }
 0x3d3   : > { %3147 = vrot.lane.b32.xlu0 %v3109_v32, %s12035_s23  ;;  %3149 = vrot.lane.b32.xlu1 %v3110_v2, %s12035_s23  ;;  %v3227_v26 = vadd.f32 %v13980_v30, %v2906_v5  ;;  %v3228_v44 = vadd.f32 %v13982_v11, %v2907_v47  ;;  %v17946_v2 = vld [vmem:[#allocation137_spill] sm:$0xff]  ;;  %v2158_v30 = vmul.f32 %v17948_v52, %v17947_v61  ;;  %v17949_v47 = vld [vmem:[#allocation260_spill] sm:$0xff] }
 0x3d4   : > { %v2159_v32 = vmul.f32 %v17946_v2, %v17945_v29  ;;  %v1542_v59 = vmul.f32 %v17949_v47, %v17891_v24  ;;  %v17954_v24 = vld [vmem:[#allocation42_spill] sm:$0xff] }
 0x3d5   : > { %v3548_v19 = vadd.f32 %v14124_v3, %v3227_v26  ;;  %v3549_v49 = vadd.f32 %v14126_v51, %v3228_v44  ;;  %v17950_v51 = vld [vmem:[#allocation261_spill] sm:$0xff]  ;;  %v17951_v26 = vld [vmem:[#allocation139_spill] sm:$0xff] }
 0x3d6   : > { %v14391_v56 = vpop.permute.xlu0 %3508  ;;  %v14393_v38 = vpop.permute.xlu1 %3510  ;;  %v1541_v18 = vmul.f32 %v17950_v51, %v17893_v42  ;;  %v2803_v44 = vmul.f32 %v17951_v26, %v13761_v33  ;;  %v17959_v33 = vld [vmem:[#allocation55_spill] sm:$0xff] }
 0x3d7   : > { %3793 = vrot.lane.b32.xlu0 %v3753_v57, %s12037_s28  ;;  %3795 = vrot.lane.b32.xlu1 %v3754_v20, %s12037_s28  ;;  %v3869_v11 = vadd.f32 %v14250_v48, %v3548_v19  ;;  %v3870_v5 = vadd.f32 %v14252_v12, %v3549_v49  ;;  %v17952_v48 = vld [vmem:[#allocation140_spill] sm:$0xff]  ;;  %v17953_v19 = vld [vmem:[#allocation41_spill] sm:$0xff] }
 0x3d8   : > { %v2802_v12 = vmul.f32 %v17952_v48, %v13764_v27  ;;  %v1863_v49 = vadd.f32 %v17953_v19, %v1542_v59  ;;  %v1862_v2 = vadd.f32 %v17954_v24, %v1541_v18  ;;  %v17960_v27 = vld [vmem:[#allocation141_spill] sm:$0xff]  ;;  %v17961_v59 = vld [vmem:[#allocation56_spill] sm:$0xff]  ;;  %v17963_v18 = vld [vmem:[#allocation63_spill] sm:$0xff] }
 0x3da   : > { %v4155_v3 = vpop.permute.xlu0 %4154  ;;  %v4157_v31 = vpop.permute.xlu1 %4156 }
 0x3db   : > { %v4190_v57 = vadd.f32 %v4155_v3, %v3869_v11  ;;  %v4191_v20 = vadd.f32 %v4157_v31, %v3870_v5  ;;  %2208 = vrot.lane.b32.xlu0 %v2158_v30, %s12032_s16  ;;  %2210 = vrot.lane.b32.xlu1 %v2159_v32, %s12032_s16  ;;  %v17957_v11 = vld [vmem:[#allocation49_spill] sm:$0xff]  ;;  %v17958_v30 = vld [vmem:[#allocation50_spill] sm:$0xff]  ;;  %v3447_v32 = vmul.f32 %v17960_v27, %v17959_v33 }
 0x3dc   : > { %v2249_v5 = vadd.f32 %v17957_v11, %v1863_v49  ;;  %v2248_v3 = vadd.f32 %v17958_v30, %v1862_v2  ;;  %v17962_v31 = vld [vmem:[#allocation142_spill] sm:$0xff]  ;;  %v17967_v2 = vld [vmem:[#allocation143_spill] sm:$0xff]  ;;  %v17969_v30 = vld [vmem:[#allocation144_spill] sm:$0xff] }
 0x3dd   : > { %v4208_v52 = vpack.c.bf16 %v4191_v20, %v4190_v57  ;;  %v3446_v51 = vmul.f32 %v17962_v31, %v17961_v59  ;;  %v17964_v20 = vld [vmem:[#allocation64_spill] sm:$0xff]  ;;  %v17968_v11 = vld [vmem:[#allocation211_spill] sm:$0xff]  ;;  %v17970_v27 = vld [vmem:[#allocation90_spill] sm:$0xff] }
 0x3de   : > { %v14417_v47 = vpop.permute.xlu0 %2184  ;;  %v14419_v42 = vpop.permute.xlu1 %2186  ;;  %v2569_v57 = vadd.f32 %v17963_v18, %v2248_v3  ;;  %v2570_v26 = vadd.f32 %v17964_v20, %v2249_v5  ;;  %v4090_v3 = vmul.f32 %v17969_v30, %v17968_v11  ;;  %v17971_v31 = vld [vmem:[#allocation91_spill] sm:$0xff] }
 0x3df   : > { %17955 = vst [vmem:[#allocation109_spill] sm:$0xff] %v14417_v47  ;;  %17956 = vst [vmem:[#allocation259_spill] sm:$0xff] %v14419_v42  ;;  %2854 = vrot.lane.b32.xlu0 %v2802_v12, %s12034_s22  ;;  %2856 = vrot.lane.b32.xlu1 %v2803_v44, %s12034_s22  ;;  %v17965_v12 = vld [vmem:[#allocation75_spill] sm:$0xff]  ;;  %v17966_v44 = vld [vmem:[#allocation210_spill] sm:$0xff] }
 0x3e0   : > { %10736 = vmatprep.subr.bf16.mxu0 %v4208_v52  ;;  %v2890_v49 = vadd.f32 %v13926_v62, %v2569_v57  ;;  %v2891_v24 = vadd.f32 %v17965_v12, %v2570_v26  ;;  %v4091_v52 = vmul.f32 %v17967_v2, %v17966_v44  ;;  %v17973_v57 = vld [vmem:[#allocation145_spill] sm:$0xff]  ;;  %v17974_v12 = vld [vmem:[#allocation44_spill] sm:$0xff]  ;;  %v17975_v44 = vld [vmem:[#allocation146_spill] sm:$0xff] }
 0x3e2   : > { %v14431_v48 = vpop.permute.xlu0 %2830  ;;  %v14433_v19 = vpop.permute.xlu1 %2832  ;;  %v3211_v5 = vadd.f32 %v17970_v27, %v2890_v49  ;;  %v3212_v18 = vadd.f32 %v17971_v31, %v2891_v24  ;;  %v2142_v49 = vmul.f32 %v17975_v44, %v17974_v12 }
 0x3e3   : > { %3500 = vrot.lane.b32.xlu0 %v3446_v51, %s12036_s26  ;;  %3502 = vrot.lane.b32.xlu1 %v3447_v32, %s12036_s26  ;;  %v17972_v32 = vld [vmem:[#allocation43_spill] sm:$0xff] }
 0x3e4   : > { %v3532_v62 = vadd.f32 %v14187_v7, %v3211_v5  ;;  %v3533_v51 = vadd.f32 %v14189_v22, %v3212_v18  ;;  %v2143_v26 = vmul.f32 %v17973_v57, %v17972_v32  ;;  %v17976_v22 = vld [vmem:[#allocation147_spill] sm:$0xff]  ;;  %v17982_v57 = vld [vmem:[#allocation66_spill] sm:$0xff] }
 0x3e5   : > { %v18031_v32 = vld [vmem:[#allocation54_spill] sm:$0xff] }
 0x3e6   : > { %v14445_v20 = vpop.permute.xlu0 %3476  ;;  %v14447_v42 = vpop.permute.xlu1 %3478  ;;  %v3853_v24 = vadd.f32 %v14319_v41, %v3532_v62  ;;  %v3854_v2 = vadd.f32 %v14321_v35, %v3533_v51  ;;  %v17980_v35 = vld [vmem:[#allocation65_spill] sm:$0xff] }
 0x3e7   : > { %4146 = vrot.lane.b32.xlu0 %v4090_v3, %s12038_s1  ;;  %4148 = vrot.lane.b32.xlu1 %v4091_v52, %s12038_s1  ;;  %v2787_v52 = vmul.f32 %v17976_v22, %v13829_v34  ;;  %v17977_v3 = vld [vmem:[#allocation148_spill] sm:$0xff]  ;;  %v17981_v62 = vld [vmem:[#allocation149_spill] sm:$0xff]  ;;  %v17983_v34 = vld [vmem:[#allocation150_spill] sm:$0xff] }
 0x3e8   : > { %v2786_v5 = vmul.f32 %v17977_v3, %v13832_v15  ;;  %v3431_v51 = vmul.f32 %v17981_v62, %v17980_v35  ;;  %v11960_v3 = vld [vmem:[%s12943_s11 + $0x78] sm:$0xff]  ;;  %v11961_v62 = vld [vmem:[%s12943_s11 + $0x70] sm:$0xff] }
 0x3ea   : > { %v4123_v11 = vpop.permute.xlu0 %4122  ;;  %v4125_v30 = vpop.permute.xlu1 %4124 }
 0x3eb   : > { %v4174_v27 = vadd.f32 %v4123_v11, %v3853_v24  ;;  %v4175_v7 = vadd.f32 %v4125_v30, %v3854_v2  ;;  %2176 = vrot.lane.b32.xlu0 %v2142_v49, %s12032_s16  ;;  %2178 = vrot.lane.b32.xlu1 %v2143_v26, %s12032_s16  ;;  %v3430_v26 = vmul.f32 %v17983_v34, %v17982_v57  ;;  %v17986_v49 = vld [vmem:[#allocation216_spill] sm:$0xff]  ;;  %v17987_v24 = vld [vmem:[#allocation151_spill] sm:$0xff]  ;;  %v17988_v11 = vld [vmem:[#allocation217_spill] sm:$0xff] }
 0x3ec   : > { %v4075_v2 = vmul.f32 %v17987_v24, %v17986_v49  ;;  %v17989_v30 = vld [vmem:[#allocation152_spill] sm:$0xff] }
 0x3ed   : > { %v4200_v31 = vpack.c.bf16 %v4175_v7, %v4174_v27  ;;  %v4074_v27 = vmul.f32 %v17989_v30, %v17988_v11  ;;  %v1288_v7 = vrot.slane %v13718_v8, 7  ;;  %v17994_v8 = vrot.slane %v13444_v37, 7  ;;  %v17996_v30 = vld [vmem:[#allocation155_spill] sm:$0xff] }
 0x3ee   : > { %v14465_v18 = vpop.permute.xlu0 %1826  ;;  %v14467_v41 = vpop.permute.xlu1 %1828 }
 0x3ef   : > { %17978 = vst [vmem:[#allocation110_spill] sm:$0xff] %v14465_v18  ;;  %17979 = vst [vmem:[#allocation186_spill] sm:$0xff] %v14467_v41  ;;  %2822 = vrot.lane.b32.xlu0 %v2786_v5, %s12034_s22  ;;  %2824 = vrot.lane.b32.xlu1 %v2787_v52, %s12034_s22  ;;  %v17990_v5 = vld [vmem:[#allocation153_spill] sm:$0xff]  ;;  %v14506_v24 = vsel %vm1304_vm1, %v17994_v8, %v1288_v7 }
 0x3f0   : > { %10737 = vmatpush3.bf16.msra.mxu0 %v4200_v31  ;;  %v1771_v31 = vmul.f32 %v11960_v3, %v17990_v5  ;;  %17995 = vst [vmem:[#allocation113_spill] sm:$0xff] %v14506_v24  ;;  %v17997_v3 = vld [vmem:[#allocation156_spill] sm:$0xff] }
 0x3f1   : > { %v2479_v37 = vmul.f32 %v17997_v3, %v14506_v24  ;;  %v11962_v3 = vld [vmem:[%s12943_s11 + $0xc8] sm:$0xff]  ;;  %v18029_v24 = vld [vmem:[#allocation168_spill] sm:$0xff] }
 0x3f2   : > { %v14475_v44 = vpop.permute.xlu0 %2537  ;;  %v14477_v15 = vpop.permute.xlu1 %2539 }
 0x3f3   : > { %17984 = vst [vmem:[#allocation111_spill] sm:$0xff] %v14475_v44  ;;  %17985 = vst [vmem:[#allocation187_spill] sm:$0xff] %v14477_v15  ;;  %3468 = vrot.lane.b32.xlu0 %v3430_v26, %s12036_s26  ;;  %3470 = vrot.lane.b32.xlu1 %v3431_v51, %s12036_s26  ;;  %v17991_v51 = vld [vmem:[#allocation154_spill] sm:$0xff]  ;;  %v17992_v26 = vrot.slane %v14001_v10, 7  ;;  %v11966_v15 = vld [vmem:[%s12943_s11 + $0xf0] sm:$0xff] }
 0x3f4   : > { %v1770_v34 = vmul.f32 %v11961_v62, %v17991_v51  ;;  %v18000_v62 = vld [vmem:[#allocation72_spill] sm:$0xff]  ;;  %v18001_v51 = vld [vmem:[#allocation157_spill] sm:$0xff]  ;;  %v18014_v44 = vld [vmem:[#allocation246_spill] sm:$0xff] }
 0x3f5   : > { %v14500_v49 = vsel %vm1304_vm1, %v1288_v7, %v17992_v26  ;;  %v18002_v26 = vld [vmem:[#allocation266_spill] sm:$0xff] }
 0x3f6   : > { %v14486_v22 = vpop.permute.xlu0 %3183  ;;  %v14488_v52 = vpop.permute.xlu1 %3185  ;;  %17993 = vst [vmem:[#allocation112_spill] sm:$0xff] %v14500_v49 }
 0x3f7   : > { %4114 = vrot.lane.b32.xlu0 %v4074_v27, %s12038_s1  ;;  %4116 = vrot.lane.b32.xlu1 %v4075_v2, %s12038_s1  ;;  %v2480_v27 = vmul.f32 %v17996_v30, %v14500_v49 }
 0x3fa   : > { %v14508_v11 = vpop.permute.xlu0 %3829  ;;  %v14510_v2 = vpop.permute.xlu1 %3831 }
 0x3fb   : > { %1818 = vrot.lane.b32.xlu0 %v1770_v34, %s12031_s15  ;;  %1820 = vrot.lane.b32.xlu1 %v1771_v31, %s12031_s15  ;;  %v3124_v34 = vmul.f32 %v18001_v51, %v18000_v62  ;;  %v18003_v31 = vld [vmem:[#allocation158_spill] sm:$0xff]  ;;  %v14539_v51 = vld [vmem:[%s12943_s11 + $0x10] sm:$0xff] }
 0x3fc   : > { %v3123_v8 = vmul.f32 %v18003_v31, %v18002_v26  ;;  %v1272_v47 = vrot.slane %v14539_v51, 7 }
 0x3fe   : > { %v14518_v5 = vpop.permute.xlu0 %1451  ;;  %v14520_v7 = vpop.permute.xlu1 %1456 }
 0x3ff   : > { %17998 = vst [vmem:[#allocation114_spill] sm:$0xff] %v14518_v5  ;;  %17999 = vst [vmem:[#allocation115_spill] sm:$0xff] %v14520_v7  ;;  %2529 = vrot.lane.b32.xlu0 %v2479_v37, %s12033_s18  ;;  %2531 = vrot.lane.b32.xlu1 %v2480_v27, %s12033_s18  ;;  %v18006_v37 = vld [vmem:[#allocation159_spill] sm:$0xff]  ;;  %v11963_v27 = vld [vmem:[%s12943_s11 + $0xc0] sm:$0xff] }
 0x400   : > { %v3768_v7 = vmul.f32 %v11962_v3, %v18006_v37  ;;  %v18007_v5 = vld [vmem:[#allocation160_spill] sm:$0xff]  ;;  %v18011_v3 = vld [vmem:[#allocation162_spill] sm:$0xff] }
 0x401   : > { %v3767_v18 = vmul.f32 %v11963_v27, %v18007_v5  ;;  %v1754_v37 = vmul.f32 %v11966_v15, %v18011_v3  ;;  %v18012_v5 = vrot.slane %v14066_v13, 7  ;;  %v18018_v15 = vld [vmem:[#allocation163_spill] sm:$0xff] }
 0x402   : > { %v14528_v30 = vpop.permute.xlu0 %1794  ;;  %v14530_v41 = vpop.permute.xlu1 %1796 }
 0x403   : > { %18004 = vst [vmem:[#allocation116_spill] sm:$0xff] %v14528_v30  ;;  %18005 = vst [vmem:[#allocation33_spill] sm:$0xff] %v14530_v41  ;;  %3175 = vrot.lane.b32.xlu0 %v3123_v8, %s12035_s23  ;;  %3177 = vrot.lane.b32.xlu1 %v3124_v34, %s12035_s23  ;;  %v11965_v8 = vld [vmem:[%s12943_s11 + $0xf8] sm:$0xff]  ;;  %v14556_v27 = vsel %vm1304_vm1, %v1272_v47, %v18012_v5 }
 0x404   : > { %v18010_v34 = vld [vmem:[#allocation161_spill] sm:$0xff]  ;;  %18013 = vst [vmem:[#allocation118_spill] sm:$0xff] %v14556_v27 }
 0x405   : > { %v1755_v41 = vmul.f32 %v11965_v8, %v18010_v34  ;;  %v2464_v8 = vmul.f32 %v18018_v15, %v14556_v27  ;;  %v18019_v34 = vld [vmem:[#allocation164_spill] sm:$0xff] }
 0x406   : > { %v14542_v31 = vpop.permute.xlu0 %2505  ;;  %v14544_v30 = vpop.permute.xlu1 %2507 }
 0x407   : > { %18008 = vst [vmem:[#allocation117_spill] sm:$0xff] %v14542_v31  ;;  %18009 = vst [vmem:[#allocation34_spill] sm:$0xff] %v14544_v30  ;;  %3821 = vrot.lane.b32.xlu0 %v3767_v18, %s12037_s28  ;;  %3823 = vrot.lane.b32.xlu1 %v3768_v7, %s12037_s28  ;;  %v18015_v31 = vrot.slane %v18014_v44, 7 }
 0x409   : > { %v14562_v30 = vsel %vm1304_vm1, %v18015_v31, %v1272_v47  ;;  %v18020_v31 = vld [vmem:[#allocation76_spill] sm:$0xff] }
 0x40a   : > { %18016 = vst [vmem:[#allocation190_spill] sm:$0xff] %v14562_v30  ;;  %v14564_v18 = vpop.permute.xlu0 %3151  ;;  %v14566_v7 = vpop.permute.xlu1 %3153  ;;  %v2463_v44 = vmul.f32 %v18019_v34, %v14562_v30  ;;  %v18026_v34 = vld [vmem:[#allocation27_spill] sm:$0xff]  ;;  %v18027_v30 = vld [vmem:[#allocation28_spill] sm:$0xff] }
 0x40b   : > { %18017 = vst [vmem:[#allocation119_spill] sm:$0xff] %v14566_v7  ;;  %1786 = vrot.lane.b32.xlu0 %v1754_v37, %s12031_s15  ;;  %1788 = vrot.lane.b32.xlu1 %v1755_v41, %s12031_s15  ;;  %v18021_v37 = vld [vmem:[#allocation165_spill] sm:$0xff]  ;;  %v18023_v41 = vld [vmem:[#allocation166_spill] sm:$0xff]  ;;  %v1556_v27 = vmul.f32 %v18026_v34, %v17959_v33  ;;  %v1555_v49 = vmul.f32 %v18027_v30, %v17961_v59  ;;  %s12042_s15 = smov 64  }
 0x40c   : > { %v3108_v5 = vmul.f32 %v18021_v37, %v18020_v31  ;;  %v3107_v62 = vmul.f32 %v18023_v41, %v18022_v25  ;;  %v11968_v31 = vld [vmem:[%s12943_s11 + $0x40] sm:$0xff]  ;;  %v18030_v25 = vld [vmem:[#allocation53_spill] sm:$0xff] }
 0x40d   : > { %v3751_v41 = vmul.f32 %v11968_v31, %v18029_v24  ;;  %v18034_v34 = vld [vmem:[#allocation69_spill] sm:$0xff] }
 0x40e   : > { %v14574_v3 = vpop.permute.xlu0 %3797  ;;  %v14576_v47 = vpop.permute.xlu1 %3799  ;;  %v18038_v31 = vld [vmem:[#allocation237_spill] sm:$0xff] }
 0x40f   : > { %2497 = vrot.lane.b32.xlu0 %v2463_v44, %s12033_s18  ;;  %2499 = vrot.lane.b32.xlu1 %v2464_v8, %s12033_s18  ;;  %v11967_v8 = vld [vmem:[%s12943_s11 + $0x48] sm:$0xff] }
 0x410   : > { %v18028_v44 = vld [vmem:[#allocation167_spill] sm:$0xff] }
 0x411   : > { %v3752_v37 = vmul.f32 %v11967_v8, %v18028_v44  ;;  %v18037_v8 = vld [vmem:[#allocation169_spill] sm:$0xff] }
 0x412   : > { %v14584_v26 = vpop.permute.xlu0 %1371  ;;  %v14586_v15 = vpop.permute.xlu1 %1376  ;;  %v18041_v44 = vld [vmem:[#allocation81_spill] sm:$0xff] }
 0x413   : > { %18024 = vst [vmem:[#allocation191_spill] sm:$0xff] %v14584_v26  ;;  %18025 = vst [vmem:[#allocation120_spill] sm:$0xff] %v14586_v15  ;;  %3143 = vrot.lane.b32.xlu0 %v3107_v62, %s12035_s23  ;;  %3145 = vrot.lane.b32.xlu1 %v3108_v5, %s12035_s23  ;;  %v1877_v26 = vadd.f32 %v18030_v25, %v1556_v27  ;;  %v1876_v15 = vadd.f32 %v18031_v32, %v1555_v49  ;;  %v18035_v62 = vld [vmem:[#allocation70_spill] sm:$0xff]  ;;  %v18036_v5 = vld [vmem:[#allocation236_spill] sm:$0xff] }
 0x414   : > { %v2157_v24 = vmul.f32 %v18037_v8, %v18036_v5  ;;  %v18039_v25 = vld [vmem:[#allocation170_spill] sm:$0xff]  ;;  %v18040_v32 = vld [vmem:[#allocation80_spill] sm:$0xff] }
 0x415   : > { %v2262_v59 = vadd.f32 %v18034_v34, %v1876_v15  ;;  %v2263_v30 = vadd.f32 %v18035_v62, %v1877_v26  ;;  %v2156_v27 = vmul.f32 %v18039_v25, %v18038_v31  ;;  %v14625_v34 = vld [vmem:[%s12943_s11 + $0x90] sm:$0xff]  ;;  %v18046_v25 = vld [vmem:[#allocation85_spill] sm:$0xff] }
 0x416   : > { %v14600_v12 = vpop.permute.xlu0 %2212  ;;  %v14602_v33 = vpop.permute.xlu1 %2214 }
 0x417   : > { %18032 = vst [vmem:[#allocation121_spill] sm:$0xff] %v14600_v12  ;;  %18033 = vst [vmem:[#allocation122_spill] sm:$0xff] %v14602_v33  ;;  %3789 = vrot.lane.b32.xlu0 %v3751_v41, %s12037_s28  ;;  %3791 = vrot.lane.b32.xlu1 %v3752_v37, %s12037_s28  ;;  %v2583_v49 = vadd.f32 %v18040_v32, %v2262_v59  ;;  %v2584_v12 = vadd.f32 %v18041_v44, %v2263_v30  ;;  %v18042_v37 = vld [vmem:[#allocation171_spill] sm:$0xff]  ;;  %v18043_v59 = vld [vmem:[#allocation172_spill] sm:$0xff] }
 0x418   : > { %v2801_v41 = vmul.f32 %v18042_v37, %v14001_v10  ;;  %v2800_v62 = vmul.f32 %v14625_v34, %v18043_v59  ;;  %v18044_v10 = vld [vmem:[#allocation84_spill] sm:$0xff]  ;;  %v18050_v59 = vld [vmem:[#allocation242_spill] sm:$0xff] }
 0x419   : > { %v2904_v26 = vadd.f32 %v14110_v23, %v2583_v49  ;;  %v2905_v15 = vadd.f32 %v14112_v60, %v2584_v12  ;;  %v18048_v49 = vld [vmem:[#allocation31_spill] sm:$0xff] }
 0x41a   : > { %v14614_v33 = vpop.permute.xlu0 %2858  ;;  %v14616_v7 = vpop.permute.xlu1 %2860  ;;  %v1540_v44 = vmul.f32 %v18048_v49, %v17980_v35  ;;  %v18055_v35 = vld [vmem:[#allocation62_spill] sm:$0xff] }
 0x41b   : > { %2204 = vrot.lane.b32.xlu0 %v2156_v27, %s12032_s16  ;;  %2206 = vrot.lane.b32.xlu1 %v2157_v24, %s12032_s16  ;;  %v3225_v30 = vadd.f32 %v14240_v45, %v2904_v26  ;;  %v3226_v5 = vadd.f32 %v14242_v36, %v2905_v15  ;;  %v18045_v24 = vld [vmem:[#allocation173_spill] sm:$0xff]  ;;  %v18047_v27 = vld [vmem:[#allocation174_spill] sm:$0xff] }
 0x41c   : > { %v3445_v31 = vmul.f32 %v18045_v24, %v18044_v10  ;;  %v3444_v45 = vmul.f32 %v18047_v27, %v18046_v25  ;;  %v1861_v24 = vadd.f32 %v18055_v35, %v1540_v44 }
 0x41d   : > { %v3546_v60 = vadd.f32 %v14391_v56, %v3225_v30  ;;  %v3547_v12 = vadd.f32 %v14393_v38, %v3226_v5  ;;  %v18049_v38 = vld [vmem:[#allocation32_spill] sm:$0xff] }
 0x41e   : > { %v14631_v8 = vpop.permute.xlu0 %3504  ;;  %v14633_v23 = vpop.permute.xlu1 %3506  ;;  %v1539_v15 = vmul.f32 %v18049_v38, %v17982_v57  ;;  %v18053_v5 = vld [vmem:[#allocation176_spill] sm:$0xff] }
 0x41f   : > { %2850 = vrot.lane.b32.xlu0 %v2800_v62, %s12034_s22  ;;  %2852 = vrot.lane.b32.xlu1 %v2801_v41, %s12034_s22  ;;  %v3867_v36 = vadd.f32 %v14508_v11, %v3546_v60  ;;  %v3868_v32 = vadd.f32 %v14510_v2, %v3547_v12  ;;  %v18051_v62 = vld [vmem:[#allocation175_spill] sm:$0xff]  ;;  %v18054_v60 = vld [vmem:[#allocation61_spill] sm:$0xff] }
 0x420   : > { %v4089_v30 = vmul.f32 %v18051_v62, %v18050_v59  ;;  %v18052_v11 = vld [vmem:[#allocation243_spill] sm:$0xff]  ;;  %v1860_v12 = vadd.f32 %v18054_v60, %v1539_v15  ;;  %v18061_v59 = vld [vmem:[#allocation178_spill] sm:$0xff]  ;;  %v18063_v62 = vld [vmem:[#allocation89_spill] sm:$0xff] }
 0x421   : > { %v4088_v2 = vmul.f32 %v18053_v5, %v18052_v11  ;;  %v18060_v15 = vld [vmem:[#allocation227_spill] sm:$0xff] }
 0x422   : > { %v4151_v56 = vpop.permute.xlu0 %4150  ;;  %v4153_v26 = vpop.permute.xlu1 %4152  ;;  %v2140_v44 = vmul.f32 %v18061_v59, %v18060_v15 }
 0x423   : > { %v4188_v37 = vadd.f32 %v4151_v56, %v3867_v36  ;;  %v4189_v41 = vadd.f32 %v4153_v26, %v3868_v32  ;;  %3496 = vrot.lane.b32.xlu0 %v3444_v45, %s12036_s26  ;;  %3498 = vrot.lane.b32.xlu1 %v3445_v31, %s12036_s26  ;;  %v18056_v36 = vld [vmem:[#allocation73_spill] sm:$0xff]  ;;  %v18057_v45 = vld [vmem:[#allocation74_spill] sm:$0xff] }
 0x424   : > { %v2246_v32 = vadd.f32 %v18056_v36, %v1860_v12  ;;  %v2247_v56 = vadd.f32 %v18057_v45, %v1861_v24  ;;  %v18058_v31 = vld [vmem:[#allocation226_spill] sm:$0xff]  ;;  %v18059_v26 = vld [vmem:[#allocation177_spill] sm:$0xff]  ;;  %v18065_v24 = vld [vmem:[#allocation180_spill] sm:$0xff] }
 0x425   : > { %v4207_v27 = vpack.c.bf16 %v4189_v41, %v4188_v37  ;;  %v2141_v38 = vmul.f32 %v18059_v26, %v18058_v31  ;;  %v18062_v37 = vld [vmem:[#allocation88_spill] sm:$0xff]  ;;  %v18067_v26 = vld [vmem:[#allocation182_spill] sm:$0xff] }
 0x426   : > { %v14657_v49 = vpop.permute.xlu0 %2180  ;;  %v14659_v57 = vpop.permute.xlu1 %2182  ;;  %v2567_v41 = vadd.f32 %v18062_v37, %v2246_v32  ;;  %v2568_v11 = vadd.f32 %v18063_v62, %v2247_v56 }
 0x427   : > { %4142 = vrot.lane.b32.xlu0 %v4088_v2, %s12038_s1  ;;  %4144 = vrot.lane.b32.xlu1 %v4089_v30, %s12038_s1  ;;  %v18064_v30 = vld [vmem:[#allocation179_spill] sm:$0xff] }
 0x428   : > { %10738 = vmatprep.subr.bf16.mxu0 %v4207_v27  ;;  %v2888_v12 = vadd.f32 %v14173_v46, %v2567_v41  ;;  %v2889_v2 = vadd.f32 %v14175_v39, %v2568_v11  ;;  %v2785_v35 = vmul.f32 %v18064_v30, %v14066_v13  ;;  %v2784_v27 = vmul.f32 %v14539_v51, %v18065_v24  ;;  %v18066_v13 = vld [vmem:[#allocation181_spill] sm:$0xff] }
 0x429   : > { %v3429_v31 = vmul.f32 %v18066_v13, %v14088_v28  ;;  %v18069_v41 = vld [vmem:[#allocation185_spill] sm:$0xff] }
 0x42a   : > { %v14671_v5 = vpop.permute.xlu0 %2826  ;;  %v14673_v60 = vpop.permute.xlu1 %2828  ;;  %v3209_v36 = vadd.f32 %v14307_v53, %v2888_v12  ;;  %v3210_v32 = vadd.f32 %v14309_v9, %v2889_v2  ;;  %v3428_v53 = vmul.f32 %v18067_v26, %v14094_v16  ;;  %v4072_v62 = vmul.f32 %v18069_v41, %v13437_v14  ;;  %v18072_v2 = vld [vmem:[#allocation188_spill] sm:$0xff]  ;;  %v11970_v26 = vld [vmem:[%s12943_s11 + $0xb8] sm:$0xff] }
 0x42b   : > { %2172 = vrot.lane.b32.xlu0 %v2140_v44, %s12032_s16  ;;  %2174 = vrot.lane.b32.xlu1 %v2141_v38, %s12032_s16  ;;  %s12043_s16 = smov 80  }
 0x42c   : > { %v3530_v46 = vadd.f32 %v14445_v20, %v3209_v36  ;;  %v3531_v39 = vadd.f32 %v14447_v42, %v3210_v32  ;;  %v18068_v42 = vld [vmem:[#allocation184_spill] sm:$0xff] }
 0x42d   : > { %v4073_v37 = vmul.f32 %v18068_v42, %v13431_v63  ;;  %v18074_v63 = vld [vmem:[#allocation189_spill] sm:$0xff]  ;;  %v18075_v36 = vld [vmem:[#allocation192_spill] sm:$0xff] }
 0x42e   : > { %v14685_v45 = vpop.permute.xlu0 %3472  ;;  %v14687_v56 = vpop.permute.xlu1 %3474  ;;  %v3851_v9 = vadd.f32 %v14574_v3, %v3530_v46  ;;  %v3852_v38 = vadd.f32 %v14576_v47, %v3531_v39  ;;  %v18071_v47 = vld [vmem:[#allocation255_spill] sm:$0xff]  ;;  %v3122_v32 = vmul.f32 %v18075_v36, %v14153_v50  ;;  %v18076_v46 = vld [vmem:[#allocation193_spill] sm:$0xff] }
 0x42f   : > { %2818 = vrot.lane.b32.xlu0 %v2784_v27, %s12034_s22  ;;  %2820 = vrot.lane.b32.xlu1 %v2785_v35, %s12034_s22  ;;  %v2478_v30 = vmul.f32 %v18072_v2, %v18071_v47  ;;  %v18073_v35 = vld [vmem:[#allocation256_spill] sm:$0xff]  ;;  %v3121_v39 = vmul.f32 %v18076_v46, %v14159_v40  ;;  %v18079_v42 = vld [vmem:[#allocation249_spill] sm:$0xff] }
 0x430   : > { %v2477_v24 = vmul.f32 %v18074_v63, %v18073_v35 }
 0x432   : > { %v4119_v15 = vpop.permute.xlu0 %4118  ;;  %v4121_v59 = vpop.permute.xlu1 %4120 }
 0x433   : > { %v4172_v44 = vadd.f32 %v4119_v15, %v3851_v9  ;;  %v4173_v20 = vadd.f32 %v4121_v59, %v3852_v38  ;;  %3464 = vrot.lane.b32.xlu0 %v3428_v53, %s12036_s26  ;;  %3466 = vrot.lane.b32.xlu1 %v3429_v31, %s12036_s26  ;;  %v18077_v53 = vld [vmem:[#allocation194_spill] sm:$0xff]  ;;  %v11971_v38 = vld [vmem:[%s12943_s11 + $0xb0] sm:$0xff]  ;;  %v18078_v15 = vld [vmem:[#allocation195_spill] sm:$0xff] }
 0x434   : > { %v3766_v9 = vmul.f32 %v11970_v26, %v18077_v53  ;;  %v3765_v59 = vmul.f32 %v11971_v38, %v18078_v15  ;;  %v11972_v53 = vld [vmem:[%s12943_s11 + $0x38] sm:$0xff]  ;;  %v11973_v15 = vld [vmem:[%s12943_s11 + $0x30] sm:$0xff] }
 0x435   : > { %v4199_v11 = vpack.c.bf16 %v4173_v20, %v4172_v44 }
 0x436   : > { %v14705_v12 = vpop.permute.xlu0 %1822  ;;  %v14707_v3 = vpop.permute.xlu1 %1824 }
 0x437   : > { %18070 = vst [vmem:[#allocation123_spill] sm:$0xff] %v14707_v3  ;;  %4110 = vrot.lane.b32.xlu0 %v4072_v62, %s12038_s1  ;;  %4112 = vrot.lane.b32.xlu1 %v4073_v37, %s12038_s1  ;;  %v18080_v37 = vld [vmem:[#allocation198_spill] sm:$0xff] }
 0x438   : > { %10739 = vmatpush3.bf16.msra.mxu0 %v4199_v11  ;;  %v2462_v41 = vmul.f32 %v18080_v37, %v18079_v42  ;;  %v18081_v62 = vld [vmem:[#allocation250_spill] sm:$0xff]  ;;  %v18082_v11 = vld [vmem:[#allocation199_spill] sm:$0xff] }
 0x439   : > { %v2461_v2 = vmul.f32 %v18082_v11, %v18081_v62  ;;  %v18096_v42 = vld [vmem:[#allocation79_spill] sm:$0xff] }
 0x43a   : > { %v14715_v27 = vpop.permute.xlu0 %2533  ;;  %v14717_v14 = vpop.permute.xlu1 %2535 }
 0x43b   : > { %2525 = vrot.lane.b32.xlu0 %v2477_v24, %s12033_s18  ;;  %2527 = vrot.lane.b32.xlu1 %v2478_v30, %s12033_s18  ;;  %v18085_v24 = vld [vmem:[#allocation200_spill] sm:$0xff] }
 0x43c   : > { %v3106_v36 = vmul.f32 %v18085_v24, %v14212_v1  ;;  %v18089_v24 = vld [vmem:[#allocation206_spill] sm:$0xff] }
 0x43e   : > { %v14725_v13 = vpop.permute.xlu0 %3179  ;;  %v14727_v31 = vpop.permute.xlu1 %3181 }
 0x43f   : > { %3171 = vrot.lane.b32.xlu0 %v3121_v39, %s12035_s23  ;;  %3173 = vrot.lane.b32.xlu1 %v3122_v32, %s12035_s23  ;;  %v18086_v32 = vld [vmem:[#allocation201_spill] sm:$0xff] }
 0x440   : > { %v3105_v46 = vmul.f32 %v18086_v32, %v14218_v55 }
 0x442   : > { %v14735_v44 = vpop.permute.xlu0 %3825  ;;  %v14737_v20 = vpop.permute.xlu1 %3827 }
 0x443   : > { %3817 = vrot.lane.b32.xlu0 %v3765_v59, %s12037_s28  ;;  %3819 = vrot.lane.b32.xlu1 %v3766_v9, %s12037_s28  ;;  %v18087_v9 = vld [vmem:[#allocation202_spill] sm:$0xff]  ;;  %v18088_v59 = vld [vmem:[#allocation203_spill] sm:$0xff] }
 0x444   : > { %v3750_v38 = vmul.f32 %v11972_v53, %v18087_v9  ;;  %v3749_v37 = vmul.f32 %v11973_v15, %v18088_v59  ;;  %v18091_v9 = vld [vmem:[#allocation262_spill] sm:$0xff]  ;;  %v18092_v59 = vld [vmem:[#allocation263_spill] sm:$0xff] }
 0x445   : > { %v1554_v15 = vmul.f32 %v18091_v9, %v18044_v10 }
 0x446   : > { %v14745_v30 = vpop.permute.xlu0 %1790  ;;  %v14747_v63 = vpop.permute.xlu1 %1792 }
 0x447   : > { %18083 = vst [vmem:[#allocation124_spill] sm:$0xff] %v14745_v30  ;;  %18084 = vst [vmem:[#allocation39_spill] sm:$0xff] %v14747_v63  ;;  %2493 = vrot.lane.b32.xlu0 %v2461_v2, %s12033_s18  ;;  %2495 = vrot.lane.b32.xlu1 %v2462_v41, %s12033_s18  ;;  %v11974_v2 = vld [vmem:[%s12943_s11 + $0x88] sm:$0xff]  ;;  %v1553_v30 = vmul.f32 %v18092_v59, %v18046_v25  ;;  %v1875_v62 = vadd.f32 %v18096_v42, %v1554_v15  ;;  %v18100_v59 = vld [vmem:[#allocation40_spill] sm:$0xff]  ;;  %s12044_s18 = smov 96  }
 0x448   : > { %v2799_v32 = vmul.f32 %v11974_v2, %v18089_v24  ;;  %v18094_v2 = vld [vmem:[#allocation209_spill] sm:$0xff]  ;;  %v18095_v24 = vld [vmem:[#allocation78_spill] sm:$0xff]  ;;  %v18103_v15 = vld [vmem:[#allocation99_spill] sm:$0xff] }
 0x44a   : > { %v14755_v39 = vpop.permute.xlu0 %2501  ;;  %v14757_v26 = vpop.permute.xlu1 %2503 }
 0x44b   : > { %3139 = vrot.lane.b32.xlu0 %v3105_v46, %s12035_s23  ;;  %3141 = vrot.lane.b32.xlu1 %v3106_v36, %s12035_s23  ;;  %v18090_v46 = vld [vmem:[#allocation207_spill] sm:$0xff] }
 0x44c   : > { %v2798_v36 = vmul.f32 %v14271_v43, %v18090_v46  ;;  %v3442_v43 = vmul.f32 %v18094_v2, %v14285_v4  ;;  %v1874_v46 = vadd.f32 %v18095_v24, %v1553_v30  ;;  %v18102_v2 = vld [vmem:[#allocation98_spill] sm:$0xff] }
 0x44e   : > { %v14765_v41 = vpop.permute.xlu0 %3147  ;;  %v14767_v11 = vpop.permute.xlu1 %3149  ;;  %v2260_v25 = vadd.f32 %v14096_v21, %v1874_v46  ;;  %v18107_v46 = vld [vmem:[#allocation35_spill] sm:$0xff] }
 0x44f   : > { %3785 = vrot.lane.b32.xlu0 %v3749_v37, %s12037_s28  ;;  %3787 = vrot.lane.b32.xlu1 %v3750_v38, %s12037_s28  ;;  %v18093_v38 = vld [vmem:[#allocation208_spill] sm:$0xff] }
 0x450   : > { %v3443_v37 = vmul.f32 %v18093_v38, %v14279_v6  ;;  %v18101_v38 = vld [vmem:[#allocation213_spill] sm:$0xff]  ;;  %v2581_v42 = vadd.f32 %v18102_v2, %v2260_v25 }
 0x451   : > { %v4086_v30 = vmul.f32 %v18101_v38, %v18100_v59 }
 0x452   : > { %v14775_v63 = vpop.permute.xlu0 %3793  ;;  %v14777_v53 = vpop.permute.xlu1 %3795  ;;  %v2902_v21 = vadd.f32 %v14377_v17, %v2581_v42  ;;  %v18110_v42 = vld [vmem:[#allocation105_spill] sm:$0xff] }
 0x453   : > { %2846 = vrot.lane.b32.xlu0 %v2798_v36, %s12034_s22  ;;  %2848 = vrot.lane.b32.xlu1 %v2799_v32, %s12034_s22  ;;  %v2261_v36 = vadd.f32 %v14098_v54, %v1875_v62  ;;  %v18099_v32 = vld [vmem:[#allocation212_spill] sm:$0xff]  ;;  %v18105_v62 = vld [vmem:[#allocation30_spill] sm:$0xff] }
 0x454   : > { %v4087_v9 = vmul.f32 %v18099_v32, %v17910_v0  ;;  %v18104_v0 = vld [vmem:[#allocation214_spill] sm:$0xff] }
 0x455   : > { %v2582_v24 = vadd.f32 %v18103_v15, %v2261_v36  ;;  %v3223_v36 = vadd.f32 %v14486_v22, %v2902_v21  ;;  %v18111_v15 = vld [vmem:[#allocation219_spill] sm:$0xff]  ;;  %v18112_v21 = vld [vmem:[#allocation45_spill] sm:$0xff] }
 0x456   : > { %v14791_v3 = vpop.permute.xlu0 %2208  ;;  %v14793_v10 = vpop.permute.xlu1 %2210  ;;  %v3426_v22 = vmul.f32 %v18111_v15, %v18110_v42 }
 0x457   : > { %18097 = vst [vmem:[#allocation125_spill] sm:$0xff] %v14791_v3  ;;  %18098 = vst [vmem:[#allocation126_spill] sm:$0xff] %v14793_v10  ;;  %3492 = vrot.lane.b32.xlu0 %v3442_v43, %s12036_s26  ;;  %3494 = vrot.lane.b32.xlu1 %v3443_v37, %s12036_s26  ;;  %v2903_v54 = vadd.f32 %v14379_v58, %v2582_v24  ;;  %v2783_v37 = vmul.f32 %v18105_v62, %v18104_v0  ;;  %v18106_v43 = vld [vmem:[#allocation215_spill] sm:$0xff] }
 0x458   : > { %v2782_v25 = vmul.f32 %v18107_v46, %v18106_v43  ;;  %v3544_v17 = vadd.f32 %v14631_v8, %v3223_v36  ;;  %v18114_v46 = vld [vmem:[#allocation48_spill] sm:$0xff] }
 0x459   : > { %v3224_v32 = vadd.f32 %v14488_v52, %v2903_v54  ;;  %v1538_v54 = vmul.f32 %v18112_v21, %v14088_v28  ;;  %v18118_v28 = vld [vmem:[#allocation47_spill] sm:$0xff] }
 0x45a   : > { %v14805_v3 = vpop.permute.xlu0 %2854  ;;  %v14807_v10 = vpop.permute.xlu1 %2856  ;;  %v3865_v52 = vadd.f32 %v14735_v44, %v3544_v17  ;;  %v18116_v44 = vld [vmem:[#allocation86_spill] sm:$0xff] }
 0x45b   : > { %4138 = vrot.lane.b32.xlu0 %v4086_v30, %s12038_s1  ;;  %4140 = vrot.lane.b32.xlu1 %v4087_v9, %s12038_s1  ;;  %v3545_v58 = vadd.f32 %v14633_v23, %v3224_v32  ;;  %v18108_v9 = vld [vmem:[#allocation36_spill] sm:$0xff]  ;;  %v18109_v30 = vld [vmem:[#allocation218_spill] sm:$0xff] }
 0x45c   : > { %v3427_v2 = vmul.f32 %v18109_v30, %v18108_v9  ;;  %v18113_v23 = vld [vmem:[#allocation46_spill] sm:$0xff]  ;;  %v18119_v30 = vld [vmem:[#allocation220_spill] sm:$0xff] }
 0x45d   : > { %v3866_v24 = vadd.f32 %v14737_v20, %v3545_v58  ;;  %v1537_v62 = vmul.f32 %v18113_v23, %v14094_v16  ;;  %v18117_v20 = vld [vmem:[#allocation87_spill] sm:$0xff]  ;;  %v4071_v15 = vmul.f32 %v18119_v30, %v18118_v28 }
 0x45e   : > { %v14819_v59 = vpop.permute.xlu0 %3500  ;;  %v14821_v38 = vpop.permute.xlu1 %3502  ;;  %v1859_v17 = vadd.f32 %v18117_v20, %v1538_v54  ;;  %v18122_v54 = vld [vmem:[#allocation223_spill] sm:$0xff]  ;;  %v18126_v20 = vld [vmem:[#allocation225_spill] sm:$0xff] }
 0x45f   : > { %2814 = vrot.lane.b32.xlu0 %v2782_v25, %s12034_s22  ;;  %2816 = vrot.lane.b32.xlu1 %v2783_v37, %s12034_s22  ;;  %v18115_v25 = vld [vmem:[#allocation221_spill] sm:$0xff]  ;;  %v1858_v32 = vadd.f32 %v18116_v44, %v1537_v62  ;;  %v18127_v28 = vld [vmem:[#allocation119_spill] sm:$0xff]  ;;  %s12045_s22 = smov 112  }
 0x460   : > { %v4070_v36 = vmul.f32 %v18115_v25, %v18114_v46  ;;  %v18124_v62 = vld [vmem:[#allocation29_spill] sm:$0xff] }
 0x462   : > { %v4147_v8 = vpop.permute.xlu0 %4146  ;;  %v4149_v0 = vpop.permute.xlu1 %4148 }
 0x463   : > { %v4186_v43 = vadd.f32 %v4147_v8, %v3865_v52  ;;  %v4187_v37 = vadd.f32 %v4149_v0, %v3866_v24  ;;  %3460 = vrot.lane.b32.xlu0 %v3426_v22, %s12036_s26  ;;  %3462 = vrot.lane.b32.xlu1 %v3427_v2, %s12036_s26  ;;  %v18120_v52 = vld [vmem:[#allocation94_spill] sm:$0xff]  ;;  %v18121_v24 = vld [vmem:[#allocation95_spill] sm:$0xff]  ;;  %v3119_v8 = vmul.f32 %v18122_v54, %v17947_v61  ;;  %v18123_v0 = vld [vmem:[#allocation104_spill] sm:$0xff] }
 0x464   : > { %v2244_v22 = vadd.f32 %v18120_v52, %v1858_v32  ;;  %v2245_v2 = vadd.f32 %v18121_v24, %v1859_v17  ;;  %v11975_v61 = vld [vmem:[%s12943_s11 + $0xa0] sm:$0xff] }
 0x465   : > { %v4206_v58 = vpack.c.bf16 %v4187_v37, %v4186_v43  ;;  %v18125_v37 = vld [vmem:[#allocation222_spill] sm:$0xff]  ;;  %v3763_v17 = vmul.f32 %v11975_v61, %v18126_v20 }
 0x466   : > { %v14845_v21 = vpop.permute.xlu0 %2176  ;;  %v14847_v16 = vpop.permute.xlu1 %2178  ;;  %v2565_v23 = vadd.f32 %v18123_v0, %v2244_v22  ;;  %v2566_v43 = vadd.f32 %v18124_v62, %v2245_v2  ;;  %v3120_v46 = vmul.f32 %v18125_v37, %v17945_v29  ;;  %v11976_v29 = vld [vmem:[%s12943_s11 + $0xa8] sm:$0xff]  ;;  %v18130_v2 = vld [vmem:[#allocation229_spill] sm:$0xff]  ;;  %v18132_v62 = vld [vmem:[#allocation228_spill] sm:$0xff] }
 0x467   : > { %4106 = vrot.lane.b32.xlu0 %v4070_v36, %s12038_s1  ;;  %10740 = vmatprep.subr.bf16.mxu0 %v4206_v58 }
 0x468   : > { %4108 = vrot.lane.b32.xlu1 %v4071_v15, %s12038_s1  ;;  %v2886_v36 = vadd.f32 %v14431_v48, %v2565_v23  ;;  %v2887_v32 = vadd.f32 %v14433_v19, %v2566_v43  ;;  %v18128_v15 = vld [vmem:[#allocation224_spill] sm:$0xff]  ;;  %v18131_v23 = vld [vmem:[#allocation43_spill] sm:$0xff] }
 0x469   : > { %v3764_v52 = vmul.f32 %v11976_v29, %v18128_v15  ;;  %v3104_v43 = vmul.f32 %v18132_v62, %v18131_v23  ;;  %v18138_v29 = vld [vmem:[#allocation233_spill] sm:$0xff]  ;;  %v18143_v23 = vld [vmem:[#allocation72_spill] sm:$0xff]  ;;  %v18144_v62 = vld [vmem:[#allocation234_spill] sm:$0xff] }
 0x46a   : > { %v14859_v25 = vpop.permute.xlu0 %2822  ;;  %v14861_v44 = vpop.permute.xlu1 %2824  ;;  %v3207_v58 = vadd.f32 %v14564_v18, %v2886_v36  ;;  %v3208_v30 = vadd.f32 %v18127_v28, %v2887_v32  ;;  %v18129_v18 = vld [vmem:[#allocation44_spill] sm:$0xff]  ;;  %v18133_v32 = vld [vmem:[#allocation231_spill] sm:$0xff] }
 0x46b   : > { %3167 = vrot.lane.b32.xlu0 %v3119_v8, %s12035_s23  ;;  %v3103_v54 = vmul.f32 %v18130_v2, %v18129_v18 }
 0x46c   : > { %3169 = vrot.lane.b32.xlu1 %v3120_v46, %s12035_s23  ;;  %v3528_v19 = vadd.f32 %v14685_v45, %v3207_v58  ;;  %v3529_v24 = vadd.f32 %v14687_v56, %v3208_v30  ;;  %v11977_v56 = vld [vmem:[%s12943_s11 + $0x20] sm:$0xff]  ;;  %v18137_v30 = vld [vmem:[#allocation113_spill] sm:$0xff] }
 0x46d   : > { %v3747_v61 = vmul.f32 %v11977_v56, %v18133_v32  ;;  %v18134_v58 = vld [vmem:[#allocation230_spill] sm:$0xff]  ;;  %v3440_v15 = vmul.f32 %v18138_v29, %v18137_v30  ;;  %v18150_v29 = vld [vmem:[#allocation241_spill] sm:$0xff] }
 0x46e   : > { %v14873_v22 = vpop.permute.xlu0 %3468  ;;  %v14875_v48 = vpop.permute.xlu1 %3470  ;;  %v3849_v8 = vadd.f32 %v14775_v63, %v3528_v19  ;;  %v3850_v0 = vadd.f32 %v14777_v53, %v3529_v24  ;;  %v18140_v19 = vld [vmem:[#allocation232_spill] sm:$0xff]  ;;  %v18147_v32 = vld [vmem:[#allocation118_spill] sm:$0xff] }
 0x46f   : > { %3813 = vrot.lane.b32.xlu0 %v3763_v17, %s12037_s28  ;;  %v11978_v17 = vld [vmem:[%s12943_s11 + $0x28] sm:$0xff] }
 0x470   : > { %3815 = vrot.lane.b32.xlu1 %v3764_v52, %s12037_s28  ;;  %v3748_v63 = vmul.f32 %v11978_v17, %v18134_v58  ;;  %v18139_v52 = vld [vmem:[#allocation112_spill] sm:$0xff] }
 0x471   : > { %v3441_v24 = vmul.f32 %v18140_v19, %v18139_v52  ;;  %v18151_v19 = vld [vmem:[#allocation76_spill] sm:$0xff] }
 0x472   : > { %v4115_v37 = vpop.permute.xlu0 %4114  ;;  %v4117_v46 = vpop.permute.xlu1 %4116 }
 0x473   : > { %v4170_v45 = vadd.f32 %v4115_v37, %v3849_v8  ;;  %v4171_v36 = vadd.f32 %v4117_v46, %v3850_v0  ;;  %3135 = vrot.lane.b32.xlu0 %v3103_v54, %s12035_s23  ;;  %v18141_v54 = vld [vmem:[#allocation266_spill] sm:$0xff]  ;;  %v18142_v8 = vld [vmem:[#allocation235_spill] sm:$0xff] }
 0x474   : > { %3137 = vrot.lane.b32.xlu1 %v3104_v43, %s12035_s23  ;;  %v4084_v0 = vmul.f32 %v18142_v8, %v18141_v54  ;;  %v4085_v43 = vmul.f32 %v18144_v62, %v18143_v23  ;;  %v18155_v23 = vld [vmem:[#allocation245_spill] sm:$0xff]  ;;  %s18231_s23 = sld [smem:[#allocation2_spill]] }
 0x475   : > { %v4198_v20 = vpack.c.bf16 %v4171_v36, %v4170_v45  ;;  %v18145_v45 = vld [vmem:[#allocation190_spill] sm:$0xff]  ;;  %v18146_v36 = vld [vmem:[#allocation239_spill] sm:$0xff]  ;;  %v3761_v62 = vmul.f32 %v14625_v34, %v18155_v23  ;;  %v18159_v23 = vld [vmem:[#allocation252_spill] sm:$0xff] }
 0x476   : > { %v14893_v28 = vpop.permute.xlu0 %1818  ;;  %v14895_v53 = vpop.permute.xlu1 %1820  ;;  %v3424_v56 = vmul.f32 %v18146_v36, %v18145_v45  ;;  %v18156_v36 = vld [vmem:[#allocation244_spill] sm:$0xff] }
 0x477   : > { %18135 = vst [vmem:[#allocation127_spill] sm:$0xff] %v14893_v28  ;;  %18136 = vst [vmem:[#allocation128_spill] sm:$0xff] %v14895_v53  ;;  %3781 = vrot.lane.b32.xlu0 %v3747_v61, %s12037_s28  ;;  %10741 = vmatpush3.bf16.msra.mxu0 %v4198_v20  ;;  %v18148_v61 = vld [vmem:[#allocation238_spill] sm:$0xff] }
 0x478   : > { %3783 = vrot.lane.b32.xlu1 %v3748_v63, %s12037_s28  ;;  %v3425_v20 = vmul.f32 %v18148_v61, %v18147_v32  ;;  %v18149_v63 = vld [vmem:[#allocation77_spill] sm:$0xff] }
 0x47a   : > { %v14903_v18 = vpop.permute.xlu0 %2529  ;;  %v14905_v2 = vpop.permute.xlu1 %2531 }
 0x47b   : > { %3488 = vrot.lane.b32.xlu0 %v3440_v15, %s12036_s26  ;;  %v4068_v15 = vmul.f32 %v18150_v29, %v18149_v63  ;;  %v18157_v63 = vld [vmem:[#allocation248_spill] sm:$0xff] }
 0x47c   : > { %3490 = vrot.lane.b32.xlu1 %v3441_v24, %s12036_s26  ;;  %v18152_v24 = vld [vmem:[#allocation240_spill] sm:$0xff]  ;;  %v3745_v29 = vmul.f32 %v14539_v51, %v18157_v63  ;;  %v18161_v63 = vld [vmem:[#allocation59_spill] sm:$0xff] }
 0x47d   : > { %v4069_v54 = vmul.f32 %v18152_v24, %v18151_v19  ;;  %v18158_v19 = vld [vmem:[#allocation247_spill] sm:$0xff] }
 0x47e   : > { %v14913_v37 = vpop.permute.xlu0 %3175  ;;  %v14915_v46 = vpop.permute.xlu1 %3177 }
 0x47f   : > { %4134 = vrot.lane.b32.xlu0 %v4084_v0, %s12038_s1 }
 0x480   : > { %4136 = vrot.lane.b32.xlu1 %v4085_v43, %s12038_s1  ;;  %v11979_v43 = vld [vmem:[%s12943_s11 + $0x98] sm:$0xff] }
 0x482   : > { %v14923_v17 = vpop.permute.xlu0 %3821  ;;  %v14925_v58 = vpop.permute.xlu1 %3823 }
 0x483   : > { %3456 = vrot.lane.b32.xlu0 %v3424_v56, %s12036_s26  ;;  %v3762_v56 = vmul.f32 %v11979_v43, %v18156_v36  ;;  %v4082_v43 = vmul.f32 %v18159_v23, %v14159_v40  ;;  %v18163_v40 = vld [vmem:[#allocation254_spill] sm:$0xff] }
 0x484   : > { %3458 = vrot.lane.b32.xlu1 %v3425_v20, %s12036_s26  ;;  %s18232_s26 = sld [smem:[#allocation3_spill]] }
 0x486   : > { %v14933_v8 = vpop.permute.xlu0 %1786  ;;  %v14935_v0 = vpop.permute.xlu1 %1788 }
 0x487   : > { %18153 = vst [vmem:[#allocation129_spill] sm:$0xff] %v14933_v8  ;;  %18154 = vst [vmem:[#allocation130_spill] sm:$0xff] %v14935_v0  ;;  %4102 = vrot.lane.b32.xlu0 %v4068_v15, %s12038_s1  ;;  %v11980_v15 = vld [vmem:[%s12943_s11 + $0x18] sm:$0xff]  ;;  %s12041_s11 = smov 48  }
 0x488   : > { %4104 = vrot.lane.b32.xlu1 %v4069_v54, %s12038_s1  ;;  %v3746_v24 = vmul.f32 %v11980_v15, %v18158_v19  ;;  %v1551_v15 = vmul.f32 %v18161_v63, %v14285_v4  ;;  %v18162_v19 = vld [vmem:[#allocation60_spill] sm:$0xff]  ;;  %v18166_v8 = vld [vmem:[#allocation253_spill] sm:$0xff] }
 0x489   : > { %v4067_v53 = vmul.f32 %v18166_v8, %v14212_v1  ;;  %v10251_v8 = vld [vmem:[%s12101_s14 + $0x48] sm:$0xff] }
 0x48a   : > { %v14943_v61 = vpop.permute.xlu0 %2497  ;;  %v14945_v20 = vpop.permute.xlu1 %2499 }
 0x48b   : > { %3809 = vrot.lane.b32.xlu0 %v3761_v62, %s12037_s28  ;;  %v18160_v62 = vld [vmem:[#allocation251_spill] sm:$0xff] }
 0x48c   : > { %3811 = vrot.lane.b32.xlu1 %v3762_v56, %s12037_s28  ;;  %v4083_v36 = vmul.f32 %v18160_v62, %v14153_v50  ;;  %v4066_v50 = vmul.f32 %v18163_v40, %v14218_v55  ;;  %v18165_v62 = vld [vmem:[#allocation97_spill] sm:$0xff]  ;;  %v10250_v55 = vld [vmem:[%s12101_s14 + $0x40] sm:$0xff]  ;;  %v18170_v40 = vld [vmem:[#allocation187_spill] sm:$0xff] }
 0x48e   : > { %v14953_v54 = vpop.permute.xlu0 %3143  ;;  %v14955_v34 = vpop.permute.xlu1 %3145 }
 0x48f   : > { %3777 = vrot.lane.b32.xlu0 %v3745_v29, %s12037_s28  ;;  %v1552_v29 = vmul.f32 %v18162_v19, %v14279_v6  ;;  %v18167_v6 = vld [vmem:[#allocation108_spill] sm:$0xff] }
 0x490   : > { %3779 = vrot.lane.b32.xlu1 %v3746_v24, %s12037_s28  ;;  %v18164_v24 = vld [vmem:[#allocation96_spill] sm:$0xff]  ;;  %s18233_s28 = sld [smem:[#allocation6_spill]] }
 0x491   : > { %v1872_v23 = vadd.f32 %v18164_v24, %v1551_v15  ;;  %v1873_v0 = vadd.f32 %v18165_v62, %v1552_v29  ;;  %v18169_v15 = vld [vmem:[#allocation111_spill] sm:$0xff] }
 0x492   : > { %v14963_v56 = vpop.permute.xlu0 %3789  ;;  %v14965_v51 = vpop.permute.xlu1 %3791 }
 0x493   : > { %4130 = vrot.lane.b32.xlu0 %v4082_v43, %s12038_s1  ;;  %v2258_v63 = vadd.f32 %v18167_v6, %v1872_v23  ;;  %v18168_v43 = vld [vmem:[#allocation26_spill] sm:$0xff] }
 0x494   : > { %4132 = vrot.lane.b32.xlu1 %v4083_v36, %s12038_s1  ;;  %v2259_v19 = vadd.f32 %v18168_v43, %v1873_v0  ;;  %v11530_v36 = vld [vmem:[%s12081_s25 + $0x4] ss:$8 sps:$4 sm:$0xff]  }
 0x495   : > { %v2579_v29 = vadd.f32 %v18169_v15, %v2258_v63  ;;  %4290 = vmatprep.mubr.bf16.mxu0 %v11530_v36  ;;  %v10259_v63 = vld [vmem:[%s12101_s14 + $0x88] sm:$0xff] }
 0x496   : > { %v14979_v28 = vpop.permute.xlu0 %2204  ;;  %v14981_v4 = vpop.permute.xlu1 %2206  ;;  %v2580_v1 = vadd.f32 %v18170_v40, %v2259_v19  ;;  %v10267_v15 = vld [vmem:[%s12101_s14 + $0xc8] sm:$0xff] }
 0x497   : > { %4098 = vrot.lane.b32.xlu0 %v4066_v50, %s12038_s1  ;;  %v2900_v0 = vadd.f32 %v14614_v33, %v2579_v29  ;;  %v18171_v40 = vld [vmem:[#allocation67_spill] sm:$0xff] }
 0x498   : > { %4100 = vrot.lane.b32.xlu1 %v4067_v53, %s12038_s1  ;;  %v2901_v50 = vadd.f32 %v14616_v7, %v2580_v1  ;;  %v10258_v53 = vld [vmem:[%s12101_s14 + $0x80] sm:$0xff]  ;;  %v1535_v1 = vmul.f32 %v18171_v40, %v18110_v42  ;;  %v18175_v42 = vld [vmem:[#allocation109_spill] sm:$0xff]  ;;  %s18234_s1 = sld [smem:[#allocation13_spill]] }
 0x499   : > { %v3221_v62 = vadd.f32 %v14725_v13, %v2900_v0  ;;  %v10266_v7 = vld [vmem:[%s12101_s14 + $0xc0] sm:$0xff] }
 0x49a   : > { %v14992_v24 = vpop.permute.xlu0 %2850  ;;  %v14994_v23 = vpop.permute.xlu1 %2852  ;;  %v3222_v6 = vadd.f32 %v14727_v31, %v2901_v50  ;;  %v10274_v50 = vld [vmem:[%s12101_s14 + $0x100] sm:$0xff] }
 0x49b   : > { %4625 = vperm.xlu0 %11501, %v10250_v55   ;;  %v3542_v36 = vadd.f32 %v14819_v59, %v3221_v62  ;;  %v18174_v62 = vld [vmem:[#allocation103_spill] sm:$0xff] }
 0x49c   : > { %4630 = vperm.xlu1 %11502, %v10251_v8   ;;  %v3543_v33 = vadd.f32 %v14821_v38, %v3222_v6  ;;  %v18172_v8 = vld [vmem:[#allocation68_spill] sm:$0xff] }
 0x49d   : > { %v3863_v55 = vadd.f32 %v14923_v17, %v3542_v36  ;;  %v1536_v59 = vmul.f32 %v18172_v8, %v18108_v9 }
 0x49e   : > { %v15002_v43 = vpop.permute.xlu0 %3496  ;;  %v15004_v19 = vpop.permute.xlu1 %3498  ;;  %v3864_v13 = vadd.f32 %v14925_v58, %v3543_v33 }
 0x49f   : > { %4722 = vperm.xlu0 %11501, %v10258_v53   ;;  %v18173_v53 = vld [vmem:[#allocation102_spill] sm:$0xff]  ;;  %v1857_v58 = vadd.f32 %v18174_v62, %v1536_v59  ;;  %v10283_v62 = vld [vmem:[%s12101_s14 + $0x148] sm:$0xff] }
 0x4a0   : > { %4727 = vperm.xlu1 %11502, %v10259_v63   ;;  %v1856_v17 = vadd.f32 %v18173_v53, %v1535_v1  ;;  %v10275_v63 = vld [vmem:[%s12101_s14 + $0x108] sm:$0xff]  ;;  %v10253_v1 = vld [vmem:[%s12101_s14 + $0x58] sm:$0xff] }
 0x4a2   : > { %v4143_v31 = vpop.permute.xlu0 %4142  ;;  %v4145_v29 = vpop.permute.xlu1 %4144  ;;  %v2242_v9 = vadd.f32 %v18175_v42, %v1856_v17 }
 0x4a3   : > { %v4184_v0 = vadd.f32 %v4143_v31, %v3863_v55  ;;  %v4185_v38 = vadd.f32 %v4145_v29, %v3864_v13  ;;  %4803 = vperm.xlu0 %11501, %v10266_v7   ;;  %v18176_v55 = vld [vmem:[#allocation259_spill] sm:$0xff]  ;;  %v10252_v7 = vld [vmem:[%s12101_s14 + $0x50] sm:$0xff]  ;;  %v18177_v13 = vld [vmem:[#allocation117_spill] sm:$0xff] }
 0x4a4   : > { %4808 = vperm.xlu1 %11502, %v10267_v15   ;;  %v2243_v31 = vadd.f32 %v18176_v55, %v1857_v58  ;;  %v2563_v15 = vadd.f32 %v18177_v13, %v2242_v9  ;;  %v18178_v29 = vld [vmem:[#allocation34_spill] sm:$0xff]  ;;  %v10291_v13 = vld [vmem:[%s12101_s14 + $0x188] sm:$0xff] }
 0x4a5   : > { %v4205_v6 = vpack.c.bf16 %v4185_v38, %v4184_v0 }
 0x4a6   : > { %v15020_v36 = vpop.permute.xlu0 %2172  ;;  %v15022_v33 = vpop.permute.xlu1 %2174  ;;  %v2564_v40 = vadd.f32 %v18178_v29, %v2243_v31  ;;  %v2884_v0 = vadd.f32 %v14671_v5, %v2563_v15 }
 0x4a7   : > { %4884 = vperm.xlu0 %11501, %v10274_v50   ;;  %10742 = vmatprep.subr.bf16.mxu0 %v4205_v6  ;;  %v10282_v50 = vld [vmem:[%s12101_s14 + $0x140] sm:$0xff] }
 0x4a8   : > { %4889 = vperm.xlu1 %11502, %v10275_v63   ;;  %v2885_v38 = vadd.f32 %v14673_v60, %v2564_v40  ;;  %v3205_v53 = vadd.f32 %v14765_v41, %v2884_v0  ;;  %v10260_v60 = vld [vmem:[%s12101_s14 + $0x90] sm:$0xff]  ;;  %v10298_v0 = vld [vmem:[%s12101_s14 + $0x1c0] sm:$0xff] }
 0x4aa   : > { %v15030_v8 = vpop.permute.xlu0 %2818  ;;  %v15032_v59 = vpop.permute.xlu1 %2820  ;;  %v3206_v17 = vadd.f32 %v14767_v11, %v2885_v38  ;;  %v3526_v63 = vadd.f32 %v14873_v22, %v3205_v53  ;;  %v10261_v11 = vld [vmem:[%s12101_s14 + $0x98] sm:$0xff]  ;;  %v10290_v22 = vld [vmem:[%s12101_s14 + $0x180] sm:$0xff]  ;;  %v10299_v38 = vld [vmem:[%s12101_s14 + $0x1c8] sm:$0xff] }
 0x4ab   : > { %4635 = vperm.xlu0 %11501, %v10252_v7  }
 0x4ac   : > { %4640 = vperm.xlu1 %11502, %v10253_v1   ;;  %v3527_v5 = vadd.f32 %v14875_v48, %v3206_v17  ;;  %v3847_v42 = vadd.f32 %v14963_v56, %v3526_v63  ;;  %v10268_v56 = vld [vmem:[%s12101_s14 + $0xd0] sm:$0xff] }
 0x4ad   : > { %v10276_v17 = vld [vmem:[%s12101_s14 + $0x110] sm:$0xff] }
 0x4ae   : > { %v15040_v58 = vpop.permute.xlu0 %3464  ;;  %v15042_v6 = vpop.permute.xlu1 %3466  ;;  %v3848_v41 = vadd.f32 %v14965_v51, %v3527_v5  ;;  %v10269_v51 = vld [vmem:[%s12101_s14 + $0xd8] sm:$0xff] }
 0x4af   : > { %4965 = vperm.xlu0 %11501, %v10282_v50  }
 0x4b0   : > { %4970 = vperm.xlu1 %11502, %v10283_v62   ;;  %v10277_v62 = vld [vmem:[%s12101_s14 + $0x118] sm:$0xff] }
 0x4b2   : > { %v4111_v9 = vpop.permute.xlu0 %4110  ;;  %v4113_v55 = vpop.permute.xlu1 %4112 }
 0x4b3   : > { %v4168_v31 = vadd.f32 %v4111_v9, %v3847_v42  ;;  %v4169_v7 = vadd.f32 %v4113_v55, %v3848_v41  ;;  %4732 = vperm.xlu0 %11501, %v10260_v60   ;;  %v10254_v60 = vld [vmem:[%s12101_s14 + $0x60] sm:$0xff]  ;;  %v10255_v42 = vld [vmem:[%s12101_s14 + $0x68] sm:$0xff] }
 0x4b4   : > { %4737 = vperm.xlu1 %11502, %v10261_v11   ;;  %v18180_v9 = vld [vmem:[#allocation82_spill] sm:$0xff] }
 0x4b5   : > { %v4197_v48 = vpack.c.bf16 %v4169_v7, %v4168_v31  ;;  %v1549_v55 = vmul.f32 %v18180_v9, %v18137_v30  ;;  %v18181_v31 = vld [vmem:[#allocation83_spill] sm:$0xff]  ;;  %v18185_v30 = vld [vmem:[#allocation122_spill] sm:$0xff] }
 0x4b6   : > { %v15052_v15 = vpop.permute.xlu0 %2525  ;;  %v15054_v29 = vpop.permute.xlu1 %2527  ;;  %v1550_v7 = vmul.f32 %v18181_v31, %v18139_v52  ;;  %v10262_v52 = vld [vmem:[%s12101_s14 + $0xa0] sm:$0xff] }
 0x4b7   : > { %5046 = vperm.xlu0 %11501, %v10290_v22   ;;  %10743 = vmatpush3.bf16.msra.mxu0 %v4197_v48  ;;  %v10284_v22 = vld [vmem:[%s12101_s14 + $0x150] sm:$0xff]  ;;  %v18182_v48 = vld [vmem:[#allocation110_spill] sm:$0xff] }
 0x4b8   : > { %5051 = vperm.xlu1 %11502, %v10291_v13   ;;  %v1870_v13 = vadd.f32 %v18182_v48, %v1549_v55  ;;  %v10263_v55 = vld [vmem:[%s12101_s14 + $0xa8] sm:$0xff] }
 0x4ba   : > { %v15058_v40 = vpop.permute.xlu0 %3171  ;;  %v15060_v1 = vpop.permute.xlu1 %3173 }
 0x4bb   : > { %4813 = vperm.xlu0 %11501, %v10268_v56   ;;  %v18183_v56 = vld [vmem:[#allocation186_spill] sm:$0xff] }
 0x4bc   : > { %4818 = vperm.xlu1 %11502, %v10269_v51   ;;  %v1871_v51 = vadd.f32 %v18183_v56, %v1550_v7  ;;  %v10292_v56 = vld [vmem:[%s12101_s14 + $0x190] sm:$0xff] }
 0x4be   : > { %v3818_v50 = vpop.permute.xlu0 %3817  ;;  %v3820_v53 = vpop.permute.xlu1 %3819  ;;  %v2257_v9 = vadd.f32 %v18185_v30, %v1871_v51 }
 0x4bf   : > { %5127 = vperm.xlu0 %11501, %v10298_v0   ;;  %v10285_v0 = vld [vmem:[%s12101_s14 + $0x158] sm:$0xff] }
 0x4c0   : > { %5132 = vperm.xlu1 %11502, %v10299_v38  }
 0x4c2   : > { %v15066_v63 = vpop.permute.xlu0 %2493  ;;  %v15068_v5 = vpop.permute.xlu1 %2495 }
 0x4c3   : > { %18179 = vst [vmem:[#allocation257_spill] sm:$0xff] %v15068_v5  ;;  %4894 = vperm.xlu0 %11501, %v10276_v17  }
 0x4c4   : > { %4899 = vperm.xlu1 %11502, %v10277_v62   ;;  %v18184_v62 = vld [vmem:[#allocation121_spill] sm:$0xff] }
 0x4c5   : > { %v2256_v5 = vadd.f32 %v18184_v62, %v1870_v13 }
 0x4c6   : > { %v15072_v41 = vpop.permute.xlu0 %3139  ;;  %v15074_v11 = vpop.permute.xlu1 %3141 }
 0x4c7   : > { %4645 = vperm.xlu0 %11501, %v10254_v60   ;;  %v2577_v60 = vadd.f32 %v14715_v27, %v2256_v5  ;;  %v10293_v5 = vld [vmem:[%s12101_s14 + $0x198] sm:$0xff] }
 0x4c8   : > { %4650 = vperm.xlu1 %11502, %v10255_v42   ;;  %v2578_v42 = vadd.f32 %v14717_v14, %v2257_v9 }
 0x4c9   : > { %v2898_v48 = vadd.f32 %v14805_v3, %v2577_v60  ;;  %v18187_v3 = vld [vmem:[#allocation93_spill] sm:$0xff] }
 0x4ca   : > { %v15084_v38 = vpop.permute.xlu0 %3785  ;;  %v15086_v17 = vpop.permute.xlu1 %3787  ;;  %v2899_v13 = vadd.f32 %v14807_v10, %v2578_v42  ;;  %v1534_v30 = vmul.f32 %v18187_v3, %v18147_v32  ;;  %v18189_v60 = vld [vmem:[#allocation33_spill] sm:$0xff] }
 0x4cb   : > { %4975 = vperm.xlu0 %11501, %v10284_v22   ;;  %v3219_v22 = vadd.f32 %v14913_v37, %v2898_v48  ;;  %v10270_v37 = vld [vmem:[%s12101_s14 + $0xe0] sm:$0xff] }
 0x4cc   : > { %4980 = vperm.xlu1 %11502, %v10285_v0   ;;  %v3220_v27 = vadd.f32 %v14915_v46, %v2899_v13  ;;  %v18186_v0 = vld [vmem:[#allocation92_spill] sm:$0xff]  ;;  %v1855_v42 = vadd.f32 %v18189_v60, %v1534_v30  ;;  %v10271_v13 = vld [vmem:[%s12101_s14 + $0xe8] sm:$0xff]  ;;  %v10278_v30 = vld [vmem:[%s12101_s14 + $0x120] sm:$0xff] }
 0x4cd   : > { %v1533_v62 = vmul.f32 %v18186_v0, %v18145_v45  ;;  %v3540_v10 = vadd.f32 %v15002_v43, %v3219_v22  ;;  %v18188_v46 = vld [vmem:[#allocation116_spill] sm:$0xff] }
 0x4ce   : > { %v15094_v31 = vpop.permute.xlu0 %2846  ;;  %v15096_v7 = vpop.permute.xlu1 %2848  ;;  %v3541_v9 = vadd.f32 %v15004_v19, %v3220_v27  ;;  %v2241_v43 = vadd.f32 %v14659_v57, %v1855_v42 }
 0x4cf   : > { %4742 = vperm.xlu0 %11501, %v10262_v52   ;;  %v1854_v52 = vadd.f32 %v18188_v46, %v1533_v62 }
 0x4d0   : > { %4747 = vperm.xlu1 %11502, %v10263_v55   ;;  %v3861_v55 = vadd.f32 %v3818_v50, %v3540_v10  ;;  %v3862_v48 = vadd.f32 %v3820_v53, %v3541_v9  ;;  %v10301_v53 = vld [vmem:[%s12101_s14 + $0x1d8] sm:$0xff]  ;;  %v10279_v10 = vld [vmem:[%s12101_s14 + $0x128] sm:$0xff] }
 0x4d1   : > { %v2240_v32 = vadd.f32 %v14657_v49, %v1854_v52 }
 0x4d2   : > { %v15104_v14 = vpop.permute.xlu0 %3492  ;;  %v15106_v51 = vpop.permute.xlu1 %3494 }
 0x4d3   : > { %5056 = vperm.xlu0 %11501, %v10292_v56   ;;  %v10300_v56 = vld [vmem:[%s12101_s14 + $0x1d0] sm:$0xff]  ;;  %v2561_v27 = vadd.f32 %v14755_v39, %v2240_v32 }
 0x4d4   : > { %5061 = vperm.xlu1 %11502, %v10293_v5   ;;  %v2562_v5 = vadd.f32 %v14757_v26, %v2241_v43 }
 0x4d5   : > { %v2882_v49 = vadd.f32 %v14859_v25, %v2561_v27 }
 0x4d6   : > { %v4139_v45 = vpop.permute.xlu0 %4138  ;;  %v4141_v0 = vpop.permute.xlu1 %4140  ;;  %v2883_v57 = vadd.f32 %v14861_v44, %v2562_v5  ;;  %v10256_v44 = vld [vmem:[%s12101_s14 + $0x70] sm:$0xff]  ;;  %v10294_v5 = vld [vmem:[%s12101_s14 + $0x1a0] sm:$0xff] }
 0x4d7   : > { %v4182_v22 = vadd.f32 %v4139_v45, %v3861_v55  ;;  %v4183_v19 = vadd.f32 %v4141_v0, %v3862_v48  ;;  %4823 = vperm.xlu0 %11501, %v10270_v37   ;;  %v3203_v39 = vadd.f32 %v14953_v54, %v2882_v49 }
 0x4d8   : > { %4828 = vperm.xlu1 %11502, %v10271_v13   ;;  %v3204_v26 = vadd.f32 %v14955_v34, %v2883_v57  ;;  %v10257_v34 = vld [vmem:[%s12101_s14 + $0x78] sm:$0xff]  ;;  %v10295_v57 = vld [vmem:[%s12101_s14 + $0x1a8] sm:$0xff] }
 0x4d9   : > { %v4204_v50 = vpack.c.bf16 %v4183_v19, %v4182_v22  ;;  %v3524_v46 = vadd.f32 %v15040_v58, %v3203_v39  ;;  %v10286_v58 = vld [vmem:[%s12101_s14 + $0x160] sm:$0xff]  ;;  %v18190_v22 = vld [vmem:[#allocation100_spill] sm:$0xff] }
 0x4da   : > { %v15124_v62 = vpop.permute.xlu0 %2814  ;;  %v15126_v3 = vpop.permute.xlu1 %2816  ;;  %v3525_v25 = vadd.f32 %v15042_v6, %v3204_v26  ;;  %v10287_v6 = vld [vmem:[%s12101_s14 + $0x168] sm:$0xff]  ;;  %v1547_v19 = vmul.f32 %v18190_v22, %v18073_v35  ;;  %v18193_v26 = vld [vmem:[#allocation125_spill] sm:$0xff] }
 0x4db   : > { %5137 = vperm.xlu0 %11501, %v10300_v56   ;;  %10744 = vmatprep.subr.bf16.mxu0 %v4204_v50  ;;  %v3845_v52 = vadd.f32 %v15084_v38, %v3524_v46  ;;  %v10264_v38 = vld [vmem:[%s12101_s14 + $0xb0] sm:$0xff]  ;;  %v18191_v56 = vld [vmem:[#allocation101_spill] sm:$0xff]  ;;  %v18194_v46 = vld [vmem:[#allocation126_spill] sm:$0xff] }
 0x4dc   : > { %5142 = vperm.xlu1 %11502, %v10301_v53   ;;  %v3846_v54 = vadd.f32 %v15086_v17, %v3525_v25  ;;  %v10265_v17 = vld [vmem:[%s12101_s14 + $0xb8] sm:$0xff]  ;;  %v1548_v27 = vmul.f32 %v18191_v56, %v18071_v47  ;;  %v1868_v50 = vadd.f32 %v14705_v12, %v1547_v19  ;;  %v18192_v53 = vld [vmem:[#allocation123_spill] sm:$0xff]  ;;  %v10272_v47 = vld [vmem:[%s12101_s14 + $0xf0] sm:$0xff] }
 0x4de   : > { %v15134_v9 = vpop.permute.xlu0 %3460  ;;  %v15136_v37 = vpop.permute.xlu1 %3462  ;;  %v1869_v49 = vadd.f32 %v18192_v53, %v1548_v27  ;;  %v10303_v27 = vld [vmem:[%s12101_s14 + $0x1e8] sm:$0xff] }
 0x4df   : > { %4904 = vperm.xlu0 %11501, %v10278_v30  }
 0x4e0   : > { %4909 = vperm.xlu1 %11502, %v10279_v10   ;;  %v2254_v10 = vadd.f32 %v18193_v26, %v1868_v50  ;;  %v2255_v35 = vadd.f32 %v18194_v46, %v1869_v49  ;;  %v10281_v46 = vld [vmem:[%s12101_s14 + $0x138] sm:$0xff] }
 0x4e2   : > { %v4107_v60 = vpop.permute.xlu0 %4106  ;;  %v4109_v42 = vpop.permute.xlu1 %4108  ;;  %v2575_v25 = vadd.f32 %v14903_v18, %v2254_v10  ;;  %v2576_v12 = vadd.f32 %v14905_v2, %v2255_v35  ;;  %v10302_v18 = vld [vmem:[%s12101_s14 + $0x1e0] sm:$0xff]  ;;  %v18200_v2 = vld [vmem:[#allocation39_spill] sm:$0xff] }
 0x4e3   : > { %v4166_v55 = vadd.f32 %v4107_v60, %v3845_v52  ;;  %v4167_v48 = vadd.f32 %v4109_v42, %v3846_v54  ;;  %4655 = vperm.xlu0 %11501, %v10256_v44   ;;  %v10273_v44 = vld [vmem:[%s12101_s14 + $0xf8] sm:$0xff]  ;;  %v18196_v60 = vld [vmem:[#allocation106_spill] sm:$0xff] }
 0x4e4   : > { %4660 = vperm.xlu1 %11502, %v10257_v34   ;;  %v18195_v34 = vld [vmem:[#allocation250_spill] sm:$0xff] }
 0x4e5   : > { %v4196_v13 = vpack.c.bf16 %v4167_v48, %v4166_v55  ;;  %v1531_v42 = vmul.f32 %v18196_v60, %v18195_v34  ;;  %v18197_v55 = vld [vmem:[#allocation249_spill] sm:$0xff]  ;;  %v18198_v48 = vld [vmem:[#allocation107_spill] sm:$0xff] }
 0x4e6   : > { %v15146_v45 = vpop.permute.xlu0 %3167  ;;  %v15148_v0 = vpop.permute.xlu1 %3169 }
 0x4e7   : > { %4985 = vperm.xlu0 %11501, %v10286_v58   ;;  %10745 = vmatpush3.bf16.msra.mxu0 %v4196_v13  ;;  %v1532_v58 = vmul.f32 %v18198_v48, %v18197_v55  ;;  %v2896_v13 = vadd.f32 %v14992_v24, %v2575_v25  ;;  %v10288_v25 = vld [vmem:[%s12101_s14 + $0x170] sm:$0xff] }
 0x4e8   : > { %4990 = vperm.xlu1 %11502, %v10287_v6   ;;  %v2897_v6 = vadd.f32 %v14994_v23, %v2576_v12 }
 0x4e9   : > { %v1853_v22 = vadd.f32 %v18200_v2, %v1532_v58  ;;  %v3217_v19 = vadd.f32 %v15058_v40, %v2896_v13  ;;  %v10280_v40 = vld [vmem:[%s12101_s14 + $0x130] sm:$0xff]  ;;  %v10297_v2 = vld [vmem:[%s12101_s14 + $0x1b8] sm:$0xff] }
 0x4ea   : > { %v3814_v32 = vpop.permute.xlu0 %3813  ;;  %v3816_v43 = vpop.permute.xlu1 %3815  ;;  %v3218_v56 = vadd.f32 %v15060_v1, %v2897_v6  ;;  %v18206_v6 = vld [vmem:[#allocation128_spill] sm:$0xff] }
 0x4eb   : > { %4752 = vperm.xlu0 %11501, %v10264_v38   ;;  %v18199_v38 = vld [vmem:[#allocation124_spill] sm:$0xff]  ;;  %v2239_v23 = vadd.f32 %v14847_v16, %v1853_v22  ;;  %v3538_v53 = vadd.f32 %v15104_v14, %v3217_v19  ;;  %v18207_v22 = vld [vmem:[#allocation197_spill] sm:$0xff]  ;;  %v18208_v19 = vld [vmem:[#allocation191_spill] sm:$0xff] }
 0x4ec   : > { %4757 = vperm.xlu1 %11502, %v10265_v17   ;;  %v1852_v17 = vadd.f32 %v18199_v38, %v1531_v42  ;;  %v3539_v49 = vadd.f32 %v15106_v51, %v3218_v56  ;;  %v18204_v42 = vld [vmem:[#allocation115_spill] sm:$0xff]  ;;  %v1529_v56 = vmul.f32 %v18208_v19, %v18207_v22  ;;  %v11533_v22 = vld [vmem:[%s12081_s25 + $0x10] ss:$8 sps:$4 sm:$0xff]  }
 0x4ed   : > { %v2560_v1 = vadd.f32 %v14945_v20, %v2239_v23  ;;  %v3859_v26 = vadd.f32 %v3814_v32, %v3538_v53  ;;  %v10289_v32 = vld [vmem:[%s12101_s14 + $0x178] sm:$0xff]  ;;  %v11534_v19 = vld [vmem:[%s12081_s25 + $0x24] ss:$8 sps:$4 sm:$0xff]  }
 0x4ee   : > { %v15160_v30 = vpop.permute.xlu0 %3135  ;;  %v15162_v39 = vpop.permute.xlu1 %3137  ;;  %v2238_v24 = vadd.f32 %v14845_v21, %v1852_v17  ;;  %v3860_v10 = vadd.f32 %v3816_v43, %v3539_v49  ;;  %v18201_v43 = vld [vmem:[#allocation205_spill] sm:$0xff] }
 0x4ef   : > { %5066 = vperm.xlu0 %11501, %v10294_v5   ;;  %v2881_v14 = vadd.f32 %v15032_v59, %v2560_v1  ;;  %v18203_v59 = vld [vmem:[#allocation204_spill] sm:$0xff]  ;;  %v18211_v1 = vld [vmem:[#allocation129_spill] sm:$0xff] }
 0x4f0   : > { %5071 = vperm.xlu1 %11502, %v10295_v57   ;;  %v2559_v57 = vadd.f32 %v14943_v61, %v2238_v24  ;;  %v1546_v55 = vmul.f32 %v18204_v42, %v18203_v59  ;;  %v18210_v24 = vld [vmem:[#allocation120_spill] sm:$0xff]  ;;  %v11542_v42 = vld [vmem:[%s12061_s9 + $0x28] sm:$0xff]  }
 0x4f1   : > { %v3202_v20 = vadd.f32 %v15074_v11, %v2881_v14  ;;  %v18205_v11 = vld [vmem:[#allocation127_spill] sm:$0xff] }
 0x4f2   : > { %v3782_v52 = vpop.permute.xlu0 %3781  ;;  %v3784_v54 = vpop.permute.xlu1 %3783  ;;  %v2880_v16 = vadd.f32 %v15030_v8, %v2559_v57 }
 0x4f3   : > { %4833 = vperm.xlu0 %11501, %v10272_v47   ;;  %v3523_v58 = vadd.f32 %v15136_v37, %v3202_v20 }
 0x4f4   : > { %4838 = vperm.xlu1 %11502, %v10273_v44   ;;  %v3201_v61 = vadd.f32 %v15072_v41, %v2880_v16  ;;  %v18202_v44 = vld [vmem:[#allocation114_spill] sm:$0xff]  ;;  %v10296_v41 = vld [vmem:[%s12101_s14 + $0x1b0] sm:$0xff] }
 0x4f5   : > { %v1545_v34 = vmul.f32 %v18202_v44, %v18201_v43  ;;  %v3844_v17 = vadd.f32 %v3784_v54, %v3523_v58  ;;  %v10304_v54 = vld [vmem:[%s12101_s14 + $0x1f0] sm:$0xff] }
 0x4f6   : > { %v15182_v5 = vpop.permute.xlu0 %3488  ;;  %v15184_v50 = vpop.permute.xlu1 %3490  ;;  %v3522_v48 = vadd.f32 %v15134_v9, %v3201_v61  ;;  %v11540_v61 = vld [vmem:[%s12061_s9 + $0x38] sm:$0xff]  }
 0x4f7   : > { %5147 = vperm.xlu0 %11501, %v10302_v18   ;;  %v1866_v13 = vadd.f32 %v18205_v11, %v1545_v34  ;;  %v1867_v18 = vadd.f32 %v18206_v6, %v1546_v55  ;;  %11026 = vmatprep.subr.bf16.mxu1 %v11540_v61  ;;  %v11543_v11 = vld [vmem:[%s12061_s9 + $0x20] sm:$0xff]  }
 0x4f8   : > { %5152 = vperm.xlu1 %11502, %v10303_v27   ;;  %v3843_v38 = vadd.f32 %v3782_v52, %v3522_v48  ;;  %v18209_v27 = vld [vmem:[#allocation196_spill] sm:$0xff]  ;;  %v1850_v52 = vadd.f32 %v18211_v1, %v1529_v56  ;;  %11027 = vmatpush3.bf16.msra.mxu1 %v11540_v61  ;;  %v11536_v56 = vld [vmem:[%s12081_s25 + $0x20] ss:$8 sps:$4 sm:$0xff]  }
 0x4f9   : > { %v1530_v9 = vmul.f32 %v18210_v24, %v18209_v27  ;;  %v2252_v53 = vadd.f32 %v14979_v28, %v1866_v13  ;;  %v2253_v49 = vadd.f32 %v14981_v4, %v1867_v18  ;;  %v10305_v28 = vld [vmem:[%s12101_s14 + $0x1f8] sm:$0xff] }
 0x4fa   : > { %v4135_v35 = vpop.permute.xlu0 %4134  ;;  %v4137_v21 = vpop.permute.xlu1 %4136  ;;  %v2236_v4 = vadd.f32 %v15020_v36, %v1850_v52  ;;  %v11537_v27 = vld [vmem:[%s12081_s25 + $0x34] ss:$8 sps:$4 sm:$0xff]   ;;  %v11539_v24 = vld [vmem:[%s12081_s25 + $0x30] ss:$8 sps:$4 sm:$0xff]  }
 0x4fb   : > { %v4180_v47 = vadd.f32 %v4135_v35, %v3859_v26  ;;  %v4181_v51 = vadd.f32 %v4137_v21, %v3860_v10  ;;  %4914 = vperm.xlu0 %11501, %v10280_v40   ;;  %v18212_v26 = vld [vmem:[#allocation130_spill] sm:$0xff]  ;;  %v2574_v35 = vadd.f32 %v15054_v29, %v2253_v49 }
 0x4fc   : > { %4919 = vperm.xlu1 %11502, %v10281_v46   ;;  %v1851_v10 = vadd.f32 %v18212_v26, %v1530_v9  ;;  %v2573_v46 = vadd.f32 %v15052_v15, %v2252_v53  ;;  %v11541_v15 = vld [vmem:[%s12061_s9 + $0x30] sm:$0xff]   ;;  %v2557_v20 = vadd.f32 %v15066_v63, %v2236_v4  ;;  %v4558_v29 = vld [vmem:[%s12101_s14] sm:$0xff]  ;;  %v11544_v9 = vld [vmem:[%s12061_s9 + $0x18] sm:$0xff]  }
 0x4fd   : > { %v4203_v12 = vpack.c.bf16 %v4181_v51, %v4180_v47  ;;  %11028 = vmatprep.subr.bf16.mxu1 %v11541_v15  ;;  %v11547_v53 = vld [vmem:[%s12061_s9] sm:$0xff]  }
 0x4fe   : > { %v15202_v60 = vpop.permute.xlu0 %3456  ;;  %v15204_v8 = vpop.permute.xlu1 %3458  ;;  %v2237_v47 = vadd.f32 %v15022_v33, %v1851_v10  ;;  %v2894_v51 = vadd.f32 %v15094_v31, %v2573_v46  ;;  %v4559_v33 = vld [vmem:[%s12101_s14 + $0x8] sm:$0xff]  ;;  %v2878_v31 = vadd.f32 %v15124_v62, %v2557_v20  ;;  %11029 = vmatpush3.bf16.msra.mxu1 %v11541_v15 }
 0x4ff   : > { %4995 = vperm.xlu0 %11501, %v10288_v25   ;;  %10746 = vmatprep.subr.bf16.mxu0 %v4203_v12  ;;  %v2895_v25 = vadd.f32 %v15096_v7, %v2574_v35  ;;  %v18213_v12 = vld [vmem:[#allocation257_spill] sm:$0xff] }
 0x500   : > { %5000 = vperm.xlu1 %11502, %v10289_v32   ;;  %v2558_v36 = vadd.f32 %v18213_v12, %v2237_v47  ;;  %v3215_v32 = vadd.f32 %v15146_v45, %v2894_v51  ;;  %v3199_v45 = vadd.f32 %v15160_v30, %v2878_v31  ;;  %11030 = vmatprep.subr.bf16.mxu1 %v11542_v42 }
 0x501   : > { %v3216_v43 = vadd.f32 %v15148_v0, %v2895_v25 }
 0x502   : > { %v4103_v37 = vpop.permute.xlu0 %4102  ;;  %v4105_v23 = vpop.permute.xlu1 %4104  ;;  %v2879_v34 = vadd.f32 %v15126_v3, %v2558_v36  ;;  %v3536_v63 = vadd.f32 %v15182_v5, %v3215_v32  ;;  %v3520_v3 = vadd.f32 %v15202_v60, %v3199_v45  ;;  %11031 = vmatpush3.bf16.msra.mxu1 %v11542_v42  ;;  %v15268_v45 = vld [vmem:[%s12071_s17] ss:$0 sm:$0xff] }
 0x503   : > { %v4164_v40 = vadd.f32 %v4103_v37, %v3843_v38  ;;  %v4165_v57 = vadd.f32 %v4105_v23, %v3844_v17  ;;  %5076 = vperm.xlu0 %11501, %v10296_v41   ;;  %v3537_v59 = vadd.f32 %v15184_v50, %v3216_v43  ;;  %11032 = vmatprep.subr.bf16.mxu1 %v11543_v11  ;;  %v11528_v17 = vld [vmem:[%s12081_s25] ss:$8 sps:$4 sm:$0xff]   ;;  %v11545_v37 = vld [vmem:[%s12061_s9 + $0x10] sm:$0xff]  }
 0x504   : > { %5081 = vperm.xlu1 %11502, %v10297_v2   ;;  %v3200_v0 = vadd.f32 %v15162_v39, %v2879_v34  ;;  %v11531_v2 = vld [vmem:[%s12081_s25 + $0x14] ss:$8 sps:$4 sm:$0xff]   ;;  %v11546_v23 = vld [vmem:[%s12061_s9 + $0x8] sm:$0xff]  }
 0x505   : > { %v4195_v21 = vpack.c.bf16 %v4165_v57, %v4164_v40 }
 0x506   : > { %v3810_v16 = vpop.permute.xlu0 %3809  ;;  %v3812_v14 = vpop.permute.xlu1 %3811  ;;  %v3521_v5 = vadd.f32 %v15204_v8, %v3200_v0  ;;  %11033 = vmatpush3.bf16.msra.mxu1 %v11543_v11 }
 0x507   : > { %5157 = vperm.xlu0 %11501, %v10304_v54   ;;  %10747 = vmatpush3.bf16.msra.mxu0 %v4195_v21  ;;  %v3857_v55 = vadd.f32 %v3810_v16, %v3536_v63  ;;  %v3858_v62 = vadd.f32 %v3812_v14, %v3537_v59  ;;  %v15264_v63 = vld [vmem:[%s12066_s13] ss:$0 sm:$0xff] }
 0x508   : > { %5162 = vperm.xlu1 %11502, %v10305_v28   ;;  %11034 = vmatprep.subr.bf16.mxu1 %v11544_v9 }
 0x50a   : > { %v3778_v7 = vpop.permute.xlu0 %3777  ;;  %v3780_v44 = vpop.permute.xlu1 %3779  ;;  %11035 = vmatpush3.bf16.msra.mxu1 %v11544_v9 }
 0x50b   : > { %4568 = vperm.xlu0 %11501, %v4558_v29   ;;  %v3841_v13 = vadd.f32 %v3778_v7, %v3520_v3  ;;  %v3842_v6 = vadd.f32 %v3780_v44, %v3521_v5  ;;  %11036 = vmatprep.subr.bf16.mxu1 %v11545_v37 }
 0x50c   : > { %4573 = vperm.xlu1 %11502, %v4559_v33  }
 0x50e   : > { %v4131_v48 = vpop.permute.xlu0 %4130  ;;  %v4133_v58 = vpop.permute.xlu1 %4132  ;;  %11037 = vmatpush3.bf16.msra.mxu1 %v11545_v37 }
 0x50f   : > { %v4178_v50 = vadd.f32 %v4131_v48, %v3857_v55  ;;  %v4179_v41 = vadd.f32 %v4133_v58, %v3858_v62  ;;  %11038 = vmatprep.subr.bf16.mxu1 %v11546_v23 }
 0x511   : > { %v4202_v30 = vpack.c.bf16 %v4179_v41, %v4178_v50 }
 0x512   : > { %v4099_v39 = vpop.permute.xlu0 %4098  ;;  %v4101_v18 = vpop.permute.xlu1 %4100  ;;  %11039 = vmatpush3.bf16.msra.mxu1 %v11546_v23 }
 0x513   : > { %v4162_v38 = vadd.f32 %v4099_v39, %v3841_v13  ;;  %v4163_v60 = vadd.f32 %v4101_v18, %v3842_v6  ;;  %10748 = vmatprep.subr.bf16.mxu0 %v4202_v30  ;;  %11040 = vmatprep.subr.bf16.mxu1 %v11547_v53 }
 0x515   : > { %v4194_v8 = vpack.c.bf16 %v4163_v60, %v4162_v38 }
 0x516   : > { %11041 = vmatpush3.bf16.msra.mxu1 %v11547_v53  ;;  %v15278_v13 = vpop.permute.xlu0 %4625 }
 0x517   : > { %10749 = vmatpush3.bf16.msra.mxu0 %v4194_v8  ;;  %v15259_v7 = vpop.permute.xlu1 %4630 }
 0x51a   : > { %4291 = vmatmul.mubr.bf16.vlgmr.msra.gmra.mxu0 %v11528_v17  ;;  %v15288_v17 = vpop.permute.xlu0 %4722 }
 0x51b   : > { %4298 = vmatprep.mubr.bf16.mxu0 %v11531_v2  ;;  %v15261_v44 = vpop.permute.xlu1 %4727 }
 0x51f   : > { %v15271_v62 = vpop.permute.xlu1 %4808 }
 0x522   : > { %4299 = vmatmul.mubr.bf16.gmra.mxu0 %v11533_v22 }
 0x523   : > { %4306 = vmatprep.mubr.bf16.mxu0 %v11534_v19  ;;  %v15276_v11 = vpop.permute.xlu1 %4889 }
 0x527   : > { %v15285_v38 = vpop.permute.xlu1 %4640 }
 0x52a   : > { %4307 = vmatmul.mubr.bf16.gmra.mxu0 %v11536_v56 }
 0x52b   : > { %4314 = vmatprep.mubr.bf16.mxu0 %v11537_v27 }
 0x532   : > { %4315 = vmatmul.mubr.bf16.gmra.mxu0 %v11539_v24 }
 0x5da   : > { %v10750_v49 = vpop.f32.mrf.mxu0 }
 0x5dc   : > { %v10751_v40 = vpop.f32.mrf.mxu0 }
 0x5dd   : > { %v10752_v52 = vadd.f32 %v10751_v40, %v10750_v49  ;;  %v15302_v49 = vpop.permute.xlu1 %4970 }
 0x5de   : > { %v10753_v57 = vpop.f32.mrf.mxu0 }
 0x5e0   : > { %v10754_v1 = vpop.f32.mrf.mxu0 }
 0x5e1   : > { %v10755_v54 = vadd.f32 %v10754_v1, %v10753_v57  ;;  %v15305_v57 = vpop.permute.xlu0 %4803 }
 0x5e2   : > { %v10756_v26 = vpop.f32.mrf.mxu0 }
 0x5e3   : > { %v4323_v10 = vpack.c.bf16 %v10755_v54, %v10752_v52 }
 0x5e4   : > { %v10757_v46 = vpop.f32.mrf.mxu0 }
 0x5e5   : > { %11042 = vmatprep.mubr.bf16.mxu1 %v4323_v10  ;;  %v10758_v28 = vadd.f32 %v10757_v46, %v10756_v26  ;;  %v15312_v46 = vpop.permute.xlu1 %4737 }
 0x5e6   : > { %v10759_v35 = vpop.f32.mrf.mxu0 }
 0x5e8   : > { %v10760_v21 = vpop.f32.mrf.mxu0 }
 0x5e9   : > { %v10761_v4 = vadd.f32 %v10760_v21, %v10759_v35  ;;  %v15314_v35 = vpop.permute.xlu0 %4884 }
 0x5ea   : > { %v10762_v16 = vpop.f32.mrf.mxu0 }
 0x5eb   : > { %v4324_v14 = vpack.c.bf16 %v10761_v4, %v10758_v28  ;;  %v15316_v28 = vpop.permute.xlu1 %5051 }
 0x5ec   : > { %v10763_v47 = vpop.f32.mrf.mxu0 }
 0x5ed   : > { %11043 = vmatmul.mubr.bf16.vlgmr.msra.gmra.mxu1 %v4324_v14  ;;  %v10764_v61 = vadd.f32 %v10763_v47, %v10762_v16  ;;  %v15318_v16 = vpop.permute.xlu0 %4635 }
 0x5ee   : > { %v10765_v51 = vpop.f32.mrf.mxu0 }
 0x5f0   : > { %v10766_v25 = vpop.f32.mrf.mxu0 }
 0x5f1   : > { %v10767_v15 = vadd.f32 %v10766_v25, %v10765_v51 }
 0x5f2   : > { %v10768_v20 = vpop.f32.mrf.mxu0 }
 0x5f3   : > { %v4325_v29 = vpack.c.bf16 %v10767_v15, %v10764_v61 }
 0x5f4   : > { %v10769_v12 = vpop.f32.mrf.mxu0 }
 0x5f5   : > { %11046 = vmatprep.mubr.bf16.mxu1 %v4325_v29  ;;  %v10770_v43 = vadd.f32 %v10769_v12, %v10768_v20  ;;  %v15324_v12 = vpop.permute.xlu1 %4818 }
 0x5f6   : > { %v10771_v36 = vpop.f32.mrf.mxu0 }
 0x5f8   : > { %v10772_v32 = vpop.f32.mrf.mxu0 }
 0x5f9   : > { %v10773_v33 = vadd.f32 %v10772_v32, %v10771_v36 }
 0x5fb   : > { %v4326_v31 = vpack.c.bf16 %v10773_v33, %v10770_v43  ;;  %v15326_v43 = vpop.permute.xlu0 %4965 }
 0x5fd   : > { %11047 = vmatmul.mubr.bf16.gmra.mxu1 %v4326_v31 }
 0x6ad   : > { %v11044_v34 = vpop.f32.mrf.mxu1 }
 0x6ae   : > { %v4465_v50 = vmul.f32 %v11044_v34, %v15264_v63  ;;  %v4561_v34 = vld [vmem:[%s12101_s14 + $0x18] sm:$0xff] }
 0x6af   : > { %v4425_v59 = vpop.f32.mrf.mxu1 }
 0x6b0   : > { %v4463_v42 = vmul.f32 %v15264_v63, %v4425_v59  ;;  %v15281_v6 = vadd.f32 %v15268_v45, %v4465_v50 }
 0x6b1   : > { %v11045_v0 = vpop.f32.mrf.mxu1 }
 0x6b2   : > { %v4478_v55 = vadd.f32 %v15268_v45, %v4463_v42  ;;  %v4466_v30 = vmul.f32 %v11045_v0, %v15264_v63  ;;  %v10244_v60 = vmul.f32 -1.442695, %v15281_v6 }
 0x6b3   : > { %v4428_v48 = vpop.f32.mrf.mxu1 }
 0x6b4   : > { %v10242_v58 = vmul.f32 -1.442695, %v4478_v55  ;;  %v4464_v3 = vmul.f32 %v15264_v63, %v4428_v48  ;;  %v15291_v2 = vadd.f32 %v15268_v45, %v4466_v30 }
 0x6b6   : > { %11677 = vpow2.f32 %v10242_v58  ;;  %v4479_v5 = vadd.f32 %v15268_v45, %v4464_v3  ;;  %v10245_v23 = vmul.f32 -1.442695, %v15291_v2  ;;  %v15340_v3 = vpop.permute.xlu1 %5132 }
 0x6b8   : > { %v10243_v41 = vmul.f32 -1.442695, %v4479_v5 }
 0x6ba   : > { %11679 = vpow2.f32 %v10243_v41  ;;  %v15345_v41 = vpop.permute.xlu0 %4732 }
 0x6bb   : > { %11681 = vpow2.f32 %v10244_v60 }
 0x6bd   : > { %v11048_v39 = vpop.f32.mrf.mxu1 }
 0x6be   : > { %v4469_v18 = vmul.f32 %v11048_v39, %v15264_v63  ;;  %v15359_v39 = vpop.permute.xlu1 %4899 }
 0x6bf   : > { %v4441_v8 = vpop.f32.mrf.mxu1 }
 0x6c0   : > { %v15294_v22 = vadd.f32 %v15268_v45, %v4469_v18  ;;  %v4467_v0 = vmul.f32 %v15264_v63, %v4441_v8  ;;  %v15362_v8 = vpop.permute.xlu0 %5046 }
 0x6c1   : > { %v11049_v19 = vpop.f32.mrf.mxu1 }
 0x6c2   : > { %v10248_v56 = vmul.f32 -1.442695, %v15294_v22  ;;  %v4470_v27 = vmul.f32 %v11049_v19, %v15264_v63 }
 0x6c3   : > { %v11678_v24 = vpop.eup %11677  ;;  %v4444_v9 = vpop.f32.mrf.mxu1 }
 0x6c4   : > { %v4510_v37 = vadd.f32 1.0, %v11678_v24  ;;  %v15300_v53 = vadd.f32 %v15268_v45, %v4470_v27  ;;  %11683 = vpow2.f32 %v10248_v56  ;;  %v4468_v40 = vmul.f32 %v15264_v63, %v4444_v9  ;;  %v15374_v9 = vpop.permute.xlu1 %4650 }
 0x6c5   : > { %v15348_v63 = vadd.f32 %v15268_v45, %v4467_v0 }
 0x6c6   : > { %11685 = vrcp.f32 %v4510_v37  ;;  %v10249_v1 = vmul.f32 -1.442695, %v15300_v53  ;;  %v15309_v54 = vadd.f32 %v15268_v45, %v4468_v40  ;;  %v15385_v40 = vpop.permute.xlu0 %4813 }
 0x6c7   : > { %v11680_v52 = vpop.eup %11679  ;;  %11687 = vpow2.f32 %v10245_v23  ;;  %v10246_v18 = vmul.f32 -1.442695, %v15348_v63 }
 0x6c8   : > { %v4511_v26 = vadd.f32 1.0, %v11680_v52  ;;  %11689 = vpow2.f32 %v10249_v1  ;;  %v10247_v10 = vmul.f32 -1.442695, %v15309_v54  ;;  %v11682_v21 = vpop.eup %11681 }
 0x6c9   : > { %v4512_v47 = vadd.f32 1.0, %v11682_v21 }
 0x6ca   : > { %11691 = vrcp.f32 %v4511_v26  ;;  %v4560_v26 = vld [vmem:[%s12101_s14 + $0x10] sm:$0xff] }
 0x6cb   : > { %11693 = vpow2.f32 %v10247_v10 }
 0x6cc   : > { %11695 = vrcp.f32 %v4512_v47 }
 0x6d1   : > { %v11684_v4 = vpop.eup %11683 }
 0x6d2   : > { %v4516_v25 = vadd.f32 1.0, %v11684_v4 }
 0x6d3   : > { %v11686_v14 = vpop.eup %11685 }
 0x6d4   : > { %v15320_v51 = vmul.f32 %v11686_v14, %v4478_v55  ;;  %v11688_v61 = vpop.eup %11687  ;;  %11697 = vrcp.f32 %v4516_v25 }
 0x6d5   : > { %v11690_v15 = vpop.eup %11689  ;;  %v4513_v42 = vadd.f32 1.0, %v11688_v61  ;;  %v15412_v61 = vpop.permute.xlu1 %4980 }
 0x6d6   : > { %v4664_v20 = vmul.f32 %v15259_v7, %v15320_v51  ;;  %v4517_v36 = vadd.f32 1.0, %v11690_v15  ;;  %v4695_v59 = vrot.slane %v15320_v51, 1  ;;  %v4542_v50 = vrot.slane %v15320_v51, 7 }
 0x6d7   : > { %v11692_v29 = vpop.eup %11691 }
 0x6d8   : > { %v11694_v32 = vpop.eup %11693  ;;  %v15328_v33 = vmul.f32 %v11692_v29, %v4479_v5  ;;  %4673 = vrot.lane.b32.xlu1 %v4664_v20, %s12039_s2  ;;  %11699 = vrcp.f32 %v4517_v36  ;;  %v15427_v29 = vpop.permute.xlu0 %5127 }
 0x6d9   : > { %v4515_v31 = vadd.f32 1.0, %v11694_v32  ;;  %v11696_v60 = vpop.eup %11695 }
 0x6da   : > { %v4696_v7 = vrot.slane %v15328_v33, 1  ;;  %v4543_v55 = vrot.slane %v15328_v33, 7  ;;  %v4923_v56 = vmul.f32 %v15276_v11, %v15328_v33  ;;  %v15377_v37 = vmul.f32 %v11696_v60, %v15281_v6 }
 0x6db   : > { %11701 = vrcp.f32 %v4515_v31 }
 0x6dc   : > { %4583 = vperm.xlu1 %11502, %v4561_v34   ;;  %v15338_v58 = vsel %vm1914_vm0, %v4695_v59, %v4696_v7  ;;  %11703 = vrcp.f32 %v4513_v42  ;;  %v15354_v30 = vsel %vm1304_vm1, %v4542_v50, %v4543_v55  ;;  %v4666_v4 = vmul.f32 %v15285_v38, %v15377_v37  ;;  %v4563_v42 = vld [vmem:[%s12101_s14 + $0x28] sm:$0xff] }
 0x6dd   : > { %v4761_v5 = vmul.f32 %v15261_v44, %v15338_v58  ;;  %v4842_v44 = vmul.f32 %v15271_v62, %v15354_v30  ;;  %11705 = vpow2.f32 %v10246_v18 }
 0x6e0   : > { %4770 = vrot.lane.b32.xlu1 %v4761_v5, %s12040_s0 }
 0x6e1   : > { %v11698_v45 = vpop.eup %11697 }
 0x6e2   : > { %v15371_v24 = vmul.f32 %v11698_v45, %v15294_v22 }
 0x6e4   : > { %4851 = vrot.lane.b32.xlu1 %v4842_v44, %s12041_s11  ;;  %v4701_v10 = vrot.slane %v15371_v24, 1  ;;  %v4548_v21 = vrot.slane %v15371_v24, 7 }
 0x6e5   : > { %v11700_v19 = vpop.eup %11699 }
 0x6e6   : > { %v15368_v27 = vmul.f32 %v11700_v19, %v15300_v53  ;;  %v10307_v53 = vld [vmem:[%s12101_s14 + $0x208] sm:$0xff]  ;;  %v10306_v19 = vld [vmem:[%s12101_s14 + $0x200] sm:$0xff] }
 0x6e8   : > { %v11702_v62 = vpop.eup %11701  ;;  %4932 = vrot.lane.b32.xlu1 %v4923_v56, %s12042_s15  ;;  %v4663_v11 = vmul.f32 %v15278_v13, %v15368_v27  ;;  %v4702_v22 = vrot.slane %v15368_v27, 1  ;;  %v4549_v6 = vrot.slane %v15368_v27, 7  ;;  %v4697_v13 = vrot.slane %v15377_v37, 1  ;;  %v11549_v56 = vld [vmem:[%s12086_s29 + $0x38] sm:$0xff]  }
 0x6e9   : > { %v15380_v23 = vmul.f32 %v11702_v62, %v15309_v54  ;;  %v11704_v52 = vpop.eup %11703 }
 0x6ea   : > { %4671 = vrot.lane.b32.xlu0 %v4663_v11, %s12039_s2  ;;  %v15400_v14 = vsel %vm1914_vm0, %v4702_v22, %v4695_v59  ;;  %v15410_v25 = vsel %vm1914_vm0, %v4701_v10, %v4702_v22  ;;  %v15415_v15 = vmul.f32 %v11704_v52, %v15291_v2  ;;  %v15419_v38 = vsel %vm1914_vm0, %v4696_v7, %v4697_v13  ;;  %v11706_v59 = vpop.eup %11705  ;;  %v15445_v7 = vpop.permute.xlu1 %4747  ;;  %v11550_v11 = vld [vmem:[%s12086_s29 + $0x70] sm:$0xff]  }
 0x6eb   : > { %v4700_v1 = vrot.slane %v15380_v23, 1  ;;  %v4547_v54 = vrot.slane %v15380_v23, 7  ;;  %v15432_v2 = vsel %vm1304_vm1, %v4548_v21, %v4549_v6  ;;  %v4760_v36 = vmul.f32 %v15288_v17, %v15400_v14 }
 0x6ec   : > { %5213 = vperm.xlu1 %11502, %v10307_v53   ;;  %v5004_v32 = vmul.f32 %v15302_v49, %v15419_v38  ;;  %v15440_v31 = vsel %vm1304_vm1, %v4549_v6, %v4542_v50  ;;  %v4698_v34 = vrot.slane %v15415_v15, 1  ;;  %v15450_v49 = vpop.permute.xlu0 %4894  ;;  %v4514_v0 = vadd.f32 1.0, %v11706_v59  ;;  %v11551_v53 = vld [vmem:[%s12086_s29 + $0x30] sm:$0xff]   ;;  %v11552_v6 = vld [vmem:[%s12086_s29 + $0x68] sm:$0xff]  }
 0x6ed   : > { %v15406_v47 = vsel %vm1914_vm0, %v4700_v1, %v4701_v10  ;;  %v15425_v20 = vsel %vm1304_vm1, %v4547_v54, %v4548_v21  ;;  %v4841_v17 = vmul.f32 %v15305_v57, %v15440_v31  ;;  %v4922_v50 = vmul.f32 %v15314_v35, %v15320_v51  ;;  %v11553_v10 = vld [vmem:[%s12086_s29 + $0x28] sm:$0xff]  }
 0x6ee   : > { %4578 = vperm.xlu0 %11501, %v4560_v26   ;;  %v15457_v5 = vsel %vm1914_vm0, %v4697_v13, %v4698_v34  ;;  %v4544_v57 = vrot.slane %v15377_v37, 7  ;;  %v15464_v18 = vpop.permute.xlu1 %5061  ;;  %11707 = vrcp.f32 %v4514_v0  ;;  %v4545_v35 = vrot.slane %v15415_v15, 7 }
 0x6ef   : > { %v4763_v44 = vmul.f32 %v15312_v46, %v15457_v5  ;;  %v11548_v46 = vld [vmem:[%s12086_s29 + $0x78] sm:$0xff]   ;;  %v5003_v13 = vmul.f32 %v15326_v43, %v15338_v58  ;;  %v11555_v43 = vld [vmem:[%s12086_s29 + $0x20] sm:$0xff]  }
 0x6f0   : > { %4677 = vrot.lane.b32.xlu1 %v4666_v4, %s12039_s2  ;;  %v15471_v60 = vsel %vm1304_vm1, %v4543_v55, %v4544_v57  ;;  %v15474_v45 = vpop.permute.xlu0 %4645  ;;  %v15486_v55 = vsel %vm1304_vm1, %v4544_v57, %v4545_v35  ;;  %10786 = vmatprep.subr.bf16.mxu0 %v11548_v46  ;;  %v10309_v57 = vld [vmem:[%s12101_s14 + $0x218] sm:$0xff]  ;;  %v5084_v46 = vmul.f32 %v15362_v8, %v15354_v30  ;;  %v11561_v8 = vld [vmem:[%s12086_s29 + $0x8] sm:$0xff]  }
 0x6f1   : > { %v5085_v62 = vmul.f32 %v15316_v28, %v15471_v60  ;;  %10787 = vmatpush3.bf16.msra.mxu0 %v11549_v56  ;;  %v4665_v28 = vmul.f32 %v15318_v16, %v15328_v33  ;;  %v4844_v26 = vmul.f32 %v15324_v12, %v15486_v55  ;;  %v5166_v16 = vmul.f32 %v15340_v3, %v15377_v37  ;;  %v11554_v12 = vld [vmem:[%s12086_s29 + $0x60] sm:$0xff]  }
 0x6f2   : > { %4768 = vrot.lane.b32.xlu0 %v4760_v36, %s12040_s0  ;;  %v15491_v22 = vpop.permute.xlu1 %4828  ;;  %10788 = vmatprep.subr.bf16.mxu0 %v11550_v11  ;;  %v4925_v3 = vmul.f32 %v15359_v39, %v15415_v15  ;;  %v11558_v39 = vld [vmem:[%s12086_s29 + $0x50] sm:$0xff]   ;;  %v11560_v11 = vld [vmem:[%s12086_s29 + $0x48] sm:$0xff]  }
 0x6f4   : > { %5013 = vrot.lane.b32.xlu1 %v5004_v32, %s12043_s16  ;;  %v15495_v52 = vpop.permute.xlu0 %4975  ;;  %v4562_v32 = vld [vmem:[%s12101_s14 + $0x20] sm:$0xff] }
 0x6f5   : > { %10789 = vmatpush3.bf16.msra.mxu0 %v11551_v53 }
 0x6f6   : > { %4849 = vrot.lane.b32.xlu0 %v4841_v17, %s12041_s11  ;;  %10790 = vmatprep.subr.bf16.mxu0 %v11552_v6  ;;  %v15507_v21 = vpop.permute.xlu1 %5142  ;;  %v11556_v17 = vld [vmem:[%s12086_s29 + $0x58] sm:$0xff]  }
 0x6f7   : > { %v4565_v6 = vld [vmem:[%s12101_s14 + $0x38] sm:$0xff] }
 0x6f8   : > { %4593 = vperm.xlu1 %11502, %v4563_v42   ;;  %v15511_v36 = vpop.permute.xlu0 %4742  ;;  %v11557_v42 = vld [vmem:[%s12086_s29 + $0x18] sm:$0xff]  }
 0x6f9   : > { %10791 = vmatpush3.bf16.msra.mxu0 %v11553_v10  ;;  %v11562_v10 = vld [vmem:[%s12086_s29 + $0x40] sm:$0xff]  }
 0x6fa   : > { %4930 = vrot.lane.b32.xlu0 %v4922_v50, %s12042_s15  ;;  %10792 = vmatprep.subr.bf16.mxu0 %v11554_v12  ;;  %v15524_v0 = vpop.permute.xlu1 %4909  ;;  %v4762_v50 = vmul.f32 %v15345_v41, %v15419_v38 }
 0x6fb   : > { %v11708_v4 = vpop.eup %11707 }
 0x6fc   : > { %4774 = vrot.lane.b32.xlu1 %v4763_v44, %s12040_s0  ;;  %v15519_v59 = vmul.f32 %v11708_v4, %v15348_v63  ;;  %v15529_v44 = vpop.permute.xlu0 %5056 }
 0x6fd   : > { %10793 = vmatpush3.bf16.msra.mxu0 %v11555_v43 }
 0x6fe   : > { %5208 = vperm.xlu0 %11501, %v10306_v19   ;;  %10794 = vmatprep.subr.bf16.mxu0 %v11556_v17  ;;  %v4699_v63 = vrot.slane %v15519_v59, 1  ;;  %v11559_v19 = vld [vmem:[%s12086_s29 + $0x10] sm:$0xff]   ;;  %v4668_v41 = vmul.f32 %v15374_v9, %v15519_v59  ;;  %v4661_v56 = vpop.permute.xlu1 %4660  ;;  %v4843_v9 = vmul.f32 %v15385_v40, %v15471_v60 }
 0x700   : > { %5094 = vrot.lane.b32.xlu1 %v5085_v62, %s12044_s18  ;;  %v15544_v62 = vsel %vm1914_vm0, %v4698_v34, %v4699_v63  ;;  %v4824_v53 = vpop.permute.xlu0 %4823  ;;  %v15565_v40 = vsel %vm1914_vm0, %v4699_v63, %v4700_v1 }
 0x701   : > { %10795 = vmatpush3.bf16.msra.mxu0 %v11557_v42 }
 0x702   : > { %4675 = vrot.lane.b32.xlu0 %v4665_v28, %s12039_s2  ;;  %10796 = vmatprep.subr.bf16.mxu0 %v11558_v39  ;;  %v5006_v28 = vmul.f32 %v15412_v61, %v15544_v62  ;;  %v4991_v34 = vpop.permute.xlu1 %4990  ;;  %v4546_v61 = vrot.slane %v15519_v59, 7  ;;  %v4670_v39 = vmul.f32 %v4661_v56, %v15371_v24 }
 0x704   : > { %4855 = vrot.lane.b32.xlu1 %v4844_v26, %s12041_s11  ;;  %v5165_v26 = vmul.f32 %v15427_v29, %v15328_v33  ;;  %v4924_v33 = vmul.f32 %v15450_v49, %v15377_v37  ;;  %v4765_v29 = vmul.f32 %v15445_v7, %v15565_v40  ;;  %v15577_v1 = vsel %vm1304_vm1, %v4545_v35, %v4546_v61 }
 0x705   : > { %10797 = vmatpush3.bf16.msra.mxu0 %v11559_v19  ;;  %v5087_v43 = vmul.f32 %v15464_v18, %v15577_v1  ;;  %v15587_v37 = vsel %vm1304_vm1, %v4546_v61, %v4547_v54  ;;  %v4667_v49 = vmul.f32 %v15474_v45, %v15415_v15  ;;  %v5005_v18 = vmul.f32 %v15495_v52, %v15457_v5  ;;  %v4564_v45 = vld [vmem:[%s12101_s14 + $0x30] sm:$0xff] }
 0x706   : > { %5011 = vrot.lane.b32.xlu0 %v5003_v13, %s12043_s16  ;;  %10798 = vmatprep.subr.bf16.mxu0 %v11560_v11  ;;  %v11563_v13 = vld [vmem:[%s12086_s29] sm:$0xff]   ;;  %v4758_v12 = vpop.permute.xlu1 %4757  ;;  %v5168_v54 = vmul.f32 %v15507_v21, %v15519_v59  ;;  %v4764_v52 = vmul.f32 %v15511_v36, %v15544_v62  ;;  %v5086_v21 = vmul.f32 %v15529_v44, %v15486_v55 }
 0x707   : > { %v5008_v36 = vmul.f32 %v4991_v34, %v15406_v47  ;;  %v4767_v56 = vmul.f32 %v4758_v12, %v15410_v25  ;;  %v10310_v34 = vld [vmem:[%s12101_s14 + $0x220] sm:$0xff]  ;;  %v10313_v12 = vld [vmem:[%s12101_s14 + $0x238] sm:$0xff] }
 0x708   : > { %5175 = vrot.lane.b32.xlu1 %v5166_v16, %s12045_s22  ;;  %v5138_v16 = vpop.permute.xlu0 %5137 }
 0x709   : > { %10799 = vmatpush3.bf16.msra.mxu0 %v11561_v8  ;;  %v5167_v44 = vmul.f32 %v5138_v16, %v15415_v15 }
 0x70a   : > { %4588 = vperm.xlu0 %11501, %v4562_v32   ;;  %10800 = vmatprep.subr.bf16.mxu0 %v11562_v10  ;;  %v10308_v32 = vld [vmem:[%s12101_s14 + $0x210] sm:$0xff]  ;;  %v5072_v7 = vpop.permute.xlu1 %5071 }
 0x70c   : > { %4936 = vrot.lane.b32.xlu1 %v4925_v3, %s12042_s15  ;;  %v4905_v4 = vpop.permute.xlu0 %4904  ;;  %v4846_v3 = vmul.f32 %v15491_v22, %v15587_v37  ;;  %v4927_v22 = vmul.f32 %v15524_v0, %v15380_v23 }
 0x70d   : > { %10801 = vmatpush3.bf16.msra.mxu0 %v11563_v13  ;;  %v4926_v8 = vmul.f32 %v4905_v4, %v15519_v59 }
 0x70e   : > { %4772 = vrot.lane.b32.xlu0 %v4762_v50, %s12040_s0  ;;  %v4839_v17 = vpop.permute.xlu1 %4838 }
 0x70f   : > { %v4848_v15 = vmul.f32 %v4839_v17, %v15432_v2 }
 0x710   : > { %5223 = vperm.xlu1 %11502, %v10309_v57   ;;  %v4656_v35 = vpop.permute.xlu0 %4655  ;;  %v10311_v57 = vld [vmem:[%s12101_s14 + $0x228] sm:$0xff] }
 0x712   : > { %5092 = vrot.lane.b32.xlu0 %v5084_v46, %s12044_s18  ;;  %v5153_v50 = vpop.permute.xlu1 %5152  ;;  %v4845_v46 = vmul.f32 %v4824_v53, %v15577_v1  ;;  %v5089_v53 = vmul.f32 %v5072_v7, %v15425_v20 }
 0x713   : > { %v5170_v59 = vmul.f32 %v5153_v50, %v15371_v24 }
 0x714   : > { %4681 = vrot.lane.b32.xlu1 %v4668_v41, %s12039_s2  ;;  %v4986_v42 = vpop.permute.xlu0 %4985 }
 0x715   : > { %v5007_v13 = vmul.f32 %v4986_v42, %v15565_v40 }
 0x716   : > { %4853 = vrot.lane.b32.xlu0 %v4843_v9, %s12041_s11  ;;  %v4920_v19 = vpop.permute.xlu1 %4919 }
 0x717   : > { %v4929_v16 = vmul.f32 %v4920_v19, %v15368_v27 }
 0x718   : > { %5017 = vrot.lane.b32.xlu1 %v5006_v28, %s12043_s16  ;;  %v4753_v63 = vpop.permute.xlu0 %4752 }
 0x71a   : > { %5173 = vrot.lane.b32.xlu0 %v5165_v26, %s12045_s22  ;;  %v5001_v41 = vpop.permute.xlu1 %5000 }
 0x71b   : > { %v5010_v7 = vmul.f32 %v5001_v41, %v15400_v14 }
 0x71c   : > { %4603 = vperm.xlu1 %11502, %v4565_v6   ;;  %v5067_v0 = vpop.permute.xlu0 %5066  ;;  %v4669_v6 = vmul.f32 %v4656_v35, %v15380_v23 }
 0x71e   : > { %4934 = vrot.lane.b32.xlu0 %v4924_v33, %s12042_s15  ;;  %v5082_v9 = vpop.permute.xlu1 %5081 }
 0x720   : > { %4778 = vrot.lane.b32.xlu1 %v4765_v29, %s12040_s0  ;;  %v4834_v11 = vpop.permute.xlu0 %4833  ;;  %v4766_v29 = vmul.f32 %v4753_v63, %v15406_v47 }
 0x721   : > { %v4847_v35 = vmul.f32 %v4834_v11, %v15425_v20 }
 0x722   : > { %5218 = vperm.xlu0 %11501, %v10308_v32   ;;  %v5163_v26 = vpop.permute.xlu1 %5162  ;;  %v5088_v32 = vmul.f32 %v5067_v0, %v15587_v37 }
 0x723   : > { %v5172_v42 = vmul.f32 %v5163_v26, %v15320_v51 }
 0x724   : > { %5098 = vrot.lane.b32.xlu1 %v5087_v43, %s12044_s18  ;;  %v5148_v28 = vpop.permute.xlu0 %5147 }
 0x725   : > { %v5169_v17 = vmul.f32 %v5148_v28, %v15380_v23 }
 0x726   : > { %4679 = vrot.lane.b32.xlu0 %v4667_v49, %s12039_s2  ;;  %v4574_v61 = vpop.permute.xlu1 %4573 }
 0x728   : > { %4859 = vrot.lane.b32.xlu1 %v4846_v3, %s12041_s11  ;;  %v4915_v10 = vpop.permute.xlu0 %4914  ;;  %v5091_v3 = vmul.f32 %v5082_v9, %v15440_v31 }
 0x72a   : > { %5015 = vrot.lane.b32.xlu0 %v5005_v18, %s12043_s16 }
 0x72c   : > { %5179 = vrot.lane.b32.xlu1 %v5168_v54, %s12045_s22  ;;  %v4996_v33 = vpop.permute.xlu0 %4995 }
 0x72e   : > { %4598 = vperm.xlu0 %11501, %v4564_v45  }
 0x730   : > { %4940 = vrot.lane.b32.xlu1 %v4927_v22, %s12042_s15  ;;  %v5077_v43 = vpop.permute.xlu0 %5076  ;;  %v4928_v22 = vmul.f32 %v4915_v10, %v15371_v24 }
 0x731   : > { %v5090_v19 = vmul.f32 %v5077_v43, %v15432_v2 }
 0x732   : > { %4776 = vrot.lane.b32.xlu0 %v4764_v52, %s12040_s0 }
 0x734   : > { %5233 = vperm.xlu1 %11502, %v10311_v57   ;;  %v5158_v54 = vpop.permute.xlu0 %5157  ;;  %v10312_v57 = vld [vmem:[%s12101_s14 + $0x230] sm:$0xff] }
 0x736   : > { %5096 = vrot.lane.b32.xlu0 %v5086_v21, %s12044_s18 }
 0x738   : > { %4685 = vrot.lane.b32.xlu1 %v4670_v39, %s12039_s2  ;;  %v4569_v50 = vpop.permute.xlu0 %4568  ;;  %v5009_v39 = vmul.f32 %v4996_v33, %v15410_v25 }
 0x73a   : > { %4857 = vrot.lane.b32.xlu0 %v4845_v46, %s12041_s11  ;;  %v5171_v46 = vmul.f32 %v5158_v54, %v15368_v27 }
 0x73c   : > { %5021 = vrot.lane.b32.xlu1 %v5008_v36, %s12043_s16 }
 0x73e   : > { %5177 = vrot.lane.b32.xlu0 %v5167_v44, %s12045_s22 }
 0x740   : > { %4782 = vrot.lane.b32.xlu1 %v4767_v56, %s12040_s0 }
 0x742   : > { %4938 = vrot.lane.b32.xlu0 %v4926_v8, %s12042_s15 }
 0x744   : > { %5102 = vrot.lane.b32.xlu1 %v5089_v53, %s12044_s18 }
 0x746   : > { %5228 = vperm.xlu0 %11501, %v10310_v34  }
 0x748   : > { %4863 = vrot.lane.b32.xlu1 %v4848_v15, %s12041_s11 }
 0x74a   : > { %4683 = vrot.lane.b32.xlu0 %v4669_v6, %s12039_s2  ;;  %v4674_v4 = vpop.permute.xlu1 %4673  ;;  %s18235_s2 = sld [smem:[#allocation8_spill]] }
 0x74c   : > { %5183 = vrot.lane.b32.xlu1 %v5170_v59, %s12045_s22  ;;  %v4607_v59 = vmul.f32 %v4574_v61, %v15440_v31 }
 0x74e   : > { %5019 = vrot.lane.b32.xlu0 %v5007_v13, %s12043_s16  ;;  %v4606_v13 = vmul.f32 %v4569_v50, %v15432_v2  ;;  %v4688_v33 = vadd.f32 %v4674_v4, %v4607_v59 }
 0x750   : > { %4944 = vrot.lane.b32.xlu1 %v4929_v16, %s12042_s15 }
 0x752   : > { %4780 = vrot.lane.b32.xlu0 %v4766_v29, %s12040_s0 }
 0x754   : > { %5243 = vperm.xlu1 %11502, %v10313_v12  }
 0x756   : > { %5100 = vrot.lane.b32.xlu0 %v5088_v32, %s12044_s18 }
 0x757   : > { %v15644_v49 = vpop.permute.xlu1 %4583 }
 0x758   : > { %5025 = vrot.lane.b32.xlu1 %v5010_v7, %s12043_s16 }
 0x75a   : > { %4861 = vrot.lane.b32.xlu0 %v4847_v35, %s12041_s11  ;;  %s18236_s11 = sld [smem:[#allocation4_spill]] }
 0x75b   : > { %v4771_v18 = vpop.permute.xlu1 %4770 }
 0x75c   : > { %5106 = vrot.lane.b32.xlu1 %v5091_v3, %s12044_s18  ;;  %v4672_v63 = vpop.permute.xlu0 %4671  ;;  %v4785_v12 = vadd.f32 %v4771_v18, %v4688_v33 }
 0x75d   : > { %v4687_v29 = vadd.f32 %v4672_v63, %v4606_v13 }
 0x75e   : > { %5181 = vrot.lane.b32.xlu0 %v5169_v17, %s12045_s22 }
 0x75f   : > { %v4852_v45 = vpop.permute.xlu1 %4851 }
 0x760   : > { %5187 = vrot.lane.b32.xlu1 %v5172_v42, %s12045_s22  ;;  %v4866_v43 = vadd.f32 %v4852_v45, %v4785_v12 }
 0x762   : > { %4942 = vrot.lane.b32.xlu0 %v4928_v22, %s12042_s15 }
 0x763   : > { %v4933_v52 = vpop.permute.xlu1 %4932 }
 0x764   : > { %v4947_v3 = vadd.f32 %v4933_v52, %v4866_v43 }
 0x766   : > { %5238 = vperm.xlu0 %11501, %v10312_v57  }
 0x767   : > { %v5214_v21 = vpop.permute.xlu1 %5213 }
 0x768   : > { %v5247_v8 = vmul.f32 %v5214_v21, %v15457_v5 }
 0x769   : > { %v15659_v23 = vpop.permute.xlu0 %4578 }
 0x76a   : > { %5023 = vrot.lane.b32.xlu0 %v5009_v39, %s12043_s16  ;;  %s18237_s16 = sld [smem:[#allocation5_spill]] }
 0x76b   : > { %v15662_v51 = vpop.permute.xlu1 %4677 }
 0x76d   : > { %v4769_v0 = vpop.permute.xlu0 %4768 }
 0x76e   : > { %5104 = vrot.lane.b32.xlu0 %v5090_v19, %s12044_s18 }
 0x76f   : > { %v5014_v24 = vpop.permute.xlu1 %5013 }
 0x770   : > { %v5028_v42 = vadd.f32 %v5014_v24, %v4947_v3 }
 0x771   : > { %v4850_v36 = vpop.permute.xlu0 %4849 }
 0x772   : > { %5185 = vrot.lane.b32.xlu0 %v5171_v46, %s12045_s22  ;;  %s18238_s22 = sld [smem:[#allocation7_spill]] }
 0x773   : > { %v15668_v41 = vpop.permute.xlu1 %4593 }
 0x775   : > { %v4931_v44 = vpop.permute.xlu0 %4930 }
 0x777   : > { %v4775_v11 = vpop.permute.xlu1 %4774 }
 0x779   : > { %v5209_v56 = vpop.permute.xlu0 %5208 }
 0x77a   : > { %v5246_v53 = vmul.f32 %v5209_v56, %v15419_v38  ;;  %v4784_v38 = vadd.f32 %v4769_v0, %v4687_v29 }
 0x77b   : > { %v5095_v9 = vpop.permute.xlu1 %5094 }
 0x77c   : > { %v5255_v28 = vpack.c.bf16 %v5247_v8, %v5246_v53  ;;  %v4865_v7 = vadd.f32 %v4850_v36, %v4784_v38  ;;  %v5109_v31 = vadd.f32 %v5095_v9, %v5028_v42  ;;  %v4609_v9 = vmul.f32 %v15644_v49, %v15471_v60 }
 0x77d   : > { %v4676_v34 = vpop.permute.xlu0 %4675 }
 0x77e   : > { %5422 = vmatprep.mubr.bf16.mxu0 %v5255_v28  ;;  %v4946_v54 = vadd.f32 %v4931_v44, %v4865_v7  ;;  %v4608_v28 = vmul.f32 %v15659_v23, %v15354_v30 }
 0x77f   : > { %v4856_v15 = vpop.permute.xlu1 %4855 }
 0x781   : > { %v5012_v26 = vpop.permute.xlu0 %5011 }
 0x782   : > { %v5027_v22 = vadd.f32 %v5012_v26, %v4946_v54 }
 0x783   : > { %v5176_v6 = vpop.permute.xlu1 %5175 }
 0x784   : > { %v5190_v50 = vadd.f32 %v5176_v6, %v5109_v31 }
 0x785   : > { %v15672_v27 = vpop.permute.xlu0 %4588 }
 0x787   : > { %v4937_v10 = vpop.permute.xlu1 %4936 }
 0x789   : > { %v4773_v16 = vpop.permute.xlu0 %4772 }
 0x78b   : > { %v5224_v5 = vpop.permute.xlu1 %5223 }
 0x78c   : > { %v5249_v19 = vmul.f32 %v5224_v5, %v15565_v40  ;;  %v4690_v40 = vadd.f32 %v15662_v51, %v4609_v9 }
 0x78d   : > { %v5093_v32 = vpop.permute.xlu0 %5092 }
 0x78e   : > { %v5108_v61 = vadd.f32 %v5093_v32, %v5027_v22  ;;  %v4787_v59 = vadd.f32 %v4775_v11, %v4690_v40 }
 0x78f   : > { %v15676_v35 = vpop.permute.xlu1 %4681 }
 0x790   : > { %v4868_v29 = vadd.f32 %v4856_v15, %v4787_v59 }
 0x791   : > { %v4854_v17 = vpop.permute.xlu0 %4853 }
 0x792   : > { %v4949_v38 = vadd.f32 %v4937_v10, %v4868_v29 }
 0x793   : > { %v5018_v57 = vpop.permute.xlu1 %5017 }
 0x794   : > { %v5030_v7 = vadd.f32 %v5018_v57, %v4949_v38 }
 0x795   : > { %v5174_v2 = vpop.permute.xlu0 %5173 }
 0x796   : > { %v5189_v4 = vadd.f32 %v5174_v2, %v5108_v61  ;;  %v4611_v2 = vmul.f32 %v15668_v41, %v15577_v1 }
 0x797   : > { %v15678_v63 = vpop.permute.xlu1 %4603 }
 0x798   : > { %v5254_v18 = vpack.c.bf16 %v5190_v50, %v5189_v4  ;;  %v4610_v50 = vmul.f32 %v15672_v27, %v15486_v55 }
 0x799   : > { %v4935_v21 = vpop.permute.xlu0 %4934 }
 0x79a   : > { %5423 = vmatmul.mubr.bf16.vlgmr.msra.gmra.mxu0 %v5254_v18 }
 0x79b   : > { %v4779_v45 = vpop.permute.xlu1 %4778 }
 0x79d   : > { %v5219_v39 = vpop.permute.xlu0 %5218 }
 0x79e   : > { %v5248_v52 = vmul.f32 %v5219_v39, %v15544_v62  ;;  %v4689_v62 = vadd.f32 %v4676_v34, %v4608_v28 }
 0x79f   : > { %v5099_v0 = vpop.permute.xlu1 %5098 }
 0x7a0   : > { %v5257_v24 = vpack.c.bf16 %v5249_v19, %v5248_v52  ;;  %v4786_v13 = vadd.f32 %v4773_v16, %v4689_v62  ;;  %v5111_v49 = vadd.f32 %v5099_v0, %v5030_v7 }
 0x7a1   : > { %v4680_v46 = vpop.permute.xlu0 %4679 }
 0x7a2   : > { %5430 = vmatprep.mubr.bf16.mxu0 %v5257_v24  ;;  %v4867_v5 = vadd.f32 %v4854_v17, %v4786_v13  ;;  %v4691_v39 = vadd.f32 %v4680_v46, %v4610_v50  ;;  %v4613_v46 = vmul.f32 %v15678_v63, %v15425_v20 }
 0x7a3   : > { %v4860_v36 = vpop.permute.xlu1 %4859 }
 0x7a4   : > { %v4948_v32 = vadd.f32 %v4935_v21, %v4867_v5  ;;  %v4692_v21 = vadd.f32 %v15676_v35, %v4611_v2 }
 0x7a5   : > { %v5016_v44 = vpop.permute.xlu0 %5015 }
 0x7a6   : > { %v5029_v3 = vadd.f32 %v5016_v44, %v4948_v32  ;;  %v4789_v19 = vadd.f32 %v4779_v45, %v4692_v21 }
 0x7a7   : > { %v5180_v56 = vpop.permute.xlu1 %5179 }
 0x7a8   : > { %v5192_v23 = vadd.f32 %v5180_v56, %v5111_v49 }
 0x7a9   : > { %v15682_v8 = vpop.permute.xlu0 %4598 }
 0x7ab   : > { %v4941_v53 = vpop.permute.xlu1 %4940 }
 0x7ad   : > { %v4777_v26 = vpop.permute.xlu0 %4776 }
 0x7af   : > { %v5234_v6 = vpop.permute.xlu1 %5233 }
 0x7b0   : > { %v5251_v15 = vmul.f32 %v5234_v6, %v15410_v25  ;;  %v4788_v25 = vadd.f32 %v4777_v26, %v4691_v39 }
 0x7b1   : > { %v5097_v33 = vpop.permute.xlu0 %5096 }
 0x7b2   : > { %v5110_v54 = vadd.f32 %v5097_v33, %v5029_v3 }
 0x7b3   : > { %v4686_v12 = vpop.permute.xlu1 %4685 }
 0x7b4   : > { %v4694_v26 = vadd.f32 %v4686_v12, %v4613_v46 }
 0x7b5   : > { %v4858_v43 = vpop.permute.xlu0 %4857 }
 0x7b6   : > { %v4869_v0 = vadd.f32 %v4858_v43, %v4788_v25 }
 0x7b7   : > { %v5022_v60 = vpop.permute.xlu1 %5021 }
 0x7b9   : > { %v5178_v30 = vpop.permute.xlu0 %5177 }
 0x7ba   : > { %v5191_v42 = vadd.f32 %v5178_v30, %v5110_v54 }
 0x7bb   : > { %v4783_v51 = vpop.permute.xlu1 %4782 }
 0x7bc   : > { %v5256_v34 = vpack.c.bf16 %v5192_v23, %v5191_v42  ;;  %v4791_v5 = vadd.f32 %v4783_v51, %v4694_v26 }
 0x7bd   : > { %v4939_v22 = vpop.permute.xlu0 %4938 }
 0x7be   : > { %5431 = vmatmul.mubr.bf16.gmra.mxu0 %v5256_v34  ;;  %v4950_v56 = vadd.f32 %v4939_v22, %v4869_v0  ;;  %v15703_v22 = vld [vmem:[%s12091_s3] ss:$0 sm:$0xff] }
 0x7bf   : > { %v5103_v11 = vpop.permute.xlu1 %5102 }
 0x7c1   : > { %v5229_v16 = vpop.permute.xlu0 %5228 }
 0x7c2   : > { %v5250_v10 = vmul.f32 %v5229_v16, %v15406_v47  ;;  %v4870_v47 = vadd.f32 %v4860_v36, %v4789_v19  ;;  %v4612_v36 = vmul.f32 %v15682_v8, %v15587_v37  ;;  %v15706_v16 = vld [vmem:[%s12096_s8] ss:$0 sm:$0xff] }
 0x7c3   : > { %v4864_v57 = vpop.permute.xlu1 %4863 }
 0x7c4   : > { %v5259_v17 = vpack.c.bf16 %v5251_v15, %v5250_v10  ;;  %v4951_v44 = vadd.f32 %v4941_v53, %v4870_v47  ;;  %v4872_v3 = vadd.f32 %v4864_v57, %v4791_v5 }
 0x7c5   : > { %v4684_v31 = vpop.permute.xlu0 %4683 }
 0x7c6   : > { %5438 = vmatprep.mubr.bf16.mxu0 %v5259_v17  ;;  %v5032_v28 = vadd.f32 %v5022_v60, %v4951_v44  ;;  %v4693_v13 = vadd.f32 %v4684_v31, %v4612_v36 }
 0x7c7   : > { %v5184_v4 = vpop.permute.xlu1 %5183 }
 0x7c8   : > { %v5113_v1 = vadd.f32 %v5103_v11, %v5032_v28 }
 0x7c9   : > { %v5020_v61 = vpop.permute.xlu0 %5019 }
 0x7ca   : > { %v5031_v40 = vadd.f32 %v5020_v61, %v4950_v56  ;;  %v5194_v27 = vadd.f32 %v5184_v4, %v5113_v1 }
 0x7cb   : > { %v4945_v24 = vpop.permute.xlu1 %4944 }
 0x7cc   : > { %v4953_v20 = vadd.f32 %v4945_v24, %v4872_v3 }
 0x7cd   : > { %v4781_v18 = vpop.permute.xlu0 %4780 }
 0x7ce   : > { %v4790_v38 = vadd.f32 %v4781_v18, %v4693_v13 }
 0x7cf   : > { %v5244_v62 = vpop.permute.xlu1 %5243 }
 0x7d0   : > { %v5253_v33 = vmul.f32 %v5244_v62, %v15338_v58 }
 0x7d1   : > { %v5101_v52 = vpop.permute.xlu0 %5100 }
 0x7d2   : > { %v5112_v41 = vadd.f32 %v5101_v52, %v5031_v40 }
 0x7d3   : > { %v5026_v45 = vpop.permute.xlu1 %5025 }
 0x7d4   : > { %v5034_v8 = vadd.f32 %v5026_v45, %v4953_v20 }
 0x7d5   : > { %v4862_v9 = vpop.permute.xlu0 %4861 }
 0x7d6   : > { %v4871_v60 = vadd.f32 %v4862_v9, %v4790_v38 }
 0x7d7   : > { %v5107_v43 = vpop.permute.xlu1 %5106 }
 0x7d8   : > { %v5115_v54 = vadd.f32 %v5107_v43, %v5034_v8 }
 0x7d9   : > { %v5182_v55 = vpop.permute.xlu0 %5181 }
 0x7da   : > { %v5193_v6 = vadd.f32 %v5182_v55, %v5112_v41 }
 0x7db   : > { %v5188_v49 = vpop.permute.xlu1 %5187 }
 0x7dc   : > { %v5258_v59 = vpack.c.bf16 %v5194_v27, %v5193_v6 }
 0x7dd   : > { %v4943_v35 = vpop.permute.xlu0 %4942 }
 0x7de   : > { %5439 = vmatmul.mubr.bf16.gmra.mxu0 %v5258_v59  ;;  %v4952_v63 = vadd.f32 %v4943_v35, %v4871_v60 }
 0x7e1   : > { %v5239_v53 = vpop.permute.xlu0 %5238 }
 0x7e2   : > { %v5252_v29 = vmul.f32 %v5239_v53, %v15400_v14  ;;  %v5196_v14 = vadd.f32 %v5188_v49, %v5115_v54 }
 0x7e4   : > { %v5261_v32 = vpack.c.bf16 %v5253_v33, %v5252_v29 }
 0x7e5   : > { %v5024_v7 = vpop.permute.xlu0 %5023 }
 0x7e6   : > { %5446 = vmatprep.mubr.bf16.mxu0 %v5261_v32  ;;  %v5033_v12 = vadd.f32 %v5024_v7, %v4952_v63 }
 0x7e9   : > { %v5105_v37 = vpop.permute.xlu0 %5104 }
 0x7ea   : > { %v5114_v58 = vadd.f32 %v5105_v37, %v5033_v12 }
 0x7ed   : > { %v5186_v30 = vpop.permute.xlu0 %5185 }
 0x7ee   : > { %v5195_v23 = vadd.f32 %v5186_v30, %v5114_v58 }
 0x7f0   : > { %v5260_v42 = vpack.c.bf16 %v5196_v14, %v5195_v23 }
 0x7f2   : > { %5447 = vmatmul.mubr.bf16.gmra.mxu0 %v5260_v42 }
 0x85a   : > { %v10802_v51 = vpop.f32.mrf.mxu0 }
 0x85c   : > { %v10803_v34 = vpop.f32.mrf.mxu0 }
 0x85d   : > { %v10804_v11 = vadd.f32 %v10803_v34, %v10802_v51 }
 0x85e   : > { %v10805_v15 = vpop.f32.mrf.mxu0 }
 0x85f   : > { %v5462_v10 = vmul.f32 %v10804_v11, %v15703_v22 }
 0x860   : > { %v10806_v17 = vpop.f32.mrf.mxu0 }
 0x861   : > { %v5477_v31 = vadd.f32 %v15706_v16, %v5462_v10  ;;  %v10807_v57 = vadd.f32 %v10806_v17, %v10805_v15 }
 0x863   : > { %v10332_v61 = vmul.f32 -1.442695, %v5477_v31  ;;  %v5463_v2 = vmul.f32 %v10807_v57, %v15703_v22 }
 0x865   : > { %11709 = vpow2.f32 %v10332_v61  ;;  %v5478_v50 = vadd.f32 %v15706_v16, %v5463_v2 }
 0x867   : > { %v10333_v4 = vmul.f32 -1.442695, %v5478_v50 }
 0x869   : > { %11711 = vpow2.f32 %v10333_v4 }
 0x872   : > { %v11710_v18 = vpop.eup %11709 }
 0x873   : > { %v5509_v21 = vadd.f32 1.0, %v11710_v18 }
 0x875   : > { %11713 = vrcp.f32 %v5509_v21 }
 0x876   : > { %v11712_v39 = vpop.eup %11711 }
 0x877   : > { %v5510_v19 = vadd.f32 1.0, %v11712_v39 }
 0x879   : > { %11715 = vrcp.f32 %v5510_v19 }
 0x87e   : > { %v10808_v25 = vpop.f32.mrf.mxu0 }
 0x880   : > { %v10809_v52 = vpop.f32.mrf.mxu0 }
 0x881   : > { %v10810_v47 = vadd.f32 %v10809_v52, %v10808_v25  ;;  %v18215_v52 = vlaneseq }
 0x882   : > { %v11714_v0 = vpop.eup %11713  ;;  %v10811_v24 = vpop.f32.mrf.mxu0 }
 0x883   : > { %v5464_v44 = vmul.f32 %v10810_v47, %v15703_v22  ;;  %v15713_v56 = vmul.f32 %v11714_v0, %v5477_v31  ;;  %v15749_v47 = vand.u32 127, %v18215_v52 }
 0x884   : > { %v10812_v9 = vpop.f32.mrf.mxu0 }
 0x885   : > { %v5479_v28 = vadd.f32 %v15706_v16, %v5464_v44  ;;  %v10813_v40 = vadd.f32 %v10812_v9, %v10811_v24  ;;  %5544 = vadd.xlane.f32.xlu0 %v15713_v56  ;;  %18216 = vst [vmem:[#allocation258_spill] sm:$0xff] %v15749_v47  ;;  %vm5543_vm2 = vcmp.lt.s32.totalorder %v15749_v47, 32  ;;  %vm6034_vm3 = vcmp.ge.s32.totalorder %v15749_v47, 8 }
 0x886   : > { %v11716_v1 = vpop.eup %11715  ;;  %vm6035_vm4 = vcmp.lt.s32.totalorder %v15749_v47, 16  ;;  %vm5827_vm5 = vcmp.lt.s32.totalorder %v15749_v47, 8  ;;  %vm6222_vm9 = vcmp.ge.s32.totalorder %v15749_v47, 72  ;;  %vm6223_vm10 = vcmp.lt.s32.totalorder %v15749_v47, 80 }
 0x887   : > { %v10334_v41 = vmul.f32 -1.442695, %v5479_v28  ;;  %v5465_v62 = vmul.f32 %v10813_v40, %v15703_v22  ;;  %v15718_v55 = vmul.f32 %v11716_v1, %v5478_v50  ;;  %vm6036_vm6 = vmand %vm6034_vm3, %vm6035_vm4  ;;  %vm6015_vm11 = vcmp.ge.s32.totalorder %v15749_v47, 64 }
 0x888   : > { %vm15834_vm7 = vmpackc.low %vm5827_vm5, %vm5827_vm5  ;;  %vm6016_vm12 = vcmp.lt.s32.totalorder %v15749_v47, 72  ;;  %vm6395_vm5 = vcmp.ge.s32.totalorder %v15749_v47, 16 }
 0x889   : > { %11717 = vpow2.f32 %v10334_v41  ;;  %v5480_v27 = vadd.f32 %v15706_v16, %v5465_v62  ;;  %5546 = vadd.xlane.f32.xlu1 %v15718_v55  ;;  %vm15838_vm8 = vmpackc.low %vm6036_vm6, %vm6036_vm6  ;;  %vm6396_vm6 = vcmp.lt.s32.totalorder %v15749_v47, 24 }
 0x88a   : > { %vm6224_vm13 = vmand %vm6222_vm9, %vm6223_vm10  ;;  %vm6583_vm9 = vcmp.ge.s32.totalorder %v15749_v47, 80  ;;  %vm6584_vm10 = vcmp.lt.s32.totalorder %v15749_v47, 88 }
 0x88b   : > { %v10335_v6 = vmul.f32 -1.442695, %v5480_v27  ;;  %vm6017_vm14 = vmand %vm6015_vm11, %vm6016_vm12 }
 0x88c   : > { %vm15912_vm15 = vmpackc.low %vm6224_vm13, %vm6224_vm13  ;;  %vm5926_vm13 = vcmask 523264  }
 0x88d   : > { %11719 = vpow2.f32 %v10335_v6  ;;  %vm15916_vm3 = vmpackc.low %vm6017_vm14, %vm6017_vm14  ;;  %vm6874_vm14 = vcmp.ge.s32.totalorder %v15749_v47, 88 }
 0x88e   : > { %vm6397_vm11 = vmand %vm6395_vm5, %vm6396_vm6 }
 0x88f   : > { %vm6585_vm12 = vmand %vm6583_vm9, %vm6584_vm10  ;;  %vm6687_vm9 = vcmp.ge.s32.totalorder %v15749_v47, 24 }
 0x890   : > { %vm6688_vm10 = vmand %vm6687_vm9, %vm5543_vm2 }
 0x896   : > { %v11718_v59 = vpop.eup %11717 }
 0x897   : > { %v5511_v35 = vadd.f32 1.0, %v11718_v59 }
 0x899   : > { %11721 = vrcp.f32 %v5511_v35 }
 0x89a   : > { %v11720_v45 = vpop.eup %11719 }
 0x89b   : > { %v5512_v46 = vadd.f32 1.0, %v11720_v45 }
 0x89d   : > { %11723 = vrcp.f32 %v5512_v46 }
 0x89e   : > { %v10814_v36 = vpop.f32.mrf.mxu0 }
 0x8a0   : > { %v10815_v53 = vpop.f32.mrf.mxu0 }
 0x8a1   : > { %v10816_v26 = vadd.f32 %v10815_v53, %v10814_v36 }
 0x8a2   : > { %v10817_v13 = vpop.f32.mrf.mxu0 }
 0x8a3   : > { %v5466_v33 = vmul.f32 %v10816_v26, %v15703_v22 }
 0x8a4   : > { %v10818_v29 = vpop.f32.mrf.mxu0 }
 0x8a5   : > { %v5481_v5 = vadd.f32 %v15706_v16, %v5466_v33  ;;  %v10819_v38 = vadd.f32 %v10818_v29, %v10817_v13  ;;  %v11564_v29 = vld [vmem:[%s12116_s30 + $0x38] sm:$0xff]  }
 0x8a6   : > { %v11722_v32 = vpop.eup %11721  ;;  %11050 = vmatprep.subr.bf16.mxu1 %v11564_v29 }
 0x8a7   : > { %v10336_v43 = vmul.f32 -1.442695, %v5481_v5  ;;  %v5467_v7 = vmul.f32 %v10819_v38, %v15703_v22  ;;  %v15725_v3 = vmul.f32 %v11722_v32, %v5479_v28  ;;  %11051 = vmatpush3.bf16.msra.mxu1 %v11564_v29  ;;  %v11566_v38 = vld [vmem:[%s12116_s30 + $0x28] sm:$0xff]  }
 0x8a9   : > { %11725 = vpow2.f32 %v10336_v43  ;;  %v5482_v60 = vadd.f32 %v15706_v16, %v5467_v7  ;;  %5548 = vadd.xlane.f32.xlu0 %v15725_v3  ;;  %v11567_v7 = vld [vmem:[%s12116_s30 + $0x20] sm:$0xff]  }
 0x8aa   : > { %v11724_v20 = vpop.eup %11723 }
 0x8ab   : > { %v10337_v63 = vmul.f32 -1.442695, %v5482_v60  ;;  %v15729_v37 = vmul.f32 %v11724_v20, %v5480_v27 }
 0x8ad   : > { %11727 = vpow2.f32 %v10337_v63  ;;  %5550 = vadd.xlane.f32.xlu0 %v15729_v37 }
 0x8b2   : > { %v10820_v8 = vpop.f32.mrf.mxu0 }
 0x8b4   : > { %v10821_v12 = vpop.f32.mrf.mxu0 }
 0x8b5   : > { %v10822_v49 = vadd.f32 %v10821_v12, %v10820_v8 }
 0x8b6   : > { %v11726_v54 = vpop.eup %11725  ;;  %v10823_v58 = vpop.f32.mrf.mxu0 }
 0x8b7   : > { %v5513_v30 = vadd.f32 1.0, %v11726_v54  ;;  %v5468_v14 = vmul.f32 %v10822_v49, %v15703_v22  ;;  %v11568_v49 = vld [vmem:[%s12116_s30 + $0x18] sm:$0xff]  }
 0x8b8   : > { %v10824_v23 = vpop.f32.mrf.mxu0 }
 0x8b9   : > { %11729 = vrcp.f32 %v5513_v30  ;;  %v5483_v42 = vadd.f32 %v15706_v16, %v5468_v14  ;;  %v10825_v51 = vadd.f32 %v10824_v23, %v10823_v58  ;;  %v11569_v58 = vld [vmem:[%s12116_s30 + $0x10] sm:$0xff]   ;;  %v11570_v23 = vld [vmem:[%s12116_s30 + $0x8] sm:$0xff]  }
 0x8ba   : > { %v11728_v34 = vpop.eup %11727 }
 0x8bb   : > { %v5514_v11 = vadd.f32 1.0, %v11728_v34  ;;  %v10338_v15 = vmul.f32 -1.442695, %v5483_v42  ;;  %v5469_v10 = vmul.f32 %v10825_v51, %v15703_v22 }
 0x8bd   : > { %11731 = vrcp.f32 %v5514_v11  ;;  %v5484_v17 = vadd.f32 %v15706_v16, %v5469_v10 }
 0x8be   : > { %11733 = vpow2.f32 %v10338_v15 }
 0x8bf   : > { %v10339_v31 = vmul.f32 -1.442695, %v5484_v17 }
 0x8c1   : > { %11735 = vpow2.f32 %v10339_v31 }
 0x8c6   : > { %v11730_v57 = vpop.eup %11729 }
 0x8c7   : > { %v15736_v61 = vmul.f32 %v11730_v57, %v5481_v5  ;;  %v11565_v5 = vld [vmem:[%s12116_s30 + $0x30] sm:$0xff]  }
 0x8c8   : > { %11052 = vmatprep.subr.bf16.mxu1 %v11565_v5 }
 0x8c9   : > { %5552 = vadd.xlane.f32.xlu1 %v15736_v61  ;;  %11053 = vmatpush3.bf16.msra.mxu1 %v11565_v5 }
 0x8ca   : > { %v11732_v2 = vpop.eup %11731  ;;  %11054 = vmatprep.subr.bf16.mxu1 %v11566_v38 }
 0x8cb   : > { %v11734_v50 = vpop.eup %11733  ;;  %v15739_v4 = vmul.f32 %v11732_v2, %v5482_v60 }
 0x8cc   : > { %v5515_v18 = vadd.f32 1.0, %v11734_v50 }
 0x8cd   : > { %5554 = vadd.xlane.f32.xlu0 %v15739_v4  ;;  %11055 = vmatpush3.bf16.msra.mxu1 %v11566_v38 }
 0x8ce   : > { %v11736_v21 = vpop.eup %11735  ;;  %11737 = vrcp.f32 %v5515_v18  ;;  %11056 = vmatprep.subr.bf16.mxu1 %v11567_v7 }
 0x8cf   : > { %v5516_v22 = vadd.f32 1.0, %v11736_v21 }
 0x8d1   : > { %11739 = vrcp.f32 %v5516_v22  ;;  %11057 = vmatpush3.bf16.msra.mxu1 %v11567_v7 }
 0x8d2   : > { %11058 = vmatprep.subr.bf16.mxu1 %v11568_v49 }
 0x8d5   : > { %11059 = vmatpush3.bf16.msra.mxu1 %v11568_v49 }
 0x8d6   : > { %11060 = vmatprep.subr.bf16.mxu1 %v11569_v58 }
 0x8d9   : > { %11061 = vmatpush3.bf16.msra.mxu1 %v11569_v58 }
 0x8da   : > { %11062 = vmatprep.subr.bf16.mxu1 %v11570_v23 }
 0x8db   : > { %v11738_v16 = vpop.eup %11737 }
 0x8dc   : > { %v15742_v39 = vmul.f32 %v11738_v16, %v5483_v42  ;;  %v11571_v42 = vld [vmem:[%s12116_s30] sm:$0xff]  }
 0x8dd   : > { %11063 = vmatpush3.bf16.msra.mxu1 %v11570_v23 }
 0x8de   : > { %v11740_v19 = vpop.eup %11739  ;;  %5556 = vadd.xlane.f32.xlu1 %v15742_v39  ;;  %11064 = vmatprep.subr.bf16.mxu1 %v11571_v42 }
 0x8df   : > { %v15745_v25 = vmul.f32 %v11740_v19, %v5484_v17 }
 0x8e1   : > { %5558 = vadd.xlane.f32.xlu0 %v15745_v25  ;;  %11065 = vmatpush3.bf16.msra.mxu1 %v11571_v42 }
 0x90e   : > { %v5545_v0 = vpop.xlane.xlu0 %5544 }
 0x90f   : > { %v5560_v24 = vmul.f32 0.03125, %v5545_v0 }
 0x911   : > { %v5568_v44 = vsub.f32 %v15713_v56, %v5560_v24 }
 0x912   : > { %v5547_v9 = vpop.xlane.xlu1 %5546 }
 0x913   : > { %v5561_v28 = vmul.f32 0.03125, %v5547_v9  ;;  %v15755_v40 = vsel %vm5543_vm2, %v5568_v44, 0.0  ;;  %v10340_v44 = vld [vmem:[%s12106_s19] ss:$0 sm:$0xff] }
 0x914   : > { %v5584_v1 = vmul.f32 %v15755_v40, %v15755_v40 }
 0x915   : > { %v5569_v41 = vsub.f32 %v15718_v55, %v5561_v28 }
 0x916   : > { %5592 = vadd.xlane.f32.xlu1 %v5584_v1 }
 0x917   : > { %v15762_v62 = vsel %vm5543_vm2, %v5569_v41, 0.0  ;;  %v10341_v41 = vld [vmem:[%s12111_s24] ss:$0 sm:$0xff] }
 0x918   : > { %v5585_v27 = vmul.f32 %v15762_v62, %v15762_v62 }
 0x91a   : > { %5594 = vadd.xlane.f32.xlu0 %v5585_v27 }
 0x932   : > { %v5549_v6 = vpop.xlane.xlu0 %5548 }
 0x933   : > { %v5562_v59 = vmul.f32 0.03125, %v5549_v6 }
 0x935   : > { %v5570_v35 = vsub.f32 %v15725_v3, %v5562_v59 }
 0x936   : > { %v5551_v45 = vpop.xlane.xlu0 %5550 }
 0x937   : > { %v5563_v46 = vmul.f32 0.03125, %v5551_v45  ;;  %v15769_v36 = vsel %vm5543_vm2, %v5570_v35, 0.0 }
 0x938   : > { %v5586_v53 = vmul.f32 %v15769_v36, %v15769_v36 }
 0x939   : > { %v5571_v26 = vsub.f32 %v15729_v37, %v5563_v46 }
 0x93a   : > { %5596 = vadd.xlane.f32.xlu1 %v5586_v53 }
 0x93b   : > { %v15776_v13 = vsel %vm5543_vm2, %v5571_v26, 0.0 }
 0x93c   : > { %v5587_v33 = vmul.f32 %v15776_v13, %v15776_v13 }
 0x93e   : > { %5598 = vadd.xlane.f32.xlu0 %v5587_v33 }
 0x952   : > { %v5553_v32 = vpop.xlane.xlu1 %5552 }
 0x953   : > { %v5564_v43 = vmul.f32 0.03125, %v5553_v32 }
 0x955   : > { %v5572_v60 = vsub.f32 %v15736_v61, %v5564_v43 }
 0x956   : > { %v5555_v20 = vpop.xlane.xlu0 %5554 }
 0x957   : > { %v5565_v63 = vmul.f32 0.03125, %v5555_v20  ;;  %v15787_v8 = vsel %vm5543_vm2, %v5572_v60, 0.0 }
 0x958   : > { %v5588_v12 = vmul.f32 %v15787_v8, %v15787_v8 }
 0x959   : > { %v5573_v54 = vsub.f32 %v15739_v4, %v5565_v63 }
 0x95a   : > { %5600 = vadd.xlane.f32.xlu1 %v5588_v12 }
 0x95b   : > { %v15796_v30 = vsel %vm5543_vm2, %v5573_v54, 0.0 }
 0x95c   : > { %v5589_v14 = vmul.f32 %v15796_v30, %v15796_v30 }
 0x95e   : > { %5602 = vadd.xlane.f32.xlu0 %v5589_v14 }
 0x967   : > { %v5557_v51 = vpop.xlane.xlu1 %5556 }
 0x968   : > { %v5566_v34 = vmul.f32 0.03125, %v5557_v51 }
 0x96a   : > { %v5574_v11 = vsub.f32 %v15742_v39, %v5566_v34  ;;  %v5559_v15 = vpop.xlane.xlu0 %5558 }
 0x96b   : > { %v5567_v10 = vmul.f32 0.03125, %v5559_v15 }
 0x96c   : > { %v15805_v17 = vsel %vm5543_vm2, %v5574_v11, 0.0 }
 0x96d   : > { %v5575_v31 = vsub.f32 %v15745_v25, %v5567_v10  ;;  %v5590_v57 = vmul.f32 %v15805_v17, %v15805_v17 }
 0x96f   : > { %5604 = vadd.xlane.f32.xlu1 %v5590_v57  ;;  %v15812_v2 = vsel %vm5543_vm2, %v5575_v31, 0.0 }
 0x970   : > { %v5591_v50 = vmul.f32 %v15812_v2, %v15812_v2 }
 0x972   : > { %5606 = vadd.xlane.f32.xlu0 %v5591_v50 }
 0x99f   : > { %v5593_v18 = vpop.xlane.xlu1 %5592 }
 0x9a0   : > { %v5608_v21 = vmul.f32 0.03125, %v5593_v18 }
 0x9a2   : > { %v5616_v22 = vadd.f32 1e-05, %v5608_v21 }
 0x9a3   : > { %v5595_v16 = vpop.xlane.xlu0 %5594 }
 0x9a4   : > { %11741 = vrsqrt.f32 %v5616_v22  ;;  %v5609_v19 = vmul.f32 0.03125, %v5595_v16 }
 0x9a6   : > { %v5617_v52 = vadd.f32 1e-05, %v5609_v19 }
 0x9a8   : > { %11743 = vrsqrt.f32 %v5617_v52 }
 0x9b1   : > { %v11742_v0 = vpop.eup %11741 }
 0x9b2   : > { %v5632_v24 = vmul.f32 %v11742_v0, %v15755_v40 }
 0x9b4   : > { %v5647_v1 = vmul.f32 %v10340_v44, %v5632_v24 }
 0x9b5   : > { %v11744_v9 = vpop.eup %11743 }
 0x9b6   : > { %v5633_v28 = vmul.f32 %v11744_v9, %v15762_v62  ;;  %v5662_v6 = vadd.f32 %v10341_v41, %v5647_v1 }
 0x9b8   : > { %v5648_v27 = vmul.f32 %v10340_v44, %v5633_v28 }
 0x9ba   : > { %v5663_v59 = vadd.f32 %v10341_v41, %v5648_v27  ;;  %v10342_v27 = vld [vmem:[%s12121_s6] ss:$0 sm:$0xff] }
 0x9bc   : > { %v5670_v35 = vpack.c.bf16 %v5663_v59, %v5662_v6 }
 0x9be   : > { %11066 = vmatprep.mubr.bf16.mxu1 %v5670_v35 }
 0x9c3   : > { %v5597_v45 = vpop.xlane.xlu1 %5596 }
 0x9c4   : > { %v5610_v46 = vmul.f32 0.03125, %v5597_v45 }
 0x9c6   : > { %v5618_v53 = vadd.f32 1e-05, %v5610_v46 }
 0x9c7   : > { %v5599_v26 = vpop.xlane.xlu0 %5598 }
 0x9c8   : > { %11745 = vrsqrt.f32 %v5618_v53  ;;  %v5611_v33 = vmul.f32 0.03125, %v5599_v26 }
 0x9ca   : > { %v5619_v29 = vadd.f32 1e-05, %v5611_v33 }
 0x9cc   : > { %11747 = vrsqrt.f32 %v5619_v29 }
 0x9d5   : > { %v11746_v40 = vpop.eup %11745 }
 0x9d6   : > { %v5634_v5 = vmul.f32 %v11746_v40, %v15769_v36 }
 0x9d8   : > { %v5649_v32 = vmul.f32 %v10340_v44, %v5634_v5 }
 0x9d9   : > { %v11748_v38 = vpop.eup %11747 }
 0x9da   : > { %v5635_v62 = vmul.f32 %v11748_v38, %v15776_v13  ;;  %v5664_v7 = vadd.f32 %v10341_v41, %v5649_v32 }
 0x9dc   : > { %v5650_v43 = vmul.f32 %v10340_v44, %v5635_v62 }
 0x9de   : > { %v5665_v60 = vadd.f32 %v10341_v41, %v5650_v43 }
 0x9e0   : > { %v5671_v20 = vpack.c.bf16 %v5665_v60, %v5664_v7 }
 0x9e2   : > { %11067 = vmatmul.mubr.bf16.vlgmr.msra.gmra.mxu1 %v5671_v20 }
 0x9e3   : > { %v5601_v63 = vpop.xlane.xlu1 %5600 }
 0x9e4   : > { %v5612_v12 = vmul.f32 0.03125, %v5601_v63 }
 0x9e6   : > { %v5620_v49 = vadd.f32 1e-05, %v5612_v12 }
 0x9e7   : > { %v5603_v54 = vpop.xlane.xlu0 %5602 }
 0x9e8   : > { %11749 = vrsqrt.f32 %v5620_v49  ;;  %v5613_v58 = vmul.f32 0.03125, %v5603_v54 }
 0x9ea   : > { %v5621_v14 = vadd.f32 1e-05, %v5613_v58 }
 0x9ec   : > { %11751 = vrsqrt.f32 %v5621_v14 }
 0x9f5   : > { %v11750_v23 = vpop.eup %11749 }
 0x9f6   : > { %v5636_v36 = vmul.f32 %v11750_v23, %v15787_v8 }
 0x9f8   : > { %v5605_v42 = vpop.xlane.xlu1 %5604  ;;  %v5651_v11 = vmul.f32 %v10340_v44, %v5636_v36 }
 0x9f9   : > { %v11752_v51 = vpop.eup %11751  ;;  %v5614_v13 = vmul.f32 0.03125, %v5605_v42 }
 0x9fa   : > { %v5637_v34 = vmul.f32 %v11752_v51, %v15796_v30  ;;  %v5666_v18 = vadd.f32 %v10341_v41, %v5651_v11 }
 0x9fb   : > { %v5622_v15 = vadd.f32 1e-05, %v5614_v13  ;;  %v5607_v10 = vpop.xlane.xlu0 %5606 }
 0x9fc   : > { %v5615_v31 = vmul.f32 0.03125, %v5607_v10  ;;  %v5652_v57 = vmul.f32 %v10340_v44, %v5637_v34 }
 0x9fd   : > { %11753 = vrsqrt.f32 %v5622_v15 }
 0x9fe   : > { %v5623_v50 = vadd.f32 1e-05, %v5615_v31  ;;  %v5667_v21 = vadd.f32 %v10341_v41, %v5652_v57 }
 0xa00   : > { %11755 = vrsqrt.f32 %v5623_v50  ;;  %v5672_v22 = vpack.c.bf16 %v5667_v21, %v5666_v18 }
 0xa02   : > { %11070 = vmatprep.mubr.bf16.mxu1 %v5672_v22 }
 0xa0a   : > { %v11754_v16 = vpop.eup %11753 }
 0xa0b   : > { %v5638_v8 = vmul.f32 %v11754_v16, %v15805_v17 }
 0xa0d   : > { %v11756_v19 = vpop.eup %11755  ;;  %v5653_v30 = vmul.f32 %v10340_v44, %v5638_v8 }
 0xa0e   : > { %v5639_v52 = vmul.f32 %v11756_v19, %v15812_v2 }
 0xa0f   : > { %v5668_v24 = vadd.f32 %v10341_v41, %v5653_v30 }
 0xa10   : > { %v5654_v0 = vmul.f32 %v10340_v44, %v5639_v52 }
 0xa12   : > { %v5669_v9 = vadd.f32 %v10341_v41, %v5654_v0 }
 0xa14   : > { %v5673_v28 = vpack.c.bf16 %v5669_v9, %v5668_v24 }
 0xa16   : > { %11071 = vmatmul.mubr.bf16.gmra.mxu1 %v5673_v28 }
 0xaa2   : > { %v11068_v1 = vpop.f32.mrf.mxu1 }
 0xaa3   : > { %v5788_v17 = vadd.f32 %v11068_v1, %v10342_v27 }
 0xaa4   : > { %v5779_v6 = vpop.f32.mrf.mxu1 }
 0xaa5   : > { %v5780_v44 = vadd.f32 %v10342_v27, %v5779_v6 }
 0xaa6   : > { %v11069_v59 = vpop.f32.mrf.mxu1 }
 0xaa7   : > { %v5791_v35 = vadd.f32 %v11069_v59, %v10342_v27 }
 0xaa8   : > { %v5782_v2 = vpop.f32.mrf.mxu1 }
 0xaa9   : > { %v15832_v41 = vpack.c.bf16 %v5791_v35, %v5788_v17  ;;  %v5783_v45 = vadd.f32 %v10342_v27, %v5782_v2  ;;  %v11513_v12 = vpack.i.bf16 %v5791_v35, %v5788_v17 }
 0xaab   : > { %v15842_v26 = vpack.c.bf16 %v5783_v45, %v5780_v44  ;;  %v11518_v49 = vpack.i.bf16 %v5783_v45, %v5780_v44 }
 0xaad   : > { %11082 = vmatprep.mubr.msk.bf16.mxu0 %vm15834_vm7, %v15842_v26  ;;  %11098 = vmatprep.mubr.msk.bf16.mxu1 %vm15838_vm8, %v15842_v26 }
 0xad6   : > { %v11072_v33 = vpop.f32.mrf.mxu1 }
 0xad7   : > { %v5804_v5 = vadd.f32 %v11072_v33, %v10342_v27 }
 0xad8   : > { %v5795_v29 = vpop.f32.mrf.mxu1 }
 0xad9   : > { %v5796_v32 = vadd.f32 %v10342_v27, %v5795_v29 }
 0xada   : > { %v11073_v40 = vpop.f32.mrf.mxu1 }
 0xadb   : > { %v5807_v38 = vadd.f32 %v11073_v40, %v10342_v27 }
 0xadc   : > { %v5798_v62 = vpop.f32.mrf.mxu1 }
 0xadd   : > { %v11503_v43 = vpack.i.bf16 %v5807_v38, %v5804_v5  ;;  %v15850_v7 = vpack.c.bf16 %v5807_v38, %v5804_v5  ;;  %v5799_v60 = vadd.f32 %v10342_v27, %v5798_v62 }
 0xadf   : > { %v11508_v20 = vpack.i.bf16 %v5799_v60, %v5796_v32  ;;  %v15852_v63 = vpack.c.bf16 %v5799_v60, %v5796_v32  ;;  %11504 = vrot.lane.b32.xlu1 %v11503_v43, %s12044_s18 }
 0xae1   : > { %11509 = vrot.lane.b32.xlu0 %v11508_v20, %s12044_s18 }
 0xae3   : > { %11514 = vrot.lane.b32.xlu1 %v11513_v12, %s12044_s18 }
 0xae7   : > { %11519 = vrot.lane.b32.xlu1 %v11518_v49, %s12044_s18 }
 0xb51   : > { %v11505_v54 = vpop.permute.xlu1 %11504 }
 0xb52   : > { %v11507_v58 = vunpack.i.h.bf16 %v11505_v54  ;;  %v11506_v14 = vunpack.i.l.bf16 %v11505_v54 }
 0xb53   : > { %v11510_v23 = vpop.permute.xlu0 %11509 }
 0xb54   : > { %v15858_v36 = vpack.c.bf16 %v11507_v58, %v11506_v14  ;;  %v11512_v42 = vunpack.i.h.bf16 %v11510_v23  ;;  %v11511_v51 = vunpack.i.l.bf16 %v11510_v23 }
 0xb55   : > { %v11515_v34 = vpop.permute.xlu1 %11514 }
 0xb56   : > { %v15860_v13 = vpack.c.bf16 %v11512_v42, %v11511_v51  ;;  %11074 = vmatprep.subr.msk.bf16.mxu0 %vm15834_vm7, %v15858_v36  ;;  %11090 = vmatprep.subr.msk.bf16.mxu1 %vm15838_vm8, %v15858_v36  ;;  %v11517_v11 = vunpack.i.h.bf16 %v11515_v34  ;;  %v11516_v15 = vunpack.i.l.bf16 %v11515_v34 }
 0xb57   : > { %11075 = vmatpush3.bf16.xpose.msk.msra.mxu0 %vm15834_vm7, %v15858_v36  ;;  %11091 = vmatpush3.bf16.xpose.msk.msra.mxu1 %vm15838_vm8, %v15858_v36 }
 0xb58   : > { %11076 = vmatprep.subr.msk.bf16.mxu0 %vm15834_vm7, %v15860_v13  ;;  %11092 = vmatprep.subr.msk.bf16.mxu1 %vm15838_vm8, %v15860_v13  ;;  %v15880_v10 = vpack.c.bf16 %v11517_v11, %v11516_v15 }
 0xb59   : > { %v11520_v31 = vpop.permute.xlu1 %11519 }
 0xb5a   : > { %v11522_v57 = vunpack.i.h.bf16 %v11520_v31  ;;  %v11521_v50 = vunpack.i.l.bf16 %v11520_v31 }
 0xb5c   : > { %v15894_v18 = vpack.c.bf16 %v11522_v57, %v11521_v50 }
 0xb5f   : > { %11077 = vmatpush3.bf16.xpose.msk.msra.mxu0 %vm15834_vm7, %v15860_v13  ;;  %11093 = vmatpush3.bf16.xpose.msk.msra.mxu1 %vm15838_vm8, %v15860_v13 }
 0xb60   : > { %11078 = vmatprep.subr.msk.bf16.mxu0 %vm15834_vm7, %v15880_v10  ;;  %11094 = vmatprep.subr.msk.bf16.mxu1 %vm15838_vm8, %v15880_v10 }
 0xb67   : > { %11079 = vmatpush3.bf16.xpose.msk.msra.mxu0 %vm15834_vm7, %v15880_v10  ;;  %11095 = vmatpush3.bf16.xpose.msk.msra.mxu1 %vm15838_vm8, %v15880_v10 }
 0xb68   : > { %11080 = vmatprep.subr.msk.bf16.mxu0 %vm15834_vm7, %v15894_v18  ;;  %11096 = vmatprep.subr.msk.bf16.mxu1 %vm15838_vm8, %v15894_v18 }
 0xb6f   : > { %11081 = vmatpush3.bf16.xpose.msk.msra.mxu0 %vm15834_vm7, %v15894_v18  ;;  %11097 = vmatpush3.bf16.xpose.msk.msra.mxu1 %vm15838_vm8, %v15894_v18 }
 0xb70   : > { %11106 = vmatprep.subr.msk.bf16.mxu0 %vm15912_vm15, %v15850_v7  ;;  %11122 = vmatprep.subr.msk.bf16.mxu1 %vm15916_vm3, %v15850_v7 }
 0xb76   : > { %11083 = vmatmul.mubr.msk.bf16.vlgmr.msra.gmra.mxu0 %vm15834_vm7, %v15832_v41  ;;  %11099 = vmatmul.mubr.msk.bf16.vlgmr.msra.gmra.mxu1 %vm15838_vm8, %v15832_v41 }
 0xb77   : > { %11086 = vmatprep.mubr.msk.bf16.mxu0 %vm15834_vm7, %v15852_v63  ;;  %11102 = vmatprep.mubr.msk.bf16.mxu1 %vm15838_vm8, %v15852_v63 }
 0xb78   : > { %11107 = vmatpush3.bf16.msk.msra.mxu0 %vm15912_vm15, %v15850_v7  ;;  %11123 = vmatpush3.bf16.msk.msra.mxu1 %vm15916_vm3, %v15850_v7 }
 0xb79   : > { %11108 = vmatprep.subr.msk.bf16.mxu0 %vm15912_vm15, %v15852_v63  ;;  %11124 = vmatprep.subr.msk.bf16.mxu1 %vm15916_vm3, %v15852_v63 }
 0xb7c   : > { %11109 = vmatpush3.bf16.msk.msra.mxu0 %vm15912_vm15, %v15852_v63  ;;  %11125 = vmatpush3.bf16.msk.msra.mxu1 %vm15916_vm3, %v15852_v63 }
 0xb7d   : > { %11110 = vmatprep.subr.msk.bf16.mxu0 %vm15912_vm15, %v15832_v41  ;;  %11126 = vmatprep.subr.msk.bf16.mxu1 %vm15916_vm3, %v15832_v41 }
 0xb7e   : > { %11087 = vmatmul.mubr.msk.bf16.gmra.mxu0 %vm15834_vm7, %v15850_v7  ;;  %11103 = vmatmul.mubr.msk.bf16.gmra.mxu1 %vm15838_vm8, %v15850_v7  ;;  %vm15992_vm7 = vmpackc.low %vm6397_vm11, %vm6397_vm11 }
 0xb7f   : > { %vm15996_vm8 = vmpackc.low %vm6585_vm12, %vm6585_vm12 }
 0xb80   : > { %11111 = vmatpush3.bf16.msk.msra.mxu0 %vm15912_vm15, %v15832_v41  ;;  %11127 = vmatpush3.bf16.msk.msra.mxu1 %vm15916_vm3, %v15832_v41  ;;  %vm16296_vm11 = vmpackc.low %vm6688_vm10, %vm6688_vm10 }
 0xb81   : > { %11112 = vmatprep.subr.msk.bf16.mxu0 %vm15912_vm15, %v15842_v26  ;;  %11128 = vmatprep.subr.msk.bf16.mxu1 %vm15916_vm3, %v15842_v26 }
 0xb84   : > { %11113 = vmatpush3.bf16.msk.msra.mxu0 %vm15912_vm15, %v15842_v26  ;;  %11129 = vmatpush3.bf16.msk.msra.mxu1 %vm15916_vm3, %v15842_v26  ;;  %vm6875_vm15 = vcmp.lt.s32.totalorder %v15749_v47, 96 }
 0xb85   : > { %11138 = vmatprep.subr.msk.bf16.mxu0 %vm15992_vm7, %v15858_v36  ;;  %11154 = vmatprep.subr.msk.bf16.mxu1 %vm15996_vm8, %v15850_v7  ;;  %vm6876_vm3 = vmand %vm6874_vm14, %vm6875_vm15 }
 0xb86   : > { %vm10495_vm6 = vmpackc.low %vm6876_vm3, %vm6876_vm3 }
 0xc36   : > { %v11100_v19 = vpop.f32.mrf.mxu1  ;;  %v11084_v50 = vpop.f32.mrf.mxu0 }
 0xc37   : > { %v6128_v24 = vmul.f32 0.35355338, %v11100_v19 }
 0xc38   : > { %v6095_v52 = vpop.f32.mrf.mxu1 }
 0xc39   : > { %v6126_v30 = vmul.f32 0.35355338, %v6095_v52  ;;  %v6140_v59 = vsel %vm5926_vm13, %v6128_v24, -inf }
 0xc3a   : > { %v11101_v0 = vpop.f32.mrf.mxu1 }
 0xc3b   : > { %v6134_v9 = vsel %vm5926_vm13, %v6126_v30, -inf  ;;  %v6129_v6 = vmul.f32 0.35355338, %v11101_v0  ;;  %v5887_v0 = vpop.f32.mrf.mxu0 }
 0xc3c   : > { %6135 = vmax.xlane.f32.xlu0 %v6134_v9  ;;  %v6098_v28 = vpop.f32.mrf.mxu1 }
 0xc3d   : > { %v6127_v1 = vmul.f32 0.35355338, %v6098_v28  ;;  %v6143_v46 = vsel %vm5926_vm13, %v6129_v6, -inf }
 0xc3e   : > { %v11104_v27 = vpop.f32.mrf.mxu1 }
 0xc3f   : > { %v6137_v17 = vsel %vm5926_vm13, %v6127_v1, -inf  ;;  %v6132_v45 = vmul.f32 0.35355338, %v11104_v27  ;;  %v11085_v27 = vpop.f32.mrf.mxu0 }
 0xc40   : > { %6141 = vmax.xlane.f32.xlu0 %v6140_v59  ;;  %6138 = vmax.xlane.f32.xlu1 %v6137_v17  ;;  %v6111_v35 = vpop.f32.mrf.mxu1 }
 0xc41   : > { %v6130_v2 = vmul.f32 0.35355338, %v6111_v35  ;;  %v6152_v5 = vsel %vm5926_vm13, %v6132_v45, -inf }
 0xc42   : > { %v11105_v44 = vpop.f32.mrf.mxu1 }
 0xc43   : > { %v6146_v53 = vsel %vm5926_vm13, %v6130_v2, -inf  ;;  %v6133_v40 = vmul.f32 0.35355338, %v11105_v44 }
 0xc44   : > { %6144 = vmax.xlane.f32.xlu0 %v6143_v46  ;;  %6147 = vmax.xlane.f32.xlu1 %v6146_v53  ;;  %v6114_v33 = vpop.f32.mrf.mxu1 }
 0xc45   : > { %v6131_v29 = vmul.f32 0.35355338, %v6114_v33  ;;  %v6155_v62 = vsel %vm5926_vm13, %v6133_v40, -inf }
 0xc47   : > { %v6149_v38 = vsel %vm5926_vm13, %v6131_v29, -inf }
 0xc48   : > { %6153 = vmax.xlane.f32.xlu1 %v6152_v5  ;;  %6150 = vmax.xlane.f32.xlu0 %v6149_v38  ;;  %v16046_v38 = vmul.f32 0.35355338, %v5887_v0 }
 0xc4c   : > { %6156 = vmax.xlane.f32.xlu0 %v6155_v62 }
 0xcc5   : > { %v6136_v32 = vpop.xlane.xlu0 %6135 }
 0xcc6   : > { %v6158_v43 = vsub.f32 %v6126_v30, %v6136_v32 }
 0xcc8   : > { %v6166_v60 = vmul.f32 1.442695, %v6158_v43 }
 0xcc9   : > { %v6142_v20 = vpop.xlane.xlu0 %6141  ;;  %v6139_v12 = vpop.xlane.xlu1 %6138 }
 0xcca   : > { %11757 = vpow2.f32 %v6166_v60  ;;  %v6160_v49 = vsub.f32 %v6128_v24, %v6142_v20  ;;  %v6159_v54 = vsub.f32 %v6127_v1, %v6139_v12  ;;  %v16054_v20 = vmul.f32 0.35355338, %v11084_v50 }
 0xccc   : > { %v6170_v58 = vmul.f32 1.442695, %v6160_v49  ;;  %v6168_v14 = vmul.f32 1.442695, %v6159_v54  ;;  %v5927_v49 = vsel %vm5926_vm13, %v16046_v38, -inf }
 0xccd   : > { %v6145_v23 = vpop.xlane.xlu0 %6144  ;;  %v6148_v42 = vpop.xlane.xlu1 %6147 }
 0xcce   : > { %11759 = vpow2.f32 %v6170_v58  ;;  %v6161_v51 = vsub.f32 %v6129_v6, %v6145_v23  ;;  %v6162_v34 = vsub.f32 %v6130_v2, %v6148_v42  ;;  %v5890_v2 = vpop.f32.mrf.mxu0  ;;  %v16060_v58 = vmul.f32 0.35355338, %v11085_v27 }
 0xccf   : > { %11761 = vpow2.f32 %v6168_v14  ;;  %v16056_v12 = vmul.f32 0.35355338, %v5890_v2  ;;  %v5933_v23 = vsel %vm5926_vm13, %v16054_v20, -inf }
 0xcd0   : > { %v6172_v11 = vmul.f32 1.442695, %v6161_v51  ;;  %v6174_v15 = vmul.f32 1.442695, %v6162_v34  ;;  %v11088_v33 = vpop.f32.mrf.mxu0 }
 0xcd1   : > { %v6154_v31 = vpop.xlane.xlu1 %6153  ;;  %v6151_v57 = vpop.xlane.xlu0 %6150  ;;  %v5930_v42 = vsel %vm5926_vm13, %v16056_v12, -inf  ;;  %v16068_v34 = vmul.f32 0.35355338, %v11088_v33 }
 0xcd2   : > { %11763 = vpow2.f32 %v6172_v11  ;;  %v6164_v21 = vsub.f32 %v6132_v45, %v6154_v31  ;;  %v6163_v22 = vsub.f32 %v6131_v29, %v6151_v57  ;;  %v5903_v32 = vpop.f32.mrf.mxu0 }
 0xcd3   : > { %11765 = vpow2.f32 %v6174_v15  ;;  %v16062_v14 = vmul.f32 0.35355338, %v5903_v32  ;;  %v5936_v15 = vsel %vm5926_vm13, %v16060_v58, -inf  ;;  %v5945_v50 = vsel %vm5926_vm13, %v16068_v34, -inf }
 0xcd4   : > { %v6178_v19 = vmul.f32 1.442695, %v6164_v21  ;;  %v6176_v52 = vmul.f32 1.442695, %v6163_v22  ;;  %v11089_v54 = vpop.f32.mrf.mxu0 }
 0xcd5   : > { %v6157_v30 = vpop.xlane.xlu0 %6156  ;;  %v5939_v31 = vsel %vm5926_vm13, %v16062_v14, -inf  ;;  %v16076_v57 = vmul.f32 0.35355338, %v11089_v54 }
 0xcd6   : > { %11767 = vpow2.f32 %v6178_v19  ;;  %v6165_v24 = vsub.f32 %v6133_v40, %v6157_v30  ;;  %v5906_v51 = vpop.f32.mrf.mxu0 }
 0xcd7   : > { %v16020_v9 = vpop.eup %11757  ;;  %11769 = vpow2.f32 %v6176_v52  ;;  %v16070_v11 = vmul.f32 0.35355338, %v5906_v51  ;;  %v5948_v22 = vsel %vm5926_vm13, %v16076_v57, -inf }
 0xcd8   : > { %v6180_v28 = vmul.f32 1.442695, %v6165_v24  ;;  %v6182_v1 = vsel %vm5926_vm13, %v16020_v9, 0.0 }
 0xcd9   : > { %6183 = vadd.xlane.f32.xlu1 %v6182_v1  ;;  %v5942_v21 = vsel %vm5926_vm13, %v16070_v11, -inf }
 0xcda   : > { %11771 = vpow2.f32 %v6180_v28 }
 0xcdb   : > { %v16024_v6 = vpop.eup %11759 }
 0xcdc   : > { %v16026_v59 = vpop.eup %11761  ;;  %v6188_v17 = vsel %vm5926_vm13, %v16024_v6, 0.0 }
 0xcdd   : > { %6189 = vadd.xlane.f32.xlu1 %v6188_v17  ;;  %v6185_v35 = vsel %vm5926_vm13, %v16026_v59, 0.0 }
 0xcde   : > { %6186 = vadd.xlane.f32.xlu0 %v6185_v35 }
 0xcdf   : > { %v16032_v44 = vpop.eup %11763 }
 0xce0   : > { %v16034_v45 = vpop.eup %11765  ;;  %v6191_v46 = vsel %vm5926_vm13, %v16032_v44, 0.0 }
 0xce1   : > { %v6194_v53 = vsel %vm5926_vm13, %v16034_v45, 0.0 }
 0xce2   : > { %6195 = vadd.xlane.f32.xlu1 %v6194_v53  ;;  %6192 = vadd.xlane.f32.xlu0 %v6191_v46 }
 0xce3   : > { %v16040_v29 = vpop.eup %11767 }
 0xce4   : > { %v16042_v40 = vpop.eup %11769  ;;  %v6200_v5 = vsel %vm5926_vm13, %v16040_v29, 0.0 }
 0xce5   : > { %v6197_v62 = vsel %vm5926_vm13, %v16042_v40, 0.0 }
 0xce6   : > { %6201 = vadd.xlane.f32.xlu1 %v6200_v5  ;;  %6198 = vadd.xlane.f32.xlu0 %v6197_v62 }
 0xce7   : > { %v16050_v43 = vpop.eup %11771 }
 0xce8   : > { %v6203_v60 = vsel %vm5926_vm13, %v16050_v43, 0.0 }
 0xcea   : > { %5928 = vmax.xlane.f32.xlu1 %v5927_v49  ;;  %6204 = vadd.xlane.f32.xlu0 %v6203_v60 }
 0xcee   : > { %5934 = vmax.xlane.f32.xlu1 %v5933_v23  ;;  %5931 = vmax.xlane.f32.xlu0 %v5930_v42 }
 0xcf2   : > { %5937 = vmax.xlane.f32.xlu0 %v5936_v15  ;;  %5940 = vmax.xlane.f32.xlu1 %v5939_v31 }
 0xcf6   : > { %5946 = vmax.xlane.f32.xlu1 %v5945_v50  ;;  %5943 = vmax.xlane.f32.xlu0 %v5942_v21 }
 0xcfa   : > { %5949 = vmax.xlane.f32.xlu0 %v5948_v22 }
 0xd62   : > { %v6184_v19 = vpop.xlane.xlu1 %6183 }
 0xd63   : > { %11773 = vrcp.f32 %v6184_v19 }
 0xd66   : > { %v6190_v52 = vpop.xlane.xlu1 %6189 }
 0xd67   : > { %v6187_v30 = vpop.xlane.xlu0 %6186 }
 0xd68   : > { %11775 = vrcp.f32 %v6187_v30 }
 0xd69   : > { %11777 = vrcp.f32 %v6190_v52 }
 0xd6b   : > { %v6196_v0 = vpop.xlane.xlu1 %6195  ;;  %v6193_v24 = vpop.xlane.xlu0 %6192 }
 0xd6c   : > { %11779 = vrcp.f32 %v6193_v24 }
 0xd6d   : > { %11781 = vrcp.f32 %v6196_v0 }
 0xd6f   : > { %v6202_v28 = vpop.xlane.xlu1 %6201  ;;  %v6199_v1 = vpop.xlane.xlu0 %6198 }
 0xd70   : > { %11783 = vrcp.f32 %v6199_v1  ;;  %v11774_v27 = vpop.eup %11773 }
 0xd71   : > { %11785 = vrcp.f32 %v6202_v28  ;;  %v6214_v2 = vmul.f32 %v11774_v27, %v16020_v9 }
 0xd73   : > { %v6205_v17 = vpop.xlane.xlu0 %6204  ;;  %v5929_v31 = vpop.xlane.xlu1 %5928 }
 0xd74   : > { %11787 = vrcp.f32 %v6205_v17  ;;  %v5951_v52 = vsub.f32 %v16046_v38, %v5929_v31 }
 0xd75   : > { %v11776_v35 = vpop.eup %11775 }
 0xd76   : > { %v6215_v46 = vmul.f32 %v11776_v35, %v16026_v59  ;;  %v11778_v53 = vpop.eup %11777  ;;  %v5959_v27 = vmul.f32 1.442695, %v5951_v52 }
 0xd77   : > { %v6216_v62 = vmul.f32 %v11778_v53, %v16024_v6  ;;  %v5935_v16 = vpop.xlane.xlu1 %5934  ;;  %v5932_v22 = vpop.xlane.xlu0 %5931 }
 0xd78   : > { %v6237_v33 = vpack.c.bf16 %v6215_v46, %v6214_v2  ;;  %v5953_v28 = vsub.f32 %v16054_v20, %v5935_v16  ;;  %v5952_v17 = vsub.f32 %v16056_v12, %v5932_v22  ;;  %11789 = vpow2.f32 %v5959_v27 }
 0xd79   : > { %v11780_v5 = vpop.eup %11779 }
 0xd7a   : > { %11114 = vmatprep.mubr.msk.bf16.mxu0 %vm5926_vm13, %v6237_v33  ;;  %v6217_v32 = vmul.f32 %v11780_v5, %v16032_v44  ;;  %v11782_v60 = vpop.eup %11781  ;;  %v5963_v33 = vmul.f32 1.442695, %v5953_v28 }
 0xd7b   : > { %v6218_v42 = vmul.f32 %v11782_v60, %v16034_v45  ;;  %v5941_v30 = vpop.xlane.xlu1 %5940  ;;  %v5938_v0 = vpop.xlane.xlu0 %5937 }
 0xd7c   : > { %v6238_v49 = vpack.c.bf16 %v6217_v32, %v6216_v62  ;;  %v5954_v2 = vsub.f32 %v16060_v58, %v5938_v0  ;;  %v5955_v5 = vsub.f32 %v16062_v14, %v5941_v30  ;;  %v5961_v32 = vmul.f32 1.442695, %v5952_v17 }
 0xd7d   : > { %v11784_v54 = vpop.eup %11783  ;;  %11791 = vpow2.f32 %v5963_v33 }
 0xd7e   : > { %v11786_v23 = vpop.eup %11785  ;;  %11115 = vmatmul.mubr.msk.bf16.vlgmr.msra.gmra.mxu0 %vm5926_vm13, %v6238_v49  ;;  %v6219_v9 = vmul.f32 %v11784_v54, %v16042_v40  ;;  %v5965_v49 = vmul.f32 1.442695, %v5954_v2  ;;  %11793 = vpow2.f32 %v5961_v32 }
 0xd7f   : > { %11139 = vmatpush3.bf16.xpose.msk.msra.mxu0 %vm15992_vm7, %v15858_v36  ;;  %v6220_v44 = vmul.f32 %v11786_v23, %v16040_v29  ;;  %v5947_v46 = vpop.xlane.xlu1 %5946  ;;  %v5944_v38 = vpop.xlane.xlu0 %5943  ;;  %v5967_v23 = vmul.f32 1.442695, %v5955_v5 }
 0xd80   : > { %11140 = vmatprep.subr.msk.bf16.mxu0 %vm15992_vm7, %v15860_v13  ;;  %v6239_v6 = vpack.c.bf16 %v6219_v9, %v6218_v42  ;;  %v5957_v58 = vsub.f32 %v16068_v34, %v5947_v46  ;;  %v5956_v14 = vsub.f32 %v16070_v11, %v5944_v38  ;;  %11795 = vpow2.f32 %v5965_v49 }
 0xd81   : > { %v11788_v59 = vpop.eup %11787  ;;  %11797 = vpow2.f32 %v5967_v23 }
 0xd82   : > { %v6221_v51 = vmul.f32 %v11788_v59, %v16050_v43  ;;  %11118 = vmatprep.mubr.msk.bf16.mxu0 %vm5926_vm13, %v6239_v6  ;;  %v5971_v34 = vmul.f32 1.442695, %v5957_v58  ;;  %v5969_v11 = vmul.f32 1.442695, %v5956_v14 }
 0xd84   : > { %v6240_v15 = vpack.c.bf16 %v6221_v51, %v6220_v44  ;;  %v5950_v44 = vpop.xlane.xlu0 %5949  ;;  %11799 = vpow2.f32 %v5971_v34 }
 0xd85   : > { %v5958_v16 = vsub.f32 %v16076_v57, %v5950_v44  ;;  %11801 = vpow2.f32 %v5969_v11 }
 0xd86   : > { %11119 = vmatmul.mubr.msk.bf16.gmra.mxu0 %vm5926_vm13, %v6240_v15 }
 0xd87   : > { %11141 = vmatpush3.bf16.xpose.msk.msra.mxu0 %vm15992_vm7, %v15860_v13  ;;  %11146 = vmatprep.mubr.msk.bf16.mxu0 %vm15992_vm7, %v15842_v26 }
 0xd88   : > { %11142 = vmatprep.subr.msk.bf16.mxu0 %vm15992_vm7, %v15880_v10 }
 0xd8f   : > { %11143 = vmatpush3.bf16.xpose.msk.msra.mxu0 %vm15992_vm7, %v15880_v10 }
 0xd90   : > { %11144 = vmatprep.subr.msk.bf16.mxu0 %vm15992_vm7, %v15894_v18 }
 0xd97   : > { %11145 = vmatpush3.bf16.xpose.msk.msra.mxu0 %vm15992_vm7, %v15894_v18 }
 0xd98   : > { %11186 = vmatprep.subr.msk.bf16.mxu0 %vm10495_vm6, %v15850_v7 }
 0xd9e   : > { %11147 = vmatmul.mubr.msk.bf16.vlgmr.msra.gmra.mxu0 %vm15992_vm7, %v15832_v41 }
 0xd9f   : > { %11150 = vmatprep.mubr.msk.bf16.mxu0 %vm15992_vm7, %v15852_v63  ;;  %11187 = vmatpush3.bf16.msk.msra.mxu0 %vm10495_vm6, %v15850_v7 }
 0xda0   : > { %11188 = vmatprep.subr.msk.bf16.mxu0 %vm10495_vm6, %v15852_v63 }
 0xda3   : > { %11189 = vmatpush3.bf16.msk.msra.mxu0 %vm10495_vm6, %v15852_v63 }
 0xda4   : > { %11190 = vmatprep.subr.msk.bf16.mxu0 %vm10495_vm6, %v15832_v41 }
 0xda6   : > { %11151 = vmatmul.mubr.msk.bf16.gmra.mxu0 %vm15992_vm7, %v15850_v7 }
 0xda7   : > { %11191 = vmatpush3.bf16.msk.msra.mxu0 %vm10495_vm6, %v15832_v41 }
 0xda8   : > { %11192 = vmatprep.subr.msk.bf16.mxu0 %vm10495_vm6, %v15842_v26 }
 0xdab   : > { %11193 = vmatpush3.bf16.msk.msra.mxu0 %vm10495_vm6, %v15842_v26 }
 0xe3e   : > { %v16139_v45 = vpop.f32.mrf.mxu0 }
 0xe40   : > { %v16141_v29 = vpop.f32.mrf.mxu0 }
 0xe42   : > { %v16143_v40 = vpop.f32.mrf.mxu0 }
 0xe44   : > { %v16145_v43 = vpop.f32.mrf.mxu0 }
 0xe46   : > { %v16147_v50 = vpop.f32.mrf.mxu0 }
 0xe48   : > { %v16149_v21 = vpop.f32.mrf.mxu0 }
 0xe4a   : > { %v16151_v19 = vpop.f32.mrf.mxu0 }
 0xe4c   : > { %v16154_v24 = vpop.f32.mrf.mxu0 }
 0xe5e   : > { %v11148_v1 = vpop.f32.mrf.mxu0 }
 0xe5f   : > { %v16162_v60 = vmul.f32 0.35355338, %v11148_v1  ;;  %v5973_v1 = vmul.f32 1.442695, %v5958_v16 }
 0xe60   : > { %v6456_v35 = vpop.f32.mrf.mxu0 }
 0xe61   : > { %v16159_v53 = vmul.f32 0.35355338, %v6456_v35  ;;  %v6501_v59 = vsel %vm5926_vm13, %v16162_v60, -inf  ;;  %v16190_v35 = vpop.eup %11789  ;;  %11803 = vpow2.f32 %v5973_v1 }
 0xe62   : > { %v11149_v62 = vpop.f32.mrf.mxu0  ;;  %v16192_v2 = vpop.eup %11791  ;;  %v5975_v46 = vsel %vm5926_vm13, %v16190_v35, 0.0 }
 0xe63   : > { %v6495_v20 = vsel %vm5926_vm13, %v16159_v53, -inf  ;;  %v16170_v9 = vmul.f32 0.35355338, %v11149_v62  ;;  %v16198_v5 = vpop.eup %11793  ;;  %v5981_v32 = vsel %vm5926_vm13, %v16192_v2, 0.0 }
 0xe64   : > { %6496 = vmax.xlane.f32.xlu1 %v6495_v20  ;;  %v6459_v12 = vpop.f32.mrf.mxu0  ;;  %v16200_v38 = vpop.eup %11795  ;;  %v5978_v20 = vsel %vm5926_vm13, %v16198_v5, 0.0 }
 0xe65   : > { %v16167_v54 = vmul.f32 0.35355338, %v6459_v12  ;;  %v6504_v30 = vsel %vm5926_vm13, %v16170_v9, -inf  ;;  %v16202_v62 = vpop.eup %11797  ;;  %v5984_v23 = vsel %vm5926_vm13, %v16200_v38, 0.0 }
 0xe66   : > { %v11152_v42 = vpop.f32.mrf.mxu0  ;;  %v16208_v12 = vpop.eup %11799  ;;  %v5987_v58 = vsel %vm5926_vm13, %v16202_v62, 0.0 }
 0xe67   : > { %v6498_v6 = vsel %vm5926_vm13, %v16167_v54, -inf  ;;  %v16179_v22 = vmul.f32 0.35355338, %v11152_v42  ;;  %v16210_v49 = vpop.eup %11801  ;;  %v5993_v14 = vsel %vm5926_vm13, %v16208_v12, 0.0 }
 0xe68   : > { %6502 = vmax.xlane.f32.xlu1 %v6501_v59  ;;  %v6472_v51 = vpop.f32.mrf.mxu0  ;;  %6499 = vmax.xlane.f32.xlu0 %v6498_v6  ;;  %v5990_v42 = vsel %vm5926_vm13, %v16210_v49, 0.0 }
 0xe69   : > { %v16176_v15 = vmul.f32 0.35355338, %v6472_v51  ;;  %v6513_v57 = vsel %vm5926_vm13, %v16179_v22, -inf }
 0xe6a   : > { %v11153_v31 = vpop.f32.mrf.mxu0 }
 0xe6b   : > { %v6507_v52 = vsel %vm5926_vm13, %v16176_v15, -inf  ;;  %v16185_v27 = vmul.f32 0.35355338, %v11153_v31 }
 0xe6c   : > { %6508 = vmax.xlane.f32.xlu1 %v6507_v52  ;;  %v6475_v0 = vpop.f32.mrf.mxu0  ;;  %6505 = vmax.xlane.f32.xlu0 %v6504_v30 }
 0xe6d   : > { %v6492_v28 = vmul.f32 0.35355338, %v6475_v0  ;;  %v6516_v33 = vsel %vm5926_vm13, %v16185_v27, -inf }
 0xe6e   : > { %v16220_v59 = vpop.eup %11803 }
 0xe6f   : > { %v6510_v17 = vsel %vm5926_vm13, %v6492_v28, -inf  ;;  %v5996_v6 = vsel %vm5926_vm13, %v16220_v59, 0.0 }
 0xe70   : > { %6514 = vmax.xlane.f32.xlu1 %v6513_v57  ;;  %6511 = vmax.xlane.f32.xlu0 %v6510_v17 }
 0xe74   : > { %5976 = vadd.xlane.f32.xlu1 %v5975_v46  ;;  %6517 = vmax.xlane.f32.xlu0 %v6516_v33 }
 0xe78   : > { %5982 = vadd.xlane.f32.xlu1 %v5981_v32  ;;  %5979 = vadd.xlane.f32.xlu0 %v5978_v20 }
 0xe7c   : > { %5988 = vadd.xlane.f32.xlu1 %v5987_v58  ;;  %5985 = vadd.xlane.f32.xlu0 %v5984_v23 }
 0xe80   : > { %5994 = vadd.xlane.f32.xlu1 %v5993_v14  ;;  %5991 = vadd.xlane.f32.xlu0 %v5990_v42 }
 0xe84   : > { %5997 = vadd.xlane.f32.xlu0 %v5996_v6 }
 0xeed   : > { %v6497_v44 = vpop.xlane.xlu1 %6496 }
 0xeee   : > { %v6519_v51 = vsub.f32 %v16159_v53, %v6497_v44 }
 0xef0   : > { %v6527_v34 = vmul.f32 1.442695, %v6519_v51 }
 0xef1   : > { %v6503_v11 = vpop.xlane.xlu1 %6502  ;;  %v6500_v31 = vpop.xlane.xlu0 %6499 }
 0xef2   : > { %11805 = vpow2.f32 %v6527_v34  ;;  %v6521_v16 = vsub.f32 %v16162_v60, %v6503_v11  ;;  %v6520_v52 = vsub.f32 %v16167_v54, %v6500_v31 }
 0xef4   : > { %v6531_v30 = vmul.f32 1.442695, %v6521_v16  ;;  %v6529_v0 = vmul.f32 1.442695, %v6520_v52 }
 0xef5   : > { %v6509_v1 = vpop.xlane.xlu1 %6508  ;;  %v6506_v57 = vpop.xlane.xlu0 %6505 }
 0xef6   : > { %11807 = vpow2.f32 %v6531_v30  ;;  %v6523_v17 = vsub.f32 %v16176_v15, %v6509_v1  ;;  %v6522_v46 = vsub.f32 %v16170_v9, %v6506_v57 }
 0xef7   : > { %11809 = vpow2.f32 %v6529_v0 }
 0xef8   : > { %v6535_v33 = vmul.f32 1.442695, %v6523_v17  ;;  %v6533_v53 = vmul.f32 1.442695, %v6522_v46 }
 0xef9   : > { %v6515_v32 = vpop.xlane.xlu1 %6514  ;;  %v6512_v20 = vpop.xlane.xlu0 %6511 }
 0xefa   : > { %11811 = vpow2.f32 %v6535_v33  ;;  %v6525_v58 = vsub.f32 %v16179_v22, %v6515_v32  ;;  %v6524_v60 = vsub.f32 %v6492_v28, %v6512_v20 }
 0xefb   : > { %11813 = vpow2.f32 %v6533_v53 }
 0xefc   : > { %v6539_v54 = vmul.f32 1.442695, %v6525_v58  ;;  %v6537_v23 = vmul.f32 1.442695, %v6524_v60 }
 0xefd   : > { %v5977_v14 = vpop.xlane.xlu1 %5976  ;;  %v6518_v42 = vpop.xlane.xlu0 %6517 }
 0xefe   : > { %11815 = vpow2.f32 %v6539_v54  ;;  %v6526_v6 = vsub.f32 %v16185_v27, %v6518_v42 }
 0xeff   : > { %v16231_v15 = vpop.eup %11805  ;;  %11817 = vpow2.f32 %v6537_v23 }
 0xf00   : > { %v6541_v9 = vmul.f32 1.442695, %v6526_v6  ;;  %v6543_v44 = vsel %vm5926_vm13, %v16231_v15, 0.0  ;;  %11819 = vrcp.f32 %v5977_v14 }
 0xf01   : > { %6544 = vadd.xlane.f32.xlu1 %v6543_v44  ;;  %v5983_v51 = vpop.xlane.xlu1 %5982  ;;  %v5980_v22 = vpop.xlane.xlu0 %5979 }
 0xf02   : > { %11821 = vpow2.f32 %v6541_v9 }
 0xf03   : > { %v16235_v28 = vpop.eup %11807  ;;  %11823 = vrcp.f32 %v5980_v22 }
 0xf04   : > { %v16237_v34 = vpop.eup %11809  ;;  %v6549_v27 = vsel %vm5926_vm13, %v16235_v28, 0.0  ;;  %11825 = vrcp.f32 %v5983_v51 }
 0xf05   : > { %6550 = vadd.xlane.f32.xlu1 %v6549_v27  ;;  %v5989_v11 = vpop.xlane.xlu1 %5988  ;;  %v6546_v31 = vsel %vm5926_vm13, %v16237_v34, 0.0  ;;  %v5986_v16 = vpop.xlane.xlu0 %5985 }
 0xf06   : > { %6547 = vadd.xlane.f32.xlu0 %v6546_v31  ;;  %11827 = vrcp.f32 %v5986_v16 }
 0xf07   : > { %v16243_v52 = vpop.eup %11811  ;;  %11829 = vrcp.f32 %v5989_v11 }
 0xf08   : > { %v16245_v30 = vpop.eup %11813  ;;  %v6555_v0 = vsel %vm5926_vm13, %v16243_v52, 0.0 }
 0xf09   : > { %6556 = vadd.xlane.f32.xlu1 %v6555_v0  ;;  %v5995_v1 = vpop.xlane.xlu1 %5994  ;;  %v6552_v57 = vsel %vm5926_vm13, %v16245_v30, 0.0  ;;  %v5992_v17 = vpop.xlane.xlu0 %5991 }
 0xf0a   : > { %6553 = vadd.xlane.f32.xlu0 %v6552_v57  ;;  %11831 = vrcp.f32 %v5992_v17 }
 0xf0b   : > { %v16251_v46 = vpop.eup %11815  ;;  %11833 = vrcp.f32 %v5995_v1 }
 0xf0c   : > { %v16253_v33 = vpop.eup %11817  ;;  %v6561_v53 = vsel %vm5926_vm13, %v16251_v46, 0.0 }
 0xf0d   : > { %6562 = vadd.xlane.f32.xlu1 %v6561_v53  ;;  %v6558_v32 = vsel %vm5926_vm13, %v16253_v33, 0.0  ;;  %v5998_v20 = vpop.xlane.xlu0 %5997  ;;  %v11820_v58 = vpop.eup %11819 }
 0xf0e   : > { %6559 = vadd.xlane.f32.xlu0 %v6558_v32  ;;  %11835 = vrcp.f32 %v5998_v20  ;;  %v6007_v42 = vmul.f32 %v11820_v58, %v16190_v35 }
 0xf0f   : > { %v16259_v60 = vpop.eup %11821 }
 0xf10   : > { %v6564_v54 = vsel %vm5926_vm13, %v16259_v60, 0.0  ;;  %v11824_v23 = vpop.eup %11823 }
 0xf11   : > { %v11826_v14 = vpop.eup %11825  ;;  %v6008_v6 = vmul.f32 %v11824_v23, %v16198_v5 }
 0xf12   : > { %6565 = vadd.xlane.f32.xlu0 %v6564_v54  ;;  %v6009_v51 = vmul.f32 %v11826_v14, %v16192_v2 }
 0xf13   : > { %v11828_v9 = vpop.eup %11827  ;;  %v6030_v44 = vpack.c.bf16 %v6008_v6, %v6007_v42 }
 0xf14   : > { %v6010_v22 = vmul.f32 %v11828_v9, %v16200_v38  ;;  %v11830_v27 = vpop.eup %11829 }
 0xf15   : > { %11130 = vmatprep.mubr.msk.bf16.mxu1 %vm5926_vm13, %v6030_v44  ;;  %v6011_v0 = vmul.f32 %v11830_v27, %v16202_v62 }
 0xf16   : > { %v6031_v11 = vpack.c.bf16 %v6010_v22, %v6009_v51 }
 0xf17   : > { %v11832_v31 = vpop.eup %11831 }
 0xf18   : > { %v11834_v16 = vpop.eup %11833  ;;  %11131 = vmatmul.mubr.msk.bf16.vlgmr.msra.gmra.mxu1 %vm5926_vm13, %v6031_v11  ;;  %v6012_v35 = vmul.f32 %v11832_v31, %v16210_v49 }
 0xf19   : > { %11155 = vmatpush3.bf16.msk.msra.mxu1 %vm15996_vm8, %v15850_v7  ;;  %v6013_v38 = vmul.f32 %v11834_v16, %v16208_v12 }
 0xf1a   : > { %11156 = vmatprep.subr.msk.bf16.mxu1 %vm15996_vm8, %v15852_v63  ;;  %v6032_v2 = vpack.c.bf16 %v6012_v35, %v6011_v0 }
 0xf1b   : > { %v11836_v5 = vpop.eup %11835 }
 0xf1c   : > { %v6014_v1 = vmul.f32 %v11836_v5, %v16220_v59  ;;  %11134 = vmatprep.mubr.msk.bf16.mxu1 %vm5926_vm13, %v6032_v2 }
 0xf1d   : > { %11157 = vmatpush3.bf16.msk.msra.mxu1 %vm15996_vm8, %v15852_v63 }
 0xf1e   : > { %v6033_v62 = vpack.c.bf16 %v6014_v1, %v6013_v38  ;;  %11158 = vmatprep.subr.msk.bf16.mxu1 %vm15996_vm8, %v15832_v41 }
 0xf20   : > { %11135 = vmatmul.mubr.msk.bf16.gmra.mxu1 %vm5926_vm13, %v6033_v62 }
 0xf21   : > { %11159 = vmatpush3.bf16.msk.msra.mxu1 %vm15996_vm8, %v15832_v41 }
 0xf22   : > { %11160 = vmatprep.subr.msk.bf16.mxu1 %vm15996_vm8, %v15842_v26 }
 0xf25   : > { %11161 = vmatpush3.bf16.msk.msra.mxu1 %vm15996_vm8, %v15842_v26 }
 0xf26   : > { %11170 = vmatprep.subr.msk.bf16.mxu1 %vm16296_vm11, %v15858_v36 }
 0xf8a   : > { %v6545_v49 = vpop.xlane.xlu1 %6544 }
 0xf8b   : > { %11837 = vrcp.f32 %v6545_v49 }
 0xf8e   : > { %v6551_v59 = vpop.xlane.xlu1 %6550 }
 0xf8f   : > { %v6548_v57 = vpop.xlane.xlu0 %6547 }
 0xf90   : > { %11839 = vrcp.f32 %v6548_v57 }
 0xf91   : > { %11841 = vrcp.f32 %v6551_v59 }
 0xf92   : > { %v6557_v17 = vpop.xlane.xlu1 %6556 }
 0xf93   : > { %v6554_v53 = vpop.xlane.xlu0 %6553 }
 0xf94   : > { %11843 = vrcp.f32 %v6554_v53 }
 0xf95   : > { %11845 = vrcp.f32 %v6557_v17 }
 0xf96   : > { %v6563_v32 = vpop.xlane.xlu1 %6562 }
 0xf97   : > { %v6560_v20 = vpop.xlane.xlu0 %6559 }
 0xf98   : > { %11847 = vrcp.f32 %v6560_v20  ;;  %v11838_v8 = vpop.eup %11837 }
 0xf99   : > { %11849 = vrcp.f32 %v6563_v32  ;;  %v6575_v23 = vmul.f32 %v11838_v8, %v16231_v15 }
 0xf9b   : > { %v6566_v58 = vpop.xlane.xlu0 %6565 }
 0xf9c   : > { %11851 = vrcp.f32 %v6566_v58 }
 0xf9d   : > { %v11840_v54 = vpop.eup %11839 }
 0xf9e   : > { %v6576_v14 = vmul.f32 %v11840_v54, %v16237_v34  ;;  %v11842_v42 = vpop.eup %11841 }
 0xf9f   : > { %v6577_v44 = vmul.f32 %v11842_v42, %v16235_v28 }
 0xfa0   : > { %v6598_v6 = vpack.c.bf16 %v6576_v14, %v6575_v23 }
 0xfa1   : > { %v11844_v9 = vpop.eup %11843 }
 0xfa2   : > { %v6578_v51 = vmul.f32 %v11844_v9, %v16245_v30  ;;  %11162 = vmatprep.mubr.msk.bf16.mxu1 %vm5926_vm13, %v6598_v6  ;;  %v11846_v22 = vpop.eup %11845 }
 0xfa3   : > { %v6579_v31 = vmul.f32 %v11846_v22, %v16243_v52 }
 0xfa4   : > { %v6599_v27 = vpack.c.bf16 %v6578_v51, %v6577_v44 }
 0xfa5   : > { %v11848_v11 = vpop.eup %11847 }
 0xfa6   : > { %11163 = vmatmul.mubr.msk.bf16.vlgmr.msra.gmra.mxu1 %vm5926_vm13, %v6599_v27  ;;  %v6580_v15 = vmul.f32 %v11848_v11, %v16253_v33  ;;  %v11850_v16 = vpop.eup %11849 }
 0xfa7   : > { %11171 = vmatpush3.bf16.xpose.msk.msra.mxu1 %vm16296_vm11, %v15858_v36  ;;  %v6581_v30 = vmul.f32 %v11850_v16, %v16251_v46 }
 0xfa8   : > { %11172 = vmatprep.subr.msk.bf16.mxu1 %vm16296_vm11, %v15860_v13  ;;  %v6600_v28 = vpack.c.bf16 %v6580_v15, %v6579_v31 }
 0xfa9   : > { %v11852_v34 = vpop.eup %11851 }
 0xfaa   : > { %11166 = vmatprep.mubr.msk.bf16.mxu1 %vm5926_vm13, %v6600_v28  ;;  %v6582_v0 = vmul.f32 %v11852_v34, %v16259_v60 }
 0xfac   : > { %v6601_v52 = vpack.c.bf16 %v6582_v0, %v6581_v30 }
 0xfae   : > { %11167 = vmatmul.mubr.msk.bf16.gmra.mxu1 %vm5926_vm13, %v6601_v52 }
 0xfaf   : > { %11173 = vmatpush3.bf16.xpose.msk.msra.mxu1 %vm16296_vm11, %v15860_v13  ;;  %11178 = vmatprep.mubr.msk.bf16.mxu1 %vm16296_vm11, %v15842_v26 }
 0xfb0   : > { %11174 = vmatprep.subr.msk.bf16.mxu1 %vm16296_vm11, %v15880_v10 }
 0xfb7   : > { %11175 = vmatpush3.bf16.xpose.msk.msra.mxu1 %vm16296_vm11, %v15880_v10 }
 0xfb8   : > { %11176 = vmatprep.subr.msk.bf16.mxu1 %vm16296_vm11, %v15894_v18 }
 0xfbf   : > { %11177 = vmatpush3.bf16.xpose.msk.msra.mxu1 %vm16296_vm11, %v15894_v18 }
 0xfc6   : > { %11179 = vmatmul.mubr.msk.bf16.vlgmr.msra.gmra.mxu1 %vm16296_vm11, %v15832_v41 }
 0xfc7   : > { %11182 = vmatprep.mubr.msk.bf16.mxu1 %vm16296_vm11, %v15852_v63 }
 0xfce   : > { %11183 = vmatmul.mubr.msk.bf16.gmra.mxu1 %vm16296_vm11, %v15850_v7 }
 0xfd8   : > { %v11132_v26 = vpop.f32.mrf.mxu1 }
 0xfd9   : > { %v6373_v35 = vadd.f32 %v11132_v26, %v16139_v45 }
 0xfda   : > { %v6364_v36 = vpop.f32.mrf.mxu1 }
 0xfdb   : > { %v6365_v5 = vadd.f32 %v6364_v36, %v16141_v29 }
 0xfdc   : > { %v11133_v13 = vpop.f32.mrf.mxu1 }
 0xfdd   : > { %v6376_v38 = vadd.f32 %v11133_v13, %v16143_v40 }
 0xfde   : > { %v6367_v10 = vpop.f32.mrf.mxu1 }
 0xfdf   : > { %v6368_v62 = vadd.f32 %v6367_v10, %v16145_v43 }
 0xfe0   : > { %v11136_v46 = vpop.f32.mrf.mxu1 }
 0xfe1   : > { %v6389_v59 = vadd.f32 %v11136_v46, %v16147_v50 }
 0xfe2   : > { %v6380_v33 = vpop.f32.mrf.mxu1 }
 0xfe3   : > { %v6381_v29 = vadd.f32 %v6380_v33, %v16149_v21 }
 0xfe4   : > { %v11137_v60 = vpop.f32.mrf.mxu1 }
 0xfe5   : > { %v6392_v40 = vadd.f32 %v11137_v60, %v16151_v19 }
 0xfe6   : > { %v16351_v18 = vpop.f32.mrf.mxu1 }
0x1066   : > { %v11164_v41 = vpop.f32.mrf.mxu1 }
0x1067   : > { %v16355_v2 = vadd.f32 %v11164_v41, %v6373_v35 }
0x1068   : > { %v6648_v63 = vpop.f32.mrf.mxu1 }
0x1069   : > { %v16358_v7 = vadd.f32 %v6648_v63, %v6365_v5 }
0x106a   : > { %v11165_v1 = vpop.f32.mrf.mxu1 }
0x106b   : > { %v16361_v12 = vadd.f32 %v11165_v1, %v6376_v38 }
0x106c   : > { %v6651_v49 = vpop.f32.mrf.mxu1 }
0x106d   : > { %v16364_v57 = vadd.f32 %v6651_v49, %v6368_v62 }
0x106e   : > { %v11168_v45 = vpop.f32.mrf.mxu1 }
0x106f   : > { %v16367_v17 = vadd.f32 %v11168_v45, %v6389_v59 }
0x1070   : > { %v6664_v53 = vpop.f32.mrf.mxu1 }
0x1071   : > { %v16370_v32 = vadd.f32 %v6664_v53, %v6381_v29 }
0x1072   : > { %v11169_v20 = vpop.f32.mrf.mxu1 }
0x1073   : > { %v16372_v8 = vadd.f32 %v11169_v20, %v6392_v40 }
0x1074   : > { %v16374_v43 = vpop.f32.mrf.mxu1 }
0x1086   : > { %v11180_v58 = vpop.f32.mrf.mxu1 }
0x1087   : > { %v6780_v14 = vmul.f32 0.35355338, %v11180_v58 }
0x1088   : > { %v6747_v54 = vpop.f32.mrf.mxu1 }
0x1089   : > { %v6778_v50 = vmul.f32 0.35355338, %v6747_v54  ;;  %v6792_v19 = vsel %vm5926_vm13, %v6780_v14, -inf }
0x108a   : > { %v11181_v23 = vpop.f32.mrf.mxu1 }
0x108b   : > { %v6786_v42 = vsel %vm5926_vm13, %v6778_v50, -inf  ;;  %v6781_v44 = vmul.f32 0.35355338, %v11181_v23 }
0x108c   : > { %6787 = vmax.xlane.f32.xlu1 %v6786_v42  ;;  %v6750_v21 = vpop.f32.mrf.mxu1 }
0x108d   : > { %v6779_v6 = vmul.f32 0.35355338, %v6750_v21  ;;  %v6795_v15 = vsel %vm5926_vm13, %v6781_v44, -inf }
0x108e   : > { %v11184_v9 = vpop.f32.mrf.mxu1 }
0x108f   : > { %v6789_v51 = vsel %vm5926_vm13, %v6779_v6, -inf  ;;  %v6784_v31 = vmul.f32 0.35355338, %v11184_v9 }
0x1090   : > { %6793 = vmax.xlane.f32.xlu1 %v6792_v19  ;;  %6790 = vmax.xlane.f32.xlu0 %v6789_v51  ;;  %v6763_v22 = vpop.f32.mrf.mxu1 }
0x1091   : > { %v6782_v27 = vmul.f32 0.35355338, %v6763_v22  ;;  %v6804_v0 = vsel %vm5926_vm13, %v6784_v31, -inf }
0x1092   : > { %v11185_v11 = vpop.f32.mrf.mxu1 }
0x1093   : > { %v6798_v16 = vsel %vm5926_vm13, %v6782_v27, -inf  ;;  %v6785_v30 = vmul.f32 0.35355338, %v11185_v11 }
0x1094   : > { %6796 = vmax.xlane.f32.xlu0 %v6795_v15  ;;  %6799 = vmax.xlane.f32.xlu1 %v6798_v16  ;;  %v6766_v28 = vpop.f32.mrf.mxu1 }
0x1095   : > { %v6783_v34 = vmul.f32 0.35355338, %v6766_v28  ;;  %v6807_v26 = vsel %vm5926_vm13, %v6785_v30, -inf }
0x1097   : > { %v6801_v52 = vsel %vm5926_vm13, %v6783_v34, -inf }
0x1098   : > { %6805 = vmax.xlane.f32.xlu1 %v6804_v0  ;;  %6802 = vmax.xlane.f32.xlu0 %v6801_v52 }
0x109c   : > { %6808 = vmax.xlane.f32.xlu0 %v6807_v26 }
0x1115   : > { %v6788_v36 = vpop.xlane.xlu1 %6787 }
0x1116   : > { %v6810_v13 = vsub.f32 %v6778_v50, %v6788_v36 }
0x1118   : > { %v6818_v10 = vmul.f32 1.442695, %v6810_v13 }
0x1119   : > { %v6794_v46 = vpop.xlane.xlu1 %6793  ;;  %v6791_v33 = vpop.xlane.xlu0 %6790 }
0x111a   : > { %11853 = vpow2.f32 %v6818_v10  ;;  %v6812_v60 = vsub.f32 %v6780_v14, %v6794_v46  ;;  %v6811_v35 = vsub.f32 %v6779_v6, %v6791_v33 }
0x111c   : > { %v6822_v41 = vmul.f32 1.442695, %v6812_v60  ;;  %v6820_v5 = vmul.f32 1.442695, %v6811_v35 }
0x111d   : > { %v6797_v63 = vpop.xlane.xlu0 %6796  ;;  %v6800_v38 = vpop.xlane.xlu1 %6799 }
0x111e   : > { %11855 = vpow2.f32 %v6822_v41  ;;  %v6813_v1 = vsub.f32 %v6781_v44, %v6797_v63  ;;  %v6814_v62 = vsub.f32 %v6782_v27, %v6800_v38 }
0x111f   : > { %11857 = vpow2.f32 %v6820_v5 }
0x1120   : > { %v6824_v49 = vmul.f32 1.442695, %v6813_v1  ;;  %v6826_v59 = vmul.f32 1.442695, %v6814_v62 }
0x1121   : > { %v6806_v45 = vpop.xlane.xlu1 %6805  ;;  %v6803_v29 = vpop.xlane.xlu0 %6802 }
0x1122   : > { %11859 = vpow2.f32 %v6824_v49  ;;  %v6816_v53 = vsub.f32 %v6784_v31, %v6806_v45  ;;  %v6815_v40 = vsub.f32 %v6783_v34, %v6803_v29  ;;  %v11573_v29 = vld [vmem:[%s18231_s23 + $0x30] sm:$0xff]  }
0x1123   : > { %11861 = vpow2.f32 %v6826_v59 }
0x1124   : > { %v6830_v20 = vmul.f32 1.442695, %v6816_v53  ;;  %v6828_v58 = vmul.f32 1.442695, %v6815_v40 }
0x1125   : > { %v6809_v54 = vpop.xlane.xlu0 %6808 }
0x1126   : > { %11863 = vpow2.f32 %v6830_v20  ;;  %v6817_v50 = vsub.f32 %v6785_v30, %v6809_v54  ;;  %v11572_v30 = vld [vmem:[%s18231_s23 + $0x38] sm:$0xff]  }
0x1127   : > { %v11854_v23 = vpop.eup %11853  ;;  %11865 = vpow2.f32 %v6828_v58  ;;  %11202 = vmatprep.subr.bf16.mxu0 %v11572_v30 }
0x1128   : > { %v6832_v14 = vmul.f32 1.442695, %v6817_v50  ;;  %v6834_v42 = vsel %vm5926_vm13, %v11854_v23, 0.0 }
0x1129   : > { %6835 = vadd.xlane.f32.xlu1 %v6834_v42 }
0x112a   : > { %11867 = vpow2.f32 %v6832_v14 }
0x112b   : > { %v11856_v21 = vpop.eup %11855 }
0x112c   : > { %v11858_v6 = vpop.eup %11857  ;;  %v6840_v9 = vsel %vm5926_vm13, %v11856_v21, 0.0 }
0x112d   : > { %6841 = vadd.xlane.f32.xlu1 %v6840_v9  ;;  %v6837_v44 = vsel %vm5926_vm13, %v11858_v6, 0.0  ;;  %v11576_v9 = vld [vmem:[%s18231_s23 + $0x18] sm:$0xff]  }
0x112e   : > { %6838 = vadd.xlane.f32.xlu0 %v6837_v44  ;;  %v11577_v44 = vld [vmem:[%s18231_s23 + $0x10] sm:$0xff]  }
0x112f   : > { %v11860_v19 = vpop.eup %11859 }
0x1130   : > { %v11862_v51 = vpop.eup %11861  ;;  %v6843_v22 = vsel %vm5926_vm13, %v11860_v19, 0.0 }
0x1131   : > { %v6846_v27 = vsel %vm5926_vm13, %v11862_v51, 0.0 }
0x1132   : > { %6847 = vadd.xlane.f32.xlu1 %v6846_v27  ;;  %6844 = vadd.xlane.f32.xlu0 %v6843_v22 }
0x1133   : > { %v11864_v11 = vpop.eup %11863 }
0x1134   : > { %v11866_v31 = vpop.eup %11865  ;;  %v6852_v15 = vsel %vm5926_vm13, %v11864_v11, 0.0 }
0x1135   : > { %v6849_v16 = vsel %vm5926_vm13, %v11866_v31, 0.0 }
0x1136   : > { %6853 = vadd.xlane.f32.xlu1 %v6852_v15  ;;  %6850 = vadd.xlane.f32.xlu0 %v6849_v16 }
0x1137   : > { %v11868_v28 = vpop.eup %11867 }
0x1138   : > { %v6855_v34 = vsel %vm5926_vm13, %v11868_v28, 0.0 }
0x113a   : > { %6856 = vadd.xlane.f32.xlu0 %v6855_v34 }
0x11b2   : > { %v6836_v0 = vpop.xlane.xlu1 %6835 }
0x11b3   : > { %11869 = vrcp.f32 %v6836_v0 }
0x11b6   : > { %v6842_v52 = vpop.xlane.xlu1 %6841 }
0x11b7   : > { %v6839_v26 = vpop.xlane.xlu0 %6838 }
0x11b8   : > { %11871 = vrcp.f32 %v6839_v26 }
0x11b9   : > { %11873 = vrcp.f32 %v6842_v52 }
0x11bb   : > { %v6848_v36 = vpop.xlane.xlu1 %6847  ;;  %v6845_v13 = vpop.xlane.xlu0 %6844 }
0x11bc   : > { %11875 = vrcp.f32 %v6845_v13 }
0x11bd   : > { %11877 = vrcp.f32 %v6848_v36  ;;  %v6384_v36 = vadd.f32 %v16351_v18, %v16154_v24 }
0x11bf   : > { %v6854_v10 = vpop.xlane.xlu1 %6853  ;;  %v6851_v46 = vpop.xlane.xlu0 %6850 }
0x11c0   : > { %11879 = vrcp.f32 %v6851_v46  ;;  %v11870_v33 = vpop.eup %11869 }
0x11c1   : > { %11881 = vrcp.f32 %v6854_v10  ;;  %v6866_v41 = vmul.f32 %v11870_v33, %v11854_v23  ;;  %v11574_v23 = vld [vmem:[%s18231_s23 + $0x28] sm:$0xff]  }
0x11c3   : > { %v6857_v60 = vpop.xlane.xlu0 %6856 }
0x11c4   : > { %11883 = vrcp.f32 %v6857_v60 }
0x11c5   : > { %v11872_v35 = vpop.eup %11871 }
0x11c6   : > { %v6867_v5 = vmul.f32 %v11872_v35, %v11858_v6  ;;  %v11874_v63 = vpop.eup %11873  ;;  %v11575_v6 = vld [vmem:[%s18231_s23 + $0x20] sm:$0xff]  }
0x11c7   : > { %v6868_v62 = vmul.f32 %v11874_v63, %v11856_v21 }
0x11c8   : > { %v6889_v38 = vpack.c.bf16 %v6867_v5, %v6866_v41  ;;  %v10519_v41 = vld [vmem:[%s18232_s26] ss:$0 sm:$0xff]  ;;  %s18240_s26 = sld [smem:[#allocation9_spill]] }
0x11c9   : > { %v11876_v1 = vpop.eup %11875 }
0x11ca   : > { %11194 = vmatprep.mubr.msk.bf16.mxu0 %vm5926_vm13, %v6889_v38  ;;  %v6869_v49 = vmul.f32 %v11876_v1, %v11860_v19  ;;  %v11878_v59 = vpop.eup %11877  ;;  %v11578_v19 = vld [vmem:[%s18231_s23 + $0x8] sm:$0xff]  }
0x11cb   : > { %v6870_v20 = vmul.f32 %v11878_v59, %v11862_v51  ;;  %v11579_v51 = vld [vmem:[%s18231_s23] sm:$0xff]  }
0x11cc   : > { %v6890_v45 = vpack.c.bf16 %v6869_v49, %v6868_v62 }
0x11cd   : > { %v11880_v53 = vpop.eup %11879 }
0x11ce   : > { %v11882_v40 = vpop.eup %11881  ;;  %11195 = vmatmul.mubr.msk.bf16.vlgmr.msra.gmra.mxu0 %vm5926_vm13, %v6890_v45  ;;  %v6871_v58 = vmul.f32 %v11880_v53, %v11866_v31 }
0x11cf   : > { %11203 = vmatpush3.bf16.msra.mxu0 %v11572_v30  ;;  %v6872_v14 = vmul.f32 %v11882_v40, %v11864_v11 }
0x11d0   : > { %v6891_v50 = vpack.c.bf16 %v6871_v58, %v6870_v20  ;;  %11204 = vmatprep.subr.bf16.mxu0 %v11573_v29 }
0x11d1   : > { %v11884_v54 = vpop.eup %11883 }
0x11d2   : > { %v6873_v42 = vmul.f32 %v11884_v54, %v11868_v28  ;;  %11198 = vmatprep.mubr.msk.bf16.mxu0 %vm5926_vm13, %v6891_v50 }
0x11d3   : > { %11205 = vmatpush3.bf16.msra.mxu0 %v11573_v29 }
0x11d4   : > { %v6892_v21 = vpack.c.bf16 %v6873_v42, %v6872_v14  ;;  %11206 = vmatprep.subr.bf16.mxu0 %v11574_v23 }
0x11d6   : > { %11199 = vmatmul.mubr.msk.bf16.gmra.mxu0 %vm5926_vm13, %v6892_v21 }
0x11d7   : > { %11207 = vmatpush3.bf16.msra.mxu0 %v11574_v23 }
0x11d8   : > { %11208 = vmatprep.subr.bf16.mxu0 %v11575_v6 }
0x11db   : > { %11209 = vmatpush3.bf16.msra.mxu0 %v11575_v6 }
0x11dc   : > { %11210 = vmatprep.subr.bf16.mxu0 %v11576_v9 }
0x11df   : > { %11211 = vmatpush3.bf16.msra.mxu0 %v11576_v9 }
0x11e0   : > { %11212 = vmatprep.subr.bf16.mxu0 %v11577_v44 }
0x11e3   : > { %11213 = vmatpush3.bf16.msra.mxu0 %v11577_v44 }
0x11e4   : > { %11214 = vmatprep.subr.bf16.mxu0 %v11578_v19 }
0x11e7   : > { %11215 = vmatpush3.bf16.msra.mxu0 %v11578_v19 }
0x11e8   : > { %11216 = vmatprep.subr.bf16.mxu0 %v11579_v51 }
0x11eb   : > { %11217 = vmatpush3.bf16.msra.mxu0 %v11579_v51 }
0x128e   : > { %v11196_v22 = vpop.f32.mrf.mxu0 }
0x128f   : > { %v6972_v31 = vadd.f32 %v11196_v22, %v16355_v2  ;;  %v6684_v2 = vadd.f32 %v16374_v43, %v6384_v36 }
0x1290   : > { %v6939_v27 = vpop.f32.mrf.mxu0 }
0x1291   : > { %v6970_v28 = vadd.f32 %v6939_v27, %v16358_v7 }
0x1292   : > { %v11197_v11 = vpop.f32.mrf.mxu0 }
0x1293   : > { %v6973_v15 = vadd.f32 %v11197_v11, %v16361_v12 }
0x1294   : > { %v6942_v16 = vpop.f32.mrf.mxu0 }
0x1295   : > { %v6979_v34 = vpack.c.bf16 %v6973_v15, %v6972_v31  ;;  %v6971_v30 = vadd.f32 %v6942_v16, %v16364_v57 }
0x1296   : > { %v11200_v0 = vpop.f32.mrf.mxu0 }
0x1297   : > { %v6978_v52 = vpack.c.bf16 %v6971_v30, %v6970_v28  ;;  %v6976_v12 = vadd.f32 %v11200_v0, %v16367_v17 }
0x1298   : > { %v6955_v26 = vpop.f32.mrf.mxu0 }
0x1299   : > { %11218 = vmatprep.mubr.bf16.mxu0 %v6978_v52  ;;  %v6974_v46 = vadd.f32 %v6955_v26, %v16370_v32 }
0x129a   : > { %v11201_v13 = vpop.f32.mrf.mxu0  ;;  %11219 = vmatmul.mubr.bf16.vlgmr.msra.gmra.mxu0 %v6979_v34 }
0x129b   : > { %v6977_v10 = vadd.f32 %v11201_v13, %v16372_v8 }
0x129c   : > { %v6958_v7 = vpop.f32.mrf.mxu0 }
0x129d   : > { %v6981_v57 = vpack.c.bf16 %v6977_v10, %v6976_v12  ;;  %v6975_v33 = vadd.f32 %v6958_v7, %v6684_v2 }
0x129f   : > { %v6980_v60 = vpack.c.bf16 %v6975_v33, %v6974_v46 }
0x12a1   : > { %11222 = vmatprep.mubr.bf16.mxu0 %v6980_v60 }
0x12a2   : > { %11223 = vmatmul.mubr.bf16.gmra.mxu0 %v6981_v57 }
0x135a   : > { %v11220_v35 = vpop.f32.mrf.mxu0 }
0x135b   : > { %v7113_v43 = vadd.f32 %v11220_v35, %v15725_v3 }
0x135c   : > { %v7080_v24 = vpop.f32.mrf.mxu0 }
0x135d   : > { %v7111_v18 = vadd.f32 %v7080_v24, %v15713_v56  ;;  %v16421_v38 = vadd.f32 %v10519_v41, %v7113_v43  ;;  %v11580_v24 = vld [vmem:[%s18233_s28 + $0x38] sm:$0xff]   ;;  %v11582_v43 = vld [vmem:[%s18233_s28 + $0x28] sm:$0xff]  }
0x135e   : > { %v11221_v5 = vpop.f32.mrf.mxu0  ;;  %11226 = vmatprep.subr.bf16.mxu1 %v11580_v24 }
0x135f   : > { %v16417_v63 = vadd.f32 %v10519_v41, %v7111_v18  ;;  %v7114_v1 = vadd.f32 %v11221_v5, %v15729_v37  ;;  %11227 = vmatpush3.bf16.msra.mxu1 %v11580_v24  ;;  %v11581_v5 = vld [vmem:[%s18233_s28 + $0x30] sm:$0xff]   ;;  %v10540_v24 = vld [vmem:[%s18234_s1 + $0x40] sm:$0xff] }
0x1360   : > { %v7083_v17 = vpop.f32.mrf.mxu0  ;;  %11228 = vmatprep.subr.bf16.mxu1 %v11581_v5 }
0x1361   : > { %v7112_v8 = vadd.f32 %v7083_v17, %v15718_v55  ;;  %7134 = vadd.xlane.f32.xlu1 %v16417_v63  ;;  %v16429_v59 = vadd.f32 %v10519_v41, %v7114_v1  ;;  %v11583_v17 = vld [vmem:[%s18233_s28 + $0x20] sm:$0xff]   ;;  %v10546_v1 = vld [vmem:[%s18234_s1 + $0x70] sm:$0xff] }
0x1362   : > { %v11224_v32 = vpop.f32.mrf.mxu0 }
0x1363   : > { %v16424_v62 = vadd.f32 %v10519_v41, %v7112_v8  ;;  %v7117_v55 = vadd.f32 %v11224_v32, %v15742_v39  ;;  %11229 = vmatpush3.bf16.msra.mxu1 %v11581_v5  ;;  %v10578_v8 = vld [vmem:[%s18234_s1 + $0x170] sm:$0xff]  ;;  %v11584_v32 = vld [vmem:[%s18233_s28 + $0x18] sm:$0xff]  }
0x1364   : > { %v7096_v49 = vpop.f32.mrf.mxu0  ;;  %11230 = vmatprep.subr.bf16.mxu1 %v11582_v43  ;;  %v10558_v5 = vld [vmem:[%s18234_s1 + $0xd0] sm:$0xff] }
0x1365   : > { %v7115_v56 = vadd.f32 %v7096_v49, %v15736_v61  ;;  %7138 = vadd.xlane.f32.xlu1 %v16421_v38  ;;  %7136 = vadd.xlane.f32.xlu0 %v16424_v62  ;;  %v16437_v37 = vadd.f32 %v10519_v41, %v7117_v55  ;;  %v11585_v49 = vld [vmem:[%s18233_s28 + $0x10] sm:$0xff]   ;;  %v11586_v55 = vld [vmem:[%s18233_s28 + $0x8] sm:$0xff]  }
0x1366   : > { %v11225_v3 = vpop.f32.mrf.mxu0 }
0x1367   : > { %v16432_v45 = vadd.f32 %v10519_v41, %v7115_v56  ;;  %v7118_v61 = vadd.f32 %v11225_v3, %v15745_v25  ;;  %11231 = vmatpush3.bf16.msra.mxu1 %v11582_v43  ;;  %v10547_v56 = vld [vmem:[%s18234_s1 + $0x78] sm:$0xff]  ;;  %v10581_v43 = vld [vmem:[%s18234_s1 + $0x188] sm:$0xff] }
0x1368   : > { %v7099_v29 = vpop.f32.mrf.mxu0  ;;  %11232 = vmatprep.subr.bf16.mxu1 %v11583_v17  ;;  %v10579_v3 = vld [vmem:[%s18234_s1 + $0x178] sm:$0xff] }
0x1369   : > { %v7116_v53 = vadd.f32 %v7099_v29, %v15739_v4  ;;  %7140 = vadd.xlane.f32.xlu0 %v16429_v59  ;;  %7142 = vadd.xlane.f32.xlu1 %v16432_v45  ;;  %v16444_v39 = vadd.f32 %v10519_v41, %v7118_v61  ;;  %v11587_v29 = vld [vmem:[%s18233_s28] sm:$0xff]   ;;  %v10586_v61 = vld [vmem:[%s18234_s1 + $0x1b0] sm:$0xff] }
0x136b   : > { %v16440_v40 = vadd.f32 %v10519_v41, %v7116_v53  ;;  %11233 = vmatpush3.bf16.msra.mxu1 %v11583_v17  ;;  %v10587_v53 = vld [vmem:[%s18234_s1 + $0x1b8] sm:$0xff]  ;;  %v10580_v17 = vld [vmem:[%s18234_s1 + $0x180] sm:$0xff] }
0x136c   : > { %11234 = vmatprep.subr.bf16.mxu1 %v11584_v32 }
0x136d   : > { %7146 = vadd.xlane.f32.xlu1 %v16437_v37  ;;  %7144 = vadd.xlane.f32.xlu0 %v16440_v40 }
0x136f   : > { %11235 = vmatpush3.bf16.msra.mxu1 %v11584_v32  ;;  %v10548_v32 = vld [vmem:[%s18234_s1 + $0x80] sm:$0xff] }
0x1370   : > { %11236 = vmatprep.subr.bf16.mxu1 %v11585_v49 }
0x1371   : > { %7148 = vadd.xlane.f32.xlu0 %v16444_v39 }
0x1373   : > { %11237 = vmatpush3.bf16.msra.mxu1 %v11585_v49  ;;  %v10588_v49 = vld [vmem:[%s18234_s1 + $0x1c0] sm:$0xff] }
0x1374   : > { %11238 = vmatprep.subr.bf16.mxu1 %v11586_v55 }
0x1377   : > { %11239 = vmatpush3.bf16.msra.mxu1 %v11586_v55  ;;  %v10571_v55 = vld [vmem:[%s18234_s1 + $0x138] sm:$0xff] }
0x1378   : > { %11240 = vmatprep.subr.bf16.mxu1 %v11587_v29 }
0x137b   : > { %11241 = vmatpush3.bf16.msra.mxu1 %v11587_v29  ;;  %v10570_v29 = vld [vmem:[%s18234_s1 + $0x130] sm:$0xff] }
0x13ea   : > { %v7135_v20 = vpop.xlane.xlu1 %7134 }
0x13eb   : > { %v7150_v4 = vmul.f32 0.03125, %v7135_v20  ;;  %v10555_v20 = vld [vmem:[%s18234_s1 + $0xb8] sm:$0xff] }
0x13ed   : > { %v7158_v58 = vsub.f32 %v16417_v63, %v7150_v4  ;;  %v10554_v4 = vld [vmem:[%s18234_s1 + $0xb0] sm:$0xff] }
0x13ee   : > { %v7139_v54 = vpop.xlane.xlu1 %7138  ;;  %v7137_v50 = vpop.xlane.xlu0 %7136 }
0x13ef   : > { %v7152_v23 = vmul.f32 0.03125, %v7139_v54  ;;  %v7151_v14 = vmul.f32 0.03125, %v7137_v50  ;;  %v16450_v25 = vsel %vm5543_vm2, %v7158_v58, 0.0  ;;  %v10577_v58 = vld [vmem:[%s18234_s1 + $0x168] sm:$0xff]  ;;  %v10576_v54 = vld [vmem:[%s18234_s1 + $0x160] sm:$0xff]  ;;  %v10595_v50 = vld [vmem:[%s18234_s1 + $0x1f8] sm:$0xff] }
0x13f0   : > { %v7174_v42 = vmul.f32 %v16450_v25, %v16450_v25 }
0x13f1   : > { %v7160_v21 = vsub.f32 %v16421_v38, %v7152_v23  ;;  %v7159_v6 = vsub.f32 %v16424_v62, %v7151_v14  ;;  %v10594_v23 = vld [vmem:[%s18234_s1 + $0x1f0] sm:$0xff]  ;;  %v10545_v14 = vld [vmem:[%s18234_s1 + $0x68] sm:$0xff] }
0x13f2   : > { %v7141_v9 = vpop.xlane.xlu0 %7140  ;;  %7182 = vadd.xlane.f32.xlu1 %v7174_v42  ;;  %v7143_v44 = vpop.xlane.xlu1 %7142  ;;  %v10544_v42 = vld [vmem:[%s18234_s1 + $0x60] sm:$0xff] }
0x13f3   : > { %v7153_v19 = vmul.f32 0.03125, %v7141_v9  ;;  %v7154_v51 = vmul.f32 0.03125, %v7143_v44  ;;  %v16458_v22 = vsel %vm5543_vm2, %v7160_v21, 0.0  ;;  %v16462_v27 = vsel %vm5543_vm2, %v7159_v6, 0.0  ;;  %v10563_v21 = vld [vmem:[%s18234_s1 + $0xf8] sm:$0xff]  ;;  %v10562_v6 = vld [vmem:[%s18234_s1 + $0xf0] sm:$0xff] }
0x13f4   : > { %v7176_v11 = vmul.f32 %v16458_v22, %v16458_v22  ;;  %v7175_v31 = vmul.f32 %v16462_v27, %v16462_v27  ;;  %v10585_v9 = vld [vmem:[%s18234_s1 + $0x1a8] sm:$0xff]  ;;  %v10584_v44 = vld [vmem:[%s18234_s1 + $0x1a0] sm:$0xff] }
0x13f5   : > { %v7161_v15 = vsub.f32 %v16429_v59, %v7153_v19  ;;  %v7162_v16 = vsub.f32 %v16432_v45, %v7154_v51  ;;  %v10553_v19 = vld [vmem:[%s18234_s1 + $0xa8] sm:$0xff]  ;;  %v10552_v51 = vld [vmem:[%s18234_s1 + $0xa0] sm:$0xff] }
0x13f6   : > { %7186 = vadd.xlane.f32.xlu1 %v7176_v11  ;;  %v7147_v28 = vpop.xlane.xlu1 %7146  ;;  %7184 = vadd.xlane.f32.xlu0 %v7175_v31  ;;  %v7145_v34 = vpop.xlane.xlu0 %7144  ;;  %v10575_v11 = vld [vmem:[%s18234_s1 + $0x158] sm:$0xff]  ;;  %v10574_v31 = vld [vmem:[%s18234_s1 + $0x150] sm:$0xff] }
0x13f7   : > { %v7156_v30 = vmul.f32 0.03125, %v7147_v28  ;;  %v7155_v0 = vmul.f32 0.03125, %v7145_v34  ;;  %v16472_v52 = vsel %vm5543_vm2, %v7162_v16, 0.0  ;;  %v16476_v26 = vsel %vm5543_vm2, %v7161_v15, 0.0  ;;  %v10593_v15 = vld [vmem:[%s18234_s1 + $0x1e8] sm:$0xff]  ;;  %v10592_v16 = vld [vmem:[%s18234_s1 + $0x1e0] sm:$0xff] }
0x13f8   : > { %v7178_v36 = vmul.f32 %v16472_v52, %v16472_v52  ;;  %v7177_v13 = vmul.f32 %v16476_v26, %v16476_v26  ;;  %v10543_v28 = vld [vmem:[%s18234_s1 + $0x58] sm:$0xff]  ;;  %v10542_v34 = vld [vmem:[%s18234_s1 + $0x50] sm:$0xff] }
0x13f9   : > { %v7164_v2 = vsub.f32 %v16437_v37, %v7156_v30  ;;  %v7163_v12 = vsub.f32 %v16440_v40, %v7155_v0  ;;  %v10561_v30 = vld [vmem:[%s18234_s1 + $0xe8] sm:$0xff]  ;;  %v10560_v0 = vld [vmem:[%s18234_s1 + $0xe0] sm:$0xff] }
0x13fa   : > { %7190 = vadd.xlane.f32.xlu1 %v7178_v36  ;;  %7188 = vadd.xlane.f32.xlu0 %v7177_v13  ;;  %v7149_v10 = vpop.xlane.xlu0 %7148  ;;  %v10583_v36 = vld [vmem:[%s18234_s1 + $0x198] sm:$0xff]  ;;  %v10582_v13 = vld [vmem:[%s18234_s1 + $0x190] sm:$0xff] }
0x13fb   : > { %v7157_v7 = vmul.f32 0.03125, %v7149_v10  ;;  %v16486_v46 = vsel %vm5543_vm2, %v7164_v2, 0.0  ;;  %v16490_v57 = vsel %vm5543_vm2, %v7163_v12, 0.0  ;;  %v10551_v2 = vld [vmem:[%s18234_s1 + $0x98] sm:$0xff]  ;;  %v10550_v12 = vld [vmem:[%s18234_s1 + $0x90] sm:$0xff]  ;;  %v10573_v10 = vld [vmem:[%s18234_s1 + $0x148] sm:$0xff] }
0x13fc   : > { %v7180_v33 = vmul.f32 %v16486_v46, %v16486_v46  ;;  %v7179_v60 = vmul.f32 %v16490_v57, %v16490_v57 }
0x13fd   : > { %v7165_v35 = vsub.f32 %v16444_v39, %v7157_v7  ;;  %v10572_v7 = vld [vmem:[%s18234_s1 + $0x140] sm:$0xff] }
0x13fe   : > { %7194 = vadd.xlane.f32.xlu1 %v7180_v33  ;;  %7192 = vadd.xlane.f32.xlu0 %v7179_v60  ;;  %v10591_v33 = vld [vmem:[%s18234_s1 + $0x1d8] sm:$0xff]  ;;  %v10590_v60 = vld [vmem:[%s18234_s1 + $0x1d0] sm:$0xff] }
0x13ff   : > { %v16500_v18 = vsel %vm5543_vm2, %v7165_v35, 0.0  ;;  %v10541_v35 = vld [vmem:[%s18234_s1 + $0x48] sm:$0xff] }
0x1400   : > { %v7181_v41 = vmul.f32 %v16500_v18, %v16500_v18 }
0x1402   : > { %7196 = vadd.xlane.f32.xlu0 %v7181_v41  ;;  %v10559_v41 = vld [vmem:[%s18234_s1 + $0xd8] sm:$0xff] }
0x140f   : > { %7993 = vperm.xlu1 %11502, %v10578_v8   ;;  %v10549_v8 = vld [vmem:[%s18234_s1 + $0x88] sm:$0xff] }
0x1413   : > { %7677 = vperm.xlu1 %11502, %v10546_v1   ;;  %v10589_v1 = vld [vmem:[%s18234_s1 + $0x1c8] sm:$0xff] }
0x1417   : > { %7682 = vperm.xlu1 %11502, %v10547_v56   ;;  %v10557_v56 = vld [vmem:[%s18234_s1 + $0xc8] sm:$0xff] }
0x1418   : > { %7998 = vperm.xlu0 %11501, %v10579_v3   ;;  %v10556_v3 = vld [vmem:[%s18234_s1 + $0xc0] sm:$0xff] }
0x141b   : > { %8079 = vperm.xlu1 %11502, %v10587_v53   ;;  %v7587_v53 = vld [vmem:[%s18234_s1 + $0x38] sm:$0xff] }
0x141c   : > { %8074 = vperm.xlu0 %11501, %v10586_v61   ;;  %v7586_v61 = vld [vmem:[%s18234_s1 + $0x30] sm:$0xff] }
0x141f   : > { %7779 = vperm.xlu1 %11502, %v10555_v20   ;;  %v10569_v20 = vld [vmem:[%s18234_s1 + $0x128] sm:$0xff] }
0x1420   : > { %7774 = vperm.xlu0 %11501, %v10554_v4   ;;  %v10568_v4 = vld [vmem:[%s18234_s1 + $0x120] sm:$0xff] }
0x1423   : > { %7988 = vperm.xlu1 %11502, %v10577_v58  }
0x1424   : > { %7983 = vperm.xlu0 %11501, %v10576_v54  }
0x1427   : > { %8160 = vperm.xlu1 %11502, %v10595_v50   ;;  %v7585_v50 = vld [vmem:[%s18234_s1 + $0x28] sm:$0xff] }
0x1428   : > { %8155 = vperm.xlu0 %11501, %v10594_v23   ;;  %v7584_v23 = vld [vmem:[%s18234_s1 + $0x20] sm:$0xff] }
0x142b   : > { %7672 = vperm.xlu1 %11502, %v10545_v14  }
0x142c   : > { %7667 = vperm.xlu0 %11501, %v10544_v42  }
0x142f   : > { %7860 = vperm.xlu1 %11502, %v10563_v21  }
0x1430   : > { %7855 = vperm.xlu0 %11501, %v10562_v6  }
0x1433   : > { %8069 = vperm.xlu1 %11502, %v10585_v9  }
0x1434   : > { %8064 = vperm.xlu0 %11501, %v10584_v44   ;;  %v10567_v44 = vld [vmem:[%s18234_s1 + $0x118] sm:$0xff] }
0x1437   : > { %7769 = vperm.xlu1 %11502, %v10553_v19   ;;  %v10566_v19 = vld [vmem:[%s18234_s1 + $0x110] sm:$0xff] }
0x1438   : > { %7764 = vperm.xlu0 %11501, %v10552_v51  }
0x143b   : > { %7978 = vperm.xlu1 %11502, %v10575_v11  }
0x143c   : > { %7973 = vperm.xlu0 %11501, %v10574_v31  }
0x143f   : > { %8150 = vperm.xlu1 %11502, %v10593_v15  }
0x1440   : > { %8145 = vperm.xlu0 %11501, %v10592_v16  }
0x1443   : > { %7662 = vperm.xlu1 %11502, %v10543_v28  }
0x1444   : > { %7657 = vperm.xlu0 %11501, %v10542_v34   ;;  %v7583_v34 = vld [vmem:[%s18234_s1 + $0x18] sm:$0xff] }
0x1447   : > { %7850 = vperm.xlu1 %11502, %v10561_v30   ;;  %v7582_v30 = vld [vmem:[%s18234_s1 + $0x10] sm:$0xff] }
0x1448   : > { %7845 = vperm.xlu0 %11501, %v10560_v0  }
0x144b   : > { %8059 = vperm.xlu1 %11502, %v10583_v36  }
0x144c   : > { %8054 = vperm.xlu0 %11501, %v10582_v13  }
0x144f   : > { %7759 = vperm.xlu1 %11502, %v10551_v2  }
0x1450   : > { %7754 = vperm.xlu0 %11501, %v10550_v12  }
0x1453   : > { %7968 = vperm.xlu1 %11502, %v10573_v10  }
0x1454   : > { %7963 = vperm.xlu0 %11501, %v10572_v7   ;;  %v10565_v7 = vld [vmem:[%s18234_s1 + $0x108] sm:$0xff] }
0x1457   : > { %8140 = vperm.xlu1 %11502, %v10591_v33   ;;  %v10564_v33 = vld [vmem:[%s18234_s1 + $0x100] sm:$0xff] }
0x1458   : > { %8135 = vperm.xlu0 %11501, %v10590_v60  }
0x145b   : > { %7652 = vperm.xlu1 %11502, %v10541_v35  }
0x145c   : > { %7647 = vperm.xlu0 %11501, %v10540_v24  }
0x145f   : > { %7840 = vperm.xlu1 %11502, %v10559_v41   ;;  %v11588_v41 = vld [vmem:[%s18235_s2 + $0x38] sm:$0xff]  }
0x1460   : > { %7835 = vperm.xlu0 %11501, %v10558_v5   ;;  %v11589_v5 = vld [vmem:[%s18235_s2 + $0x30] sm:$0xff]   ;;  %11250 = vmatprep.subr.bf16.mxu0 %v11588_v41 }
0x1461   : > { %11251 = vmatpush3.bf16.msra.mxu0 %v11588_v41 }
0x1462   : > { %11252 = vmatprep.subr.bf16.mxu0 %v11589_v5 }
0x1463   : > { %8049 = vperm.xlu1 %11502, %v10581_v43  }
0x1464   : > { %8044 = vperm.xlu0 %11501, %v10580_v17   ;;  %v7581_v17 = vld [vmem:[%s18234_s1 + $0x8] sm:$0xff] }
0x1465   : > { %11253 = vmatpush3.bf16.msra.mxu0 %v11589_v5 }
0x1467   : > { %7749 = vperm.xlu1 %11502, %v10549_v8  }
0x1468   : > { %7744 = vperm.xlu0 %11501, %v10548_v32   ;;  %v7580_v32 = vld [vmem:[%s18234_s1] sm:$0xff] }
0x146b   : > { %8130 = vperm.xlu1 %11502, %v10589_v1  }
0x146c   : > { %8125 = vperm.xlu0 %11501, %v10588_v49  }
0x146f   : > { %7830 = vperm.xlu1 %11502, %v10557_v56   ;;  %v11590_v56 = vld [vmem:[%s18235_s2 + $0x28] sm:$0xff]  }
0x1470   : > { %7825 = vperm.xlu0 %11501, %v10556_v3   ;;  %v10520_v3 = vld [vmem:[%s18236_s11] ss:$0 sm:$0xff]  ;;  %11254 = vmatprep.subr.bf16.mxu0 %v11590_v56  ;;  %s18244_s11 = sld [smem:[#allocation11_spill]] }
0x1471   : > { %11255 = vmatpush3.bf16.msra.mxu0 %v11590_v56 }
0x1473   : > { %7941 = vperm.xlu1 %11502, %v10571_v55  }
0x1474   : > { %7936 = vperm.xlu0 %11501, %v10570_v29  }
0x1477   : > { %7625 = vperm.xlu1 %11502, %v7587_v53  }
0x1478   : > { %7620 = vperm.xlu0 %11501, %v7586_v61  }
0x147b   : > { %7931 = vperm.xlu1 %11502, %v10569_v20   ;;  %v7183_v58 = vpop.xlane.xlu1 %7182 }
0x147c   : > { %v7198_v54 = vmul.f32 0.03125, %v7183_v58  ;;  %7926 = vperm.xlu0 %11501, %v10568_v4   ;;  %v11591_v4 = vld [vmem:[%s18235_s2 + $0x20] sm:$0xff]  }
0x147d   : > { %v10521_v58 = vld [vmem:[%s18237_s16] ss:$0 sm:$0xff]  ;;  %11256 = vmatprep.subr.bf16.mxu0 %v11591_v4  ;;  %s18245_s16 = sld [smem:[#allocation12_spill]] }
0x147e   : > { %v7206_v14 = vadd.f32 1e-05, %v7198_v54  ;;  %11257 = vmatpush3.bf16.msra.mxu0 %v11591_v4 }
0x147f   : > { %7615 = vperm.xlu1 %11502, %v7585_v50   ;;  %v7187_v42 = vpop.xlane.xlu1 %7186  ;;  %v7185_v21 = vpop.xlane.xlu0 %7184 }
0x1480   : > { %11885 = vrsqrt.f32 %v7206_v14  ;;  %v7200_v6 = vmul.f32 0.03125, %v7187_v42  ;;  %v7199_v9 = vmul.f32 0.03125, %v7185_v21  ;;  %7610 = vperm.xlu0 %11501, %v7584_v23  }
0x1482   : > { %v7208_v51 = vadd.f32 1e-05, %v7200_v6  ;;  %v7207_v11 = vadd.f32 1e-05, %v7199_v9 }
0x1483   : > { %7921 = vperm.xlu1 %11502, %v10567_v44   ;;  %v7191_v31 = vpop.xlane.xlu1 %7190  ;;  %v7189_v15 = vpop.xlane.xlu0 %7188 }
0x1484   : > { %11887 = vrsqrt.f32 %v7208_v51  ;;  %v7202_v16 = vmul.f32 0.03125, %v7191_v31  ;;  %v7201_v28 = vmul.f32 0.03125, %v7189_v15  ;;  %7916 = vperm.xlu0 %11501, %v10566_v19  }
0x1485   : > { %11889 = vrsqrt.f32 %v7207_v11 }
0x1486   : > { %v7210_v0 = vadd.f32 1e-05, %v7202_v16  ;;  %v7209_v36 = vadd.f32 1e-05, %v7201_v28 }
0x1487   : > { %7605 = vperm.xlu1 %11502, %v7583_v34   ;;  %v7195_v13 = vpop.xlane.xlu1 %7194  ;;  %v7193_v2 = vpop.xlane.xlu0 %7192 }
0x1488   : > { %11891 = vrsqrt.f32 %v7210_v0  ;;  %v7204_v12 = vmul.f32 0.03125, %v7195_v13  ;;  %v7203_v10 = vmul.f32 0.03125, %v7193_v2  ;;  %7600 = vperm.xlu0 %11501, %v7582_v30  }
0x1489   : > { %11893 = vrsqrt.f32 %v7209_v36 }
0x148a   : > { %v7212_v60 = vadd.f32 1e-05, %v7204_v12  ;;  %v7211_v35 = vadd.f32 1e-05, %v7203_v10  ;;  %v18239_v10 = vmov 0  }
0x148b   : > { %7911 = vperm.xlu1 %11502, %v10565_v7   ;;  %v7197_v24 = vpop.xlane.xlu0 %7196  ;;  %v11593_v7 = vld [vmem:[%s18235_s2 + $0x10] sm:$0xff]  }
0x148c   : > { %11895 = vrsqrt.f32 %v7212_v60  ;;  %v7205_v43 = vmul.f32 0.03125, %v7197_v24  ;;  %7906 = vperm.xlu0 %11501, %v10564_v33   ;;  %v11595_v33 = vld [vmem:[%s18235_s2] sm:$0xff]  }
0x148d   : > { %v11886_v8 = vpop.eup %11885  ;;  %11897 = vrsqrt.f32 %v7211_v35  ;;  %v10522_v24 = vld [vmem:[%s18238_s22] ss:$0 sm:$0xff]  ;;  %s18246_s22 = sld [smem:[#allocation17_spill]] }
0x148e   : > { %v7213_v1 = vadd.f32 1e-05, %v7205_v43  ;;  %v7222_v49 = vmul.f32 %v11886_v8, %v16450_v25 }
0x148f   : > { %7595 = vperm.xlu1 %11502, %v7581_v17  }
0x1490   : > { %11899 = vrsqrt.f32 %v7213_v1  ;;  %7590 = vperm.xlu0 %11501, %v7580_v32   ;;  %v7237_v20 = vmul.f32 %v10520_v3, %v7222_v49 }
0x1491   : > { %v11888_v55 = vpop.eup %11887 }
0x1492   : > { %v11890_v29 = vpop.eup %11889  ;;  %v7224_v53 = vmul.f32 %v11888_v55, %v16458_v22  ;;  %v7252_v42 = vadd.f32 %v10521_v58, %v7237_v20  ;;  %v11592_v22 = vld [vmem:[%s18235_s2 + $0x18] sm:$0xff]  }
0x1493   : > { %v7223_v61 = vmul.f32 %v11890_v29, %v16462_v27  ;;  %11258 = vmatprep.subr.bf16.mxu0 %v11592_v22 }
0x1494   : > { %v7239_v23 = vmul.f32 %v10520_v3, %v7224_v53  ;;  %11259 = vmatpush3.bf16.msra.mxu0 %v11592_v22 }
0x1495   : > { %v11892_v54 = vpop.eup %11891  ;;  %v7238_v50 = vmul.f32 %v10520_v3, %v7223_v61  ;;  %11260 = vmatprep.subr.bf16.mxu0 %v11593_v7 }
0x1496   : > { %v11894_v25 = vpop.eup %11893  ;;  %v7226_v6 = vmul.f32 %v11892_v54, %v16472_v52  ;;  %v7254_v51 = vadd.f32 %v10521_v58, %v7239_v23 }
0x1497   : > { %v7225_v14 = vmul.f32 %v11894_v25, %v16476_v26  ;;  %v7253_v21 = vadd.f32 %v10521_v58, %v7238_v50 }
0x1498   : > { %v7241_v16 = vmul.f32 %v10520_v3, %v7226_v6  ;;  %11261 = vmatpush3.bf16.msra.mxu0 %v11593_v7 }
0x1499   : > { %v11896_v9 = vpop.eup %11895  ;;  %v7260_v44 = vpack.c.bf16 %v7253_v21, %v7252_v42  ;;  %v7240_v27 = vmul.f32 %v10520_v3, %v7225_v14 }
0x149a   : > { %v11898_v19 = vpop.eup %11897  ;;  %v7228_v11 = vmul.f32 %v11896_v9, %v16486_v46  ;;  %v7256_v0 = vadd.f32 %v10521_v58, %v7241_v16  ;;  %v16595_v9 = vpop.permute.xlu1 %7993 }
0x149b   : > { %11242 = vmatprep.mubr.bf16.mxu1 %v7260_v44  ;;  %v7255_v31 = vadd.f32 %v10521_v58, %v7240_v27  ;;  %v7227_v15 = vmul.f32 %v11898_v19, %v16490_v57  ;;  %v16601_v19 = vpop.permute.xlu0 %7998 }
0x149c   : > { %v7243_v30 = vmul.f32 %v10520_v3, %v7228_v11 }
0x149d   : > { %v11900_v26 = vpop.eup %11899  ;;  %v7261_v28 = vpack.c.bf16 %v7255_v31, %v7254_v51  ;;  %v7242_v52 = vmul.f32 %v10520_v3, %v7227_v15 }
0x149e   : > { %v7229_v34 = vmul.f32 %v11900_v26, %v16500_v18  ;;  %v7258_v2 = vadd.f32 %v10521_v58, %v7243_v30  ;;  %v11594_v18 = vld [vmem:[%s18235_s2 + $0x8] sm:$0xff]   ;;  %v16597_v44 = vpop.permute.xlu1 %7677 }
0x149f   : > { %11243 = vmatmul.mubr.bf16.vlgmr.msra.gmra.mxu1 %v7261_v28  ;;  %v7257_v46 = vadd.f32 %v10521_v58, %v7242_v52  ;;  %11262 = vmatprep.subr.bf16.mxu0 %v11594_v18  ;;  %v16605_v11 = vpop.permute.xlu0 %8074 }
0x14a0   : > { %v7244_v36 = vmul.f32 %v10520_v3, %v7229_v34  ;;  %11263 = vmatpush3.bf16.msra.mxu0 %v11594_v18 }
0x14a1   : > { %v7262_v13 = vpack.c.bf16 %v7257_v46, %v7256_v0  ;;  %11264 = vmatprep.subr.bf16.mxu0 %v11595_v33 }
0x14a2   : > { %v7259_v12 = vadd.f32 %v10521_v58, %v7244_v36  ;;  %v16599_v27 = vpop.permute.xlu1 %7682 }
0x14a3   : > { %11246 = vmatprep.mubr.bf16.mxu1 %v7262_v13  ;;  %v16609_v15 = vpop.permute.xlu0 %7774 }
0x14a4   : > { %v7263_v57 = vpack.c.bf16 %v7259_v12, %v7258_v2  ;;  %11265 = vmatpush3.bf16.msra.mxu0 %v11595_v33 }
0x14a6   : > { %v16603_v51 = vpop.permute.xlu1 %8079 }
0x14a7   : > { %11247 = vmatmul.mubr.bf16.gmra.mxu1 %v7263_v57  ;;  %v16613_v26 = vpop.permute.xlu0 %7983 }
0x14a8   : > { %8306 = vmatprep.mubr.bf16.mxu1 %v18239_v10 }
0x14aa   : > { %v16607_v31 = vpop.permute.xlu1 %7779 }
0x14ab   : > { %v16615_v52 = vpop.permute.xlu0 %8155 }
0x14ae   : > { %v16611_v16 = vpop.permute.xlu1 %7988 }
0x14af   : > { %v7668_v30 = vpop.permute.xlu0 %7667 }
0x14b2   : > { %v8161_v28 = vpop.permute.xlu1 %8160 }
0x14b3   : > { %v16621_v46 = vpop.permute.xlu0 %7855 }
0x14b6   : > { %v16617_v34 = vpop.permute.xlu1 %7672 }
0x14b7   : > { %v16625_v13 = vpop.permute.xlu0 %8064 }
0x14ba   : > { %v16619_v0 = vpop.permute.xlu1 %7860 }
0x14bb   : > { %v16629_v12 = vpop.permute.xlu0 %7764 }
0x14be   : > { %v16623_v36 = vpop.permute.xlu1 %8069 }
0x14bf   : > { %v7974_v7 = vpop.permute.xlu0 %7973 }
0x14c2   : > { %v16627_v2 = vpop.permute.xlu1 %7769 }
0x14c3   : > { %v16635_v33 = vpop.permute.xlu0 %8145 }
0x14c6   : > { %v16631_v57 = vpop.permute.xlu1 %7978 }
0x14ca   : > { %v16633_v18 = vpop.permute.xlu1 %8150 }
0x155f   : > { %v11244_v60 = vpop.f32.mrf.mxu1 }
0x1560   : > { %v7378_v17 = vadd.f32 %v11244_v60, %v10522_v24  ;;  %v7663_v60 = vpop.permute.xlu1 %7662 }
0x1561   : > { %v7369_v35 = vpop.f32.mrf.mxu1 }
0x1562   : > { %v7370_v5 = vadd.f32 %v10522_v24, %v7369_v35  ;;  %v7402_v55 = vmax.f32 %v7378_v17, 0.0  ;;  %v7658_v35 = vpop.permute.xlu0 %7657 }
0x1563   : > { %v11245_v41 = vpop.f32.mrf.mxu1 }
0x1564   : > { %v7381_v43 = vadd.f32 %v11245_v41, %v10522_v24  ;;  %v7400_v56 = vmax.f32 %v7370_v5, 0.0 }
0x1565   : > { %v7372_v8 = vpop.f32.mrf.mxu1 }
0x1566   : > { %v7373_v32 = vadd.f32 %v10522_v24, %v7372_v8  ;;  %v7403_v1 = vmax.f32 %v7381_v43, 0.0  ;;  %v16639_v41 = vpop.permute.xlu0 %7845 }
0x1567   : > { %v11248_v49 = vpop.f32.mrf.mxu1 }
0x1568   : > { %v7401_v3 = vmax.f32 %v7373_v32, 0.0  ;;  %v7409_v61 = vpack.c.bf16 %v7403_v1, %v7402_v55  ;;  %v7394_v54 = vadd.f32 %v11248_v49, %v10522_v24  ;;  %v16644_v49 = vld [vmem:[%s18240_s26] ss:$0 sm:$0xff]  ;;  %s18248_s26 = sld [smem:[#allocation15_spill]] }
0x1569   : > { %v7385_v29 = vpop.f32.mrf.mxu1 }
0x156a   : > { %v7408_v53 = vpack.c.bf16 %v7401_v3, %v7400_v56  ;;  %v7386_v4 = vadd.f32 %v10522_v24, %v7385_v29  ;;  %v7406_v21 = vmax.f32 %v7394_v54, 0.0  ;;  %v8055_v43 = vpop.permute.xlu0 %8054 }
0x156b   : > { %v11249_v20 = vpop.f32.mrf.mxu1 }
0x156c   : > { %v7397_v58 = vadd.f32 %v11249_v20, %v10522_v24  ;;  %11266 = vmatprep.mubr.bf16.mxu0 %v7408_v53  ;;  %v7404_v14 = vmax.f32 %v7386_v4, 0.0 }
0x156d   : > { %v7388_v50 = vpop.f32.mrf.mxu1  ;;  %11267 = vmatmul.mubr.bf16.vlgmr.msra.gmra.mxu0 %v7409_v61 }
0x156e   : > { %v7389_v25 = vadd.f32 %v10522_v24, %v7388_v50  ;;  %v7407_v23 = vmax.f32 %v7397_v58, 0.0  ;;  %v16637_v24 = vpop.permute.xlu1 %7850  ;;  %v7755_v8 = vpop.permute.xlu0 %7754 }
0x1570   : > { %v7405_v42 = vmax.f32 %v7389_v25, 0.0  ;;  %v7411_v22 = vpack.c.bf16 %v7407_v23, %v7406_v21 }
0x1572   : > { %v7410_v6 = vpack.c.bf16 %v7405_v42, %v7404_v14  ;;  %v16641_v5 = vpop.permute.xlu1 %8059  ;;  %v7964_v61 = vpop.permute.xlu0 %7963 }
0x1574   : > { %11270 = vmatprep.mubr.bf16.mxu0 %v7410_v6 }
0x1575   : > { %11271 = vmatmul.mubr.bf16.gmra.mxu0 %v7411_v22 }
0x1576   : > { %v7760_v17 = vpop.permute.xlu1 %7759 }
0x157a   : > { %v7969_v32 = vpop.permute.xlu1 %7968 }
0x157e   : > { %v16656_v54 = vpop.permute.xlu1 %8140 }
0x1582   : > { %v7653_v42 = vpop.permute.xlu1 %7652 }
0x162d   : > { %v11268_v1 = vpop.f32.mrf.mxu0 }
0x162e   : > { %v7543_v56 = vadd.f32 %v11268_v1, %v16421_v38 }
0x162f   : > { %v7510_v3 = vpop.f32.mrf.mxu0 }
0x1630   : > { %v16648_v55 = vadd.f32 %v16644_v49, %v7543_v56  ;;  %v7541_v29 = vadd.f32 %v7510_v3, %v16417_v63 }
0x1631   : > { %v11269_v53 = vpop.f32.mrf.mxu0 }
0x1632   : > { %v16652_v20 = vadd.f32 %v16644_v49, %v7541_v29  ;;  %v7544_v4 = vadd.f32 %v11269_v53, %v16429_v59  ;;  %v7688_v58 = vmul.f32 %v7663_v60, %v16648_v55  ;;  %v8136_v59 = vpop.permute.xlu0 %8135  ;;  %v7719_v21 = vrot.slane %v16648_v55, 1 }
0x1633   : > { %v7513_v50 = vpop.f32.mrf.mxu0  ;;  %v7566_v1 = vrot.slane %v16648_v55, 7 }
0x1634   : > { %v16659_v38 = vadd.f32 %v16644_v49, %v7544_v4  ;;  %7699 = vrot.lane.b32.xlu1 %v7688_v58, %s12040_s0  ;;  %v7542_v25 = vadd.f32 %v7513_v50, %v16424_v62  ;;  %v8170_v63 = vmul.f32 %v8161_v28, %v16652_v20  ;;  %v7686_v22 = vmul.f32 %v7653_v42, %v16652_v20  ;;  %v7841_v4 = vpop.permute.xlu1 %7840 }
0x1635   : > { %v11272_v28 = vpop.f32.mrf.mxu0 }
0x1636   : > { %v7689_v23 = vmul.f32 %v7668_v30, %v16659_v38  ;;  %v7720_v14 = vrot.slane %v16659_v38, 1  ;;  %v16670_v6 = vadd.f32 %v16644_v49, %v7542_v25  ;;  %v8165_v62 = vmul.f32 %v8136_v59, %v16659_v38 }
0x1637   : > { %v7567_v60 = vrot.slane %v16659_v38, 7  ;;  %v7547_v56 = vadd.f32 %v11272_v28, %v16437_v37 }
0x1638   : > { %8185 = vrot.lane.b32.xlu1 %v8170_v63, %s12044_s18  ;;  %7701 = vrot.lane.b32.xlu0 %v7689_v23, %s12040_s0  ;;  %v16678_v30 = vsel %vm1914_vm0, %v7719_v21, %v7720_v14  ;;  %v7687_v29 = vmul.f32 %v7658_v35, %v16670_v6  ;;  %v7718_v35 = vrot.slane %v16670_v6, 1  ;;  %v7648_v23 = vpop.permute.xlu0 %7647 }
0x1639   : > { %v7785_v3 = vmul.f32 %v7760_v17, %v16678_v30  ;;  %v16691_v53 = vsel %vm1304_vm1, %v7566_v1, %v7567_v60  ;;  %v16696_v58 = vadd.f32 %v16644_v49, %v7547_v56  ;;  %v8003_v17 = vmul.f32 %v7974_v7, %v16678_v30  ;;  %v8050_v56 = vpop.permute.xlu1 %8049 }
0x163a   : > { %v7866_v37 = vmul.f32 %v7841_v4, %v16691_v53  ;;  %v8084_v25 = vmul.f32 %v8055_v43, %v16691_v53  ;;  %v16708_v63 = vsel %vm1914_vm0, %v7718_v35, %v7719_v21  ;;  %v7717_v7 = vrot.slane %v16652_v20, 1 }
0x163b   : > { %v7692_v50 = vmul.f32 %v16599_v27, %v16696_v58  ;;  %v8168_v59 = vmul.f32 %v16633_v18, %v16696_v58  ;;  %v7784_v42 = vmul.f32 %v7755_v8, %v16708_v63  ;;  %v7565_v43 = vrot.slane %v16670_v6, 7 }
0x163c   : > { %7695 = vrot.lane.b32.xlu1 %v7686_v22, %s12040_s0  ;;  %8175 = vrot.lane.b32.xlu0 %v8165_v62, %s12044_s18  ;;  %v7526_v22 = vpop.f32.mrf.mxu0  ;;  %v16718_v27 = vsel %vm1914_vm0, %v7717_v7, %v7718_v35  ;;  %v7836_v21 = vpop.permute.xlu0 %7835  ;;  %v8002_v62 = vmul.f32 %v7969_v32, %v16708_v63 }
0x163d   : > { %v8001_v28 = vmul.f32 %v7964_v61, %v16718_v27  ;;  %v16727_v8 = vsel %vm1304_vm1, %v7565_v43, %v7566_v1 }
0x163e   : > { %v11273_v18 = vpop.f32.mrf.mxu0  ;;  %v8083_v32 = vmul.f32 %v8050_v56, %v16727_v8  ;;  %v7865_v61 = vmul.f32 %v7836_v21, %v16727_v8 }
0x163f   : > { %v7548_v4 = vadd.f32 %v11273_v18, %v16444_v39 }
0x1640   : > { %7796 = vrot.lane.b32.xlu1 %v7785_v3, %s12042_s15  ;;  %7697 = vrot.lane.b32.xlu0 %v7687_v29, %s12040_s0  ;;  %v7564_v3 = vrot.slane %v16652_v20, 7  ;;  %v7545_v29 = vadd.f32 %v7526_v22, %v16432_v45  ;;  %v8045_v1 = vpop.permute.xlu0 %8044  ;;  %v7529_v21 = vpop.f32.mrf.mxu0 }
0x1641   : > { %v16746_v45 = vadd.f32 %v16644_v49, %v7548_v4 }
0x1642   : > { %v16743_v35 = vadd.f32 %v16644_v49, %v7545_v29 }
0x1644   : > { %7877 = vrot.lane.b32.xlu1 %v7866_v37, %s12044_s18  ;;  %8013 = vrot.lane.b32.xlu0 %v8003_v17, %s12040_s0  ;;  %v16738_v37 = vsel %vm1304_vm1, %v7564_v3, %v7565_v43  ;;  %v7750_v17 = vpop.permute.xlu1 %7749  ;;  %v8166_v22 = vmul.f32 %v16656_v54, %v16743_v35  ;;  %v7685_v43 = vmul.f32 %v7648_v23, %v16746_v45  ;;  %v7745_v18 = vpop.permute.xlu0 %7744 }
0x1645   : > { %v7783_v39 = vmul.f32 %v7750_v17, %v16718_v27 }
0x1648   : > { %7707 = vrot.lane.b32.xlu1 %v7692_v50, %s12040_s0  ;;  %8094 = vrot.lane.b32.xlu0 %v8084_v25, %s12042_s15  ;;  %v8082_v50 = vmul.f32 %v8045_v1, %v16738_v37  ;;  %v7690_v25 = vmul.f32 %v16617_v34, %v16743_v35  ;;  %v8131_v29 = vpop.permute.xlu1 %8130 }
0x164c   : > { %8181 = vrot.lane.b32.xlu1 %v8168_v59, %s12044_s18  ;;  %7794 = vrot.lane.b32.xlu0 %v7784_v42, %s12042_s15  ;;  %v8169_v59 = vmul.f32 %v16615_v52, %v16746_v45  ;;  %v7721_v42 = vrot.slane %v16743_v35, 1  ;;  %v7568_v52 = vrot.slane %v16743_v35, 7 }
0x164e   : > { %v16768_v34 = vsel %vm1914_vm0, %v7720_v14, %v7721_v42  ;;  %v16784_v14 = vsel %vm1304_vm1, %v7567_v60, %v7568_v52  ;;  %v7571_v60 = vrot.slane %v16746_v45, 7 }
0x164f   : > { %v8004_v54 = vmul.f32 %v16631_v57, %v16768_v34  ;;  %v7786_v23 = vmul.f32 %v16629_v12, %v16768_v34  ;;  %v8085_v12 = vmul.f32 %v16641_v5, %v16784_v14  ;;  %v7867_v57 = vmul.f32 %v16639_v41, %v16784_v14 }
0x1650   : > { %8011 = vrot.lane.b32.xlu1 %v8002_v62, %s12040_s0  ;;  %8009 = vrot.lane.b32.xlu0 %v8001_v28, %s12040_s0  ;;  %v7546_v62 = vadd.f32 %v7529_v21, %v16440_v40  ;;  %v7724_v28 = vrot.slane %v16746_v45, 1  ;;  %v16809_v41 = vsel %vm1304_vm1, %v7571_v60, %v7564_v3  ;;  %v7570_v3 = vrot.slane %v16696_v58, 7 }
0x1651   : > { %v8089_v4 = vmul.f32 %v16603_v51, %v16809_v41  ;;  %v8164_v21 = vmul.f32 %v8131_v29, %v16648_v55  ;;  %v10602_v29 = vld [vmem:[%s18234_s1 + $0x230] sm:$0xff] }
0x1652   : > { %v16790_v40 = vadd.f32 %v16644_v49, %v7546_v62  ;;  %v16798_v56 = vsel %vm1914_vm0, %v7724_v28, %v7717_v7  ;;  %v7723_v7 = vrot.slane %v16696_v58, 1 }
0x1653   : > { %v8008_v49 = vmul.f32 %v16601_v19, %v16798_v56 }
0x1654   : > { %8092 = vrot.lane.b32.xlu1 %v8083_v32, %s12042_s15  ;;  %7875 = vrot.lane.b32.xlu0 %v7865_v61, %s12044_s18  ;;  %v7691_v5 = vmul.f32 %v16597_v44, %v16790_v40  ;;  %v8167_v19 = vmul.f32 %v16635_v33, %v16790_v40  ;;  %v16820_v44 = vsel %vm1914_vm0, %v7723_v7, %v7724_v28  ;;  %v8126_v32 = vpop.permute.xlu0 %8125  ;;  %v7831_v61 = vpop.permute.xlu1 %7830  ;;  %v7722_v17 = vrot.slane %v16790_v40, 1 }
0x1655   : > { %v7789_v1 = vmul.f32 %v16607_v31, %v16820_v44  ;;  %v8007_v51 = vmul.f32 %v16595_v9, %v16820_v44  ;;  %v16831_v33 = vsel %vm1304_vm1, %v7570_v3, %v7571_v60 }
0x1656   : > { %v8088_v31 = vmul.f32 %v16605_v11, %v16831_v33  ;;  %v16842_v9 = vsel %vm1914_vm0, %v7722_v17, %v7723_v7  ;;  %v10601_v7 = vld [vmem:[%s18234_s1 + $0x228] sm:$0xff] }
0x1657   : > { %v7788_v62 = vmul.f32 %v16609_v15, %v16842_v9 }
0x1658   : > { %7792 = vrot.lane.b32.xlu1 %v7783_v39, %s12042_s15  ;;  %8090 = vrot.lane.b32.xlu0 %v8082_v50, %s12042_s15  ;;  %v7826_v39 = vpop.permute.xlu0 %7825  ;;  %v7870_v50 = vmul.f32 %v16619_v0, %v16831_v33  ;;  %v7569_v0 = vrot.slane %v16790_v40, 7 }
0x165c   : > { %7703 = vrot.lane.b32.xlu1 %v7690_v25, %s12040_s0  ;;  %8183 = vrot.lane.b32.xlu0 %v8169_v59, %s12044_s18  ;;  %v16844_v25 = vpop.permute.xlu1 %7941  ;;  %v8006_v59 = vmul.f32 %v16611_v16, %v16842_v9  ;;  %v16863_v16 = vsel %vm1304_vm1, %v7569_v0, %v7570_v3  ;;  %v10600_v3 = vld [vmem:[%s18234_s1 + $0x220] sm:$0xff] }
0x165d   : > { %v8087_v28 = vmul.f32 %v16623_v36, %v16863_v16  ;;  %v16891_v36 = vsel %vm1304_vm1, %v7568_v52, %v7569_v0  ;;  %v10603_v52 = vld [vmem:[%s18234_s1 + $0x238] sm:$0xff] }
0x1660   : > { %8177 = vrot.lane.b32.xlu1 %v8166_v22, %s12044_s18  ;;  %7693 = vrot.lane.b32.xlu0 %v7685_v43, %s12040_s0  ;;  %v7782_v22 = vmul.f32 %v7745_v18, %v16798_v56  ;;  %v16852_v43 = vpop.permute.xlu0 %7936  ;;  %v16856_v11 = vpop.permute.xlu1 %7625 }
0x1664   : > { %8015 = vrot.lane.b32.xlu1 %v8004_v54, %s12040_s0  ;;  %7798 = vrot.lane.b32.xlu0 %v7786_v23, %s12042_s15  ;;  %v16869_v54 = vsel %vm1914_vm0, %v7721_v42, %v7722_v17  ;;  %v16873_v23 = vpop.permute.xlu0 %7620  ;;  %v10598_v17 = vld [vmem:[%s18234_s1 + $0x210] sm:$0xff]  ;;  %vm12047_vm0 = vmmov 0  }
0x1665   : > { %v8005_v15 = vmul.f32 %v16613_v26, %v16869_v54  ;;  %v7787_v42 = vmul.f32 %v16627_v2, %v16869_v54  ;;  %v7868_v2 = vmul.f32 %v16637_v24, %v16891_v36  ;;  %v7864_v24 = vmul.f32 %v7831_v61, %v16738_v37  ;;  %v10597_v61 = vld [vmem:[%s18234_s1 + $0x208] sm:$0xff] }
0x1668   : > { %8096 = vrot.lane.b32.xlu1 %v8085_v12, %s12042_s15  ;;  %7879 = vrot.lane.b32.xlu0 %v7867_v57, %s12044_s18  ;;  %v16879_v12 = vpop.permute.xlu1 %7931  ;;  %v7869_v57 = vmul.f32 %v16621_v46, %v16863_v16  ;;  %v16893_v26 = vpop.permute.xlu0 %7926  ;;  %v8086_v46 = vmul.f32 %v16625_v13, %v16891_v36 }
0x166c   : > { %8023 = vrot.lane.b32.xlu1 %v8008_v49, %s12040_s0  ;;  %7705 = vrot.lane.b32.xlu0 %v7691_v5, %s12040_s0  ;;  %v16897_v60 = vpop.permute.xlu1 %7615  ;;  %v7611_v18 = vpop.permute.xlu0 %7610  ;;  %v8163_v49 = vmul.f32 %v8126_v32, %v16670_v6  ;;  %v10599_v32 = vld [vmem:[%s18234_s1 + $0x218] sm:$0xff] }
0x1670   : > { %8104 = vrot.lane.b32.xlu1 %v8089_v4, %s12042_s15  ;;  %8179 = vrot.lane.b32.xlu0 %v8167_v19, %s12044_s18  ;;  %v16907_v5 = vpop.permute.xlu1 %7921  ;;  %v7917_v13 = vpop.permute.xlu0 %7916  ;;  %v7863_v19 = vmul.f32 %v7826_v39, %v16809_v41 }
0x1674   : > { %7804 = vrot.lane.b32.xlu1 %v7789_v1, %s12042_s15  ;;  %8021 = vrot.lane.b32.xlu0 %v8007_v51, %s12040_s0  ;;  %v7606_v4 = vpop.permute.xlu1 %7605  ;;  %v7601_v1 = vpop.permute.xlu0 %7600 }
0x1678   : > { %7885 = vrot.lane.b32.xlu1 %v7870_v50, %s12044_s18  ;;  %8102 = vrot.lane.b32.xlu0 %v8088_v31, %s12042_s15  ;;  %v16918_v51 = vpop.permute.xlu1 %7911  ;;  %v7907_v50 = vpop.permute.xlu0 %7906  ;;  %v10596_v31 = vld [vmem:[%s18234_s1 + $0x200] sm:$0xff] }
0x167c   : > { %8019 = vrot.lane.b32.xlu1 %v8006_v59, %s12040_s0  ;;  %7790 = vrot.lane.b32.xlu0 %v7782_v22, %s12042_s15  ;;  %v7596_v39 = vpop.permute.xlu1 %7595  ;;  %v7631_v59 = vmul.f32 %v7606_v4, %v16727_v8  ;;  %v16924_v22 = vpop.permute.xlu0 %7590 }
0x1680   : > { %8173 = vrot.lane.b32.xlu1 %v8164_v21, %s12044_s18  ;;  %7802 = vrot.lane.b32.xlu0 %v7788_v62, %s12042_s15  ;;  %v7632_v62 = vmul.f32 %v7611_v18, %v16691_v53  ;;  %v7630_v18 = vmul.f32 %v7601_v1, %v16738_v37 }
0x1684   : > { %8100 = vrot.lane.b32.xlu1 %v8087_v28, %s12042_s15  ;;  %8017 = vrot.lane.b32.xlu0 %v8005_v15, %s12040_s0  ;;  %s18241_s0 = sld [smem:[#allocation10_spill]] }
0x1688   : > { %7800 = vrot.lane.b32.xlu1 %v7787_v42, %s12042_s15  ;;  %7883 = vrot.lane.b32.xlu0 %v7869_v57, %s12044_s18 }
0x168a   : > { %v11597_v57 = vld [vmem:[%s18241_s0 + $0x78] sm:$0xff]   ;;  %v11601_v53 = vld [vmem:[%s18241_s0 + $0x68] sm:$0xff]  }
0x168b   : > { %10943 = vmatprep.subr.bf16.mxu0 %v11597_v57  ;;  %v11606_v1 = vld [vmem:[%s18241_s0 + $0x58] sm:$0xff]   ;;  %v11609_v57 = vld [vmem:[%s18241_s0 + $0x50] sm:$0xff]  }
0x168c   : > { %7881 = vrot.lane.b32.xlu1 %v7868_v2, %s12044_s18  ;;  %8098 = vrot.lane.b32.xlu0 %v8086_v46, %s12042_s15  ;;  %v11598_v2 = vld [vmem:[%s18241_s0 + $0x38] sm:$0xff]   ;;  %v11599_v46 = vld [vmem:[%s18241_s0 + $0x70] sm:$0xff]  }
0x168d   : > { %10944 = vmatpush3.bf16.msra.mxu0 %v11598_v2 }
0x168e   : > { %10945 = vmatprep.subr.bf16.mxu0 %v11599_v46  ;;  %v11610_v46 = vld [vmem:[%s18241_s0 + $0x10] sm:$0xff]  }
0x1690   : > { %8241 = vperm.xlu1 %11502, %v10603_v52   ;;  %8171 = vrot.lane.b32.xlu0 %v8163_v49, %s12044_s18  ;;  %v7629_v52 = vmul.f32 %v7596_v39, %v16809_v41  ;;  %v11604_v39 = vld [vmem:[%s18241_s0 + $0x20] sm:$0xff]  }
0x1694   : > { %7873 = vrot.lane.b32.xlu1 %v7864_v24, %s12044_s18  ;;  %8236 = vperm.xlu0 %11501, %v10602_v29   ;;  %v11600_v29 = vld [vmem:[%s18241_s0 + $0x30] sm:$0xff]  }
0x1695   : > { %10946 = vmatpush3.bf16.msra.mxu0 %v11600_v29 }
0x1696   : > { %10947 = vmatprep.subr.bf16.mxu0 %v11601_v53 }
0x1698   : > { %8231 = vperm.xlu1 %11502, %v10601_v7   ;;  %7871 = vrot.lane.b32.xlu0 %v7863_v19, %s12044_s18  ;;  %v11602_v19 = vld [vmem:[%s18241_s0 + $0x28] sm:$0xff]   ;;  %s18243_s18 = sld [smem:[#allocation14_spill]] }
0x1699   : > { %10948 = vmatpush3.bf16.msra.mxu0 %v11602_v19 }
0x169c   : > { %8221 = vperm.xlu1 %11502, %v10599_v32   ;;  %8226 = vperm.xlu0 %11501, %v10600_v3   ;;  %v11603_v3 = vld [vmem:[%s18241_s0 + $0x60] sm:$0xff]  }
0x169d   : > { %10949 = vmatprep.subr.bf16.mxu0 %v11603_v3 }
0x169e   : > { %10950 = vmatpush3.bf16.msra.mxu0 %v11604_v39 }
0x169f   : > { %10951 = vmatprep.subr.bf16.mxu0 %v11606_v1 }
0x16a0   : > { %8211 = vperm.xlu1 %11502, %v10597_v61   ;;  %8216 = vperm.xlu0 %11501, %v10598_v17   ;;  %v7946_v61 = vmul.f32 %v7917_v13, %v16648_v55 }
0x16a4   : > { %8206 = vperm.xlu0 %11501, %v10596_v31  }
0x16a6   : > { %v7700_v0 = vpop.permute.xlu1 %7699 }
0x16a7   : > { %v7712_v21 = vadd.f32 %v7700_v0, %v7631_v59 }
0x16aa   : > { %v16927_v28 = vpop.permute.xlu1 %8185  ;;  %v7702_v15 = vpop.permute.xlu0 %7701 }
0x16ab   : > { %v16929_v42 = vadd.f32 %v7702_v15, %v7632_v62  ;;  %v11607_v62 = vld [vmem:[%s18241_s0 + $0x18] sm:$0xff]  }
0x16ac   : > { %10952 = vmatpush3.bf16.msra.mxu0 %v11607_v62 }
0x16ad   : > { %10953 = vmatprep.subr.bf16.mxu0 %v11609_v57 }
0x16ae   : > { %v7696_v8 = vpop.permute.xlu1 %7695  ;;  %v8176_v49 = vpop.permute.xlu0 %8175 }
0x16af   : > { %v7710_v24 = vadd.f32 %v7696_v8, %v7629_v52  ;;  %v7944_v8 = vmul.f32 %v7907_v50, %v16652_v20 }
0x16b0   : > { %10954 = vmatpush3.bf16.msra.mxu0 %v11610_v46 }
0x16b2   : > { %v7797_v7 = vpop.permute.xlu1 %7796  ;;  %v7698_v4 = vpop.permute.xlu0 %7697 }
0x16b3   : > { %v7809_v32 = vadd.f32 %v7797_v7, %v7712_v21  ;;  %v7711_v41 = vadd.f32 %v7698_v4, %v7630_v18 }
0x16b6   : > { %v7878_v17 = vpop.permute.xlu1 %7877  ;;  %v8014_v31 = vpop.permute.xlu0 %8013 }
0x16b7   : > { %v16942_v59 = vadd.f32 %v7878_v17, %v7809_v32  ;;  %v8027_v37 = vadd.f32 %v8014_v31, %v7946_v61 }
0x16ba   : > { %v16945_v0 = vpop.permute.xlu1 %7707  ;;  %v8095_v21 = vpop.permute.xlu0 %8094 }
0x16bb   : > { %v8108_v15 = vadd.f32 %v8095_v21, %v8027_v37  ;;  %v7947_v37 = vmul.f32 %v16907_v5, %v16659_v38  ;;  %v7950_v38 = vmul.f32 %v16852_v43, %v16696_v58  ;;  %v7634_v58 = vmul.f32 %v16873_v23, %v16891_v36 }
0x16bd   : > { %v16949_v2 = vadd.f32 %v8176_v49, %v8108_v15 }
0x16be   : > { %v16951_v55 = vpop.permute.xlu1 %8181  ;;  %v7795_v13 = vpop.permute.xlu0 %7794 }
0x16bf   : > { %v7808_v52 = vadd.f32 %v7795_v13, %v7711_v41 }
0x16c2   : > { %v16955_v29 = vpop.permute.xlu1 %8011  ;;  %v8010_v53 = vpop.permute.xlu0 %8009 }
0x16c3   : > { %v16957_v18 = vadd.f32 %v8010_v53, %v7944_v8  ;;  %v7951_v53 = vmul.f32 %v16844_v25, %v16746_v45  ;;  %v7635_v25 = vmul.f32 %v16856_v11, %v16863_v16 }
0x16c6   : > { %v16959_v7 = vpop.permute.xlu1 %8092  ;;  %v7876_v4 = vpop.permute.xlu0 %7875 }
0x16c7   : > { %v16961_v49 = vadd.f32 %v7876_v4, %v7808_v52 }
0x16ca   : > { %v7793_v32 = vpop.permute.xlu1 %7792  ;;  %v16965_v3 = vpop.permute.xlu0 %8090 }
0x16cb   : > { %v16967_v41 = vadd.f32 %v7793_v32, %v7710_v24 }
0x16ce   : > { %v7704_v20 = vpop.permute.xlu1 %7703  ;;  %v8184_v50 = vpop.permute.xlu0 %8183 }
0x16d2   : > { %v8178_v61 = vpop.permute.xlu1 %8177  ;;  %v16969_v17 = vpop.permute.xlu0 %7693 }
0x16d6   : > { %v8016_v31 = vpop.permute.xlu1 %8015  ;;  %v7799_v39 = vpop.permute.xlu0 %7798 }
0x16d7   : > { %v8028_v1 = vadd.f32 %v8016_v31, %v7947_v37 }
0x16da   : > { %v8097_v21 = vpop.permute.xlu1 %8096  ;;  %v7880_v62 = vpop.permute.xlu0 %7879 }
0x16db   : > { %v8109_v15 = vadd.f32 %v8097_v21, %v8028_v1 }
0x16dd   : > { %v16973_v57 = vadd.f32 %v8178_v61, %v8109_v15 }
0x16de   : > { %v8024_v13 = vpop.permute.xlu1 %8023  ;;  %v7706_v46 = vpop.permute.xlu0 %7705 }
0x16df   : > { %v8256_v24 = vpack.c.bf16 %v16973_v57, %v16949_v2  ;;  %v8032_v19 = vadd.f32 %v8024_v13, %v7951_v53  ;;  %v7716_v13 = vadd.f32 %v16945_v0, %v7635_v25  ;;  %v7945_v0 = vmul.f32 %v16918_v51, %v16670_v6 }
0x16e2   : > { %v8105_v52 = vpop.permute.xlu1 %8104  ;;  %v8180_v8 = vpop.permute.xlu0 %8179 }
0x16e3   : > { %v8113_v5 = vadd.f32 %v8105_v52, %v8032_v19  ;;  %v7715_v52 = vadd.f32 %v7706_v46, %v7634_v58  ;;  %v7810_v46 = vadd.f32 %v7799_v39, %v16929_v42 }
0x16e5   : > { %v8194_v21 = vadd.f32 %v16927_v28, %v8113_v5  ;;  %v7633_v28 = vmul.f32 %v16897_v60, %v16784_v14 }
0x16e6   : > { %v7805_v4 = vpop.permute.xlu1 %7804  ;;  %v8022_v32 = vpop.permute.xlu0 %8021 }
0x16e7   : > { %v8031_v31 = vadd.f32 %v8022_v32, %v7950_v38  ;;  %v7948_v32 = vmul.f32 %v16893_v26, %v16743_v35  ;;  %v7714_v38 = vadd.f32 %v7704_v20, %v7633_v28  ;;  %v7891_v35 = vadd.f32 %v7880_v62, %v7810_v46  ;;  %v11620_v46 = vld [vmem:[%s18241_s0 + $0x80] sm:$0xff]  }
0x16e8   : > { %v18242_v62 = vpack.c.bf16 %v16942_v59, %v16961_v49 }
0x16ea   : > { %v7886_v61 = vpop.permute.xlu1 %7885  ;;  %v8103_v37 = vpop.permute.xlu0 %8102 }
0x16eb   : > { %v8112_v1 = vadd.f32 %v8103_v37, %v8031_v31 }
0x16ed   : > { %v8193_v15 = vadd.f32 %v8184_v50, %v8112_v1  ;;  %v7813_v50 = vadd.f32 %v7805_v4, %v7716_v13 }
0x16ee   : > { %v8020_v2 = vpop.permute.xlu1 %8019  ;;  %v7791_v57 = vpop.permute.xlu0 %7790 }
0x16ef   : > { %v8262_v48 = vpack.c.bf16 %v8194_v21, %v8193_v15  ;;  %v7894_v23 = vadd.f32 %v7886_v61, %v7813_v50  ;;  %v8106_v61 = vadd.f32 %v16965_v3, %v16957_v18 }
0x16f1   : > { %8282 = vmatprep.subr.bf16.mxu1 %v8262_v48  ;;  %v7949_v48 = vmul.f32 %v16879_v12, %v16790_v40  ;;  %v8026_v40 = vadd.f32 %v16955_v29, %v7945_v0  ;;  %v11619_v0 = vld [vmem:[%s18241_s0 + $0x88] sm:$0xff]  }
0x16f2   : > { %v8174_v47 = vpop.permute.xlu1 %8173  ;;  %v7803_v45 = vpop.permute.xlu0 %7802 }
0x16f3   : > { %v7812_v53 = vadd.f32 %v7803_v45, %v7715_v52  ;;  %v8030_v36 = vadd.f32 %v8020_v2, %v7949_v48  ;;  %v8107_v20 = vadd.f32 %v16959_v7, %v8026_v40  ;;  %v12046_v52 = vmov 0.0  }
0x16f5   : > { %v8188_v21 = vadd.f32 %v8174_v47, %v8107_v20 }
0x16f6   : > { %v8101_v43 = vpop.permute.xlu1 %8100  ;;  %v8018_v19 = vpop.permute.xlu0 %8017 }
0x16f7   : > { %v8111_v14 = vadd.f32 %v8101_v43, %v8030_v36  ;;  %v8029_v60 = vadd.f32 %v8018_v19, %v7948_v32  ;;  %v11596_v19 = vld [vmem:[%s18243_s18] sm:$0xff]   ;;  %v11605_v32 = vld [vmem:[%s18241_s0 + $0xb8] sm:$0xff]   ;;  %s18249_s18 = sld [smem:[#allocation16_spill]] }
0x16f8   : > { %v11617_v36 = vld [vmem:[%s18241_s0 + $0x98] sm:$0xff]  }
0x16f9   : > { %v8192_v6 = vadd.f32 %v16951_v55, %v8111_v14  ;;  %v7628_v55 = vmul.f32 %v16924_v22, %v16831_v33 }
0x16fa   : > { %v7801_v11 = vpop.permute.xlu1 %7800  ;;  %v7884_v16 = vpop.permute.xlu0 %7883 }
0x16fb   : > { %v7893_v5 = vadd.f32 %v7884_v16, %v7812_v53  ;;  %v7811_v4 = vadd.f32 %v7801_v11, %v7714_v38  ;;  %v7709_v47 = vadd.f32 %v16969_v17, %v7628_v55  ;;  %v11613_v11 = vld [vmem:[%s18241_s0 + $0x8] sm:$0xff]   ;;  %v11614_v16 = vld [vmem:[%s18241_s0 + $0xa0] sm:$0xff]  }
0x16fc   : > { %v11615_v38 = vld [vmem:[%s18241_s0 + $0x40] sm:$0xff]  }
0x16fd   : > { %v8261_v31 = vpack.c.bf16 %v7894_v23, %v7893_v5  ;;  %v11616_v23 = vld [vmem:[%s18241_s0] sm:$0xff]   ;;  %v11618_v5 = vld [vmem:[%s18241_s0 + $0x90] sm:$0xff]  }
0x16fe   : > { %v7882_v12 = vpop.permute.xlu1 %7881  ;;  %v8099_v37 = vpop.permute.xlu0 %8098 }
0x16ff   : > { %v7892_v26 = vadd.f32 %v7882_v12, %v7811_v4  ;;  %v8110_v1 = vadd.f32 %v8099_v37, %v8029_v60  ;;  %8283 = vmatpush1.bf16.msra.mxu1 %v8261_v31 }
0x1701   : > { %v8258_v51 = vpack.c.bf16 %v7892_v26, %v7891_v35  ;;  %v8191_v42 = vadd.f32 %v8180_v8, %v8110_v1  ;;  %v7806_v8 = vadd.f32 %v7791_v57, %v7709_v47 }
0x1702   : > { %v8172_v39 = vpop.permute.xlu0 %8171 }
0x1703   : > { %v8187_v15 = vadd.f32 %v8172_v39, %v8106_v61  ;;  %v8259_v2 = vpack.c.bf16 %v8192_v6, %v8191_v42 }
0x1705   : > { %v8253_v29 = vpack.c.bf16 %v8188_v21, %v8187_v15  ;;  %8284 = vmatprep.subr.bf16.mxu1 %v8259_v2  ;;  %v10631_v15 = vld [vmem:[%s18244_s11] ss:$0 sm:$0xff]  ;;  %s18250_s11 = sld [smem:[#allocation18_spill]] }
0x1706   : > { %8285 = vmatpush1.bf16.msra.mxu1 %v8258_v51 }
0x1707   : > { %8286 = vmatprep.subr.bf16.mxu1 %v8256_v24 }
0x170a   : > { %8287 = vmatpush1.bf16.msra.mxu1 %v18242_v62 }
0x170b   : > { %v8242_v7 = vpop.permute.xlu1 %8241  ;;  %8288 = vmatprep.subr.bf16.mxu1 %v8253_v29  ;;  %v10632_v29 = vld [vmem:[%s18245_s16] ss:$0 sm:$0xff]  ;;  %s18261_s16 = sld [smem:[#allocation20_spill]] }
0x170c   : > { %v8251_v13 = vmul.f32 %v8242_v7, %v16718_v27 }
0x170f   : > { %v7874_v18 = vpop.permute.xlu1 %7873  ;;  %v8237_v3 = vpop.permute.xlu0 %8236 }
0x1710   : > { %v7888_v25 = vadd.f32 %v7874_v18, %v16967_v41  ;;  %v8250_v43 = vmul.f32 %v8237_v3, %v16798_v56 }
0x1712   : > { %v8263_v33 = vpack.c.bf16 %v8251_v13, %v8250_v43 }
0x1713   : > { %v7872_v45 = vpop.permute.xlu0 %7871  ;;  %v8232_v24 = vpop.permute.xlu1 %8231 }
0x1714   : > { %v7887_v58 = vadd.f32 %v7872_v45, %v7806_v8  ;;  %v8249_v57 = vmul.f32 %v8232_v24, %v16820_v44 }
0x1716   : > { %v8252_v59 = vpack.c.bf16 %v7888_v25, %v7887_v58 }
0x1717   : > { %v8227_v49 = vpop.permute.xlu0 %8226  ;;  %v8222_v17 = vpop.permute.xlu1 %8221 }
0x1718   : > { %8289 = vmatpush1.bf16.msra.mxu1 %v8252_v59  ;;  %v8248_v22 = vmul.f32 %v8227_v49, %v16842_v9  ;;  %v8247_v9 = vmul.f32 %v8222_v17, %v16869_v54  ;;  %v11608_v54 = vld [vmem:[%s18241_s0 + $0xb0] sm:$0xff]  }
0x1719   : > { %11274 = vmatprep.subr.bf16.mxu1 %v12046_v52  ;;  %v11621_v17 = vld [vmem:[%s18246_s22 + $0x70] ss:$8 sps:$4 sm:$0xff]  }
0x171a   : > { %v8260_v27 = vpack.c.bf16 %v8249_v57, %v8248_v22 }
0x171b   : > { %10605 = vmatmul.mubr.msk.bf16.vlgmr.msra.gmra.mxu1 %vm5926_vm13, %v11596_v19  ;;  %v8217_v41 = vpop.permute.xlu0 %8216  ;;  %v8212_v50 = vpop.permute.xlu1 %8211 }
0x171c   : > { %11275 = vmatpush3.bf16.msra.mxu1 %v8263_v33  ;;  %11282 = vmatprep.mubr.msk.bf16.mxu1 %vm12047_vm0, %v12046_v52  ;;  %v8246_v56 = vmul.f32 %v8217_v41, %v16768_v34  ;;  %v8245_v53 = vmul.f32 %v8212_v50, %v16678_v30  ;;  %v11611_v30 = vld [vmem:[%s18241_s0 + $0xa8] sm:$0xff]   ;;  %v11623_v41 = vld [vmem:[%s18246_s22 + $0x74] ss:$8 sps:$4 sm:$0xff]  }
0x171d   : > { %11276 = vmatprep.subr.bf16.mxu1 %v12046_v52 }
0x171e   : > { %v8257_v44 = vpack.c.bf16 %v8247_v9, %v8246_v56  ;;  %v18247_v56 = vld [vmem:[#allocation258_spill] sm:$0xff] }
0x171f   : > { %v8207_v28 = vpop.permute.xlu0 %8206  ;;  %vm8667_vm1 = vcmp.lt.s32.totalorder %v18247_v56, 64  ;;  %vm9107_vm12 = vcmp.ge.s32.totalorder %v18247_v56, 32  ;;  %vm9108_vm7 = vcmp.lt.s32.totalorder %v18247_v56, 48  ;;  %vm9231_vm15 = vcmp.ge.s32.totalorder %v18247_v56, 48 }
0x1720   : > { %11277 = vmatpush3.bf16.msra.mxu1 %v8260_v27  ;;  %v8244_v48 = vmul.f32 %v8207_v28, %v16708_v63  ;;  %v11612_v63 = vld [vmem:[%s18241_s0 + $0x48] sm:$0xff]   ;;  %vm9109_vm8 = vmand %vm9107_vm12, %vm9108_vm7  ;;  %s18266_s0 = sld [smem:[#allocation24_spill]] }
0x1721   : > { %11278 = vmatprep.subr.bf16.mxu1 %v12046_v52  ;;  %10955 = vmatprep.subr.bf16.mxu0 %v11612_v63  ;;  %v11627_v63 = vld [vmem:[%s18246_s22 + $0x50] ss:$8 sps:$4 sm:$0xff]   ;;  %vm17099_vm14 = vmpackc.low %vm9109_vm8, %vm9109_vm8 }
0x1722   : > { %v8254_v34 = vpack.c.bf16 %v8245_v53, %v8244_v48  ;;  %10956 = vmatpush3.bf16.msra.mxu0 %v11613_v11  ;;  %v11629_v11 = vld [vmem:[%s18246_s22 + $0x54] ss:$8 sps:$4 sm:$0xff]   ;;  %vm9232_vm3 = vmand %vm9231_vm15, %vm8667_vm1 }
0x1723   : > { %10957 = vmatprep.subr.bf16.mxu0 %v11615_v38  ;;  %v11630_v38 = vld [vmem:[%s18246_s22 + $0x40] ss:$8 sps:$4 sm:$0xff]   ;;  %vm17121_vm9 = vmpackc.low %vm9232_vm3, %vm9232_vm3 }
0x1724   : > { %11279 = vmatpush3.bf16.msra.mxu1 %v8257_v44 }
0x1725   : > { %11280 = vmatprep.subr.bf16.mxu1 %v12046_v52 }
0x1726   : > { %10958 = vmatpush3.bf16.msra.mxu0 %v11616_v23  ;;  %v11635_v23 = vld [vmem:[%s18246_s22 + $0x34] ss:$8 sps:$4 sm:$0xff]  }
0x1727   : > { %8819 = vmatprep.subr.bf16.mxu0 %v11623_v41 }
0x1728   : > { %11281 = vmatpush3.bf16.msra.mxu1 %v8254_v34 }
0x1729   : > { %11286 = vmatprep.subr.bf16.mxu1 %v12046_v52 }
0x172b   : > { %11283 = vmatmul.mubr.msk.bf16.vlgmr.msra.gmra.mxu1 %vm5926_vm13, %v11596_v19  ;;  %vm17095_vm13 = vmpackc.low %vm6035_vm4, %vm6035_vm4 }
0x172c   : > { %11287 = vmatpush3.bf16.msra.mxu1 %v11605_v32  ;;  %11302 = vmatprep.mubr.msk.bf16.mxu1 %vm12047_vm0, %v12046_v52  ;;  %vm8943_vm4 = vmand %vm6395_vm5, %vm5543_vm2  ;;  %vm8916_vm2 = vcmask 130048  }
0x172d   : > { %11288 = vmatprep.subr.bf16.mxu1 %v12046_v52  ;;  %vm17117_vm6 = vmpackc.low %vm8943_vm4, %vm8943_vm4 }
0x1730   : > { %11289 = vmatpush3.bf16.msra.mxu1 %v11608_v54  ;;  %v11624_v54 = vld [vmem:[%s18246_s22 + $0x60] ss:$8 sps:$4 sm:$0xff]  }
0x1731   : > { %11290 = vmatprep.subr.bf16.mxu1 %v12046_v52 }
0x1734   : > { %11291 = vmatpush3.bf16.msra.mxu1 %v11611_v30  ;;  %v11626_v30 = vld [vmem:[%s18246_s22 + $0x64] ss:$8 sps:$4 sm:$0xff]  }
0x1735   : > { %11292 = vmatprep.subr.bf16.mxu1 %v12046_v52 }
0x1738   : > { %11293 = vmatpush3.bf16.msra.mxu1 %v11614_v16  ;;  %v11632_v16 = vld [vmem:[%s18246_s22 + $0x44] ss:$8 sps:$4 sm:$0xff]  }
0x1739   : > { %11294 = vmatprep.subr.bf16.mxu1 %v12046_v52 }
0x173c   : > { %11295 = vmatpush3.bf16.msra.mxu1 %v11617_v36  ;;  %v11633_v36 = vld [vmem:[%s18246_s22 + $0x30] ss:$8 sps:$4 sm:$0xff]  }
0x173d   : > { %11296 = vmatprep.subr.bf16.mxu1 %v12046_v52 }
0x1740   : > { %11297 = vmatpush3.bf16.msra.mxu1 %v11618_v5  ;;  %v11638_v5 = vld [vmem:[%s18246_s22 + $0x24] ss:$8 sps:$4 sm:$0xff]  }
0x1741   : > { %11298 = vmatprep.subr.bf16.mxu1 %v12046_v52 }
0x1744   : > { %11299 = vmatpush3.bf16.msra.mxu1 %v11619_v0  ;;  %v11636_v0 = vld [vmem:[%s18246_s22 + $0x20] ss:$8 sps:$4 sm:$0xff]  }
0x1745   : > { %11300 = vmatprep.subr.bf16.mxu1 %v12046_v52 }
0x1748   : > { %11301 = vmatpush3.bf16.msra.mxu1 %v11620_v46  ;;  %v11641_v46 = vld [vmem:[%s18246_s22 + $0x14] ss:$8 sps:$4 sm:$0xff]  }
0x1749   : > { %11306 = vmatprep.subr.bf16.mxu1 %v12046_v52 }
0x17db   : > { %v8308_v14 = vpop.f32.mrf.mxu1 }
0x17dd   : > { %v8310_v60 = vpop.f32.mrf.mxu1 }
0x17df   : > { %v8312_v4 = vpop.f32.mrf.mxu1 }
0x17e0   : > { %v8358_v12 = vpack.c.bf16 %v8312_v4, %v8308_v14  ;;  %v11639_v14 = vld [vmem:[%s18246_s22 + $0x10] ss:$8 sps:$4 sm:$0xff]   ;;  %v11642_v4 = vld [vmem:[%s18246_s22] ss:$8 sps:$4 sm:$0xff]  }
0x17e1   : > { %v8314_v31 = vpop.f32.mrf.mxu1 }
0x17e2   : > { %v8359_v40 = vpack.c.bf16 %v8314_v31, %v8310_v60  ;;  %v11644_v60 = vld [vmem:[%s18246_s22 + $0x4] ss:$8 sps:$4 sm:$0xff]  }
0x17e4   : > { %8585 = vmatprep.mubr.bf16.mxu0 %v8359_v40 }
0x17e5   : > { %8586 = vmatmul.mubr.bf16.vlgmr.msra.gmra.mxu0 %v8358_v12 }
0x17e6   : > { %8851 = vmatprep.mubr.bf16.mxu0 %v18239_v10  ;;  %8820 = vmatpush1.bf16.msra.mxu0 %v11621_v17 }
0x17e7   : > { %8821 = vmatprep.subr.bf16.mxu0 %v11626_v30 }
0x17ea   : > { %8822 = vmatpush1.bf16.msra.mxu0 %v11624_v54 }
0x17eb   : > { %v8351_v37 = vpop.f32.mrf.mxu1  ;;  %8823 = vmatprep.subr.bf16.mxu0 %v11629_v11 }
0x17ed   : > { %v11284_v35 = vpop.f32.mrf.mxu1 }
0x17ee   : > { %8824 = vmatpush1.bf16.msra.mxu0 %v11627_v63 }
0x17ef   : > { %v8354_v26 = vpop.f32.mrf.mxu1  ;;  %8825 = vmatprep.subr.bf16.mxu0 %v11632_v16 }
0x17f0   : > { %v8360_v1 = vpack.c.bf16 %v8354_v26, %v8351_v37 }
0x17f1   : > { %v11285_v20 = vpop.f32.mrf.mxu1 }
0x17f2   : > { %11303 = vmatmul.mubr.bf16.vlgmr.msra.gmra.mxu1 %v8360_v1  ;;  %8826 = vmatpush1.bf16.msra.mxu0 %v11630_v38 }
0x17f3   : > { %11308 = vmatprep.mubr.msk.bf16.mxu1 %vm12047_vm0, %v12046_v52  ;;  %8827 = vmatprep.subr.bf16.mxu0 %v11635_v23 }
0x17f6   : > { %8828 = vmatpush1.bf16.msra.mxu0 %v11633_v36 }
0x17f7   : > { %8829 = vmatprep.subr.bf16.mxu0 %v11638_v5 }
0x17fa   : > { %8830 = vmatpush1.bf16.msra.mxu0 %v11636_v0 }
0x17fb   : > { %8831 = vmatprep.subr.bf16.mxu0 %v11641_v46 }
0x17fe   : > { %8832 = vmatpush1.bf16.msra.mxu0 %v11639_v14 }
0x17ff   : > { %8833 = vmatprep.subr.bf16.mxu0 %v11644_v60 }
0x1802   : > { %8834 = vmatpush1.bf16.msra.mxu0 %v11642_v4 }
0x1803   : > { %11330 = vmatprep.subr.bf16.mxu0 %v12046_v52 }
0x18a5   : > { %v10959_v61 = vpop.f32.mrf.mxu0 }
0x18a7   : > { %v10960_v6 = vpop.f32.mrf.mxu0 }
0x18a8   : > { %v10961_v42 = vadd.f32 %v10960_v6, %v10959_v61  ;;  %v10635_v61 = vld [vmem:[%s18248_s26] ss:$0 sm:$0xff]  ;;  %s18262_s26 = sld [smem:[#allocation23_spill]] }
0x18a9   : > { %v10962_v51 = vpop.f32.mrf.mxu0 }
0x18ab   : > { %v10963_v39 = vpop.f32.mrf.mxu0 }
0x18ac   : > { %v10964_v62 = vadd.f32 %v10963_v39, %v10962_v51  ;;  %v10636_v39 = vld [vmem:[%s18249_s18] ss:$0 sm:$0xff]  ;;  %s18263_s18 = sld [smem:[#allocation25_spill]] }
0x18ae   : > { %v11658_v56 = vld [vmem:[%s18262_s26 + $0x10] sm:$0xff]  }
0x18b2   : > { %v8628_v21 = vpop.f32.mrf.mxu1 }
0x18b3   : > { %v8629_v2 = vadd.f32 %v10961_v42, %v8628_v21 }
0x18b4   : > { %v11304_v10 = vpop.f32.mrf.mxu1 }
0x18b5   : > { %v8642_v7 = vmul.f32 %v10631_v15, %v8629_v2  ;;  %v18251_v10 = vld [vmem:[#allocation183_spill] sm:$0xff] }
0x18b6   : > { %v8631_v55 = vpop.f32.mrf.mxu1  ;;  %v8735_v17 = vsub.s32 1, %v18251_v10 }
0x18b7   : > { %v8651_v18 = vadd.f32 %v10632_v29, %v8642_v7  ;;  %v8632_v3 = vadd.f32 %v10964_v62, %v8631_v55  ;;  %v8731_v62 = vsub.s32 0, %v18251_v10  ;;  %v8727_v7 = vld [vmem:[%s18250_s11] sm:$0x3]  ;;  %s18264_s11 = sld [smem:[#allocation21_spill]] }
0x18b8   : > { %v11305_v47 = vpop.f32.mrf.mxu1 }
0x18b9   : > { %v10633_v8 = vmul.f32 -1.442695, %v8651_v18  ;;  %v8643_v45 = vmul.f32 %v10631_v15, %v8632_v3 }
0x18bb   : > { %11901 = vpow2.f32 %v10633_v8  ;;  %v8652_v25 = vadd.f32 %v10632_v29, %v8643_v45 }
0x18bd   : > { %v10634_v58 = vmul.f32 -1.442695, %v8652_v25 }
0x18bf   : > { %11903 = vpow2.f32 %v10634_v58 }
0x18c8   : > { %v11902_v24 = vpop.eup %11901 }
0x18c9   : > { %v8659_v43 = vadd.f32 1.0, %v11902_v24 }
0x18cb   : > { %11905 = vrcp.f32 %v8659_v43 }
0x18cc   : > { %v11904_v59 = vpop.eup %11903 }
0x18cd   : > { %v8660_v49 = vadd.f32 1.0, %v11904_v59 }
0x18cf   : > { %11907 = vrcp.f32 %v8660_v49 }
0x18d8   : > { %v11906_v19 = vpop.eup %11905 }
0x18d9   : > { %v17053_v13 = vmul.f32 %v11906_v19, %v8651_v18  ;;  %v8732_v18 = vrot.slane %v8727_v7, %v8731_v62 }
0x18db   : > { %8668 = vadd.xlane.f32.xlu0 %v17053_v13 }
0x18dc   : > { %v11908_v33 = vpop.eup %11907 }
0x18dd   : > { %v17056_v22 = vmul.f32 %v11908_v33, %v8652_v25 }
0x18df   : > { %8670 = vadd.xlane.f32.xlu1 %v17056_v22 }
0x1964   : > { %v8669_v57 = vpop.xlane.xlu0 %8668 }
0x1965   : > { %v8672_v27 = vmul.f32 0.015625, %v8669_v57 }
0x1967   : > { %v8674_v28 = vsub.f32 %v17053_v13, %v8672_v27 }
0x1968   : > { %v8671_v9 = vpop.xlane.xlu1 %8670 }
0x1969   : > { %v8676_v50 = vsel %vm8667_vm1, %v8674_v28, 0.0  ;;  %v8673_v44 = vmul.f32 0.015625, %v8671_v9  ;;  %v8736_v28 = vrot.slane %v8727_v7, %v8735_v17 }
0x196a   : > { %v8678_v48 = vmul.f32 %v8676_v50, %v8676_v50 }
0x196b   : > { %v8675_v53 = vsub.f32 %v17056_v22, %v8673_v44 }
0x196c   : > { %8680 = vadd.xlane.f32.xlu0 %v8678_v48 }
0x196d   : > { %v8677_v34 = vsel %vm8667_vm1, %v8675_v53, 0.0 }
0x196e   : > { %v8679_v32 = vmul.f32 %v8677_v34, %v8677_v34 }
0x1970   : > { %8682 = vadd.xlane.f32.xlu0 %v8679_v32 }
0x19f5   : > { %v8681_v31 = vpop.xlane.xlu0 %8680 }
0x19f6   : > { %v8684_v40 = vmul.f32 0.015625, %v8681_v31 }
0x19f8   : > { %v8686_v12 = vadd.f32 1e-05, %v8684_v40 }
0x19f9   : > { %v8683_v37 = vpop.xlane.xlu0 %8682 }
0x19fa   : > { %11909 = vrsqrt.f32 %v8686_v12  ;;  %v8685_v35 = vmul.f32 0.015625, %v8683_v37 }
0x19fc   : > { %v8687_v26 = vadd.f32 1e-05, %v8685_v35 }
0x19fe   : > { %11911 = vrsqrt.f32 %v8687_v26 }
0x1a07   : > { %v11910_v1 = vpop.eup %11909 }
0x1a08   : > { %v8690_v20 = vmul.f32 %v11910_v1, %v8676_v50 }
0x1a0a   : > { %v8699_v42 = vmul.f32 %v10635_v61, %v8690_v20 }
0x1a0b   : > { %v11912_v6 = vpop.eup %11911 }
0x1a0c   : > { %v8691_v51 = vmul.f32 %v11912_v6, %v8677_v34  ;;  %v8708_v15 = vadd.f32 %v10636_v39, %v8699_v42 }
0x1a0e   : > { %v8700_v21 = vmul.f32 %v10635_v61, %v8691_v51 }
0x1a10   : > { %v8709_v2 = vadd.f32 %v10636_v39, %v8700_v21 }
0x1a12   : > { %v8710_v29 = vpack.c.bf16 %v8709_v2, %v8708_v15 }
0x1a14   : > { %8852 = vmatmul.mubr.bf16.vlgmr.msra.gmra.mxu0 %v8710_v29 }
0x1a15   : > { %11332 = vmatprep.mubr.msk.bf16.mxu0 %vm12047_vm0, %v12046_v52 }
0x1ad4   : > { %v8853_v55 = vpop.f32.mrf.mxu0 }
0x1ad5   : > { %v8854_v8 = vadd.f32 %v8853_v55, %v8732_v18 }
0x1ad6   : > { %v8855_v3 = vpop.f32.mrf.mxu0 }
0x1ad7   : > { %v8856_v50 = vadd.f32 %v8855_v3, %v8736_v28 }
0x1ad8   : > { %v8857_v47 = vpop.f32.mrf.mxu0 }
0x1ad9   : > { %v8858_v45 = vadd.f32 %v8857_v47, %v8732_v18 }
0x1ada   : > { %v8859_v27 = vpop.f32.mrf.mxu0 }
0x1adb   : > { %v11523_v25 = vpack.i.bf16 %v8858_v45, %v8854_v8  ;;  %v10657_v58 = vpack.c.bf16 %v8858_v45, %v8854_v8  ;;  %v8860_v9 = vadd.f32 %v8859_v27, %v8736_v28 }
0x1add   : > { %11524 = vrot.lane.b32.xlu1 %v11523_v25, %s12042_s15  ;;  %v17139_v44 = vpack.c.bf16 %v8860_v9, %v8856_v50  ;;  %s18260_s15 = sld [smem:[#allocation19_spill]] }
0x1ae3   : > { %v11646_v57 = vld [vmem:[%s18260_s15 + $0x30] sm:$0xff]  }
0x1b4f   : > { %v11525_v24 = vpop.permute.xlu1 %11524 }
0x1b50   : > { %v11527_v43 = vunpack.i.h.bf16 %v11525_v24  ;;  %v11526_v59 = vunpack.i.l.bf16 %v11525_v24 }
0x1b52   : > { %v10654_v33 = vpack.c.bf16 %v11527_v43, %v11526_v59 }
0x1b54   : > { %11307 = vmatpush3.bf16.xpose.msk.msra.mxu1 %vm17095_vm13, %v10654_v33  ;;  %11331 = vmatpush3.bf16.xpose.msk.msra.mxu0 %vm17099_vm14, %v10654_v33 }
0x1b55   : > { %11312 = vmatprep.subr.bf16.mxu1 %v12046_v52  ;;  %11342 = vmatprep.subr.bf16.mxu0 %v12046_v52 }
0x1b5b   : > { %11309 = vmatmul.mubr.msk.bf16.vlgmr.msra.gmra.mxu1 %vm17095_vm13, %v10657_v58  ;;  %11333 = vmatmul.mubr.msk.bf16.vlgmr.msra.gmra.mxu0 %vm17099_vm14, %v10657_v58 }
0x1b5c   : > { %11313 = vmatpush3.bf16.xpose.msk.msra.mxu1 %vm17117_vm6, %v10654_v33  ;;  %11343 = vmatpush3.bf16.xpose.msk.msra.mxu0 %vm17121_vm9, %v10654_v33 }
0x1b5d   : > { %11314 = vmatprep.mubr.msk.bf16.mxu1 %vm12047_vm0, %v12046_v52  ;;  %11344 = vmatprep.mubr.msk.bf16.mxu0 %vm12047_vm0, %v12046_v52 }
0x1b5e   : > { %11318 = vmatprep.subr.bf16.mxu1 %v12046_v52  ;;  %11354 = vmatprep.subr.bf16.mxu0 %v12046_v52 }
0x1b63   : > { %11315 = vmatmul.mubr.msk.bf16.vlgmr.msra.gmra.mxu1 %vm17117_vm6, %v10657_v58  ;;  %11345 = vmatmul.mubr.msk.bf16.vlgmr.msra.gmra.mxu0 %vm17121_vm9, %v10657_v58 }
0x1b64   : > { %11319 = vmatpush3.bf16.msk.msra.mxu1 %vm17117_vm6, %v17139_v44  ;;  %11320 = vmatprep.mubr.msk.bf16.mxu1 %vm12047_vm0, %v12046_v52 }
0x1b65   : > { %11324 = vmatprep.subr.bf16.mxu1 %v12046_v52  ;;  %11370 = vmatprep.mubr.msk.bf16.mxu0 %vm12047_vm0, %v12046_v52 }
0x1c1b   : > { %v8907_v48 = vpop.f32.mrf.mxu1  ;;  %v9150_v53 = vpop.f32.mrf.mxu0 }
0x1c1c   : > { %v9157_v34 = vmul.f32 0.25, %v9150_v53  ;;  %v8914_v37 = vmul.f32 0.25, %v8907_v48 }
0x1c1d   : > { %v11310_v32 = vpop.f32.mrf.mxu1  ;;  %v11334_v54 = vpop.f32.mrf.mxu0 }
0x1c1e   : > { %v9159_v30 = vsel %vm8916_vm2, %v9157_v34, -inf  ;;  %v8917_v1 = vsel %vm8916_vm2, %v8914_v37, -inf }
0x1c1f   : > { %9160 = vmax.xlane.f32.xlu1 %v9159_v30  ;;  %v8910_v63 = vpop.f32.mrf.mxu1  ;;  %v9153_v11 = vpop.f32.mrf.mxu0 }
0x1c20   : > { %v8915_v26 = vmul.f32 0.25, %v8910_v63  ;;  %v9158_v20 = vmul.f32 0.25, %v9153_v11 }
0x1c21   : > { %v11311_v16 = vpop.f32.mrf.mxu1  ;;  %v11335_v38 = vpop.f32.mrf.mxu0 }
0x1c22   : > { %v8920_v61 = vsel %vm8916_vm2, %v8915_v26, -inf  ;;  %v9162_v51 = vsel %vm8916_vm2, %v9158_v20, -inf }
0x1c23   : > { %v8984_v23 = vpop.f32.mrf.mxu1  ;;  %v9273_v36 = vpop.f32.mrf.mxu0 }
0x1c24   : > { %v8991_v5 = vmul.f32 0.25, %v8984_v23  ;;  %v9280_v6 = vmul.f32 0.25, %v9273_v36 }
0x1c25   : > { %v11316_v0 = vpop.f32.mrf.mxu1  ;;  %v11346_v46 = vpop.f32.mrf.mxu0 }
0x1c26   : > { %v8993_v14 = vsel %vm8916_vm2, %v8991_v5, -inf  ;;  %v9282_v39 = vsel %vm8916_vm2, %v9280_v6, -inf }
0x1c27   : > { %v9276_v60 = vpop.f32.mrf.mxu0  ;;  %8994 = vmax.xlane.f32.xlu0 %v8993_v14  ;;  %v8987_v4 = vpop.f32.mrf.mxu1 }
0x1c28   : > { %v8992_v31 = vmul.f32 0.25, %v8987_v4  ;;  %v9281_v42 = vmul.f32 0.25, %v9276_v60 }
0x1c29   : > { %v11317_v40 = vpop.f32.mrf.mxu1  ;;  %v11347_v12 = vpop.f32.mrf.mxu0 }
0x1c2a   : > { %v8996_v35 = vsel %vm8916_vm2, %v8992_v31, -inf  ;;  %v9285_v21 = vsel %vm8916_vm2, %v9281_v42, -inf }
0x1c2b   : > { %8997 = vmax.xlane.f32.xlu0 %v8996_v35 }
0x1c2f   : > { %8918 = vmax.xlane.f32.xlu0 %v8917_v1 }
0x1c33   : > { %8921 = vmax.xlane.f32.xlu0 %v8920_v61 }
0x1c37   : > { %9163 = vmax.xlane.f32.xlu0 %v9162_v51 }
0x1c3b   : > { %9283 = vmax.xlane.f32.xlu0 %v9282_v39 }
0x1c3f   : > { %9286 = vmax.xlane.f32.xlu0 %v9285_v21 }
0x1ca8   : > { %v9161_v55 = vpop.xlane.xlu1 %9160 }
0x1ca9   : > { %v9165_v47 = vsub.f32 %v9157_v34, %v9161_v55 }
0x1cab   : > { %v9167_v58 = vmul.f32 1.442695, %v9165_v47 }
0x1cb0   : > { %v8995_v15 = vpop.xlane.xlu0 %8994 }
0x1cb1   : > { %v8999_v2 = vsub.f32 %v8991_v5, %v8995_v15 }
0x1cb3   : > { %v9001_v29 = vmul.f32 1.442695, %v8999_v2 }
0x1cb4   : > { %v8998_v10 = vpop.xlane.xlu0 %8997 }
0x1cb5   : > { %11913 = vpow2.f32 %v9001_v29  ;;  %v9000_v62 = vsub.f32 %v8992_v31, %v8998_v10 }
0x1cb7   : > { %v9003_v7 = vmul.f32 1.442695, %v9000_v62 }
0x1cb8   : > { %v8919_v18 = vpop.xlane.xlu0 %8918 }
0x1cb9   : > { %11915 = vpow2.f32 %v9003_v7  ;;  %v8923_v3 = vsub.f32 %v8914_v37, %v8919_v18 }
0x1cbb   : > { %v8925_v8 = vmul.f32 1.442695, %v8923_v3 }
0x1cbc   : > { %v8922_v45 = vpop.xlane.xlu0 %8921 }
0x1cbd   : > { %11917 = vpow2.f32 %v8925_v8  ;;  %v8924_v25 = vsub.f32 %v8915_v26, %v8922_v45  ;;  %v11645_v8 = vld [vmem:[%s18260_s15 + $0x38] sm:$0xff]   ;;  %v11648_v45 = vld [vmem:[%s18260_s15 + $0x20] sm:$0xff]  }
0x1cbe   : > { %11355 = vmatpush3.bf16.msra.mxu0 %v11645_v8 }
0x1cbf   : > { %v8927_v24 = vmul.f32 1.442695, %v8924_v25  ;;  %11356 = vmatprep.subr.bf16.mxu0 %v12046_v52  ;;  %v11649_v25 = vld [vmem:[%s18260_s15 + $0x18] sm:$0xff]  }
0x1cc0   : > { %v9164_v43 = vpop.xlane.xlu0 %9163 }
0x1cc1   : > { %11919 = vpow2.f32 %v8927_v24  ;;  %v9166_v59 = vsub.f32 %v9158_v20, %v9164_v43  ;;  %v11651_v24 = vld [vmem:[%s18260_s15 + $0x8] sm:$0xff]   ;;  %v11652_v43 = vld [vmem:[%s18260_s15] sm:$0xff]  }
0x1cc2   : > { %v11914_v33 = vpop.eup %11913  ;;  %11921 = vpow2.f32 %v9167_v58  ;;  %11357 = vmatpush3.bf16.msra.mxu0 %v11646_v57  ;;  %v11650_v58 = vld [vmem:[%s18260_s15 + $0x10] sm:$0xff]  }
0x1cc3   : > { %v9169_v17 = vmul.f32 1.442695, %v9166_v59  ;;  %v9005_v41 = vsel %vm8916_vm2, %v11914_v33, 0.0  ;;  %11358 = vmatprep.subr.bf16.mxu0 %v12046_v52 }
0x1cc4   : > { %9006 = vadd.xlane.f32.xlu0 %v9005_v41  ;;  %v9284_v27 = vpop.xlane.xlu0 %9283 }
0x1cc5   : > { %v9288_v28 = vsub.f32 %v9280_v6, %v9284_v27  ;;  %11923 = vpow2.f32 %v9169_v17 }
0x1cc6   : > { %v11916_v9 = vpop.eup %11915 }
0x1cc7   : > { %v9290_v50 = vmul.f32 1.442695, %v9288_v28  ;;  %v9008_v48 = vsel %vm8916_vm2, %v11916_v9, 0.0 }
0x1cc8   : > { %9009 = vadd.xlane.f32.xlu0 %v9008_v48  ;;  %v9287_v53 = vpop.xlane.xlu0 %9286 }
0x1cc9   : > { %11925 = vpow2.f32 %v9290_v50  ;;  %v9289_v34 = vsub.f32 %v9281_v42, %v9287_v53 }
0x1cca   : > { %v11918_v32 = vpop.eup %11917 }
0x1ccb   : > { %v9292_v54 = vmul.f32 1.442695, %v9289_v34  ;;  %v8929_v30 = vsel %vm8916_vm2, %v11918_v32, 0.0 }
0x1ccc   : > { %8930 = vadd.xlane.f32.xlu0 %v8929_v30 }
0x1ccd   : > { %11927 = vpow2.f32 %v9292_v54 }
0x1cce   : > { %v11920_v63 = vpop.eup %11919 }
0x1ccf   : > { %v8932_v11 = vsel %vm8916_vm2, %v11920_v63, 0.0  ;;  %v11922_v16 = vpop.eup %11921 }
0x1cd0   : > { %8933 = vadd.xlane.f32.xlu0 %v8932_v11  ;;  %v9171_v38 = vsel %vm8916_vm2, %v11922_v16, 0.0 }
0x1cd2   : > { %v11924_v23 = vpop.eup %11923 }
0x1cd3   : > { %v9174_v5 = vsel %vm8916_vm2, %v11924_v23, 0.0 }
0x1cd4   : > { %9172 = vadd.xlane.f32.xlu0 %v9171_v38 }
0x1cd6   : > { %v11926_v36 = vpop.eup %11925 }
0x1cd7   : > { %v9294_v0 = vsel %vm8916_vm2, %v11926_v36, 0.0 }
0x1cd8   : > { %9175 = vadd.xlane.f32.xlu0 %v9174_v5  ;;  %9295 = vadd.xlane.f32.xlu1 %v9294_v0 }
0x1cda   : > { %v11928_v46 = vpop.eup %11927 }
0x1cdb   : > { %v9297_v14 = vsel %vm8916_vm2, %v11928_v46, 0.0 }
0x1cdc   : > { %9298 = vadd.xlane.f32.xlu0 %v9297_v14 }
0x1d4d   : > { %v9007_v60 = vpop.xlane.xlu0 %9006 }
0x1d4e   : > { %11929 = vrcp.f32 %v9007_v60  ;;  %v10701_v60 = vld [vmem:[%s18261_s16] ss:$0 sm:$0xff]  ;;  %s18265_s16 = sld [smem:[#allocation22_spill]] }
0x1d51   : > { %v9010_v4 = vpop.xlane.xlu0 %9009 }
0x1d52   : > { %11931 = vrcp.f32 %v9010_v4 }
0x1d55   : > { %v8931_v31 = vpop.xlane.xlu0 %8930 }
0x1d56   : > { %11933 = vrcp.f32 %v8931_v31 }
0x1d59   : > { %v8934_v40 = vpop.xlane.xlu0 %8933 }
0x1d5a   : > { %11935 = vrcp.f32 %v8934_v40 }
0x1d5b   : > { %v11930_v12 = vpop.eup %11929 }
0x1d5c   : > { %v9013_v26 = vmul.f32 %v11930_v12, %v11914_v33 }
0x1d5d   : > { %v9173_v37 = vpop.xlane.xlu0 %9172 }
0x1d5e   : > { %11937 = vrcp.f32 %v9173_v37 }
0x1d5f   : > { %v11932_v35 = vpop.eup %11931 }
0x1d60   : > { %v9014_v1 = vmul.f32 %v11932_v35, %v11916_v9 }
0x1d61   : > { %v9176_v20 = vpop.xlane.xlu0 %9175  ;;  %v9296_v42 = vpop.xlane.xlu1 %9295 }
0x1d62   : > { %v9018_v61 = vpack.c.bf16 %v9014_v1, %v9013_v26  ;;  %11939 = vrcp.f32 %v9176_v20  ;;  %v11653_v1 = vld [vmem:[%s18262_s26 + $0x38] sm:$0xff]  }
0x1d63   : > { %v11934_v6 = vpop.eup %11933 }
0x1d64   : > { %11321 = vmatmul.mubr.msk.bf16.vlgmr.msra.gmra.mxu1 %vm8916_vm2, %v9018_v61  ;;  %v8937_v21 = vmul.f32 %v11934_v6, %v11918_v32 }
0x1d65   : > { %11325 = vmatpush3.bf16.msk.msra.mxu1 %vm17095_vm13, %v17139_v44  ;;  %v9299_v51 = vpop.xlane.xlu0 %9298  ;;  %11326 = vmatprep.mubr.msk.bf16.mxu1 %vm12047_vm0, %v12046_v52 }
0x1d66   : > { %11336 = vmatprep.subr.bf16.mxu1 %v12046_v52  ;;  %11941 = vrcp.f32 %v9299_v51 }
0x1d67   : > { %v11936_v39 = vpop.eup %11935  ;;  %11943 = vrcp.f32 %v9296_v42 }
0x1d68   : > { %v8938_v15 = vmul.f32 %v11936_v39, %v11920_v63 }
0x1d6a   : > { %v8942_v2 = vpack.c.bf16 %v8938_v15, %v8937_v21 }
0x1d6b   : > { %v11938_v49 = vpop.eup %11937 }
0x1d6c   : > { %11327 = vmatmul.mubr.msk.bf16.vlgmr.msra.gmra.mxu1 %vm8916_vm2, %v8942_v2  ;;  %v9179_v10 = vmul.f32 %v11938_v49, %v11922_v16  ;;  %v11654_v2 = vld [vmem:[%s18262_s26 + $0x30] sm:$0xff]   ;;  %v11655_v49 = vld [vmem:[%s18262_s26 + $0x28] sm:$0xff]  }
0x1d6d   : > { %11337 = vmatpush3.bf16.msk.msra.mxu1 %vm17099_vm14, %v17139_v44  ;;  %11338 = vmatprep.mubr.msk.bf16.mxu1 %vm12047_vm0, %v12046_v52 }
0x1d6e   : > { %11348 = vmatprep.subr.bf16.mxu1 %v12046_v52 }
0x1d6f   : > { %v11940_v29 = vpop.eup %11939 }
0x1d70   : > { %v9180_v62 = vmul.f32 %v11940_v29, %v11924_v23  ;;  %v11656_v29 = vld [vmem:[%s18262_s26 + $0x20] sm:$0xff]  }
0x1d72   : > { %v9184_v7 = vpack.c.bf16 %v9180_v62, %v9179_v10  ;;  %v11657_v10 = vld [vmem:[%s18262_s26 + $0x18] sm:$0xff]   ;;  %v11659_v62 = vld [vmem:[%s18262_s26 + $0x8] sm:$0xff]  }
0x1d73   : > { %v11942_v55 = vpop.eup %11941 }
0x1d74   : > { %11339 = vmatmul.mubr.msk.bf16.vlgmr.msra.gmra.mxu1 %vm8916_vm2, %v9184_v7  ;;  %v11944_v18 = vpop.eup %11943  ;;  %v9303_v19 = vmul.f32 %v11942_v55, %v11928_v46  ;;  %v11660_v7 = vld [vmem:[%s18262_s26] sm:$0xff]   ;;  %v11661_v55 = vld [vmem:[%s18263_s18 + $0x38] sm:$0xff]  }
0x1d75   : > { %11349 = vmatpush3.bf16.msk.msra.mxu1 %vm17121_vm9, %v17139_v44  ;;  %11350 = vmatprep.mubr.msk.bf16.mxu1 %vm12047_vm0, %v12046_v52  ;;  %v9302_v3 = vmul.f32 %v11944_v18, %v11926_v36  ;;  %v11647_v44 = vld [vmem:[%s18260_s15 + $0x28] sm:$0xff]   ;;  %v11662_v18 = vld [vmem:[%s18263_s18 + $0x30] sm:$0xff]  }
0x1d76   : > { %11374 = vmatprep.subr.bf16.mxu1 %v12046_v52  ;;  %11359 = vmatpush3.bf16.msra.mxu0 %v11647_v44 }
0x1d77   : > { %v9307_v47 = vpack.c.bf16 %v9303_v19, %v9302_v3  ;;  %11360 = vmatprep.subr.bf16.mxu0 %v12046_v52  ;;  %v11663_v19 = vld [vmem:[%s18263_s18 + $0x28] sm:$0xff]   ;;  %v11664_v3 = vld [vmem:[%s18263_s18 + $0x20] sm:$0xff]  }
0x1d7a   : > { %11361 = vmatpush3.bf16.msra.mxu0 %v11648_v45 }
0x1d7b   : > { %11362 = vmatprep.subr.bf16.mxu0 %v12046_v52 }
0x1d7c   : > { %11351 = vmatmul.mubr.msk.bf16.vlgmr.msra.gmra.mxu1 %vm8916_vm2, %v9307_v47  ;;  %v11665_v47 = vld [vmem:[%s18263_s18 + $0x18] sm:$0xff]  }
0x1d7d   : > { %11390 = vmatprep.mubr.msk.bf16.mxu1 %vm12047_vm0, %v12046_v52  ;;  %11375 = vmatpush3.bf16.msra.mxu1 %v11653_v1 }
0x1d7e   : > { %11363 = vmatpush3.bf16.msra.mxu0 %v11649_v25  ;;  %11376 = vmatprep.subr.bf16.mxu1 %v12046_v52 }
0x1d7f   : > { %11364 = vmatprep.subr.bf16.mxu0 %v12046_v52 }
0x1d81   : > { %11377 = vmatpush3.bf16.msra.mxu1 %v11654_v2 }
0x1d82   : > { %11365 = vmatpush3.bf16.msra.mxu0 %v11650_v58  ;;  %11378 = vmatprep.subr.bf16.mxu1 %v12046_v52 }
0x1d83   : > { %11366 = vmatprep.subr.bf16.mxu0 %v12046_v52 }
0x1d85   : > { %11379 = vmatpush3.bf16.msra.mxu1 %v11655_v49 }
0x1d86   : > { %11367 = vmatpush3.bf16.msra.mxu0 %v11651_v24  ;;  %11380 = vmatprep.subr.bf16.mxu1 %v12046_v52 }
0x1d87   : > { %11368 = vmatprep.subr.bf16.mxu0 %v12046_v52 }
0x1d89   : > { %11381 = vmatpush3.bf16.msra.mxu1 %v11656_v29 }
0x1d8a   : > { %11369 = vmatpush3.bf16.msra.mxu0 %v11652_v43  ;;  %11382 = vmatprep.subr.bf16.mxu1 %v12046_v52 }
0x1d8b   : > { %11394 = vmatprep.subr.bf16.mxu0 %v12046_v52 }
0x1d8d   : > { %11383 = vmatpush3.bf16.msra.mxu1 %v11657_v10 }
0x1d8e   : > { %11384 = vmatprep.subr.bf16.mxu1 %v12046_v52 }
0x1d91   : > { %11385 = vmatpush3.bf16.msra.mxu1 %v11658_v56 }
0x1d92   : > { %11386 = vmatprep.subr.bf16.mxu1 %v12046_v52 }
0x1d95   : > { %11387 = vmatpush3.bf16.msra.mxu1 %v11659_v62 }
0x1d96   : > { %11388 = vmatprep.subr.bf16.mxu1 %v12046_v52 }
0x1d99   : > { %11389 = vmatpush3.bf16.msra.mxu1 %v11660_v7 }
0x1d9a   : > { %11414 = vmatprep.subr.bf16.mxu1 %v12046_v52 }
0x1e24   : > { %v9056_v59 = vpop.f32.mrf.mxu1 }
0x1e26   : > { %v11322_v33 = vpop.f32.mrf.mxu1 }
0x1e28   : > { %v9059_v17 = vpop.f32.mrf.mxu1 }
0x1e2a   : > { %v11323_v41 = vpop.f32.mrf.mxu1 }
0x1e2c   : > { %v9100_v27 = vpop.f32.mrf.mxu1 }
0x1e2d   : > { %v9101_v30 = vadd.f32 %v9100_v27, %v9056_v59  ;;  %v10702_v59 = vld [vmem:[%s18264_s11] ss:$0 sm:$0xff] }
0x1e2e   : > { %v11328_v28 = vpop.f32.mrf.mxu1  ;;  %v10703_v27 = vld [vmem:[%s18265_s16] ss:$0 sm:$0xff] }
0x1e30   : > { %v9103_v9 = vpop.f32.mrf.mxu1 }
0x1e31   : > { %v9104_v63 = vadd.f32 %v9103_v9, %v9059_v17 }
0x1e32   : > { %v11329_v50 = vpop.f32.mrf.mxu1 }
0x1e34   : > { %v9222_v48 = vpop.f32.mrf.mxu1 }
0x1e35   : > { %v9229_v16 = vadd.f32 %v9222_v48, %v9101_v30  ;;  %v10704_v30 = vld [vmem:[%s18266_s0] ss:$0 sm:$0xff]  ;;  %s9967_s0 = sshll.u32 %s18268_s10, 3 }
0x1e36   : > { %v11340_v53 = vpop.f32.mrf.mxu1  ;;  %s1236_s11 = scalar_lea.vmem %s12261_s4, %s9967_s0 }
0x1e37   : > { %v11666_v53 = vld [vmem:[%s18263_s18 + $0x10] sm:$0xff]  }
0x1e38   : > { %v9225_v34 = vpop.f32.mrf.mxu1 }
0x1e39   : > { %v9230_v38 = vadd.f32 %v9225_v34, %v9104_v63  ;;  %v11667_v34 = vld [vmem:[%s18263_s18 + $0x8] sm:$0xff]  }
0x1e3a   : > { %v11341_v32 = vpop.f32.mrf.mxu1 }
0x1e3b   : > { %v11668_v32 = vld [vmem:[%s18263_s18] sm:$0xff]  }
0x1e3c   : > { %v9345_v54 = vpop.f32.mrf.mxu1 }
0x1e3d   : > { %v9352_v36 = vadd.f32 %v9345_v54, %v9229_v16  ;;  %v11669_v54 = vld [vmem:[%s12251_s20 + $0x38] sm:$0xff]  }
0x1e3e   : > { %v11352_v11 = vpop.f32.mrf.mxu1 }
0x1e40   : > { %v9348_v23 = vpop.f32.mrf.mxu1 }
0x1e41   : > { %v9353_v5 = vadd.f32 %v9348_v23, %v9230_v38 }
0x1e42   : > { %v11353_v0 = vpop.f32.mrf.mxu1 }
0x1e43   : > { %v9354_v46 = vpack.c.bf16 %v9353_v5, %v9352_v36 }
0x1e45   : > { %11371 = vmatmul.mubr.bf16.vlgmr.msra.gmra.mxu0 %v9354_v46 }
0x1e46   : > { %11410 = vmatprep.mubr.msk.bf16.mxu0 %vm12047_vm0, %v12046_v52  ;;  %11395 = vmatpush3.bf16.msra.mxu0 %v11661_v55 }
0x1e47   : > { %11396 = vmatprep.subr.bf16.mxu0 %v12046_v52 }
0x1e4a   : > { %11397 = vmatpush3.bf16.msra.mxu0 %v11662_v18 }
0x1e4b   : > { %11398 = vmatprep.subr.bf16.mxu0 %v12046_v52 }
0x1e4e   : > { %11399 = vmatpush3.bf16.msra.mxu0 %v11663_v19 }
0x1e4f   : > { %11400 = vmatprep.subr.bf16.mxu0 %v12046_v52 }
0x1e52   : > { %11401 = vmatpush3.bf16.msra.mxu0 %v11664_v3 }
0x1e53   : > { %11402 = vmatprep.subr.bf16.mxu0 %v12046_v52 }
0x1e56   : > { %11403 = vmatpush3.bf16.msra.mxu0 %v11665_v47 }
0x1e57   : > { %11404 = vmatprep.subr.bf16.mxu0 %v12046_v52 }
0x1e5a   : > { %11405 = vmatpush3.bf16.msra.mxu0 %v11666_v53 }
0x1e5b   : > { %11406 = vmatprep.subr.bf16.mxu0 %v12046_v52 }
0x1e5e   : > { %11407 = vmatpush3.bf16.msra.mxu0 %v11667_v34 }
0x1e5f   : > { %11408 = vmatprep.subr.bf16.mxu0 %v12046_v52 }
0x1e62   : > { %11409 = vmatpush3.bf16.msra.mxu0 %v11668_v32 }
0x1f05   : > { %v9453_v14 = vpop.f32.mrf.mxu0 }
0x1f06   : > { %v9460_v4 = vadd.f32 %v9453_v14, %v17053_v13  ;;  %v11670_v14 = vld [vmem:[%s12251_s20 + $0x30] sm:$0xff]  }
0x1f07   : > { %v11372_v31 = vpop.f32.mrf.mxu0 }
0x1f08   : > { %v17213_v40 = vadd.f32 %v10701_v60, %v9460_v4  ;;  %v11672_v4 = vld [vmem:[%s12251_s20 + $0x20] sm:$0xff]   ;;  %v11673_v31 = vld [vmem:[%s12251_s20 + $0x18] sm:$0xff]  }
0x1f09   : > { %v9456_v12 = vpop.f32.mrf.mxu0 }
0x1f0a   : > { %v9461_v37 = vadd.f32 %v9456_v12, %v17056_v22  ;;  %9471 = vadd.xlane.f32.xlu1 %v17213_v40  ;;  %v11674_v12 = vld [vmem:[%s12251_s20 + $0x10] sm:$0xff]  }
0x1f0b   : > { %v11373_v35 = vpop.f32.mrf.mxu0 }
0x1f0c   : > { %v17217_v26 = vadd.f32 %v10701_v60, %v9461_v37  ;;  %v11671_v60 = vld [vmem:[%s12251_s20 + $0x28] sm:$0xff]   ;;  %v11676_v35 = vld [vmem:[%s12251_s20] sm:$0xff]  }
0x1f0d   : > { %v11675_v37 = vld [vmem:[%s12251_s20 + $0x8] sm:$0xff]  }
0x1f0e   : > { %9473 = vadd.xlane.f32.xlu0 %v17217_v26 }
0x1f93   : > { %v9472_v13 = vpop.xlane.xlu1 %9471 }
0x1f94   : > { %v9475_v20 = vmul.f32 0.015625, %v9472_v13 }
0x1f96   : > { %v9477_v61 = vsub.f32 %v17213_v40, %v9475_v20 }
0x1f97   : > { %v9474_v6 = vpop.xlane.xlu0 %9473 }
0x1f98   : > { %v9479_v22 = vsel %vm8667_vm1, %v9477_v61, 0.0  ;;  %v9476_v51 = vmul.f32 0.015625, %v9474_v6  ;;  %v10721_v61 = vld [vmem:[%s12246_s12] ss:$0 sm:$0xff] }
0x1f99   : > { %v9481_v42 = vmul.f32 %v9479_v22, %v9479_v22 }
0x1f9a   : > { %v9478_v39 = vsub.f32 %v17217_v26, %v9476_v51 }
0x1f9b   : > { %9483 = vadd.xlane.f32.xlu1 %v9481_v42 }
0x1f9c   : > { %v9480_v21 = vsel %vm8667_vm1, %v9478_v39, 0.0 }
0x1f9d   : > { %v9482_v15 = vmul.f32 %v9480_v21, %v9480_v21 }
0x1f9f   : > { %9485 = vadd.xlane.f32.xlu0 %v9482_v15 }
0x2024   : > { %v9484_v8 = vpop.xlane.xlu1 %9483 }
0x2025   : > { %v9487_v57 = vmul.f32 0.015625, %v9484_v8 }
0x2027   : > { %v9489_v44 = vadd.f32 1e-05, %v9487_v57 }
0x2028   : > { %v9486_v45 = vpop.xlane.xlu0 %9485 }
0x2029   : > { %11945 = vrsqrt.f32 %v9489_v44  ;;  %v9488_v25 = vmul.f32 0.015625, %v9486_v45 }
0x202b   : > { %v9490_v58 = vadd.f32 1e-05, %v9488_v25 }
0x202d   : > { %11947 = vrsqrt.f32 %v9490_v58 }
0x2036   : > { %v11946_v24 = vpop.eup %11945 }
0x2037   : > { %v9493_v43 = vmul.f32 %v11946_v24, %v9479_v22 }
0x2039   : > { %v9502_v41 = vmul.f32 %v10702_v59, %v9493_v43 }
0x203a   : > { %v11948_v33 = vpop.eup %11947 }
0x203b   : > { %v9494_v17 = vmul.f32 %v11948_v33, %v9480_v21  ;;  %v9511_v9 = vadd.f32 %v10703_v27, %v9502_v41 }
0x203d   : > { %v9503_v28 = vmul.f32 %v10702_v59, %v9494_v17 }
0x203f   : > { %v9512_v50 = vadd.f32 %v10703_v27, %v9503_v28 }
0x2041   : > { %v9513_v48 = vpack.c.bf16 %v9512_v50, %v9511_v9 }
0x2043   : > { %11391 = vmatmul.mubr.bf16.vlgmr.msra.gmra.mxu1 %v9513_v48 }
0x2044   : > { %11430 = vmatprep.mubr.msk.bf16.mxu1 %vm12047_vm0, %v12046_v52  ;;  %11415 = vmatpush3.bf16.msra.mxu1 %v11669_v54 }
0x2045   : > { %11416 = vmatprep.subr.bf16.mxu1 %v12046_v52 }
0x2048   : > { %11417 = vmatpush3.bf16.msra.mxu1 %v11670_v14 }
0x2049   : > { %11418 = vmatprep.subr.bf16.mxu1 %v12046_v52 }
0x204c   : > { %11419 = vmatpush3.bf16.msra.mxu1 %v11671_v60 }
0x204d   : > { %11420 = vmatprep.subr.bf16.mxu1 %v12046_v52 }
0x2050   : > { %11421 = vmatpush3.bf16.msra.mxu1 %v11672_v4 }
0x2051   : > { %11422 = vmatprep.subr.bf16.mxu1 %v12046_v52 }
0x2054   : > { %11423 = vmatpush3.bf16.msra.mxu1 %v11673_v31 }
0x2055   : > { %11424 = vmatprep.subr.bf16.mxu1 %v12046_v52 }
0x2058   : > { %11425 = vmatpush3.bf16.msra.mxu1 %v11674_v12 }
0x2059   : > { %11426 = vmatprep.subr.bf16.mxu1 %v12046_v52 }
0x205c   : > { %11427 = vmatpush3.bf16.msra.mxu1 %v11675_v37 }
0x205d   : > { %11428 = vmatprep.subr.bf16.mxu1 %v12046_v52 }
0x2060   : > { %11429 = vmatpush3.bf16.msra.mxu1 %v11676_v35 }
0x2103   : > { %v9619_v63 = vpop.f32.mrf.mxu1 }
0x2104   : > { %v9620_v16 = vadd.f32 %v10704_v30, %v9619_v63 }
0x2105   : > { %v11392_v11 = vpop.f32.mrf.mxu1 }
0x2106   : > { %v9626_v5 = vmax.f32 %v9620_v16, 0.0 }
0x2107   : > { %v9622_v38 = vpop.f32.mrf.mxu1 }
0x2108   : > { %v9623_v23 = vadd.f32 %v10704_v30, %v9622_v38 }
0x2109   : > { %v11393_v36 = vpop.f32.mrf.mxu1 }
0x210a   : > { %v9627_v0 = vmax.f32 %v9623_v23, 0.0 }
0x210c   : > { %v9628_v46 = vpack.c.bf16 %v9627_v0, %v9626_v5 }
0x210e   : > { %11411 = vmatmul.mubr.bf16.vlgmr.msra.gmra.mxu0 %v9628_v46 }
0x21ce   : > { %v9727_v1 = vpop.f32.mrf.mxu0 }
0x21cf   : > { %v9734_v20 = vadd.f32 %v9727_v1, %v17213_v40  ;;  %v10722_v40 = vld [vmem:[%s12256_s27] ss:$0 sm:$0xff] }
0x21d0   : > { %v11412_v13 = vpop.f32.mrf.mxu0 }
0x21d1   : > { %v9743_v42 = vadd.f32 %v10721_v61, %v9734_v20 }
0x21d2   : > { %v9730_v6 = vpop.f32.mrf.mxu0 }
0x21d3   : > { %v9735_v22 = vadd.f32 %v9730_v6, %v17217_v26 }
0x21d4   : > { %v11413_v51 = vpop.f32.mrf.mxu0 }
0x21d5   : > { %v9744_v39 = vadd.f32 %v10721_v61, %v9735_v22 }
0x21d7   : > { %v9745_v21 = vadd.f32 %v9744_v39, %v9743_v42 }
0x21d9   : > { %v9746_v15 = vrot.slane %v9745_v21, 4 }
0x21db   : > { %v9747_v2 = vadd.f32 %v9746_v15, %v9745_v21 }
0x21dd   : > { %v9748_v49 = vrot.slane %v9747_v2, 2 }
0x21df   : > { %v9749_v52 = vadd.f32 %v9748_v49, %v9747_v2 }
0x21e1   : > { %v9750_v29 = vrot.slane %v9749_v52, 1 }
0x21e3   : > { %v9751_v10 = vadd.f32 %v9750_v29, %v9749_v52 }
0x21e5   : > { %v9752_v56 = vmul.f32 0.0625, %v9751_v10 }
0x21e7   : > { %v9753_v62 = vpack.c.bf16 %v9752_v56, %v9752_v56 }
0x21e9   : > { %11431 = vmatmul.mubr.bf16.vlgmr.msra.gmra.mxu1 %v9753_v62 }
0x22a9   : > { %v9859_v7 = vpop.f32.mrf.mxu1 }
0x22aa   : > { %v9860_v55 = vadd.f32 %v10722_v40, %v9859_v7 }
0x22ab   : > { %v11432_v26 = vpop.f32.mrf.mxu1 }
0x22ac   : > { %9865 = vst [vmem:[%s1236_s11] sm:$0xff] %v9860_v55 }
0x22ad   : > { %v9862_v18 = vpop.f32.mrf.mxu1 }
0x22af   : > { %v11433_v19 = vpop.f32.mrf.mxu1 }
0x22b0 PF: > { %s93_s7 = sadd.s32 1, %s11987_s7  }
0x22b1   : > { %p90_p4 = scmp.ge.s32.totalorder %s93_s7, 4  }
0x22b3   :  { %92 = sbr.rel (!%p90_p4) target bundleno = 79 (0x4f), region = 279 }

</bundles_post_ra>
